<compile_context>
chip_gen: v6e
topology: v6e:2x2x1
jax: 0.10.0
libtpu: 0.0.40
codegen_flags: <defaults>
</compile_context>

<pallas_src>
import functools
import math

import jax
import jax.numpy as jnp
from jax.experimental import pallas as pl
from jax.experimental.pallas import tpu as pltpu

# ----------------------------- configuration --------------------------------
DIM = 32                      # transformer width  (module default 512, shrunk)
DEPTH = 2                     # decoder depth      (module default 12)
HEADS = 4                     # attention heads    (module default 8)
DIM_HEAD = 16                 # per-head dim
INNER = HEADS * DIM_HEAD      # 64
FF_MULT = 4
FF_DIM = DIM * FF_MULT        # 128
ALIBI_HEADS = HEADS // 2      # alibi_num_heads = heads // 2
BERT_HIDDEN = 48              # text-encoder hidden size (!= DIM -> Linear map)
VQ_VOCAB = 50                 # tokenizer.num_tokens
VOCAB_PAD = 128               # lane-dense padded vocab for the final projection
TEXT_VOCAB = 30
MAX_SEQ_LEN = 64
SOS_ID = 1                    # special_token_mapping['<SOS>']
LN_EPS = 1e-5
ATTN_SCALE = DIM_HEAD ** -0.5
NEG_INF = -1e30


# ----------------------------- ALiBi slopes ----------------------------------
def _get_alibi_slopes(n):
    def pow2_slopes(m):
        start = 2 ** (-(2 ** -(math.log2(m) - 3)))
        return [start * (start ** i) for i in range(m)]
    if math.log2(n).is_integer():
        return pow2_slopes(n)
    closest = 2 ** math.floor(math.log2(n))
    return (pow2_slopes(closest)
            + _get_alibi_slopes(2 * closest)[0::2][: n - closest])


# first ALIBI_HEADS heads get alibi slopes, rest are zero (x-transformers style)
ALIBI_SLOPES = tuple(_get_alibi_slopes(ALIBI_HEADS) + [0.0] * (HEADS - ALIBI_HEADS))


# ----------------------------- helpers ---------------------------------------
def _layernorm(x, g, b):
    mu = jnp.mean(x, axis=-1, keepdims=True)
    xc = x - mu
    var = jnp.mean(xc * xc, axis=-1, keepdims=True)
    return xc * jax.lax.rsqrt(var + LN_EPS) * g + b


def _mm(a, w_bf16):
    # bf16 MXU operands, f32 accumulation
    return jnp.dot(a.astype(jnp.bfloat16), w_bf16,
                   preferred_element_type=jnp.float32)


# ----------------------------- fully fused kernel ----------------------------
def _fused_kernel(base_x_ref, text_h_ref, text_mask_ref,
                  map_w_ref, map_b_ref,
                  ln1_g_ref, ln1_b_ref, wq_ref, wk_ref, wv_ref, wo_ref,
                  ln2_g_ref, ln2_b_ref, w1_ref, b1_ref, w2_ref, b2_ref,
                  lnf_g_ref, lnf_b_ref, head_w_ref, head_b_ref,
                  out_ref, xbuf_ref, *, n_text, n_keep, slopes):
    B, S, D = base_x_ref.shape
    L = wq_ref.shape[0]
    H = wq_ref.shape[1]

    # ---- activations resident in VMEM for the whole forward pass ----
    xbuf_ref[...] = base_x_ref[...]

    # ---- prologue: mapping_layer(text_hidden) * attn_mask, written in place --
    for b in range(B):
        t_emb = _mm(text_h_ref[b], map_w_ref[...]) + map_b_ref[...]
        xbuf_ref[b, 1:1 + n_text, :] = t_emb * text_mask_ref[b]

    # ---- shared causal mask + ALiBi distance (built once, no HBM bias) ----
    row = jax.lax.broadcasted_iota(jnp.int32, (S, S), 0)
    col = jax.lax.broadcasted_iota(jnp.int32, (S, S), 1)
    causal = col <= row
    dist = -jnp.abs(row - col).astype(jnp.float32)

    for b in range(B):
        x = xbuf_ref[b]                                       # (S, D) f32
        for l in range(L):
            # ---- LN1 + per-head attention (weights sliced per head: no value
            #      lane-slicing, no head-output concatenate) ----
            h1 = _layernorm(x, ln1_g_ref[l], ln1_b_ref[l]).astype(jnp.bfloat16)
            att = jnp.zeros((S, D), jnp.float32)
            for hd in range(H):
                qh = jnp.dot(h1, wq_ref[l, hd], preferred_element_type=jnp.float32)
                kh = jnp.dot(h1, wk_ref[l, hd], preferred_element_type=jnp.float32)
                vh = jnp.dot(h1, wv_ref[l, hd], preferred_element_type=jnp.float32)
                # q @ k^T without an explicit transpose
                s = jax.lax.dot_general(
                    qh.astype(jnp.bfloat16), kh.astype(jnp.bfloat16),
                    (((1,), (1,)), ((), ())),
                    preferred_element_type=jnp.float32) * ATTN_SCALE
                if slopes[hd] != 0.0:                          # skip zero-slope heads
                    s = s + slopes[hd] * dist
                s = jnp.where(causal, s, NEG_INF)
                m = jnp.max(s, axis=-1, keepdims=True)
                p = jnp.exp(s - m)
                p = p * pl.reciprocal(jnp.sum(p, axis=-1, keepdims=True), approx=True)
                ho = jnp.dot(p.astype(jnp.bfloat16), vh.astype(jnp.bfloat16),
                             preferred_element_type=jnp.float32)
                att = att + _mm(ho, wo_ref[l, hd])             # Σ_h (P V) Wo_h
            x = x + att                                        # residual

            # ---- LN2 + FF1 + GELU + FF2 + residual ----
            h2 = _layernorm(x, ln2_g_ref[l], ln2_b_ref[l])
            ff = _mm(h2, w1_ref[l]) + b1_ref[l]
            # TODO(synk): PyTorch nn.GELU default is exact erf-GELU; tanh
            # approximation used here for a clean EUP lowering.
            ff = jax.nn.gelu(ff, approximate=True)
            x = x + _mm(ff, w2_ref[l]) + b2_ref[l]
        xbuf_ref[b] = x

        # ---- epilogue: final LN + vocab head only on the kept rows ----
        xk = xbuf_ref[b, 1 + n_text:1 + n_text + n_keep, :]
        hN = _layernorm(xk, lnf_g_ref[...], lnf_b_ref[...])
        out_ref[b] = _mm(hN, head_w_ref[...]) + head_b_ref[...]


# ----------------------------- parameters ------------------------------------
def init_params(key):
    keys = iter(jax.random.split(key, 16))

    def w(shape, scale=0.02, dtype=jnp.bfloat16):
        return (jax.random.normal(next(keys), shape, jnp.float32) * scale).astype(dtype)

    final_w = jax.random.normal(next(keys), (DIM, VQ_VOCAB), jnp.float32) * 0.02
    final_w_pad = (jnp.zeros((DIM, VOCAB_PAD), jnp.float32)
                   .at[:, :VQ_VOCAB].set(final_w)).astype(jnp.bfloat16)

    return {
        # TODO(synk): pretrained BERT text encoder replaced by a deterministic
        # synthetic embedding table producing `last_hidden_state`.
        "text_table": w((TEXT_VOCAB, BERT_HIDDEN), dtype=jnp.float32),
        "vq_table":   w((VQ_VOCAB, DIM), dtype=jnp.float32),      # TokenEmbedding
        "map_w":      w((BERT_HIDDEN, DIM)),                      # mapping_layer
        "map_b":      jnp.zeros((1, DIM), jnp.float32),
        # per-layer weights stacked along a leading layer axis (fused kernel)
        "ln1_g": jnp.ones((DEPTH, 1, DIM), jnp.float32),
        "ln1_b": jnp.zeros((DEPTH, 1, DIM), jnp.float32),
        # x-transformers attention projections are bias-free
        "wq": w((DEPTH, HEADS, DIM, DIM_HEAD)),
        "wk": w((DEPTH, HEADS, DIM, DIM_HEAD)),
        "wv": w((DEPTH, HEADS, DIM, DIM_HEAD)),
        "wo": w((DEPTH, HEADS, DIM_HEAD, DIM)),
        "ln2_g": jnp.ones((DEPTH, 1, DIM), jnp.float32),
        "ln2_b": jnp.zeros((DEPTH, 1, DIM), jnp.float32),
        "w_ff1": w((DEPTH, DIM, FF_DIM)),
        "b_ff1": jnp.zeros((DEPTH, 1, FF_DIM), jnp.float32),
        "w_ff2": w((DEPTH, FF_DIM, DIM)),
        "b_ff2": jnp.zeros((DEPTH, 1, DIM), jnp.float32),
        "lnf_g": jnp.ones((1, DIM), jnp.float32),                 # final decoder LN
        "lnf_b": jnp.zeros((1, DIM), jnp.float32),
        "final_w": final_w_pad,                                   # (DIM,128) bf16 zero-padded
        "final_b": jnp.zeros((1, VOCAB_PAD), jnp.float32),
    }


# ----------------------------- forward pass ----------------------------------
def vq_svg_stage2_forward(params, text_tokens, text_attn_mask, vq_tokens):
    B, T = text_tokens.shape
    V = vq_tokens.shape[1]
    S = 1 + T + V
    # TODO(synk): reference warns+truncates when 1+T+V > max_seq_len; the fused
    # kernel assumes S <= MAX_SEQ_LEN (always true for the shapes used here).
    S_pad = ((S + 7) // 8) * 8   # sublane-aligned; pad row is causally inert & discarded

    # ---- plain-JAX glue: embedding gathers + sequence assembly ----
    text_hidden = jnp.take(params["text_table"], text_tokens, axis=0)     # (B,T,Hb)
    text_mask = jnp.broadcast_to(
        text_attn_mask.astype(jnp.float32)[..., None], (B, T, DIM))
    vq_emb = jnp.take(params["vq_table"], vq_tokens, axis=0)              # (B,V,D)
    sos_emb = jnp.broadcast_to(params["vq_table"][SOS_ID][None, None, :], (B, 1, DIM))
    base_x = jnp.concatenate(
        [sos_emb,
         jnp.zeros((B, T, DIM), jnp.float32),      # text rows filled in-kernel
         vq_emb,
         jnp.zeros((B, S_pad - S, DIM), jnp.float32)], axis=1)            # (B,S_pad,D)
    # use_alibi_positional_bias=True -> no absolute positional embedding

    kernel = functools.partial(_fused_kernel, n_text=T, n_keep=V,
                               slopes=ALIBI_SLOPES)
    # Single grid-less pallas_call: full arrays land in VMEM (default full-array
    # BlockSpecs), activation kept in a VMEM scratch across all layers.
    logits_pad = pl.pallas_call(
        kernel,
        out_shape=jax.ShapeDtypeStruct((B, V, VOCAB_PAD), jnp.float32),
        scratch_shapes=[pltpu.VMEM((B, S_pad, DIM), jnp.float32)],
    )(base_x, text_hidden, text_mask,
      params["map_w"], params["map_b"],
      params["ln1_g"], params["ln1_b"],
      params["wq"], params["wk"], params["wv"], params["wo"],
      params["ln2_g"], params["ln2_b"],
      params["w_ff1"], params["b_ff1"], params["w_ff2"], params["b_ff2"],
      params["lnf_g"], params["lnf_b"], params["final_w"], params["final_b"])

    return logits_pad[..., :VQ_VOCAB]                                     # (B,V,vocab)


# ----------------------------- main -------------------------------------------
if __name__ == "__main__":
    key = jax.random.PRNGKey(0)
    k_p, k_txt, k_vq = jax.random.split(key, 3)

    params = init_params(k_p)

    B, T, V = 2, 6, 8
    text_tokens = jax.random.randint(k_txt, (B, T), 0, TEXT_VOCAB, dtype=jnp.int32)
    # mask out the last two text tokens of the second example
    text_attn_mask = jnp.array([[1, 1, 1, 1, 1, 1],
                                [1, 1, 1, 1, 0, 0]], dtype=jnp.int32)
    vq_tokens = jax.random.randint(k_vq, (B, V), 4, VQ_VOCAB, dtype=jnp.int32)

    fwd = jax.jit(vq_svg_stage2_forward)
    out = jax.block_until_ready(fwd(params, text_tokens, text_attn_mask, vq_tokens))

    assert out.shape == (B, V, VQ_VOCAB), out.shape
    assert bool(jnp.all(jnp.isfinite(out)))
    print("KERNEL_OK")
</pallas_src>

<mosaic_0001>
module attributes {stable_mosaic.version = 11 : i64} {
  func.func @_fused_kernel(%arg0: memref<2x16x32xf32, #tpu.memory_space<vmem>>, %arg1: memref<2x6x48xf32, #tpu.memory_space<vmem>>, %arg2: memref<2x6x32xf32, #tpu.memory_space<vmem>>, %arg3: memref<48x32xbf16, #tpu.memory_space<vmem>>, %arg4: memref<1x32xf32, #tpu.memory_space<vmem>>, %arg5: memref<2x1x32xf32, #tpu.memory_space<vmem>>, %arg6: memref<2x1x32xf32, #tpu.memory_space<vmem>>, %arg7: memref<2x4x32x16xbf16, #tpu.memory_space<vmem>>, %arg8: memref<2x4x32x16xbf16, #tpu.memory_space<vmem>>, %arg9: memref<2x4x32x16xbf16, #tpu.memory_space<vmem>>, %arg10: memref<2x4x16x32xbf16, #tpu.memory_space<vmem>>, %arg11: memref<2x1x32xf32, #tpu.memory_space<vmem>>, %arg12: memref<2x1x32xf32, #tpu.memory_space<vmem>>, %arg13: memref<2x32x128xbf16, #tpu.memory_space<vmem>>, %arg14: memref<2x1x128xf32, #tpu.memory_space<vmem>>, %arg15: memref<2x128x32xbf16, #tpu.memory_space<vmem>>, %arg16: memref<2x1x32xf32, #tpu.memory_space<vmem>>, %arg17: memref<1x32xf32, #tpu.memory_space<vmem>>, %arg18: memref<1x32xf32, #tpu.memory_space<vmem>>, %arg19: memref<32x128xbf16, #tpu.memory_space<vmem>>, %arg20: memref<1x128xf32, #tpu.memory_space<vmem>>, %arg21: memref<2x8x128xf32, #tpu.memory_space<vmem>>, %arg22: memref<2x16x32xf32, #tpu.memory_space<vmem>>) attributes {dimension_semantics = [], scalar_prefetch = 0 : i64, scratch_operands = 1 : i64, tpu.core_type = #tpu.core_type<tc>} {
    %c0 = arith.constant 0 : index
    %c0_0 = arith.constant 0 : index
    %c0_1 = arith.constant 0 : index
    %0 = vector.load %arg0[%c0, %c0_0, %c0_1] : memref<2x16x32xf32, #tpu.memory_space<vmem>>, vector<2x16x32xf32>
    %c0_2 = arith.constant 0 : index
    %c0_3 = arith.constant 0 : index
    %c0_4 = arith.constant 0 : index
    %1 = vector.load %arg22[%c0_2, %c0_3, %c0_4] : memref<2x16x32xf32, #tpu.memory_space<vmem>>, vector<2x16x32xf32>
    tpu.vector_store %arg22[%c0_2, %c0_3, %c0_4], %0 {strides = array<i32>} : memref<2x16x32xf32, #tpu.memory_space<vmem>>, vector<2x16x32xf32>,
    %c0_5 = arith.constant 0 : index
    %c0_6 = arith.constant 0 : index
    %c0_7 = arith.constant 0 : index
    %2 = vector.load %arg1[%c0_5, %c0_6, %c0_7] : memref<2x6x48xf32, #tpu.memory_space<vmem>>, vector<1x6x48xf32>
    %3 = vector.shape_cast %2 : vector<1x6x48xf32> to vector<6x48xf32>
    %c0_8 = arith.constant 0 : index
    %c0_9 = arith.constant 0 : index
    %4 = vector.load %arg3[%c0_8, %c0_9] : memref<48x32xbf16, #tpu.memory_space<vmem>>, vector<48x32xbf16>
    %5 = arith.truncf %3 : vector<6x48xf32> to vector<6x48xbf16>
    %cst = arith.constant dense<0.000000e+00> : vector<6x32xf32>
    %6 = tpu.matmul %5, %4, %cst {dimension_numbers = #tpu.dot_dimension_numbers<[1], [0], [0], [1], [0, 0, 1, 1], [], []>} : vector<6x48xbf16>, vector<48x32xbf16>, vector<6x32xf32> -> vector<6x32xf32>
    %c0_10 = arith.constant 0 : index
    %c0_11 = arith.constant 0 : index
    %7 = vector.load %arg4[%c0_10, %c0_11] : memref<1x32xf32, #tpu.memory_space<vmem>>, vector<1x32xf32>
    %8 = vector.broadcast %7 : vector<1x32xf32> to vector<6x32xf32>
    %9 = arith.addf %6, %8 : vector<6x32xf32>
    %c0_12 = arith.constant 0 : index
    %c0_13 = arith.constant 0 : index
    %c0_14 = arith.constant 0 : index
    %10 = vector.load %arg2[%c0_12, %c0_13, %c0_14] : memref<2x6x32xf32, #tpu.memory_space<vmem>>, vector<1x6x32xf32>
    %11 = vector.shape_cast %10 : vector<1x6x32xf32> to vector<6x32xf32>
    %12 = arith.mulf %9, %11 : vector<6x32xf32>
    %c0_15 = arith.constant 0 : index
    %c1 = arith.constant 1 : index
    %c0_16 = arith.constant 0 : index
    %13 = vector.load %arg22[%c0_15, %c1, %c0_16] : memref<2x16x32xf32, #tpu.memory_space<vmem>>, vector<1x6x32xf32>
    %14 = vector.shape_cast %13 : vector<1x6x32xf32> to vector<6x32xf32>
    %15 = vector.shape_cast %12 : vector<6x32xf32> to vector<1x6x32xf32>
    tpu.vector_store %arg22[%c0_15, %c1, %c0_16], %15 {strides = array<i32>} : memref<2x16x32xf32, #tpu.memory_space<vmem>>, vector<1x6x32xf32>,
    %c1_17 = arith.constant 1 : index
    %c0_18 = arith.constant 0 : index
    %c0_19 = arith.constant 0 : index
    %16 = vector.load %arg1[%c1_17, %c0_18, %c0_19] : memref<2x6x48xf32, #tpu.memory_space<vmem>>, vector<1x6x48xf32>
    %17 = vector.shape_cast %16 : vector<1x6x48xf32> to vector<6x48xf32>
    %c0_20 = arith.constant 0 : index
    %c0_21 = arith.constant 0 : index
    %18 = vector.load %arg3[%c0_20, %c0_21] : memref<48x32xbf16, #tpu.memory_space<vmem>>, vector<48x32xbf16>
    %19 = arith.truncf %17 : vector<6x48xf32> to vector<6x48xbf16>
    %cst_22 = arith.constant dense<0.000000e+00> : vector<6x32xf32>
    %20 = tpu.matmul %19, %18, %cst_22 {dimension_numbers = #tpu.dot_dimension_numbers<[1], [0], [0], [1], [0, 0, 1, 1], [], []>} : vector<6x48xbf16>, vector<48x32xbf16>, vector<6x32xf32> -> vector<6x32xf32>
    %c0_23 = arith.constant 0 : index
    %c0_24 = arith.constant 0 : index
    %21 = vector.load %arg4[%c0_23, %c0_24] : memref<1x32xf32, #tpu.memory_space<vmem>>, vector<1x32xf32>
    %22 = vector.broadcast %21 : vector<1x32xf32> to vector<6x32xf32>
    %23 = arith.addf %20, %22 : vector<6x32xf32>
    %c1_25 = arith.constant 1 : index
    %c0_26 = arith.constant 0 : index
    %c0_27 = arith.constant 0 : index
    %24 = vector.load %arg2[%c1_25, %c0_26, %c0_27] : memref<2x6x32xf32, #tpu.memory_space<vmem>>, vector<1x6x32xf32>
    %25 = vector.shape_cast %24 : vector<1x6x32xf32> to vector<6x32xf32>
    %26 = arith.mulf %23, %25 : vector<6x32xf32>
    %c1_28 = arith.constant 1 : index
    %c1_29 = arith.constant 1 : index
    %c0_30 = arith.constant 0 : index
    %27 = vector.load %arg22[%c1_28, %c1_29, %c0_30] : memref<2x16x32xf32, #tpu.memory_space<vmem>>, vector<1x6x32xf32>
    %28 = vector.shape_cast %27 : vector<1x6x32xf32> to vector<6x32xf32>
    %29 = vector.shape_cast %26 : vector<6x32xf32> to vector<1x6x32xf32>
    tpu.vector_store %arg22[%c1_28, %c1_29, %c0_30], %29 {strides = array<i32>} : memref<2x16x32xf32, #tpu.memory_space<vmem>>, vector<1x6x32xf32>,
    %30 = tpu.iota {dimensions = array<i32: 0>} : vector<16x16xi32>
    %31 = tpu.iota {dimensions = array<i32: 1>} : vector<16x16xi32>
    %32 = arith.cmpi sle, %31, %30 : vector<16x16xi32>
    %33 = arith.subi %30, %31 : vector<16x16xi32>
    %34 = math.absi %33 : vector<16x16xi32>
    %35 = arith.sitofp %34 : vector<16x16xi32> to vector<16x16xf32>
    %cst_31 = arith.constant 0.000000e+00 : f32
    %36 = vector.broadcast %cst_31 : f32 to vector<16x16xf32>
    %37 = arith.subf %36, %35 : vector<16x16xf32>
    %c0_32 = arith.constant 0 : index
    %c0_33 = arith.constant 0 : index
    %c0_34 = arith.constant 0 : index
    %38 = vector.load %arg22[%c0_32, %c0_33, %c0_34] : memref<2x16x32xf32, #tpu.memory_space<vmem>>, vector<1x16x32xf32>
    %39 = vector.shape_cast %38 : vector<1x16x32xf32> to vector<16x32xf32>
    %c0_35 = arith.constant 0 : index
    %c0_36 = arith.constant 0 : index
    %c0_37 = arith.constant 0 : index
    %40 = vector.load %arg5[%c0_35, %c0_36, %c0_37] : memref<2x1x32xf32, #tpu.memory_space<vmem>>, vector<1x1x32xf32>
    %41 = vector.shape_cast %40 : vector<1x1x32xf32> to vector<1x32xf32>
    %c0_38 = arith.constant 0 : index
    %c0_39 = arith.constant 0 : index
    %c0_40 = arith.constant 0 : index
    %42 = vector.load %arg6[%c0_38, %c0_39, %c0_40] : memref<2x1x32xf32, #tpu.memory_space<vmem>>, vector<1x1x32xf32>
    %43 = vector.shape_cast %42 : vector<1x1x32xf32> to vector<1x32xf32>
    %cst_41 = arith.constant dense<0.000000e+00> : vector<16xf32>
    %44 = vector.multi_reduction <add>, %39, %cst_41 [1] : vector<16x32xf32> to vector<16xf32>
    %45 = vector.shape_cast %44 : vector<16xf32> to vector<16x1xf32>
    %cst_42 = arith.constant 3.200000e+01 : f32
    %46 = vector.broadcast %cst_42 : f32 to vector<16x1xf32>
    %47 = arith.divf %45, %46 : vector<16x1xf32>
    %48 = vector.broadcast %47 : vector<16x1xf32> to vector<16x32xf32>
    %49 = arith.subf %39, %48 : vector<16x32xf32>
    %50 = arith.mulf %49, %49 : vector<16x32xf32>
    %cst_43 = arith.constant dense<0.000000e+00> : vector<16xf32>
    %51 = vector.multi_reduction <add>, %50, %cst_43 [1] : vector<16x32xf32> to vector<16xf32>
    %52 = vector.shape_cast %51 : vector<16xf32> to vector<16x1xf32>
    %cst_44 = arith.constant 3.200000e+01 : f32
    %53 = vector.broadcast %cst_44 : f32 to vector<16x1xf32>
    %54 = arith.divf %52, %53 : vector<16x1xf32>
    %cst_45 = arith.constant 9.99999974E-6 : f32
    %55 = vector.broadcast %cst_45 : f32 to vector<16x1xf32>
    %56 = arith.addf %54, %55 : vector<16x1xf32>
    %57 = math.rsqrt %56 : vector<16x1xf32>
    %58 = vector.broadcast %57 : vector<16x1xf32> to vector<16x32xf32>
    %59 = arith.mulf %49, %58 : vector<16x32xf32>
    %60 = vector.broadcast %41 : vector<1x32xf32> to vector<16x32xf32>
    %61 = arith.mulf %59, %60 : vector<16x32xf32>
    %62 = vector.broadcast %43 : vector<1x32xf32> to vector<16x32xf32>
    %63 = arith.addf %61, %62 : vector<16x32xf32>
    %64 = arith.truncf %63 : vector<16x32xf32> to vector<16x32xbf16>
    %cst_46 = arith.constant 0.000000e+00 : f32
    %65 = vector.broadcast %cst_46 : f32 to vector<16x32xf32>
    %c0_47 = arith.constant 0 : index
    %c0_48 = arith.constant 0 : index
    %c0_49 = arith.constant 0 : index
    %c0_50 = arith.constant 0 : index
    %66 = vector.load %arg7[%c0_47, %c0_48, %c0_49, %c0_50] : memref<2x4x32x16xbf16, #tpu.memory_space<vmem>>, vector<1x1x32x16xbf16>
    %67 = vector.shape_cast %66 : vector<1x1x32x16xbf16> to vector<32x16xbf16>
    %cst_51 = arith.constant dense<0.000000e+00> : vector<16x16xf32>
    %68 = tpu.matmul %64, %67, %cst_51 {dimension_numbers = #tpu.dot_dimension_numbers<[1], [0], [0], [1], [0, 0, 1, 1], [], []>} : vector<16x32xbf16>, vector<32x16xbf16>, vector<16x16xf32> -> vector<16x16xf32>
    %c0_52 = arith.constant 0 : index
    %c0_53 = arith.constant 0 : index
    %c0_54 = arith.constant 0 : index
    %c0_55 = arith.constant 0 : index
    %69 = vector.load %arg8[%c0_52, %c0_53, %c0_54, %c0_55] : memref<2x4x32x16xbf16, #tpu.memory_space<vmem>>, vector<1x1x32x16xbf16>
    %70 = vector.shape_cast %69 : vector<1x1x32x16xbf16> to vector<32x16xbf16>
    %cst_56 = arith.constant dense<0.000000e+00> : vector<16x16xf32>
    %71 = tpu.matmul %64, %70, %cst_56 {dimension_numbers = #tpu.dot_dimension_numbers<[1], [0], [0], [1], [0, 0, 1, 1], [], []>} : vector<16x32xbf16>, vector<32x16xbf16>, vector<16x16xf32> -> vector<16x16xf32>
    %c0_57 = arith.constant 0 : index
    %c0_58 = arith.constant 0 : index
    %c0_59 = arith.constant 0 : index
    %c0_60 = arith.constant 0 : index
    %72 = vector.load %arg9[%c0_57, %c0_58, %c0_59, %c0_60] : memref<2x4x32x16xbf16, #tpu.memory_space<vmem>>, vector<1x1x32x16xbf16>
    %73 = vector.shape_cast %72 : vector<1x1x32x16xbf16> to vector<32x16xbf16>
    %cst_61 = arith.constant dense<0.000000e+00> : vector<16x16xf32>
    %74 = tpu.matmul %64, %73, %cst_61 {dimension_numbers = #tpu.dot_dimension_numbers<[1], [0], [0], [1], [0, 0, 1, 1], [], []>} : vector<16x32xbf16>, vector<32x16xbf16>, vector<16x16xf32> -> vector<16x16xf32>
    %75 = arith.truncf %68 : vector<16x16xf32> to vector<16x16xbf16>
    %76 = arith.truncf %71 : vector<16x16xf32> to vector<16x16xbf16>
    %cst_62 = arith.constant dense<0.000000e+00> : vector<16x16xf32>
    %77 = tpu.matmul %75, %76, %cst_62 {dimension_numbers = #tpu.dot_dimension_numbers<[1], [1], [0], [0], [0, 0, 1, 0], [], []>} : vector<16x16xbf16>, vector<16x16xbf16>, vector<16x16xf32> -> vector<16x16xf32>
    %cst_63 = arith.constant 2.500000e-01 : f32
    %78 = vector.broadcast %cst_63 : f32 to vector<16x16xf32>
    %79 = arith.mulf %77, %78 : vector<16x16xf32>
    %cst_64 = arith.constant 6.250000e-02 : f32
    %80 = vector.broadcast %cst_64 : f32 to vector<16x16xf32>
    %81 = arith.mulf %80, %37 : vector<16x16xf32>
    %82 = arith.addf %79, %81 : vector<16x16xf32>
    %cst_65 = arith.constant -1.000000e+30 : f32
    %83 = vector.broadcast %cst_65 : f32 to vector<16x16xf32>
    %84 = arith.select %32, %82, %83 : vector<16x16xi1>, vector<16x16xf32>
    %cst_66 = arith.constant dense<0xFF800000> : vector<16xf32>
    %85 = vector.multi_reduction <maximumf>, %84, %cst_66 [1] : vector<16x16xf32> to vector<16xf32>
    %86 = vector.shape_cast %85 : vector<16xf32> to vector<16x1xf32>
    %87 = vector.broadcast %86 : vector<16x1xf32> to vector<16x16xf32>
    %88 = arith.subf %84, %87 : vector<16x16xf32>
    %89 = math.exp %88 : vector<16x16xf32>
    %cst_67 = arith.constant dense<0.000000e+00> : vector<16xf32>
    %90 = vector.multi_reduction <add>, %89, %cst_67 [1] : vector<16x16xf32> to vector<16xf32>
    %91 = vector.shape_cast %90 : vector<16xf32> to vector<16x1xf32>
    %92 = tpu.reciprocal %91 {approx = true} : vector<16x1xf32> -> vector<16x1xf32>
    %93 = vector.broadcast %92 : vector<16x1xf32> to vector<16x16xf32>
    %94 = arith.mulf %89, %93 : vector<16x16xf32>
    %95 = arith.truncf %94 : vector<16x16xf32> to vector<16x16xbf16>
    %96 = arith.truncf %74 : vector<16x16xf32> to vector<16x16xbf16>
    %cst_68 = arith.constant dense<0.000000e+00> : vector<16x16xf32>
    %97 = tpu.matmul %95, %96, %cst_68 {dimension_numbers = #tpu.dot_dimension_numbers<[1], [0], [0], [1], [0, 0, 1, 1], [], []>} : vector<16x16xbf16>, vector<16x16xbf16>, vector<16x16xf32> -> vector<16x16xf32>
    %c0_69 = arith.constant 0 : index
    %c0_70 = arith.constant 0 : index
    %c0_71 = arith.constant 0 : index
    %c0_72 = arith.constant 0 : index
    %98 = vector.load %arg10[%c0_69, %c0_70, %c0_71, %c0_72] : memref<2x4x16x32xbf16, #tpu.memory_space<vmem>>, vector<1x1x16x32xbf16>
    %99 = vector.shape_cast %98 : vector<1x1x16x32xbf16> to vector<16x32xbf16>
    %100 = arith.truncf %97 : vector<16x16xf32> to vector<16x16xbf16>
    %cst_73 = arith.constant dense<0.000000e+00> : vector<16x32xf32>
    %101 = tpu.matmul %100, %99, %cst_73 {dimension_numbers = #tpu.dot_dimension_numbers<[1], [0], [0], [1], [0, 0, 1, 1], [], []>} : vector<16x16xbf16>, vector<16x32xbf16>, vector<16x32xf32> -> vector<16x32xf32>
    %102 = arith.addf %65, %101 : vector<16x32xf32>
    %c0_74 = arith.constant 0 : index
    %c1_75 = arith.constant 1 : index
    %c0_76 = arith.constant 0 : index
    %c0_77 = arith.constant 0 : index
    %103 = vector.load %arg7[%c0_74, %c1_75, %c0_76, %c0_77] : memref<2x4x32x16xbf16, #tpu.memory_space<vmem>>, vector<1x1x32x16xbf16>
    %104 = vector.shape_cast %103 : vector<1x1x32x16xbf16> to vector<32x16xbf16>
    %cst_78 = arith.constant dense<0.000000e+00> : vector<16x16xf32>
    %105 = tpu.matmul %64, %104, %cst_78 {dimension_numbers = #tpu.dot_dimension_numbers<[1], [0], [0], [1], [0, 0, 1, 1], [], []>} : vector<16x32xbf16>, vector<32x16xbf16>, vector<16x16xf32> -> vector<16x16xf32>
    %c0_79 = arith.constant 0 : index
    %c1_80 = arith.constant 1 : index
    %c0_81 = arith.constant 0 : index
    %c0_82 = arith.constant 0 : index
    %106 = vector.load %arg8[%c0_79, %c1_80, %c0_81, %c0_82] : memref<2x4x32x16xbf16, #tpu.memory_space<vmem>>, vector<1x1x32x16xbf16>
    %107 = vector.shape_cast %106 : vector<1x1x32x16xbf16> to vector<32x16xbf16>
    %cst_83 = arith.constant dense<0.000000e+00> : vector<16x16xf32>
    %108 = tpu.matmul %64, %107, %cst_83 {dimension_numbers = #tpu.dot_dimension_numbers<[1], [0], [0], [1], [0, 0, 1, 1], [], []>} : vector<16x32xbf16>, vector<32x16xbf16>, vector<16x16xf32> -> vector<16x16xf32>
    %c0_84 = arith.constant 0 : index
    %c1_85 = arith.constant 1 : index
    %c0_86 = arith.constant 0 : index
    %c0_87 = arith.constant 0 : index
    %109 = vector.load %arg9[%c0_84, %c1_85, %c0_86, %c0_87] : memref<2x4x32x16xbf16, #tpu.memory_space<vmem>>, vector<1x1x32x16xbf16>
    %110 = vector.shape_cast %109 : vector<1x1x32x16xbf16> to vector<32x16xbf16>
    %cst_88 = arith.constant dense<0.000000e+00> : vector<16x16xf32>
    %111 = tpu.matmul %64, %110, %cst_88 {dimension_numbers = #tpu.dot_dimension_numbers<[1], [0], [0], [1], [0, 0, 1, 1], [], []>} : vector<16x32xbf16>, vector<32x16xbf16>, vector<16x16xf32> -> vector<16x16xf32>
    %112 = arith.truncf %105 : vector<16x16xf32> to vector<16x16xbf16>
    %113 = arith.truncf %108 : vector<16x16xf32> to vector<16x16xbf16>
    %cst_89 = arith.constant dense<0.000000e+00> : vector<16x16xf32>
    %114 = tpu.matmul %112, %113, %cst_89 {dimension_numbers = #tpu.dot_dimension_numbers<[1], [1], [0], [0], [0, 0, 1, 0], [], []>} : vector<16x16xbf16>, vector<16x16xbf16>, vector<16x16xf32> -> vector<16x16xf32>
    %cst_90 = arith.constant 2.500000e-01 : f32
    %115 = vector.broadcast %cst_90 : f32 to vector<16x16xf32>
    %116 = arith.mulf %114, %115 : vector<16x16xf32>
    %cst_91 = arith.constant 3.906250e-03 : f32
    %117 = vector.broadcast %cst_91 : f32 to vector<16x16xf32>
    %118 = arith.mulf %117, %37 : vector<16x16xf32>
    %119 = arith.addf %116, %118 : vector<16x16xf32>
    %cst_92 = arith.constant -1.000000e+30 : f32
    %120 = vector.broadcast %cst_92 : f32 to vector<16x16xf32>
    %121 = arith.select %32, %119, %120 : vector<16x16xi1>, vector<16x16xf32>
    %cst_93 = arith.constant dense<0xFF800000> : vector<16xf32>
    %122 = vector.multi_reduction <maximumf>, %121, %cst_93 [1] : vector<16x16xf32> to vector<16xf32>
    %123 = vector.shape_cast %122 : vector<16xf32> to vector<16x1xf32>
    %124 = vector.broadcast %123 : vector<16x1xf32> to vector<16x16xf32>
    %125 = arith.subf %121, %124 : vector<16x16xf32>
    %126 = math.exp %125 : vector<16x16xf32>
    %cst_94 = arith.constant dense<0.000000e+00> : vector<16xf32>
    %127 = vector.multi_reduction <add>, %126, %cst_94 [1] : vector<16x16xf32> to vector<16xf32>
    %128 = vector.shape_cast %127 : vector<16xf32> to vector<16x1xf32>
    %129 = tpu.reciprocal %128 {approx = true} : vector<16x1xf32> -> vector<16x1xf32>
    %130 = vector.broadcast %129 : vector<16x1xf32> to vector<16x16xf32>
    %131 = arith.mulf %126, %130 : vector<16x16xf32>
    %132 = arith.truncf %131 : vector<16x16xf32> to vector<16x16xbf16>
    %133 = arith.truncf %111 : vector<16x16xf32> to vector<16x16xbf16>
    %cst_95 = arith.constant dense<0.000000e+00> : vector<16x16xf32>
    %134 = tpu.matmul %132, %133, %cst_95 {dimension_numbers = #tpu.dot_dimension_numbers<[1], [0], [0], [1], [0, 0, 1, 1], [], []>} : vector<16x16xbf16>, vector<16x16xbf16>, vector<16x16xf32> -> vector<16x16xf32>
    %c0_96 = arith.constant 0 : index
    %c1_97 = arith.constant 1 : index
    %c0_98 = arith.constant 0 : index
    %c0_99 = arith.constant 0 : index
    %135 = vector.load %arg10[%c0_96, %c1_97, %c0_98, %c0_99] : memref<2x4x16x32xbf16, #tpu.memory_space<vmem>>, vector<1x1x16x32xbf16>
    %136 = vector.shape_cast %135 : vector<1x1x16x32xbf16> to vector<16x32xbf16>
    %137 = arith.truncf %134 : vector<16x16xf32> to vector<16x16xbf16>
    %cst_100 = arith.constant dense<0.000000e+00> : vector<16x32xf32>
    %138 = tpu.matmul %137, %136, %cst_100 {dimension_numbers = #tpu.dot_dimension_numbers<[1], [0], [0], [1], [0, 0, 1, 1], [], []>} : vector<16x16xbf16>, vector<16x32xbf16>, vector<16x32xf32> -> vector<16x32xf32>
    %139 = arith.addf %102, %138 : vector<16x32xf32>
    %c0_101 = arith.constant 0 : index
    %c2 = arith.constant 2 : index
    %c0_102 = arith.constant 0 : index
    %c0_103 = arith.constant 0 : index
    %140 = vector.load %arg7[%c0_101, %c2, %c0_102, %c0_103] : memref<2x4x32x16xbf16, #tpu.memory_space<vmem>>, vector<1x1x32x16xbf16>
    %141 = vector.shape_cast %140 : vector<1x1x32x16xbf16> to vector<32x16xbf16>
    %cst_104 = arith.constant dense<0.000000e+00> : vector<16x16xf32>
    %142 = tpu.matmul %64, %141, %cst_104 {dimension_numbers = #tpu.dot_dimension_numbers<[1], [0], [0], [1], [0, 0, 1, 1], [], []>} : vector<16x32xbf16>, vector<32x16xbf16>, vector<16x16xf32> -> vector<16x16xf32>
    %c0_105 = arith.constant 0 : index
    %c2_106 = arith.constant 2 : index
    %c0_107 = arith.constant 0 : index
    %c0_108 = arith.constant 0 : index
    %143 = vector.load %arg8[%c0_105, %c2_106, %c0_107, %c0_108] : memref<2x4x32x16xbf16, #tpu.memory_space<vmem>>, vector<1x1x32x16xbf16>
    %144 = vector.shape_cast %143 : vector<1x1x32x16xbf16> to vector<32x16xbf16>
    %cst_109 = arith.constant dense<0.000000e+00> : vector<16x16xf32>
    %145 = tpu.matmul %64, %144, %cst_109 {dimension_numbers = #tpu.dot_dimension_numbers<[1], [0], [0], [1], [0, 0, 1, 1], [], []>} : vector<16x32xbf16>, vector<32x16xbf16>, vector<16x16xf32> -> vector<16x16xf32>
    %c0_110 = arith.constant 0 : index
    %c2_111 = arith.constant 2 : index
    %c0_112 = arith.constant 0 : index
    %c0_113 = arith.constant 0 : index
    %146 = vector.load %arg9[%c0_110, %c2_111, %c0_112, %c0_113] : memref<2x4x32x16xbf16, #tpu.memory_space<vmem>>, vector<1x1x32x16xbf16>
    %147 = vector.shape_cast %146 : vector<1x1x32x16xbf16> to vector<32x16xbf16>
    %cst_114 = arith.constant dense<0.000000e+00> : vector<16x16xf32>
    %148 = tpu.matmul %64, %147, %cst_114 {dimension_numbers = #tpu.dot_dimension_numbers<[1], [0], [0], [1], [0, 0, 1, 1], [], []>} : vector<16x32xbf16>, vector<32x16xbf16>, vector<16x16xf32> -> vector<16x16xf32>
    %149 = arith.truncf %142 : vector<16x16xf32> to vector<16x16xbf16>
    %150 = arith.truncf %145 : vector<16x16xf32> to vector<16x16xbf16>
    %cst_115 = arith.constant dense<0.000000e+00> : vector<16x16xf32>
    %151 = tpu.matmul %149, %150, %cst_115 {dimension_numbers = #tpu.dot_dimension_numbers<[1], [1], [0], [0], [0, 0, 1, 0], [], []>} : vector<16x16xbf16>, vector<16x16xbf16>, vector<16x16xf32> -> vector<16x16xf32>
    %cst_116 = arith.constant 2.500000e-01 : f32
    %152 = vector.broadcast %cst_116 : f32 to vector<16x16xf32>
    %153 = arith.mulf %151, %152 : vector<16x16xf32>
    %cst_117 = arith.constant -1.000000e+30 : f32
    %154 = vector.broadcast %cst_117 : f32 to vector<16x16xf32>
    %155 = arith.select %32, %153, %154 : vector<16x16xi1>, vector<16x16xf32>
    %cst_118 = arith.constant dense<0xFF800000> : vector<16xf32>
    %156 = vector.multi_reduction <maximumf>, %155, %cst_118 [1] : vector<16x16xf32> to vector<16xf32>
    %157 = vector.shape_cast %156 : vector<16xf32> to vector<16x1xf32>
    %158 = vector.broadcast %157 : vector<16x1xf32> to vector<16x16xf32>
    %159 = arith.subf %155, %158 : vector<16x16xf32>
    %160 = math.exp %159 : vector<16x16xf32>
    %cst_119 = arith.constant dense<0.000000e+00> : vector<16xf32>
    %161 = vector.multi_reduction <add>, %160, %cst_119 [1] : vector<16x16xf32> to vector<16xf32>
    %162 = vector.shape_cast %161 : vector<16xf32> to vector<16x1xf32>
    %163 = tpu.reciprocal %162 {approx = true} : vector<16x1xf32> -> vector<16x1xf32>
    %164 = vector.broadcast %163 : vector<16x1xf32> to vector<16x16xf32>
    %165 = arith.mulf %160, %164 : vector<16x16xf32>
    %166 = arith.truncf %165 : vector<16x16xf32> to vector<16x16xbf16>
    %167 = arith.truncf %148 : vector<16x16xf32> to vector<16x16xbf16>
    %cst_120 = arith.constant dense<0.000000e+00> : vector<16x16xf32>
    %168 = tpu.matmul %166, %167, %cst_120 {dimension_numbers = #tpu.dot_dimension_numbers<[1], [0], [0], [1], [0, 0, 1, 1], [], []>} : vector<16x16xbf16>, vector<16x16xbf16>, vector<16x16xf32> -> vector<16x16xf32>
    %c0_121 = arith.constant 0 : index
    %c2_122 = arith.constant 2 : index
    %c0_123 = arith.constant 0 : index
    %c0_124 = arith.constant 0 : index
    %169 = vector.load %arg10[%c0_121, %c2_122, %c0_123, %c0_124] : memref<2x4x16x32xbf16, #tpu.memory_space<vmem>>, vector<1x1x16x32xbf16>
    %170 = vector.shape_cast %169 : vector<1x1x16x32xbf16> to vector<16x32xbf16>
    %171 = arith.truncf %168 : vector<16x16xf32> to vector<16x16xbf16>
    %cst_125 = arith.constant dense<0.000000e+00> : vector<16x32xf32>
    %172 = tpu.matmul %171, %170, %cst_125 {dimension_numbers = #tpu.dot_dimension_numbers<[1], [0], [0], [1], [0, 0, 1, 1], [], []>} : vector<16x16xbf16>, vector<16x32xbf16>, vector<16x32xf32> -> vector<16x32xf32>
    %173 = arith.addf %139, %172 : vector<16x32xf32>
    %c0_126 = arith.constant 0 : index
    %c3 = arith.constant 3 : index
    %c0_127 = arith.constant 0 : index
    %c0_128 = arith.constant 0 : index
    %174 = vector.load %arg7[%c0_126, %c3, %c0_127, %c0_128] : memref<2x4x32x16xbf16, #tpu.memory_space<vmem>>, vector<1x1x32x16xbf16>
    %175 = vector.shape_cast %174 : vector<1x1x32x16xbf16> to vector<32x16xbf16>
    %cst_129 = arith.constant dense<0.000000e+00> : vector<16x16xf32>
    %176 = tpu.matmul %64, %175, %cst_129 {dimension_numbers = #tpu.dot_dimension_numbers<[1], [0], [0], [1], [0, 0, 1, 1], [], []>} : vector<16x32xbf16>, vector<32x16xbf16>, vector<16x16xf32> -> vector<16x16xf32>
    %c0_130 = arith.constant 0 : index
    %c3_131 = arith.constant 3 : index
    %c0_132 = arith.constant 0 : index
    %c0_133 = arith.constant 0 : index
    %177 = vector.load %arg8[%c0_130, %c3_131, %c0_132, %c0_133] : memref<2x4x32x16xbf16, #tpu.memory_space<vmem>>, vector<1x1x32x16xbf16>
    %178 = vector.shape_cast %177 : vector<1x1x32x16xbf16> to vector<32x16xbf16>
    %cst_134 = arith.constant dense<0.000000e+00> : vector<16x16xf32>
    %179 = tpu.matmul %64, %178, %cst_134 {dimension_numbers = #tpu.dot_dimension_numbers<[1], [0], [0], [1], [0, 0, 1, 1], [], []>} : vector<16x32xbf16>, vector<32x16xbf16>, vector<16x16xf32> -> vector<16x16xf32>
    %c0_135 = arith.constant 0 : index
    %c3_136 = arith.constant 3 : index
    %c0_137 = arith.constant 0 : index
    %c0_138 = arith.constant 0 : index
    %180 = vector.load %arg9[%c0_135, %c3_136, %c0_137, %c0_138] : memref<2x4x32x16xbf16, #tpu.memory_space<vmem>>, vector<1x1x32x16xbf16>
    %181 = vector.shape_cast %180 : vector<1x1x32x16xbf16> to vector<32x16xbf16>
    %cst_139 = arith.constant dense<0.000000e+00> : vector<16x16xf32>
    %182 = tpu.matmul %64, %181, %cst_139 {dimension_numbers = #tpu.dot_dimension_numbers<[1], [0], [0], [1], [0, 0, 1, 1], [], []>} : vector<16x32xbf16>, vector<32x16xbf16>, vector<16x16xf32> -> vector<16x16xf32>
    %183 = arith.truncf %176 : vector<16x16xf32> to vector<16x16xbf16>
    %184 = arith.truncf %179 : vector<16x16xf32> to vector<16x16xbf16>
    %cst_140 = arith.constant dense<0.000000e+00> : vector<16x16xf32>
    %185 = tpu.matmul %183, %184, %cst_140 {dimension_numbers = #tpu.dot_dimension_numbers<[1], [1], [0], [0], [0, 0, 1, 0], [], []>} : vector<16x16xbf16>, vector<16x16xbf16>, vector<16x16xf32> -> vector<16x16xf32>
    %cst_141 = arith.constant 2.500000e-01 : f32
    %186 = vector.broadcast %cst_141 : f32 to vector<16x16xf32>
    %187 = arith.mulf %185, %186 : vector<16x16xf32>
    %cst_142 = arith.constant -1.000000e+30 : f32
    %188 = vector.broadcast %cst_142 : f32 to vector<16x16xf32>
    %189 = arith.select %32, %187, %188 : vector<16x16xi1>, vector<16x16xf32>
    %cst_143 = arith.constant dense<0xFF800000> : vector<16xf32>
    %190 = vector.multi_reduction <maximumf>, %189, %cst_143 [1] : vector<16x16xf32> to vector<16xf32>
    %191 = vector.shape_cast %190 : vector<16xf32> to vector<16x1xf32>
    %192 = vector.broadcast %191 : vector<16x1xf32> to vector<16x16xf32>
    %193 = arith.subf %189, %192 : vector<16x16xf32>
    %194 = math.exp %193 : vector<16x16xf32>
    %cst_144 = arith.constant dense<0.000000e+00> : vector<16xf32>
    %195 = vector.multi_reduction <add>, %194, %cst_144 [1] : vector<16x16xf32> to vector<16xf32>
    %196 = vector.shape_cast %195 : vector<16xf32> to vector<16x1xf32>
    %197 = tpu.reciprocal %196 {approx = true} : vector<16x1xf32> -> vector<16x1xf32>
    %198 = vector.broadcast %197 : vector<16x1xf32> to vector<16x16xf32>
    %199 = arith.mulf %194, %198 : vector<16x16xf32>
    %200 = arith.truncf %199 : vector<16x16xf32> to vector<16x16xbf16>
    %201 = arith.truncf %182 : vector<16x16xf32> to vector<16x16xbf16>
    %cst_145 = arith.constant dense<0.000000e+00> : vector<16x16xf32>
    %202 = tpu.matmul %200, %201, %cst_145 {dimension_numbers = #tpu.dot_dimension_numbers<[1], [0], [0], [1], [0, 0, 1, 1], [], []>} : vector<16x16xbf16>, vector<16x16xbf16>, vector<16x16xf32> -> vector<16x16xf32>
    %c0_146 = arith.constant 0 : index
    %c3_147 = arith.constant 3 : index
    %c0_148 = arith.constant 0 : index
    %c0_149 = arith.constant 0 : index
    %203 = vector.load %arg10[%c0_146, %c3_147, %c0_148, %c0_149] : memref<2x4x16x32xbf16, #tpu.memory_space<vmem>>, vector<1x1x16x32xbf16>
    %204 = vector.shape_cast %203 : vector<1x1x16x32xbf16> to vector<16x32xbf16>
    %205 = arith.truncf %202 : vector<16x16xf32> to vector<16x16xbf16>
    %cst_150 = arith.constant dense<0.000000e+00> : vector<16x32xf32>
    %206 = tpu.matmul %205, %204, %cst_150 {dimension_numbers = #tpu.dot_dimension_numbers<[1], [0], [0], [1], [0, 0, 1, 1], [], []>} : vector<16x16xbf16>, vector<16x32xbf16>, vector<16x32xf32> -> vector<16x32xf32>
    %207 = arith.addf %173, %206 : vector<16x32xf32>
    %208 = arith.addf %39, %207 : vector<16x32xf32>
    %c0_151 = arith.constant 0 : index
    %c0_152 = arith.constant 0 : index
    %c0_153 = arith.constant 0 : index
    %209 = vector.load %arg11[%c0_151, %c0_152, %c0_153] : memref<2x1x32xf32, #tpu.memory_space<vmem>>, vector<1x1x32xf32>
    %210 = vector.shape_cast %209 : vector<1x1x32xf32> to vector<1x32xf32>
    %c0_154 = arith.constant 0 : index
    %c0_155 = arith.constant 0 : index
    %c0_156 = arith.constant 0 : index
    %211 = vector.load %arg12[%c0_154, %c0_155, %c0_156] : memref<2x1x32xf32, #tpu.memory_space<vmem>>, vector<1x1x32xf32>
    %212 = vector.shape_cast %211 : vector<1x1x32xf32> to vector<1x32xf32>
    %cst_157 = arith.constant dense<0.000000e+00> : vector<16xf32>
    %213 = vector.multi_reduction <add>, %208, %cst_157 [1] : vector<16x32xf32> to vector<16xf32>
    %214 = vector.shape_cast %213 : vector<16xf32> to vector<16x1xf32>
    %cst_158 = arith.constant 3.200000e+01 : f32
    %215 = vector.broadcast %cst_158 : f32 to vector<16x1xf32>
    %216 = arith.divf %214, %215 : vector<16x1xf32>
    %217 = vector.broadcast %216 : vector<16x1xf32> to vector<16x32xf32>
    %218 = arith.subf %208, %217 : vector<16x32xf32>
    %219 = arith.mulf %218, %218 : vector<16x32xf32>
    %cst_159 = arith.constant dense<0.000000e+00> : vector<16xf32>
    %220 = vector.multi_reduction <add>, %219, %cst_159 [1] : vector<16x32xf32> to vector<16xf32>
    %221 = vector.shape_cast %220 : vector<16xf32> to vector<16x1xf32>
    %cst_160 = arith.constant 3.200000e+01 : f32
    %222 = vector.broadcast %cst_160 : f32 to vector<16x1xf32>
    %223 = arith.divf %221, %222 : vector<16x1xf32>
    %cst_161 = arith.constant 9.99999974E-6 : f32
    %224 = vector.broadcast %cst_161 : f32 to vector<16x1xf32>
    %225 = arith.addf %223, %224 : vector<16x1xf32>
    %226 = math.rsqrt %225 : vector<16x1xf32>
    %227 = vector.broadcast %226 : vector<16x1xf32> to vector<16x32xf32>
    %228 = arith.mulf %218, %227 : vector<16x32xf32>
    %229 = vector.broadcast %210 : vector<1x32xf32> to vector<16x32xf32>
    %230 = arith.mulf %228, %229 : vector<16x32xf32>
    %231 = vector.broadcast %212 : vector<1x32xf32> to vector<16x32xf32>
    %232 = arith.addf %230, %231 : vector<16x32xf32>
    %c0_162 = arith.constant 0 : index
    %c0_163 = arith.constant 0 : index
    %c0_164 = arith.constant 0 : index
    %233 = vector.load %arg13[%c0_162, %c0_163, %c0_164] : memref<2x32x128xbf16, #tpu.memory_space<vmem>>, vector<1x32x128xbf16>
    %234 = vector.shape_cast %233 : vector<1x32x128xbf16> to vector<32x128xbf16>
    %235 = arith.truncf %232 : vector<16x32xf32> to vector<16x32xbf16>
    %cst_165 = arith.constant dense<0.000000e+00> : vector<16x128xf32>
    %236 = tpu.matmul %235, %234, %cst_165 {dimension_numbers = #tpu.dot_dimension_numbers<[1], [0], [0], [1], [0, 0, 1, 1], [], []>} : vector<16x32xbf16>, vector<32x128xbf16>, vector<16x128xf32> -> vector<16x128xf32>
    %c0_166 = arith.constant 0 : index
    %c0_167 = arith.constant 0 : index
    %c0_168 = arith.constant 0 : index
    %237 = vector.load %arg14[%c0_166, %c0_167, %c0_168] : memref<2x1x128xf32, #tpu.memory_space<vmem>>, vector<1x1x128xf32>
    %238 = vector.shape_cast %237 : vector<1x1x128xf32> to vector<1x128xf32>
    %239 = vector.broadcast %238 : vector<1x128xf32> to vector<16x128xf32>
    %240 = arith.addf %236, %239 : vector<16x128xf32>
    %241 = arith.mulf %240, %240 : vector<16x128xf32>
    %242 = arith.mulf %240, %241 : vector<16x128xf32>
    %cst_169 = arith.constant 4.471500e-02 : f32
    %243 = vector.broadcast %cst_169 : f32 to vector<16x128xf32>
    %244 = arith.mulf %243, %242 : vector<16x128xf32>
    %245 = arith.addf %240, %244 : vector<16x128xf32>
    %cst_170 = arith.constant 0.797884583 : f32
    %246 = vector.broadcast %cst_170 : f32 to vector<16x128xf32>
    %247 = arith.mulf %246, %245 : vector<16x128xf32>
    %248 = math.tanh %247 : vector<16x128xf32>
    %cst_171 = arith.constant 1.000000e+00 : f32
    %249 = vector.broadcast %cst_171 : f32 to vector<16x128xf32>
    %250 = arith.addf %249, %248 : vector<16x128xf32>
    %cst_172 = arith.constant 5.000000e-01 : f32
    %251 = vector.broadcast %cst_172 : f32 to vector<16x128xf32>
    %252 = arith.mulf %251, %250 : vector<16x128xf32>
    %253 = arith.mulf %240, %252 : vector<16x128xf32>
    %c0_173 = arith.constant 0 : index
    %c0_174 = arith.constant 0 : index
    %c0_175 = arith.constant 0 : index
    %254 = vector.load %arg15[%c0_173, %c0_174, %c0_175] : memref<2x128x32xbf16, #tpu.memory_space<vmem>>, vector<1x128x32xbf16>
    %255 = vector.shape_cast %254 : vector<1x128x32xbf16> to vector<128x32xbf16>
    %256 = arith.truncf %253 : vector<16x128xf32> to vector<16x128xbf16>
    %cst_176 = arith.constant dense<0.000000e+00> : vector<16x32xf32>
    %257 = tpu.matmul %256, %255, %cst_176 {dimension_numbers = #tpu.dot_dimension_numbers<[1], [0], [0], [1], [0, 0, 1, 1], [], []>} : vector<16x128xbf16>, vector<128x32xbf16>, vector<16x32xf32> -> vector<16x32xf32>
    %258 = arith.addf %208, %257 : vector<16x32xf32>
    %c0_177 = arith.constant 0 : index
    %c0_178 = arith.constant 0 : index
    %c0_179 = arith.constant 0 : index
    %259 = vector.load %arg16[%c0_177, %c0_178, %c0_179] : memref<2x1x32xf32, #tpu.memory_space<vmem>>, vector<1x1x32xf32>
    %260 = vector.shape_cast %259 : vector<1x1x32xf32> to vector<1x32xf32>
    %261 = vector.broadcast %260 : vector<1x32xf32> to vector<16x32xf32>
    %262 = arith.addf %258, %261 : vector<16x32xf32>
    %c1_180 = arith.constant 1 : index
    %c0_181 = arith.constant 0 : index
    %c0_182 = arith.constant 0 : index
    %263 = vector.load %arg5[%c1_180, %c0_181, %c0_182] : memref<2x1x32xf32, #tpu.memory_space<vmem>>, vector<1x1x32xf32>
    %264 = vector.shape_cast %263 : vector<1x1x32xf32> to vector<1x32xf32>
    %c1_183 = arith.constant 1 : index
    %c0_184 = arith.constant 0 : index
    %c0_185 = arith.constant 0 : index
    %265 = vector.load %arg6[%c1_183, %c0_184, %c0_185] : memref<2x1x32xf32, #tpu.memory_space<vmem>>, vector<1x1x32xf32>
    %266 = vector.shape_cast %265 : vector<1x1x32xf32> to vector<1x32xf32>
    %cst_186 = arith.constant dense<0.000000e+00> : vector<16xf32>
    %267 = vector.multi_reduction <add>, %262, %cst_186 [1] : vector<16x32xf32> to vector<16xf32>
    %268 = vector.shape_cast %267 : vector<16xf32> to vector<16x1xf32>
    %cst_187 = arith.constant 3.200000e+01 : f32
    %269 = vector.broadcast %cst_187 : f32 to vector<16x1xf32>
    %270 = arith.divf %268, %269 : vector<16x1xf32>
    %271 = vector.broadcast %270 : vector<16x1xf32> to vector<16x32xf32>
    %272 = arith.subf %262, %271 : vector<16x32xf32>
    %273 = arith.mulf %272, %272 : vector<16x32xf32>
    %cst_188 = arith.constant dense<0.000000e+00> : vector<16xf32>
    %274 = vector.multi_reduction <add>, %273, %cst_188 [1] : vector<16x32xf32> to vector<16xf32>
    %275 = vector.shape_cast %274 : vector<16xf32> to vector<16x1xf32>
    %cst_189 = arith.constant 3.200000e+01 : f32
    %276 = vector.broadcast %cst_189 : f32 to vector<16x1xf32>
    %277 = arith.divf %275, %276 : vector<16x1xf32>
    %cst_190 = arith.constant 9.99999974E-6 : f32
    %278 = vector.broadcast %cst_190 : f32 to vector<16x1xf32>
    %279 = arith.addf %277, %278 : vector<16x1xf32>
    %280 = math.rsqrt %279 : vector<16x1xf32>
    %281 = vector.broadcast %280 : vector<16x1xf32> to vector<16x32xf32>
    %282 = arith.mulf %272, %281 : vector<16x32xf32>
    %283 = vector.broadcast %264 : vector<1x32xf32> to vector<16x32xf32>
    %284 = arith.mulf %282, %283 : vector<16x32xf32>
    %285 = vector.broadcast %266 : vector<1x32xf32> to vector<16x32xf32>
    %286 = arith.addf %284, %285 : vector<16x32xf32>
    %287 = arith.truncf %286 : vector<16x32xf32> to vector<16x32xbf16>
    %cst_191 = arith.constant 0.000000e+00 : f32
    %288 = vector.broadcast %cst_191 : f32 to vector<16x32xf32>
    %c1_192 = arith.constant 1 : index
    %c0_193 = arith.constant 0 : index
    %c0_194 = arith.constant 0 : index
    %c0_195 = arith.constant 0 : index
    %289 = vector.load %arg7[%c1_192, %c0_193, %c0_194, %c0_195] : memref<2x4x32x16xbf16, #tpu.memory_space<vmem>>, vector<1x1x32x16xbf16>
    %290 = vector.shape_cast %289 : vector<1x1x32x16xbf16> to vector<32x16xbf16>
    %cst_196 = arith.constant dense<0.000000e+00> : vector<16x16xf32>
    %291 = tpu.matmul %287, %290, %cst_196 {dimension_numbers = #tpu.dot_dimension_numbers<[1], [0], [0], [1], [0, 0, 1, 1], [], []>} : vector<16x32xbf16>, vector<32x16xbf16>, vector<16x16xf32> -> vector<16x16xf32>
    %c1_197 = arith.constant 1 : index
    %c0_198 = arith.constant 0 : index
    %c0_199 = arith.constant 0 : index
    %c0_200 = arith.constant 0 : index
    %292 = vector.load %arg8[%c1_197, %c0_198, %c0_199, %c0_200] : memref<2x4x32x16xbf16, #tpu.memory_space<vmem>>, vector<1x1x32x16xbf16>
    %293 = vector.shape_cast %292 : vector<1x1x32x16xbf16> to vector<32x16xbf16>
    %cst_201 = arith.constant dense<0.000000e+00> : vector<16x16xf32>
    %294 = tpu.matmul %287, %293, %cst_201 {dimension_numbers = #tpu.dot_dimension_numbers<[1], [0], [0], [1], [0, 0, 1, 1], [], []>} : vector<16x32xbf16>, vector<32x16xbf16>, vector<16x16xf32> -> vector<16x16xf32>
    %c1_202 = arith.constant 1 : index
    %c0_203 = arith.constant 0 : index
    %c0_204 = arith.constant 0 : index
    %c0_205 = arith.constant 0 : index
    %295 = vector.load %arg9[%c1_202, %c0_203, %c0_204, %c0_205] : memref<2x4x32x16xbf16, #tpu.memory_space<vmem>>, vector<1x1x32x16xbf16>
    %296 = vector.shape_cast %295 : vector<1x1x32x16xbf16> to vector<32x16xbf16>
    %cst_206 = arith.constant dense<0.000000e+00> : vector<16x16xf32>
    %297 = tpu.matmul %287, %296, %cst_206 {dimension_numbers = #tpu.dot_dimension_numbers<[1], [0], [0], [1], [0, 0, 1, 1], [], []>} : vector<16x32xbf16>, vector<32x16xbf16>, vector<16x16xf32> -> vector<16x16xf32>
    %298 = arith.truncf %291 : vector<16x16xf32> to vector<16x16xbf16>
    %299 = arith.truncf %294 : vector<16x16xf32> to vector<16x16xbf16>
    %cst_207 = arith.constant dense<0.000000e+00> : vector<16x16xf32>
    %300 = tpu.matmul %298, %299, %cst_207 {dimension_numbers = #tpu.dot_dimension_numbers<[1], [1], [0], [0], [0, 0, 1, 0], [], []>} : vector<16x16xbf16>, vector<16x16xbf16>, vector<16x16xf32> -> vector<16x16xf32>
    %cst_208 = arith.constant 2.500000e-01 : f32
    %301 = vector.broadcast %cst_208 : f32 to vector<16x16xf32>
    %302 = arith.mulf %300, %301 : vector<16x16xf32>
    %cst_209 = arith.constant 6.250000e-02 : f32
    %303 = vector.broadcast %cst_209 : f32 to vector<16x16xf32>
    %304 = arith.mulf %303, %37 : vector<16x16xf32>
    %305 = arith.addf %302, %304 : vector<16x16xf32>
    %cst_210 = arith.constant -1.000000e+30 : f32
    %306 = vector.broadcast %cst_210 : f32 to vector<16x16xf32>
    %307 = arith.select %32, %305, %306 : vector<16x16xi1>, vector<16x16xf32>
    %cst_211 = arith.constant dense<0xFF800000> : vector<16xf32>
    %308 = vector.multi_reduction <maximumf>, %307, %cst_211 [1] : vector<16x16xf32> to vector<16xf32>
    %309 = vector.shape_cast %308 : vector<16xf32> to vector<16x1xf32>
    %310 = vector.broadcast %309 : vector<16x1xf32> to vector<16x16xf32>
    %311 = arith.subf %307, %310 : vector<16x16xf32>
    %312 = math.exp %311 : vector<16x16xf32>
    %cst_212 = arith.constant dense<0.000000e+00> : vector<16xf32>
    %313 = vector.multi_reduction <add>, %312, %cst_212 [1] : vector<16x16xf32> to vector<16xf32>
    %314 = vector.shape_cast %313 : vector<16xf32> to vector<16x1xf32>
    %315 = tpu.reciprocal %314 {approx = true} : vector<16x1xf32> -> vector<16x1xf32>
    %316 = vector.broadcast %315 : vector<16x1xf32> to vector<16x16xf32>
    %317 = arith.mulf %312, %316 : vector<16x16xf32>
    %318 = arith.truncf %317 : vector<16x16xf32> to vector<16x16xbf16>
    %319 = arith.truncf %297 : vector<16x16xf32> to vector<16x16xbf16>
    %cst_213 = arith.constant dense<0.000000e+00> : vector<16x16xf32>
    %320 = tpu.matmul %318, %319, %cst_213 {dimension_numbers = #tpu.dot_dimension_numbers<[1], [0], [0], [1], [0, 0, 1, 1], [], []>} : vector<16x16xbf16>, vector<16x16xbf16>, vector<16x16xf32> -> vector<16x16xf32>
    %c1_214 = arith.constant 1 : index
    %c0_215 = arith.constant 0 : index
    %c0_216 = arith.constant 0 : index
    %c0_217 = arith.constant 0 : index
    %321 = vector.load %arg10[%c1_214, %c0_215, %c0_216, %c0_217] : memref<2x4x16x32xbf16, #tpu.memory_space<vmem>>, vector<1x1x16x32xbf16>
    %322 = vector.shape_cast %321 : vector<1x1x16x32xbf16> to vector<16x32xbf16>
    %323 = arith.truncf %320 : vector<16x16xf32> to vector<16x16xbf16>
    %cst_218 = arith.constant dense<0.000000e+00> : vector<16x32xf32>
    %324 = tpu.matmul %323, %322, %cst_218 {dimension_numbers = #tpu.dot_dimension_numbers<[1], [0], [0], [1], [0, 0, 1, 1], [], []>} : vector<16x16xbf16>, vector<16x32xbf16>, vector<16x32xf32> -> vector<16x32xf32>
    %325 = arith.addf %288, %324 : vector<16x32xf32>
    %c1_219 = arith.constant 1 : index
    %c1_220 = arith.constant 1 : index
    %c0_221 = arith.constant 0 : index
    %c0_222 = arith.constant 0 : index
    %326 = vector.load %arg7[%c1_219, %c1_220, %c0_221, %c0_222] : memref<2x4x32x16xbf16, #tpu.memory_space<vmem>>, vector<1x1x32x16xbf16>
    %327 = vector.shape_cast %326 : vector<1x1x32x16xbf16> to vector<32x16xbf16>
    %cst_223 = arith.constant dense<0.000000e+00> : vector<16x16xf32>
    %328 = tpu.matmul %287, %327, %cst_223 {dimension_numbers = #tpu.dot_dimension_numbers<[1], [0], [0], [1], [0, 0, 1, 1], [], []>} : vector<16x32xbf16>, vector<32x16xbf16>, vector<16x16xf32> -> vector<16x16xf32>
    %c1_224 = arith.constant 1 : index
    %c1_225 = arith.constant 1 : index
    %c0_226 = arith.constant 0 : index
    %c0_227 = arith.constant 0 : index
    %329 = vector.load %arg8[%c1_224, %c1_225, %c0_226, %c0_227] : memref<2x4x32x16xbf16, #tpu.memory_space<vmem>>, vector<1x1x32x16xbf16>
    %330 = vector.shape_cast %329 : vector<1x1x32x16xbf16> to vector<32x16xbf16>
    %cst_228 = arith.constant dense<0.000000e+00> : vector<16x16xf32>
    %331 = tpu.matmul %287, %330, %cst_228 {dimension_numbers = #tpu.dot_dimension_numbers<[1], [0], [0], [1], [0, 0, 1, 1], [], []>} : vector<16x32xbf16>, vector<32x16xbf16>, vector<16x16xf32> -> vector<16x16xf32>
    %c1_229 = arith.constant 1 : index
    %c1_230 = arith.constant 1 : index
    %c0_231 = arith.constant 0 : index
    %c0_232 = arith.constant 0 : index
    %332 = vector.load %arg9[%c1_229, %c1_230, %c0_231, %c0_232] : memref<2x4x32x16xbf16, #tpu.memory_space<vmem>>, vector<1x1x32x16xbf16>
    %333 = vector.shape_cast %332 : vector<1x1x32x16xbf16> to vector<32x16xbf16>
    %cst_233 = arith.constant dense<0.000000e+00> : vector<16x16xf32>
    %334 = tpu.matmul %287, %333, %cst_233 {dimension_numbers = #tpu.dot_dimension_numbers<[1], [0], [0], [1], [0, 0, 1, 1], [], []>} : vector<16x32xbf16>, vector<32x16xbf16>, vector<16x16xf32> -> vector<16x16xf32>
    %335 = arith.truncf %328 : vector<16x16xf32> to vector<16x16xbf16>
    %336 = arith.truncf %331 : vector<16x16xf32> to vector<16x16xbf16>
    %cst_234 = arith.constant dense<0.000000e+00> : vector<16x16xf32>
    %337 = tpu.matmul %335, %336, %cst_234 {dimension_numbers = #tpu.dot_dimension_numbers<[1], [1], [0], [0], [0, 0, 1, 0], [], []>} : vector<16x16xbf16>, vector<16x16xbf16>, vector<16x16xf32> -> vector<16x16xf32>
    %cst_235 = arith.constant 2.500000e-01 : f32
    %338 = vector.broadcast %cst_235 : f32 to vector<16x16xf32>
    %339 = arith.mulf %337, %338 : vector<16x16xf32>
    %cst_236 = arith.constant 3.906250e-03 : f32
    %340 = vector.broadcast %cst_236 : f32 to vector<16x16xf32>
    %341 = arith.mulf %340, %37 : vector<16x16xf32>
    %342 = arith.addf %339, %341 : vector<16x16xf32>
    %cst_237 = arith.constant -1.000000e+30 : f32
    %343 = vector.broadcast %cst_237 : f32 to vector<16x16xf32>
    %344 = arith.select %32, %342, %343 : vector<16x16xi1>, vector<16x16xf32>
    %cst_238 = arith.constant dense<0xFF800000> : vector<16xf32>
    %345 = vector.multi_reduction <maximumf>, %344, %cst_238 [1] : vector<16x16xf32> to vector<16xf32>
    %346 = vector.shape_cast %345 : vector<16xf32> to vector<16x1xf32>
    %347 = vector.broadcast %346 : vector<16x1xf32> to vector<16x16xf32>
    %348 = arith.subf %344, %347 : vector<16x16xf32>
    %349 = math.exp %348 : vector<16x16xf32>
    %cst_239 = arith.constant dense<0.000000e+00> : vector<16xf32>
    %350 = vector.multi_reduction <add>, %349, %cst_239 [1] : vector<16x16xf32> to vector<16xf32>
    %351 = vector.shape_cast %350 : vector<16xf32> to vector<16x1xf32>
    %352 = tpu.reciprocal %351 {approx = true} : vector<16x1xf32> -> vector<16x1xf32>
    %353 = vector.broadcast %352 : vector<16x1xf32> to vector<16x16xf32>
    %354 = arith.mulf %349, %353 : vector<16x16xf32>
    %355 = arith.truncf %354 : vector<16x16xf32> to vector<16x16xbf16>
    %356 = arith.truncf %334 : vector<16x16xf32> to vector<16x16xbf16>
    %cst_240 = arith.constant dense<0.000000e+00> : vector<16x16xf32>
    %357 = tpu.matmul %355, %356, %cst_240 {dimension_numbers = #tpu.dot_dimension_numbers<[1], [0], [0], [1], [0, 0, 1, 1], [], []>} : vector<16x16xbf16>, vector<16x16xbf16>, vector<16x16xf32> -> vector<16x16xf32>
    %c1_241 = arith.constant 1 : index
    %c1_242 = arith.constant 1 : index
    %c0_243 = arith.constant 0 : index
    %c0_244 = arith.constant 0 : index
    %358 = vector.load %arg10[%c1_241, %c1_242, %c0_243, %c0_244] : memref<2x4x16x32xbf16, #tpu.memory_space<vmem>>, vector<1x1x16x32xbf16>
    %359 = vector.shape_cast %358 : vector<1x1x16x32xbf16> to vector<16x32xbf16>
    %360 = arith.truncf %357 : vector<16x16xf32> to vector<16x16xbf16>
    %cst_245 = arith.constant dense<0.000000e+00> : vector<16x32xf32>
    %361 = tpu.matmul %360, %359, %cst_245 {dimension_numbers = #tpu.dot_dimension_numbers<[1], [0], [0], [1], [0, 0, 1, 1], [], []>} : vector<16x16xbf16>, vector<16x32xbf16>, vector<16x32xf32> -> vector<16x32xf32>
    %362 = arith.addf %325, %361 : vector<16x32xf32>
    %c1_246 = arith.constant 1 : index
    %c2_247 = arith.constant 2 : index
    %c0_248 = arith.constant 0 : index
    %c0_249 = arith.constant 0 : index
    %363 = vector.load %arg7[%c1_246, %c2_247, %c0_248, %c0_249] : memref<2x4x32x16xbf16, #tpu.memory_space<vmem>>, vector<1x1x32x16xbf16>
    %364 = vector.shape_cast %363 : vector<1x1x32x16xbf16> to vector<32x16xbf16>
    %cst_250 = arith.constant dense<0.000000e+00> : vector<16x16xf32>
    %365 = tpu.matmul %287, %364, %cst_250 {dimension_numbers = #tpu.dot_dimension_numbers<[1], [0], [0], [1], [0, 0, 1, 1], [], []>} : vector<16x32xbf16>, vector<32x16xbf16>, vector<16x16xf32> -> vector<16x16xf32>
    %c1_251 = arith.constant 1 : index
    %c2_252 = arith.constant 2 : index
    %c0_253 = arith.constant 0 : index
    %c0_254 = arith.constant 0 : index
    %366 = vector.load %arg8[%c1_251, %c2_252, %c0_253, %c0_254] : memref<2x4x32x16xbf16, #tpu.memory_space<vmem>>, vector<1x1x32x16xbf16>
    %367 = vector.shape_cast %366 : vector<1x1x32x16xbf16> to vector<32x16xbf16>
    %cst_255 = arith.constant dense<0.000000e+00> : vector<16x16xf32>
    %368 = tpu.matmul %287, %367, %cst_255 {dimension_numbers = #tpu.dot_dimension_numbers<[1], [0], [0], [1], [0, 0, 1, 1], [], []>} : vector<16x32xbf16>, vector<32x16xbf16>, vector<16x16xf32> -> vector<16x16xf32>
    %c1_256 = arith.constant 1 : index
    %c2_257 = arith.constant 2 : index
    %c0_258 = arith.constant 0 : index
    %c0_259 = arith.constant 0 : index
    %369 = vector.load %arg9[%c1_256, %c2_257, %c0_258, %c0_259] : memref<2x4x32x16xbf16, #tpu.memory_space<vmem>>, vector<1x1x32x16xbf16>
    %370 = vector.shape_cast %369 : vector<1x1x32x16xbf16> to vector<32x16xbf16>
    %cst_260 = arith.constant dense<0.000000e+00> : vector<16x16xf32>
    %371 = tpu.matmul %287, %370, %cst_260 {dimension_numbers = #tpu.dot_dimension_numbers<[1], [0], [0], [1], [0, 0, 1, 1], [], []>} : vector<16x32xbf16>, vector<32x16xbf16>, vector<16x16xf32> -> vector<16x16xf32>
    %372 = arith.truncf %365 : vector<16x16xf32> to vector<16x16xbf16>
    %373 = arith.truncf %368 : vector<16x16xf32> to vector<16x16xbf16>
    %cst_261 = arith.constant dense<0.000000e+00> : vector<16x16xf32>
    %374 = tpu.matmul %372, %373, %cst_261 {dimension_numbers = #tpu.dot_dimension_numbers<[1], [1], [0], [0], [0, 0, 1, 0], [], []>} : vector<16x16xbf16>, vector<16x16xbf16>, vector<16x16xf32> -> vector<16x16xf32>
    %cst_262 = arith.constant 2.500000e-01 : f32
    %375 = vector.broadcast %cst_262 : f32 to vector<16x16xf32>
    %376 = arith.mulf %374, %375 : vector<16x16xf32>
    %cst_263 = arith.constant -1.000000e+30 : f32
    %377 = vector.broadcast %cst_263 : f32 to vector<16x16xf32>
    %378 = arith.select %32, %376, %377 : vector<16x16xi1>, vector<16x16xf32>
    %cst_264 = arith.constant dense<0xFF800000> : vector<16xf32>
    %379 = vector.multi_reduction <maximumf>, %378, %cst_264 [1] : vector<16x16xf32> to vector<16xf32>
    %380 = vector.shape_cast %379 : vector<16xf32> to vector<16x1xf32>
    %381 = vector.broadcast %380 : vector<16x1xf32> to vector<16x16xf32>
    %382 = arith.subf %378, %381 : vector<16x16xf32>
    %383 = math.exp %382 : vector<16x16xf32>
    %cst_265 = arith.constant dense<0.000000e+00> : vector<16xf32>
    %384 = vector.multi_reduction <add>, %383, %cst_265 [1] : vector<16x16xf32> to vector<16xf32>
    %385 = vector.shape_cast %384 : vector<16xf32> to vector<16x1xf32>
    %386 = tpu.reciprocal %385 {approx = true} : vector<16x1xf32> -> vector<16x1xf32>
    %387 = vector.broadcast %386 : vector<16x1xf32> to vector<16x16xf32>
    %388 = arith.mulf %383, %387 : vector<16x16xf32>
    %389 = arith.truncf %388 : vector<16x16xf32> to vector<16x16xbf16>
    %390 = arith.truncf %371 : vector<16x16xf32> to vector<16x16xbf16>
    %cst_266 = arith.constant dense<0.000000e+00> : vector<16x16xf32>
    %391 = tpu.matmul %389, %390, %cst_266 {dimension_numbers = #tpu.dot_dimension_numbers<[1], [0], [0], [1], [0, 0, 1, 1], [], []>} : vector<16x16xbf16>, vector<16x16xbf16>, vector<16x16xf32> -> vector<16x16xf32>
    %c1_267 = arith.constant 1 : index
    %c2_268 = arith.constant 2 : index
    %c0_269 = arith.constant 0 : index
    %c0_270 = arith.constant 0 : index
    %392 = vector.load %arg10[%c1_267, %c2_268, %c0_269, %c0_270] : memref<2x4x16x32xbf16, #tpu.memory_space<vmem>>, vector<1x1x16x32xbf16>
    %393 = vector.shape_cast %392 : vector<1x1x16x32xbf16> to vector<16x32xbf16>
    %394 = arith.truncf %391 : vector<16x16xf32> to vector<16x16xbf16>
    %cst_271 = arith.constant dense<0.000000e+00> : vector<16x32xf32>
    %395 = tpu.matmul %394, %393, %cst_271 {dimension_numbers = #tpu.dot_dimension_numbers<[1], [0], [0], [1], [0, 0, 1, 1], [], []>} : vector<16x16xbf16>, vector<16x32xbf16>, vector<16x32xf32> -> vector<16x32xf32>
    %396 = arith.addf %362, %395 : vector<16x32xf32>
    %c1_272 = arith.constant 1 : index
    %c3_273 = arith.constant 3 : index
    %c0_274 = arith.constant 0 : index
    %c0_275 = arith.constant 0 : index
    %397 = vector.load %arg7[%c1_272, %c3_273, %c0_274, %c0_275] : memref<2x4x32x16xbf16, #tpu.memory_space<vmem>>, vector<1x1x32x16xbf16>
    %398 = vector.shape_cast %397 : vector<1x1x32x16xbf16> to vector<32x16xbf16>
    %cst_276 = arith.constant dense<0.000000e+00> : vector<16x16xf32>
    %399 = tpu.matmul %287, %398, %cst_276 {dimension_numbers = #tpu.dot_dimension_numbers<[1], [0], [0], [1], [0, 0, 1, 1], [], []>} : vector<16x32xbf16>, vector<32x16xbf16>, vector<16x16xf32> -> vector<16x16xf32>
    %c1_277 = arith.constant 1 : index
    %c3_278 = arith.constant 3 : index
    %c0_279 = arith.constant 0 : index
    %c0_280 = arith.constant 0 : index
    %400 = vector.load %arg8[%c1_277, %c3_278, %c0_279, %c0_280] : memref<2x4x32x16xbf16, #tpu.memory_space<vmem>>, vector<1x1x32x16xbf16>
    %401 = vector.shape_cast %400 : vector<1x1x32x16xbf16> to vector<32x16xbf16>
    %cst_281 = arith.constant dense<0.000000e+00> : vector<16x16xf32>
    %402 = tpu.matmul %287, %401, %cst_281 {dimension_numbers = #tpu.dot_dimension_numbers<[1], [0], [0], [1], [0, 0, 1, 1], [], []>} : vector<16x32xbf16>, vector<32x16xbf16>, vector<16x16xf32> -> vector<16x16xf32>
    %c1_282 = arith.constant 1 : index
    %c3_283 = arith.constant 3 : index
    %c0_284 = arith.constant 0 : index
    %c0_285 = arith.constant 0 : index
    %403 = vector.load %arg9[%c1_282, %c3_283, %c0_284, %c0_285] : memref<2x4x32x16xbf16, #tpu.memory_space<vmem>>, vector<1x1x32x16xbf16>
    %404 = vector.shape_cast %403 : vector<1x1x32x16xbf16> to vector<32x16xbf16>
    %cst_286 = arith.constant dense<0.000000e+00> : vector<16x16xf32>
    %405 = tpu.matmul %287, %404, %cst_286 {dimension_numbers = #tpu.dot_dimension_numbers<[1], [0], [0], [1], [0, 0, 1, 1], [], []>} : vector<16x32xbf16>, vector<32x16xbf16>, vector<16x16xf32> -> vector<16x16xf32>
    %406 = arith.truncf %399 : vector<16x16xf32> to vector<16x16xbf16>
    %407 = arith.truncf %402 : vector<16x16xf32> to vector<16x16xbf16>
    %cst_287 = arith.constant dense<0.000000e+00> : vector<16x16xf32>
    %408 = tpu.matmul %406, %407, %cst_287 {dimension_numbers = #tpu.dot_dimension_numbers<[1], [1], [0], [0], [0, 0, 1, 0], [], []>} : vector<16x16xbf16>, vector<16x16xbf16>, vector<16x16xf32> -> vector<16x16xf32>
    %cst_288 = arith.constant 2.500000e-01 : f32
    %409 = vector.broadcast %cst_288 : f32 to vector<16x16xf32>
    %410 = arith.mulf %408, %409 : vector<16x16xf32>
    %cst_289 = arith.constant -1.000000e+30 : f32
    %411 = vector.broadcast %cst_289 : f32 to vector<16x16xf32>
    %412 = arith.select %32, %410, %411 : vector<16x16xi1>, vector<16x16xf32>
    %cst_290 = arith.constant dense<0xFF800000> : vector<16xf32>
    %413 = vector.multi_reduction <maximumf>, %412, %cst_290 [1] : vector<16x16xf32> to vector<16xf32>
    %414 = vector.shape_cast %413 : vector<16xf32> to vector<16x1xf32>
    %415 = vector.broadcast %414 : vector<16x1xf32> to vector<16x16xf32>
    %416 = arith.subf %412, %415 : vector<16x16xf32>
    %417 = math.exp %416 : vector<16x16xf32>
    %cst_291 = arith.constant dense<0.000000e+00> : vector<16xf32>
    %418 = vector.multi_reduction <add>, %417, %cst_291 [1] : vector<16x16xf32> to vector<16xf32>
    %419 = vector.shape_cast %418 : vector<16xf32> to vector<16x1xf32>
    %420 = tpu.reciprocal %419 {approx = true} : vector<16x1xf32> -> vector<16x1xf32>
    %421 = vector.broadcast %420 : vector<16x1xf32> to vector<16x16xf32>
    %422 = arith.mulf %417, %421 : vector<16x16xf32>
    %423 = arith.truncf %422 : vector<16x16xf32> to vector<16x16xbf16>
    %424 = arith.truncf %405 : vector<16x16xf32> to vector<16x16xbf16>
    %cst_292 = arith.constant dense<0.000000e+00> : vector<16x16xf32>
    %425 = tpu.matmul %423, %424, %cst_292 {dimension_numbers = #tpu.dot_dimension_numbers<[1], [0], [0], [1], [0, 0, 1, 1], [], []>} : vector<16x16xbf16>, vector<16x16xbf16>, vector<16x16xf32> -> vector<16x16xf32>
    %c1_293 = arith.constant 1 : index
    %c3_294 = arith.constant 3 : index
    %c0_295 = arith.constant 0 : index
    %c0_296 = arith.constant 0 : index
    %426 = vector.load %arg10[%c1_293, %c3_294, %c0_295, %c0_296] : memref<2x4x16x32xbf16, #tpu.memory_space<vmem>>, vector<1x1x16x32xbf16>
    %427 = vector.shape_cast %426 : vector<1x1x16x32xbf16> to vector<16x32xbf16>
    %428 = arith.truncf %425 : vector<16x16xf32> to vector<16x16xbf16>
    %cst_297 = arith.constant dense<0.000000e+00> : vector<16x32xf32>
    %429 = tpu.matmul %428, %427, %cst_297 {dimension_numbers = #tpu.dot_dimension_numbers<[1], [0], [0], [1], [0, 0, 1, 1], [], []>} : vector<16x16xbf16>, vector<16x32xbf16>, vector<16x32xf32> -> vector<16x32xf32>
    %430 = arith.addf %396, %429 : vector<16x32xf32>
    %431 = arith.addf %262, %430 : vector<16x32xf32>
    %c1_298 = arith.constant 1 : index
    %c0_299 = arith.constant 0 : index
    %c0_300 = arith.constant 0 : index
    %432 = vector.load %arg11[%c1_298, %c0_299, %c0_300] : memref<2x1x32xf32, #tpu.memory_space<vmem>>, vector<1x1x32xf32>
    %433 = vector.shape_cast %432 : vector<1x1x32xf32> to vector<1x32xf32>
    %c1_301 = arith.constant 1 : index
    %c0_302 = arith.constant 0 : index
    %c0_303 = arith.constant 0 : index
    %434 = vector.load %arg12[%c1_301, %c0_302, %c0_303] : memref<2x1x32xf32, #tpu.memory_space<vmem>>, vector<1x1x32xf32>
    %435 = vector.shape_cast %434 : vector<1x1x32xf32> to vector<1x32xf32>
    %cst_304 = arith.constant dense<0.000000e+00> : vector<16xf32>
    %436 = vector.multi_reduction <add>, %431, %cst_304 [1] : vector<16x32xf32> to vector<16xf32>
    %437 = vector.shape_cast %436 : vector<16xf32> to vector<16x1xf32>
    %cst_305 = arith.constant 3.200000e+01 : f32
    %438 = vector.broadcast %cst_305 : f32 to vector<16x1xf32>
    %439 = arith.divf %437, %438 : vector<16x1xf32>
    %440 = vector.broadcast %439 : vector<16x1xf32> to vector<16x32xf32>
    %441 = arith.subf %431, %440 : vector<16x32xf32>
    %442 = arith.mulf %441, %441 : vector<16x32xf32>
    %cst_306 = arith.constant dense<0.000000e+00> : vector<16xf32>
    %443 = vector.multi_reduction <add>, %442, %cst_306 [1] : vector<16x32xf32> to vector<16xf32>
    %444 = vector.shape_cast %443 : vector<16xf32> to vector<16x1xf32>
    %cst_307 = arith.constant 3.200000e+01 : f32
    %445 = vector.broadcast %cst_307 : f32 to vector<16x1xf32>
    %446 = arith.divf %444, %445 : vector<16x1xf32>
    %cst_308 = arith.constant 9.99999974E-6 : f32
    %447 = vector.broadcast %cst_308 : f32 to vector<16x1xf32>
    %448 = arith.addf %446, %447 : vector<16x1xf32>
    %449 = math.rsqrt %448 : vector<16x1xf32>
    %450 = vector.broadcast %449 : vector<16x1xf32> to vector<16x32xf32>
    %451 = arith.mulf %441, %450 : vector<16x32xf32>
    %452 = vector.broadcast %433 : vector<1x32xf32> to vector<16x32xf32>
    %453 = arith.mulf %451, %452 : vector<16x32xf32>
    %454 = vector.broadcast %435 : vector<1x32xf32> to vector<16x32xf32>
    %455 = arith.addf %453, %454 : vector<16x32xf32>
    %c1_309 = arith.constant 1 : index
    %c0_310 = arith.constant 0 : index
    %c0_311 = arith.constant 0 : index
    %456 = vector.load %arg13[%c1_309, %c0_310, %c0_311] : memref<2x32x128xbf16, #tpu.memory_space<vmem>>, vector<1x32x128xbf16>
    %457 = vector.shape_cast %456 : vector<1x32x128xbf16> to vector<32x128xbf16>
    %458 = arith.truncf %455 : vector<16x32xf32> to vector<16x32xbf16>
    %cst_312 = arith.constant dense<0.000000e+00> : vector<16x128xf32>
    %459 = tpu.matmul %458, %457, %cst_312 {dimension_numbers = #tpu.dot_dimension_numbers<[1], [0], [0], [1], [0, 0, 1, 1], [], []>} : vector<16x32xbf16>, vector<32x128xbf16>, vector<16x128xf32> -> vector<16x128xf32>
    %c1_313 = arith.constant 1 : index
    %c0_314 = arith.constant 0 : index
    %c0_315 = arith.constant 0 : index
    %460 = vector.load %arg14[%c1_313, %c0_314, %c0_315] : memref<2x1x128xf32, #tpu.memory_space<vmem>>, vector<1x1x128xf32>
    %461 = vector.shape_cast %460 : vector<1x1x128xf32> to vector<1x128xf32>
    %462 = vector.broadcast %461 : vector<1x128xf32> to vector<16x128xf32>
    %463 = arith.addf %459, %462 : vector<16x128xf32>
    %464 = arith.mulf %463, %463 : vector<16x128xf32>
    %465 = arith.mulf %463, %464 : vector<16x128xf32>
    %cst_316 = arith.constant 4.471500e-02 : f32
    %466 = vector.broadcast %cst_316 : f32 to vector<16x128xf32>
    %467 = arith.mulf %466, %465 : vector<16x128xf32>
    %468 = arith.addf %463, %467 : vector<16x128xf32>
    %cst_317 = arith.constant 0.797884583 : f32
    %469 = vector.broadcast %cst_317 : f32 to vector<16x128xf32>
    %470 = arith.mulf %469, %468 : vector<16x128xf32>
    %471 = math.tanh %470 : vector<16x128xf32>
    %cst_318 = arith.constant 1.000000e+00 : f32
    %472 = vector.broadcast %cst_318 : f32 to vector<16x128xf32>
    %473 = arith.addf %472, %471 : vector<16x128xf32>
    %cst_319 = arith.constant 5.000000e-01 : f32
    %474 = vector.broadcast %cst_319 : f32 to vector<16x128xf32>
    %475 = arith.mulf %474, %473 : vector<16x128xf32>
    %476 = arith.mulf %463, %475 : vector<16x128xf32>
    %c1_320 = arith.constant 1 : index
    %c0_321 = arith.constant 0 : index
    %c0_322 = arith.constant 0 : index
    %477 = vector.load %arg15[%c1_320, %c0_321, %c0_322] : memref<2x128x32xbf16, #tpu.memory_space<vmem>>, vector<1x128x32xbf16>
    %478 = vector.shape_cast %477 : vector<1x128x32xbf16> to vector<128x32xbf16>
    %479 = arith.truncf %476 : vector<16x128xf32> to vector<16x128xbf16>
    %cst_323 = arith.constant dense<0.000000e+00> : vector<16x32xf32>
    %480 = tpu.matmul %479, %478, %cst_323 {dimension_numbers = #tpu.dot_dimension_numbers<[1], [0], [0], [1], [0, 0, 1, 1], [], []>} : vector<16x128xbf16>, vector<128x32xbf16>, vector<16x32xf32> -> vector<16x32xf32>
    %481 = arith.addf %431, %480 : vector<16x32xf32>
    %c1_324 = arith.constant 1 : index
    %c0_325 = arith.constant 0 : index
    %c0_326 = arith.constant 0 : index
    %482 = vector.load %arg16[%c1_324, %c0_325, %c0_326] : memref<2x1x32xf32, #tpu.memory_space<vmem>>, vector<1x1x32xf32>
    %483 = vector.shape_cast %482 : vector<1x1x32xf32> to vector<1x32xf32>
    %484 = vector.broadcast %483 : vector<1x32xf32> to vector<16x32xf32>
    %485 = arith.addf %481, %484 : vector<16x32xf32>
    %c0_327 = arith.constant 0 : index
    %c0_328 = arith.constant 0 : index
    %c0_329 = arith.constant 0 : index
    %486 = vector.load %arg22[%c0_327, %c0_328, %c0_329] : memref<2x16x32xf32, #tpu.memory_space<vmem>>, vector<1x16x32xf32>
    %487 = vector.shape_cast %486 : vector<1x16x32xf32> to vector<16x32xf32>
    %488 = vector.shape_cast %485 : vector<16x32xf32> to vector<1x16x32xf32>
    tpu.vector_store %arg22[%c0_327, %c0_328, %c0_329], %488 {strides = array<i32>} : memref<2x16x32xf32, #tpu.memory_space<vmem>>, vector<1x16x32xf32>,
    %c0_330 = arith.constant 0 : index
    %c7 = arith.constant 7 : index
    %c0_331 = arith.constant 0 : index
    %489 = vector.load %arg22[%c0_330, %c7, %c0_331] : memref<2x16x32xf32, #tpu.memory_space<vmem>>, vector<1x8x32xf32>
    %490 = vector.shape_cast %489 : vector<1x8x32xf32> to vector<8x32xf32>
    %c0_332 = arith.constant 0 : index
    %c0_333 = arith.constant 0 : index
    %491 = vector.load %arg17[%c0_332, %c0_333] : memref<1x32xf32, #tpu.memory_space<vmem>>, vector<1x32xf32>
    %c0_334 = arith.constant 0 : index
    %c0_335 = arith.constant 0 : index
    %492 = vector.load %arg18[%c0_334, %c0_335] : memref<1x32xf32, #tpu.memory_space<vmem>>, vector<1x32xf32>
    %cst_336 = arith.constant dense<0.000000e+00> : vector<8xf32>
    %493 = vector.multi_reduction <add>, %490, %cst_336 [1] : vector<8x32xf32> to vector<8xf32>
    %494 = vector.shape_cast %493 : vector<8xf32> to vector<8x1xf32>
    %cst_337 = arith.constant 3.200000e+01 : f32
    %495 = vector.broadcast %cst_337 : f32 to vector<8x1xf32>
    %496 = arith.divf %494, %495 : vector<8x1xf32>
    %497 = vector.broadcast %496 : vector<8x1xf32> to vector<8x32xf32>
    %498 = arith.subf %490, %497 : vector<8x32xf32>
    %499 = arith.mulf %498, %498 : vector<8x32xf32>
    %cst_338 = arith.constant dense<0.000000e+00> : vector<8xf32>
    %500 = vector.multi_reduction <add>, %499, %cst_338 [1] : vector<8x32xf32> to vector<8xf32>
    %501 = vector.shape_cast %500 : vector<8xf32> to vector<8x1xf32>
    %cst_339 = arith.constant 3.200000e+01 : f32
    %502 = vector.broadcast %cst_339 : f32 to vector<8x1xf32>
    %503 = arith.divf %501, %502 : vector<8x1xf32>
    %cst_340 = arith.constant 9.99999974E-6 : f32
    %504 = vector.broadcast %cst_340 : f32 to vector<8x1xf32>
    %505 = arith.addf %503, %504 : vector<8x1xf32>
    %506 = math.rsqrt %505 : vector<8x1xf32>
    %507 = vector.broadcast %506 : vector<8x1xf32> to vector<8x32xf32>
    %508 = arith.mulf %498, %507 : vector<8x32xf32>
    %509 = vector.broadcast %491 : vector<1x32xf32> to vector<8x32xf32>
    %510 = arith.mulf %508, %509 : vector<8x32xf32>
    %511 = vector.broadcast %492 : vector<1x32xf32> to vector<8x32xf32>
    %512 = arith.addf %510, %511 : vector<8x32xf32>
    %c0_341 = arith.constant 0 : index
    %c0_342 = arith.constant 0 : index
    %513 = vector.load %arg19[%c0_341, %c0_342] : memref<32x128xbf16, #tpu.memory_space<vmem>>, vector<32x128xbf16>
    %514 = arith.truncf %512 : vector<8x32xf32> to vector<8x32xbf16>
    %cst_343 = arith.constant dense<0.000000e+00> : vector<8x128xf32>
    %515 = tpu.matmul %514, %513, %cst_343 {dimension_numbers = #tpu.dot_dimension_numbers<[1], [0], [0], [1], [0, 0, 1, 1], [], []>} : vector<8x32xbf16>, vector<32x128xbf16>, vector<8x128xf32> -> vector<8x128xf32>
    %c0_344 = arith.constant 0 : index
    %c0_345 = arith.constant 0 : index
    %516 = vector.load %arg20[%c0_344, %c0_345] : memref<1x128xf32, #tpu.memory_space<vmem>>, vector<1x128xf32>
    %517 = vector.broadcast %516 : vector<1x128xf32> to vector<8x128xf32>
    %518 = arith.addf %515, %517 : vector<8x128xf32>
    %c0_346 = arith.constant 0 : index
    %c0_347 = arith.constant 0 : index
    %c0_348 = arith.constant 0 : index
    %519 = vector.load %arg21[%c0_346, %c0_347, %c0_348] : memref<2x8x128xf32, #tpu.memory_space<vmem>>, vector<1x8x128xf32>
    %520 = vector.shape_cast %519 : vector<1x8x128xf32> to vector<8x128xf32>
    %521 = vector.shape_cast %518 : vector<8x128xf32> to vector<1x8x128xf32>
    tpu.vector_store %arg21[%c0_346, %c0_347, %c0_348], %521 {strides = array<i32>} : memref<2x8x128xf32, #tpu.memory_space<vmem>>, vector<1x8x128xf32>,
    %c1_349 = arith.constant 1 : index
    %c0_350 = arith.constant 0 : index
    %c0_351 = arith.constant 0 : index
    %522 = vector.load %arg22[%c1_349, %c0_350, %c0_351] : memref<2x16x32xf32, #tpu.memory_space<vmem>>, vector<1x16x32xf32>
    %523 = vector.shape_cast %522 : vector<1x16x32xf32> to vector<16x32xf32>
    %c0_352 = arith.constant 0 : index
    %c0_353 = arith.constant 0 : index
    %c0_354 = arith.constant 0 : index
    %524 = vector.load %arg5[%c0_352, %c0_353, %c0_354] : memref<2x1x32xf32, #tpu.memory_space<vmem>>, vector<1x1x32xf32>
    %525 = vector.shape_cast %524 : vector<1x1x32xf32> to vector<1x32xf32>
    %c0_355 = arith.constant 0 : index
    %c0_356 = arith.constant 0 : index
    %c0_357 = arith.constant 0 : index
    %526 = vector.load %arg6[%c0_355, %c0_356, %c0_357] : memref<2x1x32xf32, #tpu.memory_space<vmem>>, vector<1x1x32xf32>
    %527 = vector.shape_cast %526 : vector<1x1x32xf32> to vector<1x32xf32>
    %cst_358 = arith.constant dense<0.000000e+00> : vector<16xf32>
    %528 = vector.multi_reduction <add>, %523, %cst_358 [1] : vector<16x32xf32> to vector<16xf32>
    %529 = vector.shape_cast %528 : vector<16xf32> to vector<16x1xf32>
    %cst_359 = arith.constant 3.200000e+01 : f32
    %530 = vector.broadcast %cst_359 : f32 to vector<16x1xf32>
    %531 = arith.divf %529, %530 : vector<16x1xf32>
    %532 = vector.broadcast %531 : vector<16x1xf32> to vector<16x32xf32>
    %533 = arith.subf %523, %532 : vector<16x32xf32>
    %534 = arith.mulf %533, %533 : vector<16x32xf32>
    %cst_360 = arith.constant dense<0.000000e+00> : vector<16xf32>
    %535 = vector.multi_reduction <add>, %534, %cst_360 [1] : vector<16x32xf32> to vector<16xf32>
    %536 = vector.shape_cast %535 : vector<16xf32> to vector<16x1xf32>
    %cst_361 = arith.constant 3.200000e+01 : f32
    %537 = vector.broadcast %cst_361 : f32 to vector<16x1xf32>
    %538 = arith.divf %536, %537 : vector<16x1xf32>
    %cst_362 = arith.constant 9.99999974E-6 : f32
    %539 = vector.broadcast %cst_362 : f32 to vector<16x1xf32>
    %540 = arith.addf %538, %539 : vector<16x1xf32>
    %541 = math.rsqrt %540 : vector<16x1xf32>
    %542 = vector.broadcast %541 : vector<16x1xf32> to vector<16x32xf32>
    %543 = arith.mulf %533, %542 : vector<16x32xf32>
    %544 = vector.broadcast %525 : vector<1x32xf32> to vector<16x32xf32>
    %545 = arith.mulf %543, %544 : vector<16x32xf32>
    %546 = vector.broadcast %527 : vector<1x32xf32> to vector<16x32xf32>
    %547 = arith.addf %545, %546 : vector<16x32xf32>
    %548 = arith.truncf %547 : vector<16x32xf32> to vector<16x32xbf16>
    %cst_363 = arith.constant 0.000000e+00 : f32
    %549 = vector.broadcast %cst_363 : f32 to vector<16x32xf32>
    %c0_364 = arith.constant 0 : index
    %c0_365 = arith.constant 0 : index
    %c0_366 = arith.constant 0 : index
    %c0_367 = arith.constant 0 : index
    %550 = vector.load %arg7[%c0_364, %c0_365, %c0_366, %c0_367] : memref<2x4x32x16xbf16, #tpu.memory_space<vmem>>, vector<1x1x32x16xbf16>
    %551 = vector.shape_cast %550 : vector<1x1x32x16xbf16> to vector<32x16xbf16>
    %cst_368 = arith.constant dense<0.000000e+00> : vector<16x16xf32>
    %552 = tpu.matmul %548, %551, %cst_368 {dimension_numbers = #tpu.dot_dimension_numbers<[1], [0], [0], [1], [0, 0, 1, 1], [], []>} : vector<16x32xbf16>, vector<32x16xbf16>, vector<16x16xf32> -> vector<16x16xf32>
    %c0_369 = arith.constant 0 : index
    %c0_370 = arith.constant 0 : index
    %c0_371 = arith.constant 0 : index
    %c0_372 = arith.constant 0 : index
    %553 = vector.load %arg8[%c0_369, %c0_370, %c0_371, %c0_372] : memref<2x4x32x16xbf16, #tpu.memory_space<vmem>>, vector<1x1x32x16xbf16>
    %554 = vector.shape_cast %553 : vector<1x1x32x16xbf16> to vector<32x16xbf16>
    %cst_373 = arith.constant dense<0.000000e+00> : vector<16x16xf32>
    %555 = tpu.matmul %548, %554, %cst_373 {dimension_numbers = #tpu.dot_dimension_numbers<[1], [0], [0], [1], [0, 0, 1, 1], [], []>} : vector<16x32xbf16>, vector<32x16xbf16>, vector<16x16xf32> -> vector<16x16xf32>
    %c0_374 = arith.constant 0 : index
    %c0_375 = arith.constant 0 : index
    %c0_376 = arith.constant 0 : index
    %c0_377 = arith.constant 0 : index
    %556 = vector.load %arg9[%c0_374, %c0_375, %c0_376, %c0_377] : memref<2x4x32x16xbf16, #tpu.memory_space<vmem>>, vector<1x1x32x16xbf16>
    %557 = vector.shape_cast %556 : vector<1x1x32x16xbf16> to vector<32x16xbf16>
    %cst_378 = arith.constant dense<0.000000e+00> : vector<16x16xf32>
    %558 = tpu.matmul %548, %557, %cst_378 {dimension_numbers = #tpu.dot_dimension_numbers<[1], [0], [0], [1], [0, 0, 1, 1], [], []>} : vector<16x32xbf16>, vector<32x16xbf16>, vector<16x16xf32> -> vector<16x16xf32>
    %559 = arith.truncf %552 : vector<16x16xf32> to vector<16x16xbf16>
    %560 = arith.truncf %555 : vector<16x16xf32> to vector<16x16xbf16>
    %cst_379 = arith.constant dense<0.000000e+00> : vector<16x16xf32>
    %561 = tpu.matmul %559, %560, %cst_379 {dimension_numbers = #tpu.dot_dimension_numbers<[1], [1], [0], [0], [0, 0, 1, 0], [], []>} : vector<16x16xbf16>, vector<16x16xbf16>, vector<16x16xf32> -> vector<16x16xf32>
    %cst_380 = arith.constant 2.500000e-01 : f32
    %562 = vector.broadcast %cst_380 : f32 to vector<16x16xf32>
    %563 = arith.mulf %561, %562 : vector<16x16xf32>
    %cst_381 = arith.constant 6.250000e-02 : f32
    %564 = vector.broadcast %cst_381 : f32 to vector<16x16xf32>
    %565 = arith.mulf %564, %37 : vector<16x16xf32>
    %566 = arith.addf %563, %565 : vector<16x16xf32>
    %cst_382 = arith.constant -1.000000e+30 : f32
    %567 = vector.broadcast %cst_382 : f32 to vector<16x16xf32>
    %568 = arith.select %32, %566, %567 : vector<16x16xi1>, vector<16x16xf32>
    %cst_383 = arith.constant dense<0xFF800000> : vector<16xf32>
    %569 = vector.multi_reduction <maximumf>, %568, %cst_383 [1] : vector<16x16xf32> to vector<16xf32>
    %570 = vector.shape_cast %569 : vector<16xf32> to vector<16x1xf32>
    %571 = vector.broadcast %570 : vector<16x1xf32> to vector<16x16xf32>
    %572 = arith.subf %568, %571 : vector<16x16xf32>
    %573 = math.exp %572 : vector<16x16xf32>
    %cst_384 = arith.constant dense<0.000000e+00> : vector<16xf32>
    %574 = vector.multi_reduction <add>, %573, %cst_384 [1] : vector<16x16xf32> to vector<16xf32>
    %575 = vector.shape_cast %574 : vector<16xf32> to vector<16x1xf32>
    %576 = tpu.reciprocal %575 {approx = true} : vector<16x1xf32> -> vector<16x1xf32>
    %577 = vector.broadcast %576 : vector<16x1xf32> to vector<16x16xf32>
    %578 = arith.mulf %573, %577 : vector<16x16xf32>
    %579 = arith.truncf %578 : vector<16x16xf32> to vector<16x16xbf16>
    %580 = arith.truncf %558 : vector<16x16xf32> to vector<16x16xbf16>
    %cst_385 = arith.constant dense<0.000000e+00> : vector<16x16xf32>
    %581 = tpu.matmul %579, %580, %cst_385 {dimension_numbers = #tpu.dot_dimension_numbers<[1], [0], [0], [1], [0, 0, 1, 1], [], []>} : vector<16x16xbf16>, vector<16x16xbf16>, vector<16x16xf32> -> vector<16x16xf32>
    %c0_386 = arith.constant 0 : index
    %c0_387 = arith.constant 0 : index
    %c0_388 = arith.constant 0 : index
    %c0_389 = arith.constant 0 : index
    %582 = vector.load %arg10[%c0_386, %c0_387, %c0_388, %c0_389] : memref<2x4x16x32xbf16, #tpu.memory_space<vmem>>, vector<1x1x16x32xbf16>
    %583 = vector.shape_cast %582 : vector<1x1x16x32xbf16> to vector<16x32xbf16>
    %584 = arith.truncf %581 : vector<16x16xf32> to vector<16x16xbf16>
    %cst_390 = arith.constant dense<0.000000e+00> : vector<16x32xf32>
    %585 = tpu.matmul %584, %583, %cst_390 {dimension_numbers = #tpu.dot_dimension_numbers<[1], [0], [0], [1], [0, 0, 1, 1], [], []>} : vector<16x16xbf16>, vector<16x32xbf16>, vector<16x32xf32> -> vector<16x32xf32>
    %586 = arith.addf %549, %585 : vector<16x32xf32>
    %c0_391 = arith.constant 0 : index
    %c1_392 = arith.constant 1 : index
    %c0_393 = arith.constant 0 : index
    %c0_394 = arith.constant 0 : index
    %587 = vector.load %arg7[%c0_391, %c1_392, %c0_393, %c0_394] : memref<2x4x32x16xbf16, #tpu.memory_space<vmem>>, vector<1x1x32x16xbf16>
    %588 = vector.shape_cast %587 : vector<1x1x32x16xbf16> to vector<32x16xbf16>
    %cst_395 = arith.constant dense<0.000000e+00> : vector<16x16xf32>
    %589 = tpu.matmul %548, %588, %cst_395 {dimension_numbers = #tpu.dot_dimension_numbers<[1], [0], [0], [1], [0, 0, 1, 1], [], []>} : vector<16x32xbf16>, vector<32x16xbf16>, vector<16x16xf32> -> vector<16x16xf32>
    %c0_396 = arith.constant 0 : index
    %c1_397 = arith.constant 1 : index
    %c0_398 = arith.constant 0 : index
    %c0_399 = arith.constant 0 : index
    %590 = vector.load %arg8[%c0_396, %c1_397, %c0_398, %c0_399] : memref<2x4x32x16xbf16, #tpu.memory_space<vmem>>, vector<1x1x32x16xbf16>
    %591 = vector.shape_cast %590 : vector<1x1x32x16xbf16> to vector<32x16xbf16>
    %cst_400 = arith.constant dense<0.000000e+00> : vector<16x16xf32>
    %592 = tpu.matmul %548, %591, %cst_400 {dimension_numbers = #tpu.dot_dimension_numbers<[1], [0], [0], [1], [0, 0, 1, 1], [], []>} : vector<16x32xbf16>, vector<32x16xbf16>, vector<16x16xf32> -> vector<16x16xf32>
    %c0_401 = arith.constant 0 : index
    %c1_402 = arith.constant 1 : index
    %c0_403 = arith.constant 0 : index
    %c0_404 = arith.constant 0 : index
    %593 = vector.load %arg9[%c0_401, %c1_402, %c0_403, %c0_404] : memref<2x4x32x16xbf16, #tpu.memory_space<vmem>>, vector<1x1x32x16xbf16>
    %594 = vector.shape_cast %593 : vector<1x1x32x16xbf16> to vector<32x16xbf16>
    %cst_405 = arith.constant dense<0.000000e+00> : vector<16x16xf32>
    %595 = tpu.matmul %548, %594, %cst_405 {dimension_numbers = #tpu.dot_dimension_numbers<[1], [0], [0], [1], [0, 0, 1, 1], [], []>} : vector<16x32xbf16>, vector<32x16xbf16>, vector<16x16xf32> -> vector<16x16xf32>
    %596 = arith.truncf %589 : vector<16x16xf32> to vector<16x16xbf16>
    %597 = arith.truncf %592 : vector<16x16xf32> to vector<16x16xbf16>
    %cst_406 = arith.constant dense<0.000000e+00> : vector<16x16xf32>
    %598 = tpu.matmul %596, %597, %cst_406 {dimension_numbers = #tpu.dot_dimension_numbers<[1], [1], [0], [0], [0, 0, 1, 0], [], []>} : vector<16x16xbf16>, vector<16x16xbf16>, vector<16x16xf32> -> vector<16x16xf32>
    %cst_407 = arith.constant 2.500000e-01 : f32
    %599 = vector.broadcast %cst_407 : f32 to vector<16x16xf32>
    %600 = arith.mulf %598, %599 : vector<16x16xf32>
    %cst_408 = arith.constant 3.906250e-03 : f32
    %601 = vector.broadcast %cst_408 : f32 to vector<16x16xf32>
    %602 = arith.mulf %601, %37 : vector<16x16xf32>
    %603 = arith.addf %600, %602 : vector<16x16xf32>
    %cst_409 = arith.constant -1.000000e+30 : f32
    %604 = vector.broadcast %cst_409 : f32 to vector<16x16xf32>
    %605 = arith.select %32, %603, %604 : vector<16x16xi1>, vector<16x16xf32>
    %cst_410 = arith.constant dense<0xFF800000> : vector<16xf32>
    %606 = vector.multi_reduction <maximumf>, %605, %cst_410 [1] : vector<16x16xf32> to vector<16xf32>
    %607 = vector.shape_cast %606 : vector<16xf32> to vector<16x1xf32>
    %608 = vector.broadcast %607 : vector<16x1xf32> to vector<16x16xf32>
    %609 = arith.subf %605, %608 : vector<16x16xf32>
    %610 = math.exp %609 : vector<16x16xf32>
    %cst_411 = arith.constant dense<0.000000e+00> : vector<16xf32>
    %611 = vector.multi_reduction <add>, %610, %cst_411 [1] : vector<16x16xf32> to vector<16xf32>
    %612 = vector.shape_cast %611 : vector<16xf32> to vector<16x1xf32>
    %613 = tpu.reciprocal %612 {approx = true} : vector<16x1xf32> -> vector<16x1xf32>
    %614 = vector.broadcast %613 : vector<16x1xf32> to vector<16x16xf32>
    %615 = arith.mulf %610, %614 : vector<16x16xf32>
    %616 = arith.truncf %615 : vector<16x16xf32> to vector<16x16xbf16>
    %617 = arith.truncf %595 : vector<16x16xf32> to vector<16x16xbf16>
    %cst_412 = arith.constant dense<0.000000e+00> : vector<16x16xf32>
    %618 = tpu.matmul %616, %617, %cst_412 {dimension_numbers = #tpu.dot_dimension_numbers<[1], [0], [0], [1], [0, 0, 1, 1], [], []>} : vector<16x16xbf16>, vector<16x16xbf16>, vector<16x16xf32> -> vector<16x16xf32>
    %c0_413 = arith.constant 0 : index
    %c1_414 = arith.constant 1 : index
    %c0_415 = arith.constant 0 : index
    %c0_416 = arith.constant 0 : index
    %619 = vector.load %arg10[%c0_413, %c1_414, %c0_415, %c0_416] : memref<2x4x16x32xbf16, #tpu.memory_space<vmem>>, vector<1x1x16x32xbf16>
    %620 = vector.shape_cast %619 : vector<1x1x16x32xbf16> to vector<16x32xbf16>
    %621 = arith.truncf %618 : vector<16x16xf32> to vector<16x16xbf16>
    %cst_417 = arith.constant dense<0.000000e+00> : vector<16x32xf32>
    %622 = tpu.matmul %621, %620, %cst_417 {dimension_numbers = #tpu.dot_dimension_numbers<[1], [0], [0], [1], [0, 0, 1, 1], [], []>} : vector<16x16xbf16>, vector<16x32xbf16>, vector<16x32xf32> -> vector<16x32xf32>
    %623 = arith.addf %586, %622 : vector<16x32xf32>
    %c0_418 = arith.constant 0 : index
    %c2_419 = arith.constant 2 : index
    %c0_420 = arith.constant 0 : index
    %c0_421 = arith.constant 0 : index
    %624 = vector.load %arg7[%c0_418, %c2_419, %c0_420, %c0_421] : memref<2x4x32x16xbf16, #tpu.memory_space<vmem>>, vector<1x1x32x16xbf16>
    %625 = vector.shape_cast %624 : vector<1x1x32x16xbf16> to vector<32x16xbf16>
    %cst_422 = arith.constant dense<0.000000e+00> : vector<16x16xf32>
    %626 = tpu.matmul %548, %625, %cst_422 {dimension_numbers = #tpu.dot_dimension_numbers<[1], [0], [0], [1], [0, 0, 1, 1], [], []>} : vector<16x32xbf16>, vector<32x16xbf16>, vector<16x16xf32> -> vector<16x16xf32>
    %c0_423 = arith.constant 0 : index
    %c2_424 = arith.constant 2 : index
    %c0_425 = arith.constant 0 : index
    %c0_426 = arith.constant 0 : index
    %627 = vector.load %arg8[%c0_423, %c2_424, %c0_425, %c0_426] : memref<2x4x32x16xbf16, #tpu.memory_space<vmem>>, vector<1x1x32x16xbf16>
    %628 = vector.shape_cast %627 : vector<1x1x32x16xbf16> to vector<32x16xbf16>
    %cst_427 = arith.constant dense<0.000000e+00> : vector<16x16xf32>
    %629 = tpu.matmul %548, %628, %cst_427 {dimension_numbers = #tpu.dot_dimension_numbers<[1], [0], [0], [1], [0, 0, 1, 1], [], []>} : vector<16x32xbf16>, vector<32x16xbf16>, vector<16x16xf32> -> vector<16x16xf32>
    %c0_428 = arith.constant 0 : index
    %c2_429 = arith.constant 2 : index
    %c0_430 = arith.constant 0 : index
    %c0_431 = arith.constant 0 : index
    %630 = vector.load %arg9[%c0_428, %c2_429, %c0_430, %c0_431] : memref<2x4x32x16xbf16, #tpu.memory_space<vmem>>, vector<1x1x32x16xbf16>
    %631 = vector.shape_cast %630 : vector<1x1x32x16xbf16> to vector<32x16xbf16>
    %cst_432 = arith.constant dense<0.000000e+00> : vector<16x16xf32>
    %632 = tpu.matmul %548, %631, %cst_432 {dimension_numbers = #tpu.dot_dimension_numbers<[1], [0], [0], [1], [0, 0, 1, 1], [], []>} : vector<16x32xbf16>, vector<32x16xbf16>, vector<16x16xf32> -> vector<16x16xf32>
    %633 = arith.truncf %626 : vector<16x16xf32> to vector<16x16xbf16>
    %634 = arith.truncf %629 : vector<16x16xf32> to vector<16x16xbf16>
    %cst_433 = arith.constant dense<0.000000e+00> : vector<16x16xf32>
    %635 = tpu.matmul %633, %634, %cst_433 {dimension_numbers = #tpu.dot_dimension_numbers<[1], [1], [0], [0], [0, 0, 1, 0], [], []>} : vector<16x16xbf16>, vector<16x16xbf16>, vector<16x16xf32> -> vector<16x16xf32>
    %cst_434 = arith.constant 2.500000e-01 : f32
    %636 = vector.broadcast %cst_434 : f32 to vector<16x16xf32>
    %637 = arith.mulf %635, %636 : vector<16x16xf32>
    %cst_435 = arith.constant -1.000000e+30 : f32
    %638 = vector.broadcast %cst_435 : f32 to vector<16x16xf32>
    %639 = arith.select %32, %637, %638 : vector<16x16xi1>, vector<16x16xf32>
    %cst_436 = arith.constant dense<0xFF800000> : vector<16xf32>
    %640 = vector.multi_reduction <maximumf>, %639, %cst_436 [1] : vector<16x16xf32> to vector<16xf32>
    %641 = vector.shape_cast %640 : vector<16xf32> to vector<16x1xf32>
    %642 = vector.broadcast %641 : vector<16x1xf32> to vector<16x16xf32>
    %643 = arith.subf %639, %642 : vector<16x16xf32>
    %644 = math.exp %643 : vector<16x16xf32>
    %cst_437 = arith.constant dense<0.000000e+00> : vector<16xf32>
    %645 = vector.multi_reduction <add>, %644, %cst_437 [1] : vector<16x16xf32> to vector<16xf32>
    %646 = vector.shape_cast %645 : vector<16xf32> to vector<16x1xf32>
    %647 = tpu.reciprocal %646 {approx = true} : vector<16x1xf32> -> vector<16x1xf32>
    %648 = vector.broadcast %647 : vector<16x1xf32> to vector<16x16xf32>
    %649 = arith.mulf %644, %648 : vector<16x16xf32>
    %650 = arith.truncf %649 : vector<16x16xf32> to vector<16x16xbf16>
    %651 = arith.truncf %632 : vector<16x16xf32> to vector<16x16xbf16>
    %cst_438 = arith.constant dense<0.000000e+00> : vector<16x16xf32>
    %652 = tpu.matmul %650, %651, %cst_438 {dimension_numbers = #tpu.dot_dimension_numbers<[1], [0], [0], [1], [0, 0, 1, 1], [], []>} : vector<16x16xbf16>, vector<16x16xbf16>, vector<16x16xf32> -> vector<16x16xf32>
    %c0_439 = arith.constant 0 : index
    %c2_440 = arith.constant 2 : index
    %c0_441 = arith.constant 0 : index
    %c0_442 = arith.constant 0 : index
    %653 = vector.load %arg10[%c0_439, %c2_440, %c0_441, %c0_442] : memref<2x4x16x32xbf16, #tpu.memory_space<vmem>>, vector<1x1x16x32xbf16>
    %654 = vector.shape_cast %653 : vector<1x1x16x32xbf16> to vector<16x32xbf16>
    %655 = arith.truncf %652 : vector<16x16xf32> to vector<16x16xbf16>
    %cst_443 = arith.constant dense<0.000000e+00> : vector<16x32xf32>
    %656 = tpu.matmul %655, %654, %cst_443 {dimension_numbers = #tpu.dot_dimension_numbers<[1], [0], [0], [1], [0, 0, 1, 1], [], []>} : vector<16x16xbf16>, vector<16x32xbf16>, vector<16x32xf32> -> vector<16x32xf32>
    %657 = arith.addf %623, %656 : vector<16x32xf32>
    %c0_444 = arith.constant 0 : index
    %c3_445 = arith.constant 3 : index
    %c0_446 = arith.constant 0 : index
    %c0_447 = arith.constant 0 : index
    %658 = vector.load %arg7[%c0_444, %c3_445, %c0_446, %c0_447] : memref<2x4x32x16xbf16, #tpu.memory_space<vmem>>, vector<1x1x32x16xbf16>
    %659 = vector.shape_cast %658 : vector<1x1x32x16xbf16> to vector<32x16xbf16>
    %cst_448 = arith.constant dense<0.000000e+00> : vector<16x16xf32>
    %660 = tpu.matmul %548, %659, %cst_448 {dimension_numbers = #tpu.dot_dimension_numbers<[1], [0], [0], [1], [0, 0, 1, 1], [], []>} : vector<16x32xbf16>, vector<32x16xbf16>, vector<16x16xf32> -> vector<16x16xf32>
    %c0_449 = arith.constant 0 : index
    %c3_450 = arith.constant 3 : index
    %c0_451 = arith.constant 0 : index
    %c0_452 = arith.constant 0 : index
    %661 = vector.load %arg8[%c0_449, %c3_450, %c0_451, %c0_452] : memref<2x4x32x16xbf16, #tpu.memory_space<vmem>>, vector<1x1x32x16xbf16>
    %662 = vector.shape_cast %661 : vector<1x1x32x16xbf16> to vector<32x16xbf16>
    %cst_453 = arith.constant dense<0.000000e+00> : vector<16x16xf32>
    %663 = tpu.matmul %548, %662, %cst_453 {dimension_numbers = #tpu.dot_dimension_numbers<[1], [0], [0], [1], [0, 0, 1, 1], [], []>} : vector<16x32xbf16>, vector<32x16xbf16>, vector<16x16xf32> -> vector<16x16xf32>
    %c0_454 = arith.constant 0 : index
    %c3_455 = arith.constant 3 : index
    %c0_456 = arith.constant 0 : index
    %c0_457 = arith.constant 0 : index
    %664 = vector.load %arg9[%c0_454, %c3_455, %c0_456, %c0_457] : memref<2x4x32x16xbf16, #tpu.memory_space<vmem>>, vector<1x1x32x16xbf16>
    %665 = vector.shape_cast %664 : vector<1x1x32x16xbf16> to vector<32x16xbf16>
    %cst_458 = arith.constant dense<0.000000e+00> : vector<16x16xf32>
    %666 = tpu.matmul %548, %665, %cst_458 {dimension_numbers = #tpu.dot_dimension_numbers<[1], [0], [0], [1], [0, 0, 1, 1], [], []>} : vector<16x32xbf16>, vector<32x16xbf16>, vector<16x16xf32> -> vector<16x16xf32>
    %667 = arith.truncf %660 : vector<16x16xf32> to vector<16x16xbf16>
    %668 = arith.truncf %663 : vector<16x16xf32> to vector<16x16xbf16>
    %cst_459 = arith.constant dense<0.000000e+00> : vector<16x16xf32>
    %669 = tpu.matmul %667, %668, %cst_459 {dimension_numbers = #tpu.dot_dimension_numbers<[1], [1], [0], [0], [0, 0, 1, 0], [], []>} : vector<16x16xbf16>, vector<16x16xbf16>, vector<16x16xf32> -> vector<16x16xf32>
    %cst_460 = arith.constant 2.500000e-01 : f32
    %670 = vector.broadcast %cst_460 : f32 to vector<16x16xf32>
    %671 = arith.mulf %669, %670 : vector<16x16xf32>
    %cst_461 = arith.constant -1.000000e+30 : f32
    %672 = vector.broadcast %cst_461 : f32 to vector<16x16xf32>
    %673 = arith.select %32, %671, %672 : vector<16x16xi1>, vector<16x16xf32>
    %cst_462 = arith.constant dense<0xFF800000> : vector<16xf32>
    %674 = vector.multi_reduction <maximumf>, %673, %cst_462 [1] : vector<16x16xf32> to vector<16xf32>
    %675 = vector.shape_cast %674 : vector<16xf32> to vector<16x1xf32>
    %676 = vector.broadcast %675 : vector<16x1xf32> to vector<16x16xf32>
    %677 = arith.subf %673, %676 : vector<16x16xf32>
    %678 = math.exp %677 : vector<16x16xf32>
    %cst_463 = arith.constant dense<0.000000e+00> : vector<16xf32>
    %679 = vector.multi_reduction <add>, %678, %cst_463 [1] : vector<16x16xf32> to vector<16xf32>
    %680 = vector.shape_cast %679 : vector<16xf32> to vector<16x1xf32>
    %681 = tpu.reciprocal %680 {approx = true} : vector<16x1xf32> -> vector<16x1xf32>
    %682 = vector.broadcast %681 : vector<16x1xf32> to vector<16x16xf32>
    %683 = arith.mulf %678, %682 : vector<16x16xf32>
    %684 = arith.truncf %683 : vector<16x16xf32> to vector<16x16xbf16>
    %685 = arith.truncf %666 : vector<16x16xf32> to vector<16x16xbf16>
    %cst_464 = arith.constant dense<0.000000e+00> : vector<16x16xf32>
    %686 = tpu.matmul %684, %685, %cst_464 {dimension_numbers = #tpu.dot_dimension_numbers<[1], [0], [0], [1], [0, 0, 1, 1], [], []>} : vector<16x16xbf16>, vector<16x16xbf16>, vector<16x16xf32> -> vector<16x16xf32>
    %c0_465 = arith.constant 0 : index
    %c3_466 = arith.constant 3 : index
    %c0_467 = arith.constant 0 : index
    %c0_468 = arith.constant 0 : index
    %687 = vector.load %arg10[%c0_465, %c3_466, %c0_467, %c0_468] : memref<2x4x16x32xbf16, #tpu.memory_space<vmem>>, vector<1x1x16x32xbf16>
    %688 = vector.shape_cast %687 : vector<1x1x16x32xbf16> to vector<16x32xbf16>
    %689 = arith.truncf %686 : vector<16x16xf32> to vector<16x16xbf16>
    %cst_469 = arith.constant dense<0.000000e+00> : vector<16x32xf32>
    %690 = tpu.matmul %689, %688, %cst_469 {dimension_numbers = #tpu.dot_dimension_numbers<[1], [0], [0], [1], [0, 0, 1, 1], [], []>} : vector<16x16xbf16>, vector<16x32xbf16>, vector<16x32xf32> -> vector<16x32xf32>
    %691 = arith.addf %657, %690 : vector<16x32xf32>
    %692 = arith.addf %523, %691 : vector<16x32xf32>
    %c0_470 = arith.constant 0 : index
    %c0_471 = arith.constant 0 : index
    %c0_472 = arith.constant 0 : index
    %693 = vector.load %arg11[%c0_470, %c0_471, %c0_472] : memref<2x1x32xf32, #tpu.memory_space<vmem>>, vector<1x1x32xf32>
    %694 = vector.shape_cast %693 : vector<1x1x32xf32> to vector<1x32xf32>
    %c0_473 = arith.constant 0 : index
    %c0_474 = arith.constant 0 : index
    %c0_475 = arith.constant 0 : index
    %695 = vector.load %arg12[%c0_473, %c0_474, %c0_475] : memref<2x1x32xf32, #tpu.memory_space<vmem>>, vector<1x1x32xf32>
    %696 = vector.shape_cast %695 : vector<1x1x32xf32> to vector<1x32xf32>
    %cst_476 = arith.constant dense<0.000000e+00> : vector<16xf32>
    %697 = vector.multi_reduction <add>, %692, %cst_476 [1] : vector<16x32xf32> to vector<16xf32>
    %698 = vector.shape_cast %697 : vector<16xf32> to vector<16x1xf32>
    %cst_477 = arith.constant 3.200000e+01 : f32
    %699 = vector.broadcast %cst_477 : f32 to vector<16x1xf32>
    %700 = arith.divf %698, %699 : vector<16x1xf32>
    %701 = vector.broadcast %700 : vector<16x1xf32> to vector<16x32xf32>
    %702 = arith.subf %692, %701 : vector<16x32xf32>
    %703 = arith.mulf %702, %702 : vector<16x32xf32>
    %cst_478 = arith.constant dense<0.000000e+00> : vector<16xf32>
    %704 = vector.multi_reduction <add>, %703, %cst_478 [1] : vector<16x32xf32> to vector<16xf32>
    %705 = vector.shape_cast %704 : vector<16xf32> to vector<16x1xf32>
    %cst_479 = arith.constant 3.200000e+01 : f32
    %706 = vector.broadcast %cst_479 : f32 to vector<16x1xf32>
    %707 = arith.divf %705, %706 : vector<16x1xf32>
    %cst_480 = arith.constant 9.99999974E-6 : f32
    %708 = vector.broadcast %cst_480 : f32 to vector<16x1xf32>
    %709 = arith.addf %707, %708 : vector<16x1xf32>
    %710 = math.rsqrt %709 : vector<16x1xf32>
    %711 = vector.broadcast %710 : vector<16x1xf32> to vector<16x32xf32>
    %712 = arith.mulf %702, %711 : vector<16x32xf32>
    %713 = vector.broadcast %694 : vector<1x32xf32> to vector<16x32xf32>
    %714 = arith.mulf %712, %713 : vector<16x32xf32>
    %715 = vector.broadcast %696 : vector<1x32xf32> to vector<16x32xf32>
    %716 = arith.addf %714, %715 : vector<16x32xf32>
    %c0_481 = arith.constant 0 : index
    %c0_482 = arith.constant 0 : index
    %c0_483 = arith.constant 0 : index
    %717 = vector.load %arg13[%c0_481, %c0_482, %c0_483] : memref<2x32x128xbf16, #tpu.memory_space<vmem>>, vector<1x32x128xbf16>
    %718 = vector.shape_cast %717 : vector<1x32x128xbf16> to vector<32x128xbf16>
    %719 = arith.truncf %716 : vector<16x32xf32> to vector<16x32xbf16>
    %cst_484 = arith.constant dense<0.000000e+00> : vector<16x128xf32>
    %720 = tpu.matmul %719, %718, %cst_484 {dimension_numbers = #tpu.dot_dimension_numbers<[1], [0], [0], [1], [0, 0, 1, 1], [], []>} : vector<16x32xbf16>, vector<32x128xbf16>, vector<16x128xf32> -> vector<16x128xf32>
    %c0_485 = arith.constant 0 : index
    %c0_486 = arith.constant 0 : index
    %c0_487 = arith.constant 0 : index
    %721 = vector.load %arg14[%c0_485, %c0_486, %c0_487] : memref<2x1x128xf32, #tpu.memory_space<vmem>>, vector<1x1x128xf32>
    %722 = vector.shape_cast %721 : vector<1x1x128xf32> to vector<1x128xf32>
    %723 = vector.broadcast %722 : vector<1x128xf32> to vector<16x128xf32>
    %724 = arith.addf %720, %723 : vector<16x128xf32>
    %725 = arith.mulf %724, %724 : vector<16x128xf32>
    %726 = arith.mulf %724, %725 : vector<16x128xf32>
    %cst_488 = arith.constant 4.471500e-02 : f32
    %727 = vector.broadcast %cst_488 : f32 to vector<16x128xf32>
    %728 = arith.mulf %727, %726 : vector<16x128xf32>
    %729 = arith.addf %724, %728 : vector<16x128xf32>
    %cst_489 = arith.constant 0.797884583 : f32
    %730 = vector.broadcast %cst_489 : f32 to vector<16x128xf32>
    %731 = arith.mulf %730, %729 : vector<16x128xf32>
    %732 = math.tanh %731 : vector<16x128xf32>
    %cst_490 = arith.constant 1.000000e+00 : f32
    %733 = vector.broadcast %cst_490 : f32 to vector<16x128xf32>
    %734 = arith.addf %733, %732 : vector<16x128xf32>
    %cst_491 = arith.constant 5.000000e-01 : f32
    %735 = vector.broadcast %cst_491 : f32 to vector<16x128xf32>
    %736 = arith.mulf %735, %734 : vector<16x128xf32>
    %737 = arith.mulf %724, %736 : vector<16x128xf32>
    %c0_492 = arith.constant 0 : index
    %c0_493 = arith.constant 0 : index
    %c0_494 = arith.constant 0 : index
    %738 = vector.load %arg15[%c0_492, %c0_493, %c0_494] : memref<2x128x32xbf16, #tpu.memory_space<vmem>>, vector<1x128x32xbf16>
    %739 = vector.shape_cast %738 : vector<1x128x32xbf16> to vector<128x32xbf16>
    %740 = arith.truncf %737 : vector<16x128xf32> to vector<16x128xbf16>
    %cst_495 = arith.constant dense<0.000000e+00> : vector<16x32xf32>
    %741 = tpu.matmul %740, %739, %cst_495 {dimension_numbers = #tpu.dot_dimension_numbers<[1], [0], [0], [1], [0, 0, 1, 1], [], []>} : vector<16x128xbf16>, vector<128x32xbf16>, vector<16x32xf32> -> vector<16x32xf32>
    %742 = arith.addf %692, %741 : vector<16x32xf32>
    %c0_496 = arith.constant 0 : index
    %c0_497 = arith.constant 0 : index
    %c0_498 = arith.constant 0 : index
    %743 = vector.load %arg16[%c0_496, %c0_497, %c0_498] : memref<2x1x32xf32, #tpu.memory_space<vmem>>, vector<1x1x32xf32>
    %744 = vector.shape_cast %743 : vector<1x1x32xf32> to vector<1x32xf32>
    %745 = vector.broadcast %744 : vector<1x32xf32> to vector<16x32xf32>
    %746 = arith.addf %742, %745 : vector<16x32xf32>
    %c1_499 = arith.constant 1 : index
    %c0_500 = arith.constant 0 : index
    %c0_501 = arith.constant 0 : index
    %747 = vector.load %arg5[%c1_499, %c0_500, %c0_501] : memref<2x1x32xf32, #tpu.memory_space<vmem>>, vector<1x1x32xf32>
    %748 = vector.shape_cast %747 : vector<1x1x32xf32> to vector<1x32xf32>
    %c1_502 = arith.constant 1 : index
    %c0_503 = arith.constant 0 : index
    %c0_504 = arith.constant 0 : index
    %749 = vector.load %arg6[%c1_502, %c0_503, %c0_504] : memref<2x1x32xf32, #tpu.memory_space<vmem>>, vector<1x1x32xf32>
    %750 = vector.shape_cast %749 : vector<1x1x32xf32> to vector<1x32xf32>
    %cst_505 = arith.constant dense<0.000000e+00> : vector<16xf32>
    %751 = vector.multi_reduction <add>, %746, %cst_505 [1] : vector<16x32xf32> to vector<16xf32>
    %752 = vector.shape_cast %751 : vector<16xf32> to vector<16x1xf32>
    %cst_506 = arith.constant 3.200000e+01 : f32
    %753 = vector.broadcast %cst_506 : f32 to vector<16x1xf32>
    %754 = arith.divf %752, %753 : vector<16x1xf32>
    %755 = vector.broadcast %754 : vector<16x1xf32> to vector<16x32xf32>
    %756 = arith.subf %746, %755 : vector<16x32xf32>
    %757 = arith.mulf %756, %756 : vector<16x32xf32>
    %cst_507 = arith.constant dense<0.000000e+00> : vector<16xf32>
    %758 = vector.multi_reduction <add>, %757, %cst_507 [1] : vector<16x32xf32> to vector<16xf32>
    %759 = vector.shape_cast %758 : vector<16xf32> to vector<16x1xf32>
    %cst_508 = arith.constant 3.200000e+01 : f32
    %760 = vector.broadcast %cst_508 : f32 to vector<16x1xf32>
    %761 = arith.divf %759, %760 : vector<16x1xf32>
    %cst_509 = arith.constant 9.99999974E-6 : f32
    %762 = vector.broadcast %cst_509 : f32 to vector<16x1xf32>
    %763 = arith.addf %761, %762 : vector<16x1xf32>
    %764 = math.rsqrt %763 : vector<16x1xf32>
    %765 = vector.broadcast %764 : vector<16x1xf32> to vector<16x32xf32>
    %766 = arith.mulf %756, %765 : vector<16x32xf32>
    %767 = vector.broadcast %748 : vector<1x32xf32> to vector<16x32xf32>
    %768 = arith.mulf %766, %767 : vector<16x32xf32>
    %769 = vector.broadcast %750 : vector<1x32xf32> to vector<16x32xf32>
    %770 = arith.addf %768, %769 : vector<16x32xf32>
    %771 = arith.truncf %770 : vector<16x32xf32> to vector<16x32xbf16>
    %cst_510 = arith.constant 0.000000e+00 : f32
    %772 = vector.broadcast %cst_510 : f32 to vector<16x32xf32>
    %c1_511 = arith.constant 1 : index
    %c0_512 = arith.constant 0 : index
    %c0_513 = arith.constant 0 : index
    %c0_514 = arith.constant 0 : index
    %773 = vector.load %arg7[%c1_511, %c0_512, %c0_513, %c0_514] : memref<2x4x32x16xbf16, #tpu.memory_space<vmem>>, vector<1x1x32x16xbf16>
    %774 = vector.shape_cast %773 : vector<1x1x32x16xbf16> to vector<32x16xbf16>
    %cst_515 = arith.constant dense<0.000000e+00> : vector<16x16xf32>
    %775 = tpu.matmul %771, %774, %cst_515 {dimension_numbers = #tpu.dot_dimension_numbers<[1], [0], [0], [1], [0, 0, 1, 1], [], []>} : vector<16x32xbf16>, vector<32x16xbf16>, vector<16x16xf32> -> vector<16x16xf32>
    %c1_516 = arith.constant 1 : index
    %c0_517 = arith.constant 0 : index
    %c0_518 = arith.constant 0 : index
    %c0_519 = arith.constant 0 : index
    %776 = vector.load %arg8[%c1_516, %c0_517, %c0_518, %c0_519] : memref<2x4x32x16xbf16, #tpu.memory_space<vmem>>, vector<1x1x32x16xbf16>
    %777 = vector.shape_cast %776 : vector<1x1x32x16xbf16> to vector<32x16xbf16>
    %cst_520 = arith.constant dense<0.000000e+00> : vector<16x16xf32>
    %778 = tpu.matmul %771, %777, %cst_520 {dimension_numbers = #tpu.dot_dimension_numbers<[1], [0], [0], [1], [0, 0, 1, 1], [], []>} : vector<16x32xbf16>, vector<32x16xbf16>, vector<16x16xf32> -> vector<16x16xf32>
    %c1_521 = arith.constant 1 : index
    %c0_522 = arith.constant 0 : index
    %c0_523 = arith.constant 0 : index
    %c0_524 = arith.constant 0 : index
    %779 = vector.load %arg9[%c1_521, %c0_522, %c0_523, %c0_524] : memref<2x4x32x16xbf16, #tpu.memory_space<vmem>>, vector<1x1x32x16xbf16>
    %780 = vector.shape_cast %779 : vector<1x1x32x16xbf16> to vector<32x16xbf16>
    %cst_525 = arith.constant dense<0.000000e+00> : vector<16x16xf32>
    %781 = tpu.matmul %771, %780, %cst_525 {dimension_numbers = #tpu.dot_dimension_numbers<[1], [0], [0], [1], [0, 0, 1, 1], [], []>} : vector<16x32xbf16>, vector<32x16xbf16>, vector<16x16xf32> -> vector<16x16xf32>
    %782 = arith.truncf %775 : vector<16x16xf32> to vector<16x16xbf16>
    %783 = arith.truncf %778 : vector<16x16xf32> to vector<16x16xbf16>
    %cst_526 = arith.constant dense<0.000000e+00> : vector<16x16xf32>
    %784 = tpu.matmul %782, %783, %cst_526 {dimension_numbers = #tpu.dot_dimension_numbers<[1], [1], [0], [0], [0, 0, 1, 0], [], []>} : vector<16x16xbf16>, vector<16x16xbf16>, vector<16x16xf32> -> vector<16x16xf32>
    %cst_527 = arith.constant 2.500000e-01 : f32
    %785 = vector.broadcast %cst_527 : f32 to vector<16x16xf32>
    %786 = arith.mulf %784, %785 : vector<16x16xf32>
    %cst_528 = arith.constant 6.250000e-02 : f32
    %787 = vector.broadcast %cst_528 : f32 to vector<16x16xf32>
    %788 = arith.mulf %787, %37 : vector<16x16xf32>
    %789 = arith.addf %786, %788 : vector<16x16xf32>
    %cst_529 = arith.constant -1.000000e+30 : f32
    %790 = vector.broadcast %cst_529 : f32 to vector<16x16xf32>
    %791 = arith.select %32, %789, %790 : vector<16x16xi1>, vector<16x16xf32>
    %cst_530 = arith.constant dense<0xFF800000> : vector<16xf32>
    %792 = vector.multi_reduction <maximumf>, %791, %cst_530 [1] : vector<16x16xf32> to vector<16xf32>
    %793 = vector.shape_cast %792 : vector<16xf32> to vector<16x1xf32>
    %794 = vector.broadcast %793 : vector<16x1xf32> to vector<16x16xf32>
    %795 = arith.subf %791, %794 : vector<16x16xf32>
    %796 = math.exp %795 : vector<16x16xf32>
    %cst_531 = arith.constant dense<0.000000e+00> : vector<16xf32>
    %797 = vector.multi_reduction <add>, %796, %cst_531 [1] : vector<16x16xf32> to vector<16xf32>
    %798 = vector.shape_cast %797 : vector<16xf32> to vector<16x1xf32>
    %799 = tpu.reciprocal %798 {approx = true} : vector<16x1xf32> -> vector<16x1xf32>
    %800 = vector.broadcast %799 : vector<16x1xf32> to vector<16x16xf32>
    %801 = arith.mulf %796, %800 : vector<16x16xf32>
    %802 = arith.truncf %801 : vector<16x16xf32> to vector<16x16xbf16>
    %803 = arith.truncf %781 : vector<16x16xf32> to vector<16x16xbf16>
    %cst_532 = arith.constant dense<0.000000e+00> : vector<16x16xf32>
    %804 = tpu.matmul %802, %803, %cst_532 {dimension_numbers = #tpu.dot_dimension_numbers<[1], [0], [0], [1], [0, 0, 1, 1], [], []>} : vector<16x16xbf16>, vector<16x16xbf16>, vector<16x16xf32> -> vector<16x16xf32>
    %c1_533 = arith.constant 1 : index
    %c0_534 = arith.constant 0 : index
    %c0_535 = arith.constant 0 : index
    %c0_536 = arith.constant 0 : index
    %805 = vector.load %arg10[%c1_533, %c0_534, %c0_535, %c0_536] : memref<2x4x16x32xbf16, #tpu.memory_space<vmem>>, vector<1x1x16x32xbf16>
    %806 = vector.shape_cast %805 : vector<1x1x16x32xbf16> to vector<16x32xbf16>
    %807 = arith.truncf %804 : vector<16x16xf32> to vector<16x16xbf16>
    %cst_537 = arith.constant dense<0.000000e+00> : vector<16x32xf32>
    %808 = tpu.matmul %807, %806, %cst_537 {dimension_numbers = #tpu.dot_dimension_numbers<[1], [0], [0], [1], [0, 0, 1, 1], [], []>} : vector<16x16xbf16>, vector<16x32xbf16>, vector<16x32xf32> -> vector<16x32xf32>
    %809 = arith.addf %772, %808 : vector<16x32xf32>
    %c1_538 = arith.constant 1 : index
    %c1_539 = arith.constant 1 : index
    %c0_540 = arith.constant 0 : index
    %c0_541 = arith.constant 0 : index
    %810 = vector.load %arg7[%c1_538, %c1_539, %c0_540, %c0_541] : memref<2x4x32x16xbf16, #tpu.memory_space<vmem>>, vector<1x1x32x16xbf16>
    %811 = vector.shape_cast %810 : vector<1x1x32x16xbf16> to vector<32x16xbf16>
    %cst_542 = arith.constant dense<0.000000e+00> : vector<16x16xf32>
    %812 = tpu.matmul %771, %811, %cst_542 {dimension_numbers = #tpu.dot_dimension_numbers<[1], [0], [0], [1], [0, 0, 1, 1], [], []>} : vector<16x32xbf16>, vector<32x16xbf16>, vector<16x16xf32> -> vector<16x16xf32>
    %c1_543 = arith.constant 1 : index
    %c1_544 = arith.constant 1 : index
    %c0_545 = arith.constant 0 : index
    %c0_546 = arith.constant 0 : index
    %813 = vector.load %arg8[%c1_543, %c1_544, %c0_545, %c0_546] : memref<2x4x32x16xbf16, #tpu.memory_space<vmem>>, vector<1x1x32x16xbf16>
    %814 = vector.shape_cast %813 : vector<1x1x32x16xbf16> to vector<32x16xbf16>
    %cst_547 = arith.constant dense<0.000000e+00> : vector<16x16xf32>
    %815 = tpu.matmul %771, %814, %cst_547 {dimension_numbers = #tpu.dot_dimension_numbers<[1], [0], [0], [1], [0, 0, 1, 1], [], []>} : vector<16x32xbf16>, vector<32x16xbf16>, vector<16x16xf32> -> vector<16x16xf32>
    %c1_548 = arith.constant 1 : index
    %c1_549 = arith.constant 1 : index
    %c0_550 = arith.constant 0 : index
    %c0_551 = arith.constant 0 : index
    %816 = vector.load %arg9[%c1_548, %c1_549, %c0_550, %c0_551] : memref<2x4x32x16xbf16, #tpu.memory_space<vmem>>, vector<1x1x32x16xbf16>
    %817 = vector.shape_cast %816 : vector<1x1x32x16xbf16> to vector<32x16xbf16>
    %cst_552 = arith.constant dense<0.000000e+00> : vector<16x16xf32>
    %818 = tpu.matmul %771, %817, %cst_552 {dimension_numbers = #tpu.dot_dimension_numbers<[1], [0], [0], [1], [0, 0, 1, 1], [], []>} : vector<16x32xbf16>, vector<32x16xbf16>, vector<16x16xf32> -> vector<16x16xf32>
    %819 = arith.truncf %812 : vector<16x16xf32> to vector<16x16xbf16>
    %820 = arith.truncf %815 : vector<16x16xf32> to vector<16x16xbf16>
    %cst_553 = arith.constant dense<0.000000e+00> : vector<16x16xf32>
    %821 = tpu.matmul %819, %820, %cst_553 {dimension_numbers = #tpu.dot_dimension_numbers<[1], [1], [0], [0], [0, 0, 1, 0], [], []>} : vector<16x16xbf16>, vector<16x16xbf16>, vector<16x16xf32> -> vector<16x16xf32>
    %cst_554 = arith.constant 2.500000e-01 : f32
    %822 = vector.broadcast %cst_554 : f32 to vector<16x16xf32>
    %823 = arith.mulf %821, %822 : vector<16x16xf32>
    %cst_555 = arith.constant 3.906250e-03 : f32
    %824 = vector.broadcast %cst_555 : f32 to vector<16x16xf32>
    %825 = arith.mulf %824, %37 : vector<16x16xf32>
    %826 = arith.addf %823, %825 : vector<16x16xf32>
    %cst_556 = arith.constant -1.000000e+30 : f32
    %827 = vector.broadcast %cst_556 : f32 to vector<16x16xf32>
    %828 = arith.select %32, %826, %827 : vector<16x16xi1>, vector<16x16xf32>
    %cst_557 = arith.constant dense<0xFF800000> : vector<16xf32>
    %829 = vector.multi_reduction <maximumf>, %828, %cst_557 [1] : vector<16x16xf32> to vector<16xf32>
    %830 = vector.shape_cast %829 : vector<16xf32> to vector<16x1xf32>
    %831 = vector.broadcast %830 : vector<16x1xf32> to vector<16x16xf32>
    %832 = arith.subf %828, %831 : vector<16x16xf32>
    %833 = math.exp %832 : vector<16x16xf32>
    %cst_558 = arith.constant dense<0.000000e+00> : vector<16xf32>
    %834 = vector.multi_reduction <add>, %833, %cst_558 [1] : vector<16x16xf32> to vector<16xf32>
    %835 = vector.shape_cast %834 : vector<16xf32> to vector<16x1xf32>
    %836 = tpu.reciprocal %835 {approx = true} : vector<16x1xf32> -> vector<16x1xf32>
    %837 = vector.broadcast %836 : vector<16x1xf32> to vector<16x16xf32>
    %838 = arith.mulf %833, %837 : vector<16x16xf32>
    %839 = arith.truncf %838 : vector<16x16xf32> to vector<16x16xbf16>
    %840 = arith.truncf %818 : vector<16x16xf32> to vector<16x16xbf16>
    %cst_559 = arith.constant dense<0.000000e+00> : vector<16x16xf32>
    %841 = tpu.matmul %839, %840, %cst_559 {dimension_numbers = #tpu.dot_dimension_numbers<[1], [0], [0], [1], [0, 0, 1, 1], [], []>} : vector<16x16xbf16>, vector<16x16xbf16>, vector<16x16xf32> -> vector<16x16xf32>
    %c1_560 = arith.constant 1 : index
    %c1_561 = arith.constant 1 : index
    %c0_562 = arith.constant 0 : index
    %c0_563 = arith.constant 0 : index
    %842 = vector.load %arg10[%c1_560, %c1_561, %c0_562, %c0_563] : memref<2x4x16x32xbf16, #tpu.memory_space<vmem>>, vector<1x1x16x32xbf16>
    %843 = vector.shape_cast %842 : vector<1x1x16x32xbf16> to vector<16x32xbf16>
    %844 = arith.truncf %841 : vector<16x16xf32> to vector<16x16xbf16>
    %cst_564 = arith.constant dense<0.000000e+00> : vector<16x32xf32>
    %845 = tpu.matmul %844, %843, %cst_564 {dimension_numbers = #tpu.dot_dimension_numbers<[1], [0], [0], [1], [0, 0, 1, 1], [], []>} : vector<16x16xbf16>, vector<16x32xbf16>, vector<16x32xf32> -> vector<16x32xf32>
    %846 = arith.addf %809, %845 : vector<16x32xf32>
    %c1_565 = arith.constant 1 : index
    %c2_566 = arith.constant 2 : index
    %c0_567 = arith.constant 0 : index
    %c0_568 = arith.constant 0 : index
    %847 = vector.load %arg7[%c1_565, %c2_566, %c0_567, %c0_568] : memref<2x4x32x16xbf16, #tpu.memory_space<vmem>>, vector<1x1x32x16xbf16>
    %848 = vector.shape_cast %847 : vector<1x1x32x16xbf16> to vector<32x16xbf16>
    %cst_569 = arith.constant dense<0.000000e+00> : vector<16x16xf32>
    %849 = tpu.matmul %771, %848, %cst_569 {dimension_numbers = #tpu.dot_dimension_numbers<[1], [0], [0], [1], [0, 0, 1, 1], [], []>} : vector<16x32xbf16>, vector<32x16xbf16>, vector<16x16xf32> -> vector<16x16xf32>
    %c1_570 = arith.constant 1 : index
    %c2_571 = arith.constant 2 : index
    %c0_572 = arith.constant 0 : index
    %c0_573 = arith.constant 0 : index
    %850 = vector.load %arg8[%c1_570, %c2_571, %c0_572, %c0_573] : memref<2x4x32x16xbf16, #tpu.memory_space<vmem>>, vector<1x1x32x16xbf16>
    %851 = vector.shape_cast %850 : vector<1x1x32x16xbf16> to vector<32x16xbf16>
    %cst_574 = arith.constant dense<0.000000e+00> : vector<16x16xf32>
    %852 = tpu.matmul %771, %851, %cst_574 {dimension_numbers = #tpu.dot_dimension_numbers<[1], [0], [0], [1], [0, 0, 1, 1], [], []>} : vector<16x32xbf16>, vector<32x16xbf16>, vector<16x16xf32> -> vector<16x16xf32>
    %c1_575 = arith.constant 1 : index
    %c2_576 = arith.constant 2 : index
    %c0_577 = arith.constant 0 : index
    %c0_578 = arith.constant 0 : index
    %853 = vector.load %arg9[%c1_575, %c2_576, %c0_577, %c0_578] : memref<2x4x32x16xbf16, #tpu.memory_space<vmem>>, vector<1x1x32x16xbf16>
    %854 = vector.shape_cast %853 : vector<1x1x32x16xbf16> to vector<32x16xbf16>
    %cst_579 = arith.constant dense<0.000000e+00> : vector<16x16xf32>
    %855 = tpu.matmul %771, %854, %cst_579 {dimension_numbers = #tpu.dot_dimension_numbers<[1], [0], [0], [1], [0, 0, 1, 1], [], []>} : vector<16x32xbf16>, vector<32x16xbf16>, vector<16x16xf32> -> vector<16x16xf32>
    %856 = arith.truncf %849 : vector<16x16xf32> to vector<16x16xbf16>
    %857 = arith.truncf %852 : vector<16x16xf32> to vector<16x16xbf16>
    %cst_580 = arith.constant dense<0.000000e+00> : vector<16x16xf32>
    %858 = tpu.matmul %856, %857, %cst_580 {dimension_numbers = #tpu.dot_dimension_numbers<[1], [1], [0], [0], [0, 0, 1, 0], [], []>} : vector<16x16xbf16>, vector<16x16xbf16>, vector<16x16xf32> -> vector<16x16xf32>
    %cst_581 = arith.constant 2.500000e-01 : f32
    %859 = vector.broadcast %cst_581 : f32 to vector<16x16xf32>
    %860 = arith.mulf %858, %859 : vector<16x16xf32>
    %cst_582 = arith.constant -1.000000e+30 : f32
    %861 = vector.broadcast %cst_582 : f32 to vector<16x16xf32>
    %862 = arith.select %32, %860, %861 : vector<16x16xi1>, vector<16x16xf32>
    %cst_583 = arith.constant dense<0xFF800000> : vector<16xf32>
    %863 = vector.multi_reduction <maximumf>, %862, %cst_583 [1] : vector<16x16xf32> to vector<16xf32>
    %864 = vector.shape_cast %863 : vector<16xf32> to vector<16x1xf32>
    %865 = vector.broadcast %864 : vector<16x1xf32> to vector<16x16xf32>
    %866 = arith.subf %862, %865 : vector<16x16xf32>
    %867 = math.exp %866 : vector<16x16xf32>
    %cst_584 = arith.constant dense<0.000000e+00> : vector<16xf32>
    %868 = vector.multi_reduction <add>, %867, %cst_584 [1] : vector<16x16xf32> to vector<16xf32>
    %869 = vector.shape_cast %868 : vector<16xf32> to vector<16x1xf32>
    %870 = tpu.reciprocal %869 {approx = true} : vector<16x1xf32> -> vector<16x1xf32>
    %871 = vector.broadcast %870 : vector<16x1xf32> to vector<16x16xf32>
    %872 = arith.mulf %867, %871 : vector<16x16xf32>
    %873 = arith.truncf %872 : vector<16x16xf32> to vector<16x16xbf16>
    %874 = arith.truncf %855 : vector<16x16xf32> to vector<16x16xbf16>
    %cst_585 = arith.constant dense<0.000000e+00> : vector<16x16xf32>
    %875 = tpu.matmul %873, %874, %cst_585 {dimension_numbers = #tpu.dot_dimension_numbers<[1], [0], [0], [1], [0, 0, 1, 1], [], []>} : vector<16x16xbf16>, vector<16x16xbf16>, vector<16x16xf32> -> vector<16x16xf32>
    %c1_586 = arith.constant 1 : index
    %c2_587 = arith.constant 2 : index
    %c0_588 = arith.constant 0 : index
    %c0_589 = arith.constant 0 : index
    %876 = vector.load %arg10[%c1_586, %c2_587, %c0_588, %c0_589] : memref<2x4x16x32xbf16, #tpu.memory_space<vmem>>, vector<1x1x16x32xbf16>
    %877 = vector.shape_cast %876 : vector<1x1x16x32xbf16> to vector<16x32xbf16>
    %878 = arith.truncf %875 : vector<16x16xf32> to vector<16x16xbf16>
    %cst_590 = arith.constant dense<0.000000e+00> : vector<16x32xf32>
    %879 = tpu.matmul %878, %877, %cst_590 {dimension_numbers = #tpu.dot_dimension_numbers<[1], [0], [0], [1], [0, 0, 1, 1], [], []>} : vector<16x16xbf16>, vector<16x32xbf16>, vector<16x32xf32> -> vector<16x32xf32>
    %880 = arith.addf %846, %879 : vector<16x32xf32>
    %c1_591 = arith.constant 1 : index
    %c3_592 = arith.constant 3 : index
    %c0_593 = arith.constant 0 : index
    %c0_594 = arith.constant 0 : index
    %881 = vector.load %arg7[%c1_591, %c3_592, %c0_593, %c0_594] : memref<2x4x32x16xbf16, #tpu.memory_space<vmem>>, vector<1x1x32x16xbf16>
    %882 = vector.shape_cast %881 : vector<1x1x32x16xbf16> to vector<32x16xbf16>
    %cst_595 = arith.constant dense<0.000000e+00> : vector<16x16xf32>
    %883 = tpu.matmul %771, %882, %cst_595 {dimension_numbers = #tpu.dot_dimension_numbers<[1], [0], [0], [1], [0, 0, 1, 1], [], []>} : vector<16x32xbf16>, vector<32x16xbf16>, vector<16x16xf32> -> vector<16x16xf32>
    %c1_596 = arith.constant 1 : index
    %c3_597 = arith.constant 3 : index
    %c0_598 = arith.constant 0 : index
    %c0_599 = arith.constant 0 : index
    %884 = vector.load %arg8[%c1_596, %c3_597, %c0_598, %c0_599] : memref<2x4x32x16xbf16, #tpu.memory_space<vmem>>, vector<1x1x32x16xbf16>
    %885 = vector.shape_cast %884 : vector<1x1x32x16xbf16> to vector<32x16xbf16>
    %cst_600 = arith.constant dense<0.000000e+00> : vector<16x16xf32>
    %886 = tpu.matmul %771, %885, %cst_600 {dimension_numbers = #tpu.dot_dimension_numbers<[1], [0], [0], [1], [0, 0, 1, 1], [], []>} : vector<16x32xbf16>, vector<32x16xbf16>, vector<16x16xf32> -> vector<16x16xf32>
    %c1_601 = arith.constant 1 : index
    %c3_602 = arith.constant 3 : index
    %c0_603 = arith.constant 0 : index
    %c0_604 = arith.constant 0 : index
    %887 = vector.load %arg9[%c1_601, %c3_602, %c0_603, %c0_604] : memref<2x4x32x16xbf16, #tpu.memory_space<vmem>>, vector<1x1x32x16xbf16>
    %888 = vector.shape_cast %887 : vector<1x1x32x16xbf16> to vector<32x16xbf16>
    %cst_605 = arith.constant dense<0.000000e+00> : vector<16x16xf32>
    %889 = tpu.matmul %771, %888, %cst_605 {dimension_numbers = #tpu.dot_dimension_numbers<[1], [0], [0], [1], [0, 0, 1, 1], [], []>} : vector<16x32xbf16>, vector<32x16xbf16>, vector<16x16xf32> -> vector<16x16xf32>
    %890 = arith.truncf %883 : vector<16x16xf32> to vector<16x16xbf16>
    %891 = arith.truncf %886 : vector<16x16xf32> to vector<16x16xbf16>
    %cst_606 = arith.constant dense<0.000000e+00> : vector<16x16xf32>
    %892 = tpu.matmul %890, %891, %cst_606 {dimension_numbers = #tpu.dot_dimension_numbers<[1], [1], [0], [0], [0, 0, 1, 0], [], []>} : vector<16x16xbf16>, vector<16x16xbf16>, vector<16x16xf32> -> vector<16x16xf32>
    %cst_607 = arith.constant 2.500000e-01 : f32
    %893 = vector.broadcast %cst_607 : f32 to vector<16x16xf32>
    %894 = arith.mulf %892, %893 : vector<16x16xf32>
    %cst_608 = arith.constant -1.000000e+30 : f32
    %895 = vector.broadcast %cst_608 : f32 to vector<16x16xf32>
    %896 = arith.select %32, %894, %895 : vector<16x16xi1>, vector<16x16xf32>
    %cst_609 = arith.constant dense<0xFF800000> : vector<16xf32>
    %897 = vector.multi_reduction <maximumf>, %896, %cst_609 [1] : vector<16x16xf32> to vector<16xf32>
    %898 = vector.shape_cast %897 : vector<16xf32> to vector<16x1xf32>
    %899 = vector.broadcast %898 : vector<16x1xf32> to vector<16x16xf32>
    %900 = arith.subf %896, %899 : vector<16x16xf32>
    %901 = math.exp %900 : vector<16x16xf32>
    %cst_610 = arith.constant dense<0.000000e+00> : vector<16xf32>
    %902 = vector.multi_reduction <add>, %901, %cst_610 [1] : vector<16x16xf32> to vector<16xf32>
    %903 = vector.shape_cast %902 : vector<16xf32> to vector<16x1xf32>
    %904 = tpu.reciprocal %903 {approx = true} : vector<16x1xf32> -> vector<16x1xf32>
    %905 = vector.broadcast %904 : vector<16x1xf32> to vector<16x16xf32>
    %906 = arith.mulf %901, %905 : vector<16x16xf32>
    %907 = arith.truncf %906 : vector<16x16xf32> to vector<16x16xbf16>
    %908 = arith.truncf %889 : vector<16x16xf32> to vector<16x16xbf16>
    %cst_611 = arith.constant dense<0.000000e+00> : vector<16x16xf32>
    %909 = tpu.matmul %907, %908, %cst_611 {dimension_numbers = #tpu.dot_dimension_numbers<[1], [0], [0], [1], [0, 0, 1, 1], [], []>} : vector<16x16xbf16>, vector<16x16xbf16>, vector<16x16xf32> -> vector<16x16xf32>
    %c1_612 = arith.constant 1 : index
    %c3_613 = arith.constant 3 : index
    %c0_614 = arith.constant 0 : index
    %c0_615 = arith.constant 0 : index
    %910 = vector.load %arg10[%c1_612, %c3_613, %c0_614, %c0_615] : memref<2x4x16x32xbf16, #tpu.memory_space<vmem>>, vector<1x1x16x32xbf16>
    %911 = vector.shape_cast %910 : vector<1x1x16x32xbf16> to vector<16x32xbf16>
    %912 = arith.truncf %909 : vector<16x16xf32> to vector<16x16xbf16>
    %cst_616 = arith.constant dense<0.000000e+00> : vector<16x32xf32>
    %913 = tpu.matmul %912, %911, %cst_616 {dimension_numbers = #tpu.dot_dimension_numbers<[1], [0], [0], [1], [0, 0, 1, 1], [], []>} : vector<16x16xbf16>, vector<16x32xbf16>, vector<16x32xf32> -> vector<16x32xf32>
    %914 = arith.addf %880, %913 : vector<16x32xf32>
    %915 = arith.addf %746, %914 : vector<16x32xf32>
    %c1_617 = arith.constant 1 : index
    %c0_618 = arith.constant 0 : index
    %c0_619 = arith.constant 0 : index
    %916 = vector.load %arg11[%c1_617, %c0_618, %c0_619] : memref<2x1x32xf32, #tpu.memory_space<vmem>>, vector<1x1x32xf32>
    %917 = vector.shape_cast %916 : vector<1x1x32xf32> to vector<1x32xf32>
    %c1_620 = arith.constant 1 : index
    %c0_621 = arith.constant 0 : index
    %c0_622 = arith.constant 0 : index
    %918 = vector.load %arg12[%c1_620, %c0_621, %c0_622] : memref<2x1x32xf32, #tpu.memory_space<vmem>>, vector<1x1x32xf32>
    %919 = vector.shape_cast %918 : vector<1x1x32xf32> to vector<1x32xf32>
    %cst_623 = arith.constant dense<0.000000e+00> : vector<16xf32>
    %920 = vector.multi_reduction <add>, %915, %cst_623 [1] : vector<16x32xf32> to vector<16xf32>
    %921 = vector.shape_cast %920 : vector<16xf32> to vector<16x1xf32>
    %cst_624 = arith.constant 3.200000e+01 : f32
    %922 = vector.broadcast %cst_624 : f32 to vector<16x1xf32>
    %923 = arith.divf %921, %922 : vector<16x1xf32>
    %924 = vector.broadcast %923 : vector<16x1xf32> to vector<16x32xf32>
    %925 = arith.subf %915, %924 : vector<16x32xf32>
    %926 = arith.mulf %925, %925 : vector<16x32xf32>
    %cst_625 = arith.constant dense<0.000000e+00> : vector<16xf32>
    %927 = vector.multi_reduction <add>, %926, %cst_625 [1] : vector<16x32xf32> to vector<16xf32>
    %928 = vector.shape_cast %927 : vector<16xf32> to vector<16x1xf32>
    %cst_626 = arith.constant 3.200000e+01 : f32
    %929 = vector.broadcast %cst_626 : f32 to vector<16x1xf32>
    %930 = arith.divf %928, %929 : vector<16x1xf32>
    %cst_627 = arith.constant 9.99999974E-6 : f32
    %931 = vector.broadcast %cst_627 : f32 to vector<16x1xf32>
    %932 = arith.addf %930, %931 : vector<16x1xf32>
    %933 = math.rsqrt %932 : vector<16x1xf32>
    %934 = vector.broadcast %933 : vector<16x1xf32> to vector<16x32xf32>
    %935 = arith.mulf %925, %934 : vector<16x32xf32>
    %936 = vector.broadcast %917 : vector<1x32xf32> to vector<16x32xf32>
    %937 = arith.mulf %935, %936 : vector<16x32xf32>
    %938 = vector.broadcast %919 : vector<1x32xf32> to vector<16x32xf32>
    %939 = arith.addf %937, %938 : vector<16x32xf32>
    %c1_628 = arith.constant 1 : index
    %c0_629 = arith.constant 0 : index
    %c0_630 = arith.constant 0 : index
    %940 = vector.load %arg13[%c1_628, %c0_629, %c0_630] : memref<2x32x128xbf16, #tpu.memory_space<vmem>>, vector<1x32x128xbf16>
    %941 = vector.shape_cast %940 : vector<1x32x128xbf16> to vector<32x128xbf16>
    %942 = arith.truncf %939 : vector<16x32xf32> to vector<16x32xbf16>
    %cst_631 = arith.constant dense<0.000000e+00> : vector<16x128xf32>
    %943 = tpu.matmul %942, %941, %cst_631 {dimension_numbers = #tpu.dot_dimension_numbers<[1], [0], [0], [1], [0, 0, 1, 1], [], []>} : vector<16x32xbf16>, vector<32x128xbf16>, vector<16x128xf32> -> vector<16x128xf32>
    %c1_632 = arith.constant 1 : index
    %c0_633 = arith.constant 0 : index
    %c0_634 = arith.constant 0 : index
    %944 = vector.load %arg14[%c1_632, %c0_633, %c0_634] : memref<2x1x128xf32, #tpu.memory_space<vmem>>, vector<1x1x128xf32>
    %945 = vector.shape_cast %944 : vector<1x1x128xf32> to vector<1x128xf32>
    %946 = vector.broadcast %945 : vector<1x128xf32> to vector<16x128xf32>
    %947 = arith.addf %943, %946 : vector<16x128xf32>
    %948 = arith.mulf %947, %947 : vector<16x128xf32>
    %949 = arith.mulf %947, %948 : vector<16x128xf32>
    %cst_635 = arith.constant 4.471500e-02 : f32
    %950 = vector.broadcast %cst_635 : f32 to vector<16x128xf32>
    %951 = arith.mulf %950, %949 : vector<16x128xf32>
    %952 = arith.addf %947, %951 : vector<16x128xf32>
    %cst_636 = arith.constant 0.797884583 : f32
    %953 = vector.broadcast %cst_636 : f32 to vector<16x128xf32>
    %954 = arith.mulf %953, %952 : vector<16x128xf32>
    %955 = math.tanh %954 : vector<16x128xf32>
    %cst_637 = arith.constant 1.000000e+00 : f32
    %956 = vector.broadcast %cst_637 : f32 to vector<16x128xf32>
    %957 = arith.addf %956, %955 : vector<16x128xf32>
    %cst_638 = arith.constant 5.000000e-01 : f32
    %958 = vector.broadcast %cst_638 : f32 to vector<16x128xf32>
    %959 = arith.mulf %958, %957 : vector<16x128xf32>
    %960 = arith.mulf %947, %959 : vector<16x128xf32>
    %c1_639 = arith.constant 1 : index
    %c0_640 = arith.constant 0 : index
    %c0_641 = arith.constant 0 : index
    %961 = vector.load %arg15[%c1_639, %c0_640, %c0_641] : memref<2x128x32xbf16, #tpu.memory_space<vmem>>, vector<1x128x32xbf16>
    %962 = vector.shape_cast %961 : vector<1x128x32xbf16> to vector<128x32xbf16>
    %963 = arith.truncf %960 : vector<16x128xf32> to vector<16x128xbf16>
    %cst_642 = arith.constant dense<0.000000e+00> : vector<16x32xf32>
    %964 = tpu.matmul %963, %962, %cst_642 {dimension_numbers = #tpu.dot_dimension_numbers<[1], [0], [0], [1], [0, 0, 1, 1], [], []>} : vector<16x128xbf16>, vector<128x32xbf16>, vector<16x32xf32> -> vector<16x32xf32>
    %965 = arith.addf %915, %964 : vector<16x32xf32>
    %c1_643 = arith.constant 1 : index
    %c0_644 = arith.constant 0 : index
    %c0_645 = arith.constant 0 : index
    %966 = vector.load %arg16[%c1_643, %c0_644, %c0_645] : memref<2x1x32xf32, #tpu.memory_space<vmem>>, vector<1x1x32xf32>
    %967 = vector.shape_cast %966 : vector<1x1x32xf32> to vector<1x32xf32>
    %968 = vector.broadcast %967 : vector<1x32xf32> to vector<16x32xf32>
    %969 = arith.addf %965, %968 : vector<16x32xf32>
    %c1_646 = arith.constant 1 : index
    %c0_647 = arith.constant 0 : index
    %c0_648 = arith.constant 0 : index
    %970 = vector.load %arg22[%c1_646, %c0_647, %c0_648] : memref<2x16x32xf32, #tpu.memory_space<vmem>>, vector<1x16x32xf32>
    %971 = vector.shape_cast %970 : vector<1x16x32xf32> to vector<16x32xf32>
    %972 = vector.shape_cast %969 : vector<16x32xf32> to vector<1x16x32xf32>
    tpu.vector_store %arg22[%c1_646, %c0_647, %c0_648], %972 {strides = array<i32>} : memref<2x16x32xf32, #tpu.memory_space<vmem>>, vector<1x16x32xf32>,
    %c1_649 = arith.constant 1 : index
    %c7_650 = arith.constant 7 : index
    %c0_651 = arith.constant 0 : index
    %973 = vector.load %arg22[%c1_649, %c7_650, %c0_651] : memref<2x16x32xf32, #tpu.memory_space<vmem>>, vector<1x8x32xf32>
    %974 = vector.shape_cast %973 : vector<1x8x32xf32> to vector<8x32xf32>
    %c0_652 = arith.constant 0 : index
    %c0_653 = arith.constant 0 : index
    %975 = vector.load %arg17[%c0_652, %c0_653] : memref<1x32xf32, #tpu.memory_space<vmem>>, vector<1x32xf32>
    %c0_654 = arith.constant 0 : index
    %c0_655 = arith.constant 0 : index
    %976 = vector.load %arg18[%c0_654, %c0_655] : memref<1x32xf32, #tpu.memory_space<vmem>>, vector<1x32xf32>
    %cst_656 = arith.constant dense<0.000000e+00> : vector<8xf32>
    %977 = vector.multi_reduction <add>, %974, %cst_656 [1] : vector<8x32xf32> to vector<8xf32>
    %978 = vector.shape_cast %977 : vector<8xf32> to vector<8x1xf32>
    %cst_657 = arith.constant 3.200000e+01 : f32
    %979 = vector.broadcast %cst_657 : f32 to vector<8x1xf32>
    %980 = arith.divf %978, %979 : vector<8x1xf32>
    %981 = vector.broadcast %980 : vector<8x1xf32> to vector<8x32xf32>
    %982 = arith.subf %974, %981 : vector<8x32xf32>
    %983 = arith.mulf %982, %982 : vector<8x32xf32>
    %cst_658 = arith.constant dense<0.000000e+00> : vector<8xf32>
    %984 = vector.multi_reduction <add>, %983, %cst_658 [1] : vector<8x32xf32> to vector<8xf32>
    %985 = vector.shape_cast %984 : vector<8xf32> to vector<8x1xf32>
    %cst_659 = arith.constant 3.200000e+01 : f32
    %986 = vector.broadcast %cst_659 : f32 to vector<8x1xf32>
    %987 = arith.divf %985, %986 : vector<8x1xf32>
    %cst_660 = arith.constant 9.99999974E-6 : f32
    %988 = vector.broadcast %cst_660 : f32 to vector<8x1xf32>
    %989 = arith.addf %987, %988 : vector<8x1xf32>
    %990 = math.rsqrt %989 : vector<8x1xf32>
    %991 = vector.broadcast %990 : vector<8x1xf32> to vector<8x32xf32>
    %992 = arith.mulf %982, %991 : vector<8x32xf32>
    %993 = vector.broadcast %975 : vector<1x32xf32> to vector<8x32xf32>
    %994 = arith.mulf %992, %993 : vector<8x32xf32>
    %995 = vector.broadcast %976 : vector<1x32xf32> to vector<8x32xf32>
    %996 = arith.addf %994, %995 : vector<8x32xf32>
    %c0_661 = arith.constant 0 : index
    %c0_662 = arith.constant 0 : index
    %997 = vector.load %arg19[%c0_661, %c0_662] : memref<32x128xbf16, #tpu.memory_space<vmem>>, vector<32x128xbf16>
    %998 = arith.truncf %996 : vector<8x32xf32> to vector<8x32xbf16>
    %cst_663 = arith.constant dense<0.000000e+00> : vector<8x128xf32>
    %999 = tpu.matmul %998, %997, %cst_663 {dimension_numbers = #tpu.dot_dimension_numbers<[1], [0], [0], [1], [0, 0, 1, 1], [], []>} : vector<8x32xbf16>, vector<32x128xbf16>, vector<8x128xf32> -> vector<8x128xf32>
    %c0_664 = arith.constant 0 : index
    %c0_665 = arith.constant 0 : index
    %1000 = vector.load %arg20[%c0_664, %c0_665] : memref<1x128xf32, #tpu.memory_space<vmem>>, vector<1x128xf32>
    %1001 = vector.broadcast %1000 : vector<1x128xf32> to vector<8x128xf32>
    %1002 = arith.addf %999, %1001 : vector<8x128xf32>
    %c1_666 = arith.constant 1 : index
    %c0_667 = arith.constant 0 : index
    %c0_668 = arith.constant 0 : index
    %1003 = vector.load %arg21[%c1_666, %c0_667, %c0_668] : memref<2x8x128xf32, #tpu.memory_space<vmem>>, vector<1x8x128xf32>
    %1004 = vector.shape_cast %1003 : vector<1x8x128xf32> to vector<8x128xf32>
    %1005 = vector.shape_cast %1002 : vector<8x128xf32> to vector<1x8x128xf32>
    tpu.vector_store %arg21[%c1_666, %c0_667, %c0_668], %1005 {strides = array<i32>} : memref<2x8x128xf32, #tpu.memory_space<vmem>>, vector<1x8x128xf32>,
    return
  }
}

</mosaic_0001>

<bundles_post_ra>
// kernel: vq_svg_stage2_forward.1
= control target key start
LH: loop header
LB: loop body
LE: loop exit
PB: predicated region body
PF: predicated region fallthrough
CT: control target
= control target key end

     0   :  { %s10982_s0 = inlined_call_operand.vmem [shape: f32[2,16,32], index: 0, kind: input, shape index: {}]   ;;  %s10983_s1 = inlined_call_operand.vmem [shape: f32[2,6,48], index: 1, kind: input, shape index: {}]   ;;  %s10984_s2 = inlined_call_operand.vmem [shape: f32[2,6,32], index: 2, kind: input, shape index: {}]   ;;  %s10985_s3 = inlined_call_operand.vmem [shape: bf16[48,32], index: 3, kind: input, shape index: {}]   ;;  %s10986_s4 = inlined_call_operand.vmem [shape: f32[1,32], index: 4, kind: input, shape index: {}]   ;;  %s10987_s5 = inlined_call_operand.vmem [shape: f32[2,1,32], index: 5, kind: input, shape index: {}]   ;;  %s10988_s6 = inlined_call_operand.vmem [shape: f32[2,1,32], index: 6, kind: input, shape index: {}]   ;;  %s10989_s7 = inlined_call_operand.vmem [shape: bf16[2,4,32,16], index: 7, kind: input, shape index: {}]   ;;  %s10990_s8 = inlined_call_operand.vmem [shape: bf16[2,4,32,16], index: 8, kind: input, shape index: {}]   ;;  %s10991_s9 = inlined_call_operand.vmem [shape: bf16[2,4,32,16], index: 9, kind: input, shape index: {}]   ;;  %s10992_s10 = inlined_call_operand.vmem [shape: bf16[2,4,16,32], index: 10, kind: input, shape index: {}]   ;;  %s10993_s11 = inlined_call_operand.vmem [shape: f32[2,1,32], index: 11, kind: input, shape index: {}]   ;;  %s10994_s12 = inlined_call_operand.vmem [shape: f32[2,1,32], index: 12, kind: input, shape index: {}]   ;;  %s10995_s13 = inlined_call_operand.vmem [shape: bf16[2,32,128], index: 13, kind: input, shape index: {}]   ;;  %s10996_s14 = inlined_call_operand.vmem [shape: f32[2,1,128], index: 14, kind: input, shape index: {}]   ;;  %s10997_s15 = inlined_call_operand.vmem [shape: bf16[2,128,32], index: 15, kind: input, shape index: {}]   ;;  %s10998_s16 = inlined_call_operand.vmem [shape: f32[2,1,32], index: 16, kind: input, shape index: {}]   ;;  %s10999_s17 = inlined_call_operand.vmem [shape: f32[1,32], index: 17, kind: input, shape index: {}]   ;;  %s11000_s18 = inlined_call_operand.vmem [shape: f32[1,32], index: 18, kind: input, shape index: {}]   ;;  %s11001_s19 = inlined_call_operand.vmem [shape: bf16[32,128], index: 19, kind: input, shape index: {}]   ;;  %s11002_s20 = inlined_call_operand.vmem [shape: f32[1,128], index: 20, kind: input, shape index: {}]   ;;  %s11003_s21 = inlined_call_operand.hbm [shape: f32[2,8,128], index: 21, kind: output, shape index: {}]  }
   0x1   :  { %11009 = sst [smem:[#allocation6_spill]] %s10982_s0 }
   0x2   :  { %11010 = sst [smem:[#allocation7_spill]] %s10983_s1 }
   0x3   :  { %11011 = sst [smem:[#allocation8_spill]] %s10984_s2 }
   0x4   :  { %11012 = sst [smem:[#allocation9_spill]] %s10985_s3 }
   0x5   :  { %11013 = sst [smem:[#allocation10_spill]] %s10986_s4 }
   0x6   :  { %11014 = sst [smem:[#allocation11_spill]] %s10987_s5 }
   0x7   :  { %s11015_s26 = sld [smem:[#allocation9_spill]]  ;;  %v9306_v1 = vmov 0.0   ;;  %vm9307_vm0 = vmmov 0   ;;  %vm112_vm1 = vcmask 392192   ;;  %vm74_vm2 = vcmask 261120  }
   0x8   :  { %8116 = vmatprep.subr.bf16.mxu0 %v9306_v1  ;;  %8126 = vmatprep.subr.bf16.mxu1 %v9306_v1  ;;  %s11016_s0 = sld [smem:[#allocation6_spill]] }
   0x9   :  { %8122 = vmatprep.mubr.msk.bf16.mxu0 %vm9307_vm0, %v9306_v1  ;;  %8132 = vmatprep.mubr.msk.bf16.mxu1 %vm9307_vm0, %v9306_v1  ;;  %s11017_s23 = sld [smem:[#allocation7_spill]] }
   0xd   :  { %v8941_v0 = vld [vmem:[%s11015_s26 + $0x10] sm:$0xff]   ;;  %v8942_v2 = vld [vmem:[%s11015_s26 + $0x8] sm:$0xff]   ;;  %v8943_v4 = vld [vmem:[%s11015_s26] sm:$0xff]  }
   0xe   :  { %8117 = vmatpush3.bf16.msra.mxu0 %v8941_v0  ;;  %v70_v3 = vld [vmem:[%s11016_s0] sm:$0xff]  ;;  %v71_v7 = vld [vmem:[%s11016_s0 + $0x8] sm:$0xff] }
   0xf   :  { %8118 = vmatprep.subr.bf16.mxu0 %v9306_v1  ;;  %v79_v5 = vld [vmem:[%s11017_s23] sm:$0x3f]  ;;  %75 = vst.msk [vmem:[#allocation2] sm:$0xff] %vm74_vm2, %v70_v3  ;;  %76 = vst.msk [vmem:[#allocation2 + $0x8] sm:$0xff] %vm74_vm2, %v71_v7 }
  0x10   :  { %v86_v6 = vpack.c.bf16 %v79_v5, %v79_v5 }
  0x12   :  { %8119 = vmatpush3.bf16.msra.mxu0 %v8942_v2 }
  0x13   :  { %8120 = vmatprep.subr.bf16.mxu0 %v9306_v1 }
  0x16   :  { %8121 = vmatpush3.bf16.msra.mxu0 %v8943_v4 }
  0x17   :  { %8136 = vmatprep.subr.bf16.mxu0 %v9306_v1 }
  0x19   :  { %8123 = vmatmul.mubr.msk.bf16.vlgmr.msra.gmra.mxu0 %vm112_vm1, %v86_v6 }
  0x1a   :  { %8140 = vmatprep.mubr.msk.bf16.mxu0 %vm9307_vm0, %v9306_v1 }
  0x1b   :  { %26 = vsyncpa [#allocation4], 0  ;;  %s11018_s27 = sld [smem:[#allocation10_spill]]  ;;  %vm158_vm3 = vcmask 259072   ;;  %v9465_v17 = vld [vmem:[#allocation2 + $0x8] sm:$0xff]  ;;  %v8945_v31 = vld [vmem:[%s10989_s7] sm:$0xff]  }
  0x1c   :  { %s11019_s29 = sld [smem:[#allocation8_spill]]  ;;  %v268_v19 = vsel %vm74_vm2, %v9465_v17, 0.0  ;;  %v8944_v30 = vld [vmem:[%s10989_s7 + $0x8] sm:$0xff]   ;;  %v8950_v32 = vld [vmem:[%s11015_s26 + $0x10] sm:$0xff]   ;;  %v7279_v45 = vld [vmem:[%s10988_s6] ss:$0 sm:$0xff] }
  0x1d   :  { %8137 = vmatpush3.bf16.msra.mxu0 %v8944_v30  ;;  %8127 = vmatpush3.bf16.msra.mxu1 %v8950_v32  ;;  %v8946_v49 = vld [vmem:[%s10990_s8 + $0x8] sm:$0xff]   ;;  %v8947_v51 = vld [vmem:[%s10990_s8] sm:$0xff]   ;;  %v72_v58 = vld [vmem:[%s11016_s0 + $0x10] sm:$0xff]  ;;  %vm485_vm4 = vcmask 130048  }
  0x1e   :  { %8138 = vmatprep.subr.bf16.mxu0 %v9306_v1  ;;  %8128 = vmatprep.subr.bf16.mxu1 %v9306_v1  ;;  %v8948_v52 = vld [vmem:[%s10991_s9 + $0x8] sm:$0xff]   ;;  %v8949_v53 = vld [vmem:[%s10991_s9] sm:$0xff]   ;;  %77 = vst.msk [vmem:[#allocation2 + $0x10] sm:$0xff] %vm74_vm2, %v72_v58 }
  0x1f   :  { %v8951_v54 = vld [vmem:[%s11015_s26 + $0x8] sm:$0xff]   ;;  %v8952_v55 = vld [vmem:[%s11015_s26] sm:$0xff]  }
  0x20   :  { %v7269_v56 = vld [vmem:[%s11017_s23 + $0x8] sm:$0x3f] }
  0x21   :  { %v9456_v8 = vld [vmem:[%s11018_s27] ss:$0 sm:$0xff]  ;;  %8139 = vmatpush3.bf16.msra.mxu0 %v8945_v31  ;;  %s11020_s27 = sld [smem:[#allocation11_spill]]  ;;  %8129 = vmatpush3.bf16.msra.mxu1 %v8951_v54  ;;  %v168_v57 = vpack.c.bf16 %v7269_v56, %v7269_v56 }
  0x22   :  { %v156_v10 = vld [vmem:[%s11019_s29] sm:$0x3f]  ;;  %8144 = vmatprep.subr.bf16.mxu0 %v9306_v1  ;;  %8130 = vmatprep.subr.bf16.mxu1 %v9306_v1 }
  0x25   :  { %8131 = vmatpush3.bf16.msra.mxu1 %v8952_v55 }
  0x26   :  { %8160 = vmatprep.subr.bf16.mxu1 %v9306_v1 }
  0x27   :  { %v7278_v41 = vld [vmem:[%s11020_s27] ss:$0 sm:$0xff] }
  0x28   :  { %8133 = vmatmul.mubr.msk.bf16.vlgmr.msra.gmra.mxu1 %vm112_vm1, %v168_v57 }
  0x29   :  { %8162 = vmatprep.mubr.msk.bf16.mxu1 %vm9307_vm0, %v9306_v1 }
  0xd9   :  { %v150_v9 = vpop.f32.mrf.mxu0 }
  0xda   :  { %v151_v11 = vadd.f32 %v9456_v8, %v150_v9 }
  0xdb   :  { %v8124_v12 = vpop.f32.mrf.mxu0 }
  0xdc   :  { %v157_v13 = vmul.f32 %v156_v10, %v151_v11  ;;  %v8953_v10 = vld [vmem:[%s10989_s7 + $0x18] sm:$0xff]  }
  0xdd   :  { %v153_v14 = vpop.f32.mrf.mxu0 }
  0xde   :  { %159 = vst.msk [vmem:[#allocation2 + $0x1] sm:$0x3f] %vm158_vm3, %v157_v13  ;;  %v8954_v14 = vld [vmem:[%s10989_s7 + $0x10] sm:$0xff]  }
  0xdf   :  { %v8125_v15 = vpop.f32.mrf.mxu0 }
  0xe0   :  { %v8955_v15 = vld [vmem:[%s10991_s9 + $0x18] sm:$0xff]  }
  0xe5   :  { %v9463_v16 = vld [vmem:[#allocation2] sm:$0xff] }
  0xe6   :  { %v265_v18 = vsel %vm74_vm2, %v9463_v16, 0.0 }
  0xe7   :  { %266 = vadd.xlane.f32.xlu0 %v265_v18  ;;  %v8956_v18 = vld [vmem:[%s10991_s9 + $0x10] sm:$0xff]  }
  0xeb   :  { %269 = vadd.xlane.f32.xlu0 %v268_v19  ;;  %v231_v19 = vpop.f32.mrf.mxu1 }
 0x170   :  { %v267_v20 = vpop.xlane.xlu0 %266 }
 0x171   :  { %v272_v21 = vmul.f32 0.03125, %v267_v20  ;;  %v7275_v20 = vld [vmem:[%s11019_s29 + $0x8] sm:$0x3f] }
 0x173   :  { %v274_v22 = vsub.f32 %v9463_v16, %v272_v21  ;;  %v232_v21 = vadd.f32 %v9456_v8, %v231_v19 }
 0x174   :  { %v270_v23 = vpop.xlane.xlu0 %269 }
 0x175   :  { %v273_v24 = vmul.f32 0.03125, %v270_v23  ;;  %v276_v25 = vmul.f32 %v274_v22, %v274_v22  ;;  %v239_v23 = vmul.f32 %v7275_v20, %v232_v21 }
 0x177   :  { %v275_v26 = vsub.f32 %v9465_v17, %v273_v24  ;;  %v278_v27 = vsel %vm74_vm2, %v276_v25, 0.0  ;;  %241 = vst.msk [vmem:[#allocation2 + $0x11] sm:$0x3f] %vm158_vm3, %v239_v23 }
 0x178   :  { %279 = vadd.xlane.f32.xlu1 %v278_v27 }
 0x179   :  { %v277_v28 = vmul.f32 %v275_v26, %v275_v26 }
 0x17b   :  { %v281_v29 = vsel %vm74_vm2, %v277_v28, 0.0 }
 0x17c   :  { %282 = vadd.xlane.f32.xlu1 %v281_v29 }
 0x201   :  { %v280_v33 = vpop.xlane.xlu1 %279 }
 0x202   :  { %v284_v34 = vmul.f32 0.03125, %v280_v33 }
 0x204   :  { %v286_v35 = vadd.f32 1e-05, %v284_v34 }
 0x205   :  { %v283_v36 = vpop.xlane.xlu1 %282 }
 0x206   :  { %9103 = vrsqrt.f32 %v286_v35  ;;  %v285_v37 = vmul.f32 0.03125, %v283_v36 }
 0x208   :  { %v287_v38 = vadd.f32 1e-05, %v285_v37 }
 0x20a   :  { %9105 = vrsqrt.f32 %v287_v38 }
 0x213   :  { %v9104_v39 = vpop.eup %9103 }
 0x214   :  { %v290_v40 = vmul.f32 %v9104_v39, %v274_v22  ;;  %v8134_v22 = vpop.f32.mrf.mxu1 }
 0x215   :  { %v8957_v22 = vld [vmem:[%s10990_s8 + $0x18] sm:$0xff]  }
 0x216   :  { %v298_v43 = vmul.f32 %v7278_v41, %v290_v40  ;;  %v234_v24 = vpop.f32.mrf.mxu1 }
 0x217   :  { %v9106_v42 = vpop.eup %9105  ;;  %v8958_v24 = vld [vmem:[%s10990_s8 + $0x10] sm:$0xff]  }
 0x218   :  { %v291_v44 = vmul.f32 %v9106_v42, %v275_v26  ;;  %v306_v47 = vadd.f32 %v7279_v45, %v298_v43  ;;  %v8135_v25 = vpop.f32.mrf.mxu1  ;;  %v242_v26 = vlaneseq }
 0x21a   :  { %v299_v46 = vmul.f32 %v7278_v41, %v291_v44  ;;  %v243_v27 = vshrl.u32 %v242_v26, 7  ;;  %v246_v28 = vand.u32 127, %v242_v26 }
 0x21c   :  { %v307_v48 = vadd.f32 %v7279_v45, %v299_v46  ;;  %v249_v29 = vsub.s32 %v243_v27, %v246_v28  ;;  %v244_v30 = vadd.s32 8, %v243_v27  ;;  %vm9583_vm5 = vcmp.le.s32.totalorder %v246_v28, %v243_v27 }
 0x21e   :  { %v9496_v50 = vpack.c.bf16 %v307_v48, %v306_v47  ;;  %v252_v31 = vsub.s32 0, %v249_v29  ;;  %v250_v32 = vsub.s32 %v244_v30, %v246_v28  ;;  %vm9593_vm6 = vcmp.le.s32.totalorder %v246_v28, %v244_v30 }
 0x220   :  { %8141 = vmatmul.mubr.msk.bf16.vlgmr.msra.gmra.mxu0 %vm74_vm2, %v9496_v50  ;;  %v7276_v33 = vmin.u32 %v252_v31, %v249_v29  ;;  %v255_v34 = vsub.s32 0, %v250_v32 }
 0x221   :  { %8145 = vmatpush3.bf16.msra.mxu0 %v8946_v49  ;;  %8148 = vmatprep.mubr.msk.bf16.mxu0 %vm9307_vm0, %v9306_v1 }
 0x222   :  { %8146 = vmatprep.subr.bf16.mxu0 %v9306_v1  ;;  %v257_v35 = vcvt.s32.f32 %v7276_v33  ;;  %v7277_v36 = vmin.u32 %v255_v34, %v250_v32 }
 0x224   :  { %v9576_v37 = vsub.f32 0.0, %v257_v35  ;;  %v258_v8 = vcvt.s32.f32 %v7277_v36 }
 0x225   :  { %8147 = vmatpush3.bf16.msra.mxu0 %v8947_v51 }
 0x226   :  { %8152 = vmatprep.subr.bf16.mxu0 %v9306_v1  ;;  %v9579_v38 = vmul.f32 0.0625, %v9576_v37  ;;  %v9581_v39 = vsub.f32 0.0, %v258_v8  ;;  %v9626_v36 = vmul.f32 0.00390625, %v9576_v37 }
 0x228   :  { %8149 = vmatmul.mubr.msk.bf16.vlgmr.msra.gmra.mxu0 %vm74_vm2, %v9496_v50  ;;  %v9589_v45 = vmul.f32 0.0625, %v9581_v39 }
 0x229   :  { %8153 = vmatpush3.bf16.msra.mxu0 %v8948_v52  ;;  %8156 = vmatprep.mubr.msk.bf16.mxu0 %vm9307_vm0, %v9306_v1 }
 0x22a   :  { %8154 = vmatprep.subr.bf16.mxu0 %v9306_v1 }
 0x22d   :  { %8155 = vmatpush3.bf16.msra.mxu0 %v8949_v53 }
 0x22e   :  { %8166 = vmatprep.subr.bf16.mxu0 %v9306_v1 }
 0x230   :  { %8157 = vmatmul.mubr.msk.bf16.vlgmr.msra.gmra.mxu0 %vm74_vm2, %v9496_v50 }
 0x231   :  { %8168 = vmatprep.mubr.msk.bf16.mxu0 %vm9307_vm0, %v9306_v1 }
 0x2e0   :  { %v362_v59 = vpop.f32.mrf.mxu0 }
 0x2e2   :  { %v8142_v60 = vpop.f32.mrf.mxu0 }
 0x2e4   :  { %v365_v61 = vpop.f32.mrf.mxu0 }
 0x2e5   :  { %v483_v11 = vpack.c.bf16 %v365_v61, %v362_v59 }
 0x2e6   :  { %v8143_v62 = vpop.f32.mrf.mxu0 }
 0x2e8   :  { %v419_v63 = vpop.f32.mrf.mxu0 }
 0x2ea   :  { %v8150_v0 = vpop.f32.mrf.mxu0 }
 0x2ec   :  { %v422_v2 = vpop.f32.mrf.mxu0 }
 0x2ed   :  { %v484_v3 = vpack.c.bf16 %v422_v2, %v419_v63 }
 0x2ee   :  { %v8151_v4 = vpop.f32.mrf.mxu0 }
 0x2ef   :  { %v490_v5 = vsel %vm485_vm4, %v484_v3, 0 }
 0x2f0   :  { %v476_v6 = vpop.f32.mrf.mxu0  ;;  %8161 = vmatpush3.bf16.xpose.msra.mxu1 %v490_v5 }
 0x2f1   :  { %8172 = vmatprep.subr.bf16.mxu1 %v9306_v1 }
 0x2f2   :  { %v8158_v7 = vpop.f32.mrf.mxu0 }
 0x2f4   :  { %v479_v9 = vpop.f32.mrf.mxu0 }
 0x2f5   :  { %v564_v12 = vpack.c.bf16 %v479_v9, %v476_v6 }
 0x2f6   :  { %v8159_v13 = vpop.f32.mrf.mxu0 }
 0x2f7   :  { %8163 = vmatmul.mubr.msk.bf16.vlgmr.msra.gmra.mxu1 %vm485_vm4, %v483_v11  ;;  %8167 = vmatpush3.bf16.msra.mxu0 %v564_v12 }
 0x2f8   :  { %8173 = vmatpush3.bf16.msra.mxu1 %v8953_v10  ;;  %8176 = vmatprep.mubr.msk.bf16.mxu1 %vm9307_vm0, %v9306_v1 }
 0x2f9   :  { %8174 = vmatprep.subr.bf16.mxu1 %v9306_v1  ;;  %8180 = vmatprep.subr.bf16.mxu0 %v9306_v1 }
 0x2fc   :  { %8175 = vmatpush3.bf16.msra.mxu1 %v8954_v14 }
 0x2fd   :  { %8188 = vmatprep.subr.bf16.mxu1 %v9306_v1 }
 0x2ff   :  { %8177 = vmatmul.mubr.msk.bf16.vlgmr.msra.gmra.mxu1 %vm74_vm2, %v9496_v50 }
 0x300   :  { %8189 = vmatpush3.bf16.msra.mxu1 %v8955_v15  ;;  %8192 = vmatprep.mubr.msk.bf16.mxu1 %vm9307_vm0, %v9306_v1 }
 0x301   :  { %8190 = vmatprep.subr.bf16.mxu1 %v9306_v1 }
 0x304   :  { %8191 = vmatpush3.bf16.msra.mxu1 %v8956_v18 }
 0x305   :  { %8202 = vmatprep.subr.bf16.mxu1 %v9306_v1 }
 0x307   :  { %8193 = vmatmul.mubr.msk.bf16.vlgmr.msra.gmra.mxu1 %vm74_vm2, %v9496_v50 }
 0x308   :  { %8204 = vmatprep.mubr.msk.bf16.mxu1 %vm9307_vm0, %v9306_v1 }
 0x3b7   :  { %v526_v40 = vpop.f32.mrf.mxu1 }
 0x3b8   :  { %v533_v41 = vmul.f32 0.25, %v526_v40 }
 0x3b9   :  { %v8164_v43 = vpop.f32.mrf.mxu1 }
 0x3ba   :  { %v537_v44 = vadd.f32 %v9579_v38, %v533_v41 }
 0x3bb   :  { %v529_v46 = vpop.f32.mrf.mxu1 }
 0x3bc   :  { %v534_v47 = vmul.f32 0.25, %v529_v46  ;;  %v539_v48 = vsel %vm9583_vm5, %v537_v44, -1e+30  ;;  %v9630_v44 = vmul.f32 0.00390625, %v9581_v39 }
 0x3bd   :  { %v8165_v51 = vpop.f32.mrf.mxu1  ;;  %v541_v52 = vsel %vm485_vm4, %v539_v48, -inf }
 0x3be   :  { %v538_v53 = vadd.f32 %v9589_v45, %v534_v47  ;;  %542 = vmax.xlane.f32.xlu0 %v541_v52 }
 0x3bf   :  { %v663_v54 = vpop.f32.mrf.mxu1 }
 0x3c0   :  { %v540_v55 = vsel %vm9593_vm6, %v538_v53, -1e+30 }
 0x3c1   :  { %v8178_v56 = vpop.f32.mrf.mxu1  ;;  %v544_v57 = vsel %vm485_vm4, %v540_v55, -inf }
 0x3c2   :  { %545 = vmax.xlane.f32.xlu1 %v544_v57 }
 0x3c3   :  { %v666_v58 = vpop.f32.mrf.mxu1 }
 0x3c4   :  { %v786_v59 = vpack.c.bf16 %v666_v58, %v663_v54 }
 0x3c5   :  { %v8179_v60 = vpop.f32.mrf.mxu1 }
 0x3c7   :  { %v779_v61 = vpop.f32.mrf.mxu1 }
 0x3c9   :  { %v8194_v62 = vpop.f32.mrf.mxu1 }
 0x3cb   :  { %v782_v63 = vpop.f32.mrf.mxu1 }
 0x3cc   :  { %v866_v0 = vpack.c.bf16 %v782_v63, %v779_v61 }
 0x3cd   :  { %v8195_v2 = vpop.f32.mrf.mxu1 }
 0x3ce   :  { %8203 = vmatpush3.bf16.msra.mxu1 %v866_v0 }
 0x3cf   :  { %8214 = vmatprep.subr.bf16.mxu1 %v9306_v1 }
 0x447   :  { %v543_v3 = vpop.xlane.xlu0 %542 }
 0x448   :  { %v547_v4 = vsub.f32 %v539_v48, %v543_v3 }
 0x44a   :  { %v549_v5 = vmul.f32 1.442695, %v547_v4 }
 0x44b   :  { %v546_v6 = vpop.xlane.xlu1 %545 }
 0x44c   :  { %9107 = vpow2.f32 %v549_v5  ;;  %v548_v7 = vsub.f32 %v540_v55, %v546_v6 }
 0x44e   :  { %v551_v9 = vmul.f32 1.442695, %v548_v7  ;;  %v8959_v7 = vld [vmem:[%s10992_s10] sm:$0xff]  }
 0x450   :  { %9109 = vpow2.f32 %v551_v9 }
 0x459   :  { %v9108_v10 = vpop.eup %9107 }
 0x45a   :  { %v553_v11 = vsel %vm485_vm4, %v9108_v10, 0.0 }
 0x45b   :  { %554 = vadd.xlane.f32.xlu0 %v553_v11  ;;  %v8961_v11 = vld [vmem:[%s10990_s8 + $0x20] sm:$0xff]  }
 0x45d   :  { %v9110_v12 = vpop.eup %9109 }
 0x45e   :  { %v556_v13 = vsel %vm485_vm4, %v9110_v12, 0.0 }
 0x45f   :  { %557 = vadd.xlane.f32.xlu1 %v556_v13 }
 0x4e4   :  { %v555_v14 = vpop.xlane.xlu0 %554 }
 0x4e5   :  { %9111 = vrcp.f32 %v555_v14 }
 0x4e8   :  { %v558_v15 = vpop.xlane.xlu1 %557 }
 0x4e9   :  { %9113 = vrcp.f32 %v558_v15 }
 0x4f2   :  { %v9112_v18 = vpop.eup %9111 }
 0x4f3   :  { %v561_v20 = vmul.f32 %v9112_v18, %v9108_v10  ;;  %v8960_v10 = vld [vmem:[%s10990_s8 + $0x28] sm:$0xff]  }
 0x4f4   :  { %v8963_v18 = vld [vmem:[%s10989_s7 + $0x28] sm:$0xff]  }
 0x4f6   :  { %v9114_v19 = vpop.eup %9113 }
 0x4f7   :  { %v562_v21 = vmul.f32 %v9114_v19, %v9110_v12  ;;  %v8962_v12 = vld [vmem:[%s10992_s10 + $0x8] sm:$0xff]  }
 0x4f9   :  { %v563_v23 = vpack.c.bf16 %v562_v21, %v561_v20 }
 0x4fb   :  { %8169 = vmatmul.mubr.msk.bf16.vlgmr.msra.gmra.mxu0 %vm485_vm4, %v563_v23 }
 0x4fc   :  { %8181 = vmatpush3.bf16.msra.mxu0 %v8957_v22  ;;  %8184 = vmatprep.mubr.msk.bf16.mxu0 %vm9307_vm0, %v9306_v1  ;;  %v8964_v22 = vld [vmem:[%s10989_s7 + $0x20] sm:$0xff]  }
 0x4fd   :  { %8182 = vmatprep.subr.bf16.mxu0 %v9306_v1 }
 0x500   :  { %8183 = vmatpush3.bf16.msra.mxu0 %v8958_v24 }
 0x501   :  { %8196 = vmatprep.subr.bf16.mxu0 %v9306_v1 }
 0x503   :  { %8185 = vmatmul.mubr.msk.bf16.vlgmr.msra.gmra.mxu0 %vm74_vm2, %v9496_v50 }
 0x504   :  { %8198 = vmatprep.mubr.msk.bf16.mxu0 %vm9307_vm0, %v9306_v1 }
 0x5bb   :  { %v602_v25 = vpop.f32.mrf.mxu0 }
 0x5bd   :  { %v8170_v26 = vpop.f32.mrf.mxu0 }
 0x5bf   :  { %v605_v27 = vpop.f32.mrf.mxu0 }
 0x5c0   :  { %v611_v28 = vpack.c.bf16 %v605_v27, %v602_v25  ;;  %v8965_v25 = vld [vmem:[%s10991_s9 + $0x28] sm:$0xff]  }
 0x5c1   :  { %v8171_v29 = vpop.f32.mrf.mxu0 }
 0x5c3   :  { %v721_v30 = vpop.f32.mrf.mxu0 }
 0x5c5   :  { %v8186_v31 = vpop.f32.mrf.mxu0 }
 0x5c7   :  { %v724_v32 = vpop.f32.mrf.mxu0 }
 0x5c8   :  { %v787_v33 = vpack.c.bf16 %v724_v32, %v721_v30 }
 0x5c9   :  { %v8187_v34 = vpop.f32.mrf.mxu0 }
 0x5ca   :  { %v792_v35 = vsel %vm485_vm4, %v787_v33, 0 }
 0x5cb   :  { %8197 = vmatpush3.bf16.xpose.msra.mxu0 %v792_v35 }
 0x5cc   :  { %8208 = vmatprep.subr.bf16.mxu0 %v9306_v1 }
 0x5d2   :  { %8199 = vmatmul.mubr.msk.bf16.vlgmr.msra.gmra.mxu0 %vm485_vm4, %v786_v59 }
 0x5d3   :  { %8210 = vmatprep.mubr.msk.bf16.mxu0 %vm9307_vm0, %v9306_v1  ;;  %8209 = vmatpush3.bf16.msra.mxu0 %v8962_v12 }
 0x5d4   :  { %8220 = vmatprep.subr.bf16.mxu0 %v9306_v1 }
 0x692   :  { %v828_v8 = vpop.f32.mrf.mxu0 }
 0x693   :  { %v835_v40 = vmul.f32 0.25, %v828_v8 }
 0x694   :  { %v8200_v41 = vpop.f32.mrf.mxu0 }
 0x695   :  { %v839_v43 = vadd.f32 %v9626_v36, %v835_v40 }
 0x696   :  { %v831_v46 = vpop.f32.mrf.mxu0 }
 0x697   :  { %v836_v47 = vmul.f32 0.25, %v831_v46  ;;  %v841_v48 = vsel %vm9583_vm5, %v839_v43, -1e+30 }
 0x698   :  { %v8201_v51 = vpop.f32.mrf.mxu0  ;;  %v843_v52 = vsel %vm485_vm4, %v841_v48, -inf }
 0x699   :  { %v840_v53 = vadd.f32 %v9630_v44, %v836_v47  ;;  %844 = vmax.xlane.f32.xlu0 %v843_v52 }
 0x69b   :  { %v842_v37 = vsel %vm9593_vm6, %v840_v53, -1e+30 }
 0x69c   :  { %v846_v54 = vsel %vm485_vm4, %v842_v37, -inf }
 0x69d   :  { %847 = vmax.xlane.f32.xlu1 %v846_v54 }
 0x722   :  { %v845_v55 = vpop.xlane.xlu0 %844 }
 0x723   :  { %v849_v39 = vsub.f32 %v841_v48, %v845_v55 }
 0x725   :  { %v851_v56 = vmul.f32 1.442695, %v849_v39 }
 0x726   :  { %v848_v57 = vpop.xlane.xlu1 %847 }
 0x727   :  { %9115 = vpow2.f32 %v851_v56  ;;  %v850_v58 = vsub.f32 %v842_v37, %v848_v57 }
 0x729   :  { %v853_v59 = vmul.f32 1.442695, %v850_v58 }
 0x72b   :  { %9117 = vpow2.f32 %v853_v59 }
 0x734   :  { %v9116_v60 = vpop.eup %9115 }
 0x735   :  { %v855_v61 = vsel %vm485_vm4, %v9116_v60, 0.0 }
 0x736   :  { %856 = vadd.xlane.f32.xlu0 %v855_v61 }
 0x738   :  { %v9118_v62 = vpop.eup %9117 }
 0x739   :  { %v858_v63 = vsel %vm485_vm4, %v9118_v62, 0.0 }
 0x73a   :  { %859 = vadd.xlane.f32.xlu1 %v858_v63 }
 0x7bf   :  { %v857_v0 = vpop.xlane.xlu0 %856 }
 0x7c0   :  { %9119 = vrcp.f32 %v857_v0 }
 0x7c3   :  { %v860_v2 = vpop.xlane.xlu1 %859 }
 0x7c4   :  { %9121 = vrcp.f32 %v860_v2 }
 0x7cd   :  { %v9120_v3 = vpop.eup %9119 }
 0x7ce   :  { %v863_v5 = vmul.f32 %v9120_v3, %v9116_v60 }
 0x7d1   :  { %v9122_v4 = vpop.eup %9121 }
 0x7d2   :  { %v864_v6 = vmul.f32 %v9122_v4, %v9118_v62 }
 0x7d4   :  { %v865_v9 = vpack.c.bf16 %v864_v6, %v863_v5 }
 0x7d6   :  { %8205 = vmatmul.mubr.msk.bf16.vlgmr.msra.gmra.mxu1 %vm485_vm4, %v865_v9 }
 0x7d7   :  { %8215 = vmatpush3.bf16.msra.mxu1 %v8959_v7  ;;  %8216 = vmatprep.mubr.msk.bf16.mxu1 %vm9307_vm0, %v9306_v1 }
 0x7d8   :  { %8228 = vmatprep.subr.bf16.mxu1 %v9306_v1 }
 0x7de   :  { %8217 = vmatmul.mubr.msk.bf16.vlgmr.msra.gmra.mxu1 %vm485_vm4, %v611_v28  ;;  %v8966_v28 = vld [vmem:[%s10991_s9 + $0x20] sm:$0xff]  }
 0x7df   :  { %8229 = vmatpush3.bf16.msra.mxu1 %v8960_v10  ;;  %8232 = vmatprep.mubr.msk.bf16.mxu1 %vm9307_vm0, %v9306_v1 }
 0x7e0   :  { %8230 = vmatprep.subr.bf16.mxu1 %v9306_v1 }
 0x7e3   :  { %8231 = vmatpush3.bf16.msra.mxu1 %v8961_v11 }
 0x7e4   :  { %8244 = vmatprep.subr.bf16.mxu1 %v9306_v1 }
 0x7e6   :  { %8233 = vmatmul.mubr.msk.bf16.vlgmr.msra.gmra.mxu1 %vm74_vm2, %v9496_v50 }
 0x7e7   :  { %8246 = vmatprep.mubr.msk.bf16.mxu1 %vm9307_vm0, %v9306_v1 }
 0x896   :  { %v904_v13 = vpop.f32.mrf.mxu1 }
 0x898   :  { %v8206_v14 = vpop.f32.mrf.mxu1 }
 0x89a   :  { %v907_v15 = vpop.f32.mrf.mxu1 }
 0x89b   :  { %v914_v19 = vpack.c.bf16 %v907_v15, %v904_v13 }
 0x89c   :  { %v8207_v20 = vpop.f32.mrf.mxu1 }
 0x89d   :  { %8211 = vmatmul.mubr.msk.bf16.vlgmr.msra.gmra.mxu0 %vm485_vm4, %v914_v19  ;;  %v8967_v20 = vld [vmem:[%s10989_s7 + $0x38] sm:$0xff]  }
 0x89e   :  { %v9671_v21 = vpop.f32.mrf.mxu1  ;;  %8221 = vmatpush3.bf16.msra.mxu0 %v8963_v18  ;;  %8224 = vmatprep.mubr.msk.bf16.mxu0 %vm9307_vm0, %v9306_v1 }
 0x89f   :  { %8222 = vmatprep.subr.bf16.mxu0 %v9306_v1 }
 0x8a0   :  { %v8218_v23 = vpop.f32.mrf.mxu1 }
 0x8a1   :  { %v8968_v23 = vld [vmem:[%s10989_s7 + $0x30] sm:$0xff]  }
 0x8a2   :  { %v9679_v24 = vpop.f32.mrf.mxu1  ;;  %8223 = vmatpush3.bf16.msra.mxu0 %v8964_v22 }
 0x8a3   :  { %8236 = vmatprep.subr.bf16.mxu0 %v9306_v1 }
 0x8a4   :  { %v8219_v26 = vpop.f32.mrf.mxu1 }
 0x8a5   :  { %8225 = vmatmul.mubr.msk.bf16.vlgmr.msra.gmra.mxu0 %vm74_vm2, %v9496_v50  ;;  %v8970_v26 = vld [vmem:[%s10991_s9 + $0x30] sm:$0xff]  }
 0x8a6   :  { %v1124_v27 = vpop.f32.mrf.mxu1  ;;  %8237 = vmatpush3.bf16.msra.mxu0 %v8965_v25  ;;  %8240 = vmatprep.mubr.msk.bf16.mxu0 %vm9307_vm0, %v9306_v1  ;;  %v8969_v25 = vld [vmem:[%s10991_s9 + $0x38] sm:$0xff]  }
 0x8a7   :  { %8238 = vmatprep.subr.bf16.mxu0 %v9306_v1 }
 0x8a8   :  { %v8234_v29 = vpop.f32.mrf.mxu1 }
 0x8aa   :  { %v1127_v30 = vpop.f32.mrf.mxu1  ;;  %8239 = vmatpush3.bf16.msra.mxu0 %v8966_v28 }
 0x8ab   :  { %v1190_v31 = vpack.c.bf16 %v1127_v30, %v1124_v27  ;;  %8250 = vmatprep.subr.bf16.mxu0 %v9306_v1  ;;  %v8971_v27 = vld [vmem:[%s10992_s10 + $0x10] sm:$0xff]  }
 0x8ac   :  { %v8235_v32 = vpop.f32.mrf.mxu1 }
 0x8ad   :  { %v1195_v33 = vsel %vm485_vm4, %v1190_v31, 0  ;;  %8241 = vmatmul.mubr.msk.bf16.vlgmr.msra.gmra.mxu0 %vm74_vm2, %v9496_v50  ;;  %v8972_v31 = vld [vmem:[%s10990_s8 + $0x38] sm:$0xff]  }
 0x8ae   :  { %8245 = vmatpush3.bf16.xpose.msra.mxu1 %v1195_v33  ;;  %8252 = vmatprep.mubr.msk.bf16.mxu0 %vm9307_vm0, %v9306_v1 }
 0x8af   :  { %8256 = vmatprep.subr.bf16.mxu1 %v9306_v1 }
 0x95d   :  { %v9700_v34 = vpop.f32.mrf.mxu0 }
 0x95f   :  { %v8212_v35 = vpop.f32.mrf.mxu0 }
 0x961   :  { %v9702_v8 = vpop.f32.mrf.mxu0 }
 0x963   :  { %v8213_v40 = vpop.f32.mrf.mxu0 }
 0x964   :  { %v8973_v40 = vld [vmem:[%s10990_s8 + $0x30] sm:$0xff]  }
 0x965   :  { %v1066_v41 = vpop.f32.mrf.mxu0 }
 0x967   :  { %v8226_v43 = vpop.f32.mrf.mxu0 }
 0x969   :  { %v1069_v46 = vpop.f32.mrf.mxu0 }
 0x96a   :  { %v1189_v47 = vpack.c.bf16 %v1069_v46, %v1066_v41 }
 0x96b   :  { %v8227_v48 = vpop.f32.mrf.mxu0 }
 0x96c   :  { %8247 = vmatmul.mubr.msk.bf16.vlgmr.msra.gmra.mxu1 %vm485_vm4, %v1189_v47 }
 0x96d   :  { %v1182_v51 = vpop.f32.mrf.mxu0  ;;  %8258 = vmatprep.mubr.msk.bf16.mxu1 %vm9307_vm0, %v9306_v1  ;;  %8257 = vmatpush3.bf16.msra.mxu1 %v8971_v27 }
 0x96e   :  { %8270 = vmatprep.subr.bf16.mxu1 %v9306_v1 }
 0x96f   :  { %v8242_v52 = vpop.f32.mrf.mxu0 }
 0x971   :  { %v1185_v53 = vpop.f32.mrf.mxu0 }
 0x972   :  { %v1265_v37 = vpack.c.bf16 %v1185_v53, %v1182_v51 }
 0x973   :  { %v8243_v54 = vpop.f32.mrf.mxu0 }
 0x974   :  { %8251 = vmatpush3.bf16.msra.mxu0 %v1265_v37  ;;  %v1009_v54 = vadd.f32 %v9671_v21, %v9700_v34 }
 0x975   :  { %8262 = vmatprep.subr.bf16.mxu0 %v9306_v1 }
 0xa2c   :  { %v1231_v55 = vpop.f32.mrf.mxu1 }
 0xa2d   :  { %v1238_v39 = vmul.f32 0.25, %v1231_v55 }
 0xa2e   :  { %v8248_v56 = vpop.f32.mrf.mxu1 }
 0xa2f   :  { %v1240_v57 = vsel %vm9583_vm5, %v1238_v39, -1e+30 }
 0xa30   :  { %v1234_v58 = vpop.f32.mrf.mxu1  ;;  %v1242_v59 = vsel %vm485_vm4, %v1240_v57, -inf }
 0xa31   :  { %v1239_v60 = vmul.f32 0.25, %v1234_v58  ;;  %1243 = vmax.xlane.f32.xlu0 %v1242_v59 }
 0xa32   :  { %v8249_v61 = vpop.f32.mrf.mxu1 }
 0xa33   :  { %v1241_v62 = vsel %vm9593_vm6, %v1239_v60, -1e+30 }
 0xa34   :  { %v1245_v63 = vsel %vm485_vm4, %v1241_v62, -inf }
 0xa35   :  { %1246 = vmax.xlane.f32.xlu1 %v1245_v63 }
 0xaba   :  { %v1244_v0 = vpop.xlane.xlu0 %1243 }
 0xabb   :  { %v1248_v2 = vsub.f32 %v1240_v57, %v1244_v0 }
 0xabd   :  { %v1250_v3 = vmul.f32 1.442695, %v1248_v2 }
 0xabe   :  { %v1247_v4 = vpop.xlane.xlu1 %1246 }
 0xabf   :  { %9123 = vpow2.f32 %v1250_v3  ;;  %v1249_v5 = vsub.f32 %v1241_v62, %v1247_v4 }
 0xac1   :  { %v1252_v6 = vmul.f32 1.442695, %v1249_v5 }
 0xac3   :  { %9125 = vpow2.f32 %v1252_v6 }
 0xacc   :  { %v9124_v7 = vpop.eup %9123 }
 0xacd   :  { %v1254_v9 = vsel %vm485_vm4, %v9124_v7, 0.0 }
 0xace   :  { %1255 = vadd.xlane.f32.xlu0 %v1254_v9 }
 0xad0   :  { %v9126_v10 = vpop.eup %9125 }
 0xad1   :  { %v1257_v11 = vsel %vm485_vm4, %v9126_v10, 0.0 }
 0xad2   :  { %1258 = vadd.xlane.f32.xlu1 %v1257_v11 }
 0xb57   :  { %v1256_v12 = vpop.xlane.xlu0 %1255 }
 0xb58   :  { %9127 = vrcp.f32 %v1256_v12 }
 0xb5b   :  { %v1259_v13 = vpop.xlane.xlu1 %1258 }
 0xb5c   :  { %9129 = vrcp.f32 %v1259_v13 }
 0xb65   :  { %v9128_v14 = vpop.eup %9127 }
 0xb66   :  { %v1262_v18 = vmul.f32 %v9128_v14, %v9124_v7 }
 0xb69   :  { %v9130_v15 = vpop.eup %9129 }
 0xb6a   :  { %v1263_v19 = vmul.f32 %v9130_v15, %v9126_v10 }
 0xb6c   :  { %v1264_v22 = vpack.c.bf16 %v1263_v19, %v1262_v18 }
 0xb6e   :  { %8253 = vmatmul.mubr.msk.bf16.vlgmr.msra.gmra.mxu0 %vm485_vm4, %v1264_v22 }
 0xb6f   :  { %8263 = vmatpush3.bf16.msra.mxu0 %v8967_v20  ;;  %8266 = vmatprep.mubr.msk.bf16.mxu0 %vm9307_vm0, %v9306_v1 }
 0xb70   :  { %8264 = vmatprep.subr.bf16.mxu0 %v9306_v1 }
 0xb73   :  { %8265 = vmatpush3.bf16.msra.mxu0 %v8968_v23 }
 0xb74   :  { %8278 = vmatprep.subr.bf16.mxu0 %v9306_v1 }
 0xb76   :  { %8267 = vmatmul.mubr.msk.bf16.vlgmr.msra.gmra.mxu0 %vm74_vm2, %v9496_v50 }
 0xb77   :  { %8279 = vmatpush3.bf16.msra.mxu0 %v8969_v25  ;;  %8282 = vmatprep.mubr.msk.bf16.mxu0 %vm9307_vm0, %v9306_v1 }
 0xb78   :  { %8280 = vmatprep.subr.bf16.mxu0 %v9306_v1 }
 0xb7b   :  { %8281 = vmatpush3.bf16.msra.mxu0 %v8970_v26 }
 0xb7c   :  { %8292 = vmatprep.subr.bf16.mxu0 %v9306_v1 }
 0xb7e   :  { %8283 = vmatmul.mubr.msk.bf16.vlgmr.msra.gmra.mxu0 %vm74_vm2, %v9496_v50 }
 0xb7f   :  { %8294 = vmatprep.mubr.msk.bf16.mxu0 %vm9307_vm0, %v9306_v1 }
 0xc2e   :  { %v1303_v28 = vpop.f32.mrf.mxu0 }
 0xc30   :  { %v8254_v29 = vpop.f32.mrf.mxu0 }
 0xc32   :  { %v1306_v30 = vpop.f32.mrf.mxu0 }
 0xc33   :  { %v1313_v32 = vpack.c.bf16 %v1306_v30, %v1303_v28 }
 0xc34   :  { %v8255_v33 = vpop.f32.mrf.mxu0 }
 0xc35   :  { %8259 = vmatmul.mubr.msk.bf16.vlgmr.msra.gmra.mxu1 %vm485_vm4, %v1313_v32 }
 0xc36   :  { %v1417_v35 = vpop.f32.mrf.mxu0  ;;  %8271 = vmatpush3.bf16.msra.mxu1 %v8972_v31  ;;  %8274 = vmatprep.mubr.msk.bf16.mxu1 %vm9307_vm0, %v9306_v1  ;;  %v8974_v31 = vld [vmem:[%s10992_s10 + $0x18] sm:$0xff]  }
 0xc37   :  { %8272 = vmatprep.subr.bf16.mxu1 %v9306_v1 }
 0xc38   :  { %v8268_v41 = vpop.f32.mrf.mxu0 }
 0xc3a   :  { %v1420_v43 = vpop.f32.mrf.mxu0  ;;  %8273 = vmatpush3.bf16.msra.mxu1 %v8973_v40 }
 0xc3b   :  { %v1540_v46 = vpack.c.bf16 %v1420_v43, %v1417_v35  ;;  %8286 = vmatprep.subr.bf16.mxu1 %v9306_v1 }
 0xc3c   :  { %v8269_v47 = vpop.f32.mrf.mxu0 }
 0xc3d   :  { %8275 = vmatmul.mubr.msk.bf16.vlgmr.msra.gmra.mxu1 %vm74_vm2, %v9496_v50  ;;  %v1012_v50 = vadd.f32 %v9679_v24, %v9702_v8 }
 0xc3e   :  { %v1533_v48 = vpop.f32.mrf.mxu0  ;;  %8288 = vmatprep.mubr.msk.bf16.mxu1 %vm9307_vm0, %v9306_v1 }
 0xc40   :  { %v8284_v51 = vpop.f32.mrf.mxu0 }
 0xc42   :  { %v1536_v52 = vpop.f32.mrf.mxu0 }
 0xc43   :  { %v1616_v53 = vpack.c.bf16 %v1536_v52, %v1533_v48 }
 0xc44   :  { %v8285_v37 = vpop.f32.mrf.mxu0 }
 0xc45   :  { %8293 = vmatpush3.bf16.msra.mxu0 %v1616_v53 }
 0xc46   :  { %8304 = vmatprep.subr.bf16.mxu0 %v9306_v1 }
 0xcf5   :  { %v1357_v55 = vpop.f32.mrf.mxu1 }
 0xcf6   :  { %v9765_v39 = vadd.f32 %v1357_v55, %v1009_v54 }
 0xcf7   :  { %v8260_v56 = vpop.f32.mrf.mxu1 }
 0xcf9   :  { %v1360_v57 = vpop.f32.mrf.mxu1 }
 0xcfa   :  { %v9769_v58 = vadd.f32 %v1360_v57, %v1012_v50 }
 0xcfb   :  { %v8261_v59 = vpop.f32.mrf.mxu1 }
 0xcfd   :  { %v1475_v60 = vpop.f32.mrf.mxu1 }
 0xcff   :  { %v8276_v61 = vpop.f32.mrf.mxu1 }
 0xd01   :  { %v1478_v62 = vpop.f32.mrf.mxu1 }
 0xd02   :  { %v1541_v63 = vpack.c.bf16 %v1478_v62, %v1475_v60  ;;  %v8975_v62 = vld [vmem:[%s10995_s13 + $0x8] sm:$0xff]  }
 0xd03   :  { %v8277_v0 = vpop.f32.mrf.mxu1 }
 0xd04   :  { %v1546_v2 = vsel %vm485_vm4, %v1541_v63, 0  ;;  %v8976_v63 = vld [vmem:[%s10995_s13] sm:$0xff]  }
 0xd05   :  { %8287 = vmatpush3.bf16.xpose.msra.mxu1 %v1546_v2 }
 0xd06   :  { %8298 = vmatprep.subr.bf16.mxu1 %v9306_v1 }
 0xd0c   :  { %8289 = vmatmul.mubr.msk.bf16.vlgmr.msra.gmra.mxu1 %vm485_vm4, %v1540_v46 }
 0xd0d   :  { %8300 = vmatprep.mubr.msk.bf16.mxu1 %vm9307_vm0, %v9306_v1  ;;  %8299 = vmatpush3.bf16.msra.mxu1 %v8974_v31 }
 0xd0e   :  { %8312 = vmatprep.subr.bf16.mxu1 %v9306_v1 }
 0xdcc   :  { %v1582_v21 = vpop.f32.mrf.mxu1 }
 0xdcd   :  { %v1589_v24 = vmul.f32 0.25, %v1582_v21 }
 0xdce   :  { %v8290_v34 = vpop.f32.mrf.mxu1 }
 0xdcf   :  { %v1591_v8 = vsel %vm9583_vm5, %v1589_v24, -1e+30 }
 0xdd0   :  { %v1585_v3 = vpop.f32.mrf.mxu1  ;;  %v1593_v4 = vsel %vm485_vm4, %v1591_v8, -inf }
 0xdd1   :  { %v1590_v5 = vmul.f32 0.25, %v1585_v3  ;;  %1594 = vmax.xlane.f32.xlu0 %v1593_v4 }
 0xdd2   :  { %v8291_v6 = vpop.f32.mrf.mxu1 }
 0xdd3   :  { %v1592_v7 = vsel %vm9593_vm6, %v1590_v5, -1e+30  ;;  %v7374_v5 = vld [vmem:[%s10993_s11] ss:$0 sm:$0xff] }
 0xdd4   :  { %v1596_v9 = vsel %vm485_vm4, %v1592_v7, -inf }
 0xdd5   :  { %1597 = vmax.xlane.f32.xlu1 %v1596_v9 }
 0xe5a   :  { %v1595_v10 = vpop.xlane.xlu0 %1594 }
 0xe5b   :  { %v1599_v11 = vsub.f32 %v1591_v8, %v1595_v10  ;;  %v7375_v10 = vld [vmem:[%s10994_s12] ss:$0 sm:$0xff] }
 0xe5d   :  { %v1601_v12 = vmul.f32 1.442695, %v1599_v11 }
 0xe5e   :  { %v1598_v13 = vpop.xlane.xlu1 %1597 }
 0xe5f   :  { %9131 = vpow2.f32 %v1601_v12  ;;  %v1600_v14 = vsub.f32 %v1592_v7, %v1598_v13 }
 0xe61   :  { %v1603_v15 = vmul.f32 1.442695, %v1600_v14 }
 0xe63   :  { %9133 = vpow2.f32 %v1603_v15  ;;  %v8977_v15 = vld [vmem:[%s10997_s15 + $0x38] sm:$0xff]  }
 0xe6c   :  { %v9132_v18 = vpop.eup %9131 }
 0xe6d   :  { %v1605_v19 = vsel %vm485_vm4, %v9132_v18, 0.0 }
 0xe6e   :  { %1606 = vadd.xlane.f32.xlu0 %v1605_v19  ;;  %v8979_v19 = vld [vmem:[%s10997_s15 + $0x28] sm:$0xff]  }
 0xe70   :  { %v9134_v20 = vpop.eup %9133 }
 0xe71   :  { %v1608_v22 = vsel %vm485_vm4, %v9134_v20, 0.0 }
 0xe72   :  { %1609 = vadd.xlane.f32.xlu1 %v1608_v22  ;;  %v8981_v22 = vld [vmem:[%s10997_s15 + $0x18] sm:$0xff]  }
 0xef7   :  { %v1607_v23 = vpop.xlane.xlu0 %1606 }
 0xef8   :  { %9135 = vrcp.f32 %v1607_v23  ;;  %v8982_v23 = vld [vmem:[%s10997_s15 + $0x10] sm:$0xff]  }
 0xefb   :  { %v1610_v25 = vpop.xlane.xlu1 %1609 }
 0xefc   :  { %9137 = vrcp.f32 %v1610_v25  ;;  %v8983_v25 = vld [vmem:[%s10997_s15 + $0x8] sm:$0xff]  }
 0xf05   :  { %v9136_v26 = vpop.eup %9135 }
 0xf06   :  { %v1613_v28 = vmul.f32 %v9136_v26, %v9132_v18  ;;  %v8978_v18 = vld [vmem:[%s10997_s15 + $0x30] sm:$0xff]   ;;  %v8984_v26 = vld [vmem:[%s10997_s15] sm:$0xff]  }
 0xf09   :  { %v9138_v27 = vpop.eup %9137 }
 0xf0a   :  { %v1614_v29 = vmul.f32 %v9138_v27, %v9134_v20  ;;  %v8980_v20 = vld [vmem:[%s10997_s15 + $0x20] sm:$0xff]  }
 0xf0b   :  { %v7376_v27 = vld [vmem:[%s10996_s14] ss:$0 sm:$0xff] }
 0xf0c   :  { %v1615_v30 = vpack.c.bf16 %v1614_v29, %v1613_v28 }
 0xf0e   :  { %8295 = vmatmul.mubr.msk.bf16.vlgmr.msra.gmra.mxu0 %vm485_vm4, %v1615_v30 }
 0xf0f   :  { %8308 = vmatprep.mubr.msk.bf16.mxu0 %vm9307_vm0, %v9306_v1  ;;  %8305 = vmatpush3.bf16.msra.mxu0 %v8975_v62 }
 0xf10   :  { %8306 = vmatprep.subr.bf16.mxu0 %v9306_v1 }
 0xf13   :  { %8307 = vmatpush3.bf16.msra.mxu0 %v8976_v63 }
 0xf14   :  { %8332 = vmatprep.subr.bf16.mxu0 %v9306_v1 }
 0xfce   :  { %v1654_v32 = vpop.f32.mrf.mxu0 }
 0xfd0   :  { %v8296_v33 = vpop.f32.mrf.mxu0 }
 0xfd2   :  { %v1657_v35 = vpop.f32.mrf.mxu0 }
 0xfd3   :  { %v1664_v40 = vpack.c.bf16 %v1657_v35, %v1654_v32 }
 0xfd4   :  { %v8297_v41 = vpop.f32.mrf.mxu0 }
 0xfd5   :  { %8301 = vmatmul.mubr.msk.bf16.vlgmr.msra.gmra.mxu1 %vm485_vm4, %v1664_v40 }
 0xfd6   :  { %8328 = vmatprep.mubr.msk.bf16.mxu1 %vm9307_vm0, %v9306_v1  ;;  %8313 = vmatpush3.bf16.msra.mxu1 %v8977_v15 }
 0xfd7   :  { %8314 = vmatprep.subr.bf16.mxu1 %v9306_v1 }
 0xfda   :  { %8315 = vmatpush3.bf16.msra.mxu1 %v8978_v18 }
 0xfdb   :  { %8316 = vmatprep.subr.bf16.mxu1 %v9306_v1 }
 0xfde   :  { %8317 = vmatpush3.bf16.msra.mxu1 %v8979_v19 }
 0xfdf   :  { %8318 = vmatprep.subr.bf16.mxu1 %v9306_v1 }
 0xfe2   :  { %8319 = vmatpush3.bf16.msra.mxu1 %v8980_v20 }
 0xfe3   :  { %8320 = vmatprep.subr.bf16.mxu1 %v9306_v1 }
 0xfe6   :  { %8321 = vmatpush3.bf16.msra.mxu1 %v8981_v22 }
 0xfe7   :  { %8322 = vmatprep.subr.bf16.mxu1 %v9306_v1 }
 0xfea   :  { %8323 = vmatpush3.bf16.msra.mxu1 %v8982_v23 }
 0xfeb   :  { %8324 = vmatprep.subr.bf16.mxu1 %v9306_v1 }
 0xfee   :  { %8325 = vmatpush3.bf16.msra.mxu1 %v8983_v25 }
 0xfef   :  { %8326 = vmatprep.subr.bf16.mxu1 %v9306_v1 }
 0xff2   :  { %8327 = vmatpush3.bf16.msra.mxu1 %v8984_v26 }
 0xff3   :  { %8362 = vmatprep.subr.bf16.mxu1 %v9306_v1 }
0x1095   :  { %v1708_v43 = vpop.f32.mrf.mxu1 }
0x1096   :  { %v1715_v46 = vadd.f32 %v1708_v43, %v9765_v39 }
0x1097   :  { %v8302_v47 = vpop.f32.mrf.mxu1 }
0x1098   :  { %v9796_v48 = vadd.f32 %v1715_v46, %v9463_v16 }
0x1099   :  { %v1711_v51 = vpop.f32.mrf.mxu1 }
0x109a   :  { %v1716_v52 = vadd.f32 %v1711_v51, %v9769_v58  ;;  %v1721_v53 = vsel %vm74_vm2, %v9796_v48, 0.0 }
0x109b   :  { %1722 = vadd.xlane.f32.xlu0 %v1721_v53  ;;  %v8303_v37 = vpop.f32.mrf.mxu1 }
0x109c   :  { %v9802_v54 = vadd.f32 %v1716_v52, %v9465_v17 }
0x109e   :  { %v1724_v55 = vsel %vm74_vm2, %v9802_v54, 0.0 }
0x109f   :  { %1725 = vadd.xlane.f32.xlu1 %v1724_v55 }
0x1124   :  { %v1723_v39 = vpop.xlane.xlu0 %1722 }
0x1125   :  { %v1727_v56 = vmul.f32 0.03125, %v1723_v39 }
0x1127   :  { %v1729_v16 = vsub.f32 %v9796_v48, %v1727_v56 }
0x1128   :  { %v1726_v50 = vpop.xlane.xlu1 %1725 }
0x1129   :  { %v1728_v57 = vmul.f32 0.03125, %v1726_v50  ;;  %v1731_v59 = vmul.f32 %v1729_v16, %v1729_v16 }
0x112b   :  { %v1730_v58 = vsub.f32 %v9802_v54, %v1728_v57  ;;  %v1733_v60 = vsel %vm74_vm2, %v1731_v59, 0.0 }
0x112c   :  { %1734 = vadd.xlane.f32.xlu0 %v1733_v60 }
0x112d   :  { %v1732_v61 = vmul.f32 %v1730_v58, %v1730_v58 }
0x112f   :  { %v1736_v17 = vsel %vm74_vm2, %v1732_v61, 0.0 }
0x1130   :  { %1737 = vadd.xlane.f32.xlu1 %v1736_v17  ;;  %v7388_v17 = vld [vmem:[%s10998_s16] ss:$0 sm:$0xff] }
0x11b5   :  { %v1735_v0 = vpop.xlane.xlu0 %1734 }
0x11b6   :  { %v1739_v2 = vmul.f32 0.03125, %v1735_v0 }
0x11b8   :  { %v1741_v21 = vadd.f32 1e-05, %v1739_v2 }
0x11b9   :  { %v1738_v24 = vpop.xlane.xlu1 %1737 }
0x11ba   :  { %9139 = vrsqrt.f32 %v1741_v21  ;;  %v1740_v34 = vmul.f32 0.03125, %v1738_v24 }
0x11bc   :  { %v1742_v8 = vadd.f32 1e-05, %v1740_v34 }
0x11be   :  { %9141 = vrsqrt.f32 %v1742_v8 }
0x11c7   :  { %v9140_v3 = vpop.eup %9139 }
0x11c8   :  { %v1745_v4 = vmul.f32 %v9140_v3, %v1729_v16 }
0x11ca   :  { %v1753_v9 = vmul.f32 %v7374_v5, %v1745_v4 }
0x11cb   :  { %v9142_v6 = vpop.eup %9141 }
0x11cc   :  { %v1746_v7 = vmul.f32 %v9142_v6, %v1730_v58  ;;  %v1761_v12 = vadd.f32 %v7375_v10, %v1753_v9 }
0x11ce   :  { %v1754_v11 = vmul.f32 %v7374_v5, %v1746_v7 }
0x11d0   :  { %v1762_v13 = vadd.f32 %v7375_v10, %v1754_v11 }
0x11d2   :  { %v1767_v14 = vpack.c.bf16 %v1762_v13, %v1761_v12  ;;  %v8985_v13 = vld [vmem:[%s10989_s7 + $0x48] sm:$0xff]  }
0x11d4   :  { %8309 = vmatmul.mubr.msk.bf16.vlgmr.msra.gmra.mxu0 %vm74_vm2, %v1767_v14  ;;  %v8986_v14 = vld [vmem:[%s10989_s7 + $0x40] sm:$0xff]  }
0x11d5   :  { %8336 = vmatprep.mubr.msk.bf16.mxu0 %vm9307_vm0, %v9306_v1  ;;  %8333 = vmatpush3.bf16.msra.mxu0 %v8985_v13 }
0x11d6   :  { %8334 = vmatprep.subr.bf16.mxu0 %v9306_v1 }
0x11d9   :  { %8335 = vmatpush3.bf16.msra.mxu0 %v8986_v14 }
0x11da   :  { %8340 = vmatprep.subr.bf16.mxu0 %v9306_v1 }
0x1294   :  { %v1824_v28 = vpop.f32.mrf.mxu0 }
0x1295   :  { %v1825_v29 = vadd.f32 %v7376_v27, %v1824_v28 }
0x1296   :  { %v8310_v30 = vpop.f32.mrf.mxu0 }
0x1297   :  { %v1831_v31 = vmul.f32 %v1825_v29, %v1825_v29 }
0x1298   :  { %v1827_v32 = vpop.f32.mrf.mxu0 }
0x1299   :  { %v1833_v33 = vmul.f32 %v1831_v31, %v1825_v29  ;;  %v1828_v35 = vadd.f32 %v7376_v27, %v1827_v32  ;;  %v7391_v27 = vld [vmem:[%s11020_s27 + $0x1] ss:$0 sm:$0xff] }
0x129a   :  { %v8311_v40 = vpop.f32.mrf.mxu0  ;;  %v7392_v31 = vld [vmem:[%s10988_s6 + $0x1] ss:$0 sm:$0xff] }
0x129b   :  { %v1835_v41 = vmul.f32 0.044715, %v1833_v33  ;;  %v1832_v43 = vmul.f32 %v1828_v35, %v1828_v35  ;;  %v8987_v40 = vld [vmem:[%s10990_s8 + $0x48] sm:$0xff]  }
0x129d   :  { %v1837_v46 = vadd.f32 %v1835_v41, %v1825_v29  ;;  %v1834_v47 = vmul.f32 %v1832_v43, %v1828_v35  ;;  %v8988_v43 = vld [vmem:[%s10990_s8 + $0x40] sm:$0xff]  }
0x129f   :  { %v1839_v51 = vmul.f32 0.7978846, %v1837_v46  ;;  %v1836_v52 = vmul.f32 0.044715, %v1834_v47  ;;  %v8989_v46 = vld [vmem:[%s10991_s9 + $0x48] sm:$0xff]   ;;  %v8990_v47 = vld [vmem:[%s10991_s9 + $0x40] sm:$0xff]  }
0x12a1   :  { %9143 = vtanh.f32 %v1839_v51  ;;  %v1838_v53 = vadd.f32 %v1836_v52, %v1828_v35 }
0x12a3   :  { %v1840_v37 = vmul.f32 0.7978846, %v1838_v53 }
0x12a5   :  { %9145 = vtanh.f32 %v1840_v37 }
0x12ae   :  { %v9144_v55 = vpop.eup %9143 }
0x12af   :  { %v1843_v39 = vadd.f32 1.0, %v9144_v55 }
0x12b1   :  { %v1845_v16 = vmul.f32 0.5, %v1843_v39 }
0x12b2   :  { %v9146_v56 = vpop.eup %9145 }
0x12b3   :  { %v1844_v50 = vadd.f32 1.0, %v9146_v56  ;;  %v1847_v59 = vmul.f32 %v1845_v16, %v1825_v29 }
0x12b5   :  { %v1846_v57 = vmul.f32 0.5, %v1844_v50 }
0x12b7   :  { %v1848_v58 = vmul.f32 %v1846_v57, %v1828_v35 }
0x12b9   :  { %v1865_v60 = vpack.c.bf16 %v1848_v58, %v1847_v59 }
0x12bb   :  { %8329 = vmatmul.mubr.bf16.vlgmr.msra.gmra.mxu1 %v1865_v60 }
0x12bc   :  { %8364 = vmatprep.mubr.msk.bf16.mxu1 %vm9307_vm0, %v9306_v1 }
0x137b   :  { %v1948_v61 = vpop.f32.mrf.mxu1 }
0x137c   :  { %v1955_v62 = vadd.f32 %v1948_v61, %v9796_v48  ;;  %v8991_v61 = vld [vmem:[%s10989_s7 + $0x58] sm:$0xff]  }
0x137d   :  { %v8330_v63 = vpop.f32.mrf.mxu1 }
0x137e   :  { %v9868_v0 = vadd.f32 %v7388_v17, %v1955_v62 }
0x137f   :  { %v1951_v2 = vpop.f32.mrf.mxu1 }
0x1380   :  { %v1956_v21 = vadd.f32 %v1951_v2, %v9802_v54  ;;  %v1970_v24 = vsel %vm74_vm2, %v9868_v0, 0.0  ;;  %v8992_v2 = vld [vmem:[%s10989_s7 + $0x50] sm:$0xff]  }
0x1381   :  { %1971 = vadd.xlane.f32.xlu0 %v1970_v24  ;;  %v8331_v34 = vpop.f32.mrf.mxu1  ;;  %v8994_v24 = vld [vmem:[%s10991_s9 + $0x50] sm:$0xff]  }
0x1382   :  { %v9873_v8 = vadd.f32 %v7388_v17, %v1956_v21  ;;  %v8993_v21 = vld [vmem:[%s10991_s9 + $0x58] sm:$0xff]  }
0x1384   :  { %v1973_v3 = vsel %vm74_vm2, %v9873_v8, 0.0 }
0x1385   :  { %1974 = vadd.xlane.f32.xlu1 %v1973_v3 }
0x140a   :  { %v1972_v4 = vpop.xlane.xlu0 %1971 }
0x140b   :  { %v1976_v5 = vmul.f32 0.03125, %v1972_v4 }
0x140d   :  { %v1978_v48 = vsub.f32 %v9868_v0, %v1976_v5 }
0x140e   :  { %v1975_v6 = vpop.xlane.xlu1 %1974 }
0x140f   :  { %v1977_v7 = vmul.f32 0.03125, %v1975_v6  ;;  %v1980_v9 = vmul.f32 %v1978_v48, %v1978_v48 }
0x1411   :  { %v1979_v54 = vsub.f32 %v9873_v8, %v1977_v7  ;;  %v1982_v10 = vsel %vm74_vm2, %v1980_v9, 0.0 }
0x1412   :  { %1983 = vadd.xlane.f32.xlu0 %v1982_v10 }
0x1413   :  { %v1981_v11 = vmul.f32 %v1979_v54, %v1979_v54 }
0x1415   :  { %v1985_v12 = vsel %vm74_vm2, %v1981_v11, 0.0 }
0x1416   :  { %1986 = vadd.xlane.f32.xlu1 %v1985_v12 }
0x149b   :  { %v1984_v15 = vpop.xlane.xlu0 %1983 }
0x149c   :  { %v1988_v18 = vmul.f32 0.03125, %v1984_v15 }
0x149e   :  { %v1990_v19 = vadd.f32 1e-05, %v1988_v18 }
0x149f   :  { %v1987_v20 = vpop.xlane.xlu1 %1986 }
0x14a0   :  { %9147 = vrsqrt.f32 %v1990_v19  ;;  %v1989_v22 = vmul.f32 0.03125, %v1987_v20 }
0x14a2   :  { %v1991_v23 = vadd.f32 1e-05, %v1989_v22 }
0x14a4   :  { %9149 = vrsqrt.f32 %v1991_v23 }
0x14ad   :  { %v9148_v25 = vpop.eup %9147 }
0x14ae   :  { %v1994_v26 = vmul.f32 %v9148_v25, %v1978_v48 }
0x14b0   :  { %v2002_v29 = vmul.f32 %v7391_v27, %v1994_v26 }
0x14b1   :  { %v9150_v28 = vpop.eup %9149 }
0x14b2   :  { %v1995_v30 = vmul.f32 %v9150_v28, %v1979_v54  ;;  %v2010_v33 = vadd.f32 %v7392_v31, %v2002_v29 }
0x14b4   :  { %v2003_v32 = vmul.f32 %v7391_v27, %v1995_v30 }
0x14b6   :  { %v2011_v35 = vadd.f32 %v7392_v31, %v2003_v32 }
0x14b8   :  { %v9898_v41 = vpack.c.bf16 %v2011_v35, %v2010_v33 }
0x14ba   :  { %8337 = vmatmul.mubr.msk.bf16.vlgmr.msra.gmra.mxu0 %vm74_vm2, %v9898_v41 }
0x14bb   :  { %8341 = vmatpush3.bf16.msra.mxu0 %v8987_v40  ;;  %8344 = vmatprep.mubr.msk.bf16.mxu0 %vm9307_vm0, %v9306_v1 }
0x14bc   :  { %8342 = vmatprep.subr.bf16.mxu0 %v9306_v1 }
0x14bf   :  { %8343 = vmatpush3.bf16.msra.mxu0 %v8988_v43 }
0x14c0   :  { %8348 = vmatprep.subr.bf16.mxu0 %v9306_v1 }
0x14c2   :  { %8345 = vmatmul.mubr.msk.bf16.vlgmr.msra.gmra.mxu0 %vm74_vm2, %v9898_v41 }
0x14c3   :  { %8349 = vmatpush3.bf16.msra.mxu0 %v8989_v46  ;;  %8352 = vmatprep.mubr.msk.bf16.mxu0 %vm9307_vm0, %v9306_v1 }
0x14c4   :  { %8350 = vmatprep.subr.bf16.mxu0 %v9306_v1 }
0x14c7   :  { %8351 = vmatpush3.bf16.msra.mxu0 %v8990_v47 }
0x14c8   :  { %8356 = vmatprep.subr.bf16.mxu0 %v9306_v1 }
0x14ca   :  { %8353 = vmatmul.mubr.msk.bf16.vlgmr.msra.gmra.mxu0 %vm74_vm2, %v9898_v41 }
0x14cb   :  { %8358 = vmatprep.mubr.msk.bf16.mxu0 %vm9307_vm0, %v9306_v1 }
0x157a   :  { %v2067_v51 = vpop.f32.mrf.mxu0 }
0x157c   :  { %v8338_v52 = vpop.f32.mrf.mxu0 }
0x157e   :  { %v2070_v53 = vpop.f32.mrf.mxu0 }
0x157f   :  { %v2190_v17 = vpack.c.bf16 %v2070_v53, %v2067_v51 }
0x1580   :  { %v8339_v37 = vpop.f32.mrf.mxu0 }
0x1582   :  { %v2125_v55 = vpop.f32.mrf.mxu0 }
0x1584   :  { %v8346_v39 = vpop.f32.mrf.mxu0 }
0x1586   :  { %v2128_v56 = vpop.f32.mrf.mxu0 }
0x1587   :  { %v2191_v16 = vpack.c.bf16 %v2128_v56, %v2125_v55  ;;  %v8995_v55 = vld [vmem:[%s10990_s8 + $0x58] sm:$0xff]   ;;  %v8996_v56 = vld [vmem:[%s10990_s8 + $0x50] sm:$0xff]  }
0x1588   :  { %v8347_v50 = vpop.f32.mrf.mxu0 }
0x1589   :  { %v2196_v57 = vsel %vm485_vm4, %v2191_v16, 0 }
0x158a   :  { %v2183_v59 = vpop.f32.mrf.mxu0  ;;  %8357 = vmatpush3.bf16.xpose.msra.mxu0 %v2196_v57 }
0x158b   :  { %8368 = vmatprep.subr.bf16.mxu0 %v9306_v1 }
0x158c   :  { %v8354_v58 = vpop.f32.mrf.mxu0 }
0x158e   :  { %v2186_v60 = vpop.f32.mrf.mxu0 }
0x158f   :  { %v2268_v62 = vpack.c.bf16 %v2186_v60, %v2183_v59 }
0x1590   :  { %v8355_v63 = vpop.f32.mrf.mxu0 }
0x1591   :  { %8359 = vmatmul.mubr.msk.bf16.vlgmr.msra.gmra.mxu0 %vm485_vm4, %v2190_v17  ;;  %8363 = vmatpush3.bf16.msra.mxu1 %v2268_v62 }
0x1592   :  { %8369 = vmatpush3.bf16.msra.mxu0 %v8991_v61  ;;  %8372 = vmatprep.mubr.msk.bf16.mxu0 %vm9307_vm0, %v9306_v1 }
0x1593   :  { %8370 = vmatprep.subr.bf16.mxu0 %v9306_v1  ;;  %8376 = vmatprep.subr.bf16.mxu1 %v9306_v1 }
0x1596   :  { %8371 = vmatpush3.bf16.msra.mxu0 %v8992_v2 }
0x1597   :  { %8384 = vmatprep.subr.bf16.mxu0 %v9306_v1 }
0x1599   :  { %8373 = vmatmul.mubr.msk.bf16.vlgmr.msra.gmra.mxu0 %vm74_vm2, %v9898_v41 }
0x159a   :  { %8385 = vmatpush3.bf16.msra.mxu0 %v8993_v21  ;;  %8388 = vmatprep.mubr.msk.bf16.mxu0 %vm9307_vm0, %v9306_v1 }
0x159b   :  { %8386 = vmatprep.subr.bf16.mxu0 %v9306_v1 }
0x159e   :  { %8387 = vmatpush3.bf16.msra.mxu0 %v8994_v24 }
0x159f   :  { %8398 = vmatprep.subr.bf16.mxu0 %v9306_v1 }
0x15a1   :  { %8389 = vmatmul.mubr.msk.bf16.vlgmr.msra.gmra.mxu0 %vm74_vm2, %v9898_v41 }
0x15a2   :  { %8400 = vmatprep.mubr.msk.bf16.mxu0 %vm9307_vm0, %v9306_v1 }
0x1651   :  { %v2232_v34 = vpop.f32.mrf.mxu0 }
0x1652   :  { %v2239_v3 = vmul.f32 0.25, %v2232_v34 }
0x1653   :  { %v8360_v4 = vpop.f32.mrf.mxu0 }
0x1654   :  { %v2241_v5 = vadd.f32 %v2239_v3, %v9579_v38 }
0x1655   :  { %v2235_v48 = vpop.f32.mrf.mxu0 }
0x1656   :  { %v2240_v6 = vmul.f32 0.25, %v2235_v48  ;;  %v2243_v7 = vsel %vm9583_vm5, %v2241_v5, -1e+30 }
0x1657   :  { %v8361_v9 = vpop.f32.mrf.mxu0  ;;  %v2245_v54 = vsel %vm485_vm4, %v2243_v7, -inf }
0x1658   :  { %v2242_v10 = vadd.f32 %v2240_v6, %v9589_v45  ;;  %2246 = vmax.xlane.f32.xlu0 %v2245_v54 }
0x1659   :  { %v2368_v11 = vpop.f32.mrf.mxu0 }
0x165a   :  { %v2244_v12 = vsel %vm9593_vm6, %v2242_v10, -1e+30 }
0x165b   :  { %v8374_v13 = vpop.f32.mrf.mxu0  ;;  %v2248_v14 = vsel %vm485_vm4, %v2244_v12, -inf }
0x165c   :  { %2249 = vmax.xlane.f32.xlu1 %v2248_v14 }
0x165d   :  { %v2371_v15 = vpop.f32.mrf.mxu0 }
0x165e   :  { %v2491_v18 = vpack.c.bf16 %v2371_v15, %v2368_v11 }
0x165f   :  { %v8375_v19 = vpop.f32.mrf.mxu0 }
0x1661   :  { %v2484_v20 = vpop.f32.mrf.mxu0 }
0x1663   :  { %v8390_v22 = vpop.f32.mrf.mxu0 }
0x1665   :  { %v2487_v23 = vpop.f32.mrf.mxu0 }
0x1666   :  { %v2569_v25 = vpack.c.bf16 %v2487_v23, %v2484_v20 }
0x1667   :  { %v8391_v26 = vpop.f32.mrf.mxu0 }
0x1668   :  { %8399 = vmatpush3.bf16.msra.mxu0 %v2569_v25 }
0x1669   :  { %8410 = vmatprep.subr.bf16.mxu0 %v9306_v1 }
0x16e1   :  { %v2247_v27 = vpop.xlane.xlu0 %2246 }
0x16e2   :  { %v2251_v28 = vsub.f32 %v2243_v7, %v2247_v27 }
0x16e4   :  { %v2253_v29 = vmul.f32 1.442695, %v2251_v28 }
0x16e5   :  { %v2250_v30 = vpop.xlane.xlu1 %2249 }
0x16e6   :  { %9151 = vpow2.f32 %v2253_v29  ;;  %v2252_v31 = vsub.f32 %v2244_v12, %v2250_v30 }
0x16e8   :  { %v2255_v32 = vmul.f32 1.442695, %v2252_v31  ;;  %v8997_v31 = vld [vmem:[%s10992_s10 + $0x20] sm:$0xff]  }
0x16ea   :  { %9153 = vpow2.f32 %v2255_v32 }
0x16f3   :  { %v9152_v33 = vpop.eup %9151 }
0x16f4   :  { %v2257_v35 = vsel %vm485_vm4, %v9152_v33, 0.0 }
0x16f5   :  { %2258 = vadd.xlane.f32.xlu0 %v2257_v35  ;;  %v8999_v35 = vld [vmem:[%s10990_s8 + $0x60] sm:$0xff]  }
0x16f7   :  { %v9154_v40 = vpop.eup %9153 }
0x16f8   :  { %v2260_v43 = vsel %vm485_vm4, %v9154_v40, 0.0 }
0x16f9   :  { %2261 = vadd.xlane.f32.xlu1 %v2260_v43 }
0x177e   :  { %v2259_v46 = vpop.xlane.xlu0 %2258 }
0x177f   :  { %9155 = vrcp.f32 %v2259_v46 }
0x1782   :  { %v2262_v47 = vpop.xlane.xlu1 %2261 }
0x1783   :  { %9157 = vrcp.f32 %v2262_v47 }
0x178c   :  { %v9156_v51 = vpop.eup %9155 }
0x178d   :  { %v2265_v53 = vmul.f32 %v9156_v51, %v9152_v33  ;;  %v8998_v33 = vld [vmem:[%s10990_s8 + $0x68] sm:$0xff]  }
0x178e   :  { %v9001_v51 = vld [vmem:[%s10989_s7 + $0x68] sm:$0xff]  }
0x1790   :  { %v9158_v52 = vpop.eup %9157 }
0x1791   :  { %v2266_v37 = vmul.f32 %v9158_v52, %v9154_v40  ;;  %v9000_v40 = vld [vmem:[%s10992_s10 + $0x28] sm:$0xff]  }
0x1793   :  { %v2267_v39 = vpack.c.bf16 %v2266_v37, %v2265_v53 }
0x1795   :  { %8365 = vmatmul.mubr.msk.bf16.vlgmr.msra.gmra.mxu1 %vm485_vm4, %v2267_v39 }
0x1796   :  { %8377 = vmatpush3.bf16.msra.mxu1 %v8995_v55  ;;  %8380 = vmatprep.mubr.msk.bf16.mxu1 %vm9307_vm0, %v9306_v1  ;;  %v9002_v55 = vld [vmem:[%s10989_s7 + $0x60] sm:$0xff]  }
0x1797   :  { %8378 = vmatprep.subr.bf16.mxu1 %v9306_v1 }
0x179a   :  { %8379 = vmatpush3.bf16.msra.mxu1 %v8996_v56 }
0x179b   :  { %8392 = vmatprep.subr.bf16.mxu1 %v9306_v1 }
0x179d   :  { %8381 = vmatmul.mubr.msk.bf16.vlgmr.msra.gmra.mxu1 %vm74_vm2, %v9898_v41 }
0x179e   :  { %8394 = vmatprep.mubr.msk.bf16.mxu1 %vm9307_vm0, %v9306_v1 }
0x1855   :  { %v2306_v16 = vpop.f32.mrf.mxu1 }
0x1857   :  { %v8366_v50 = vpop.f32.mrf.mxu1 }
0x1859   :  { %v2309_v57 = vpop.f32.mrf.mxu1 }
0x185a   :  { %v2316_v59 = vpack.c.bf16 %v2309_v57, %v2306_v16  ;;  %v9003_v16 = vld [vmem:[%s10991_s9 + $0x68] sm:$0xff]  }
0x185b   :  { %v8367_v58 = vpop.f32.mrf.mxu1 }
0x185d   :  { %v2426_v60 = vpop.f32.mrf.mxu1 }
0x185f   :  { %v8382_v61 = vpop.f32.mrf.mxu1 }
0x1861   :  { %v2429_v17 = vpop.f32.mrf.mxu1 }
0x1862   :  { %v2492_v62 = vpack.c.bf16 %v2429_v17, %v2426_v60 }
0x1863   :  { %v8383_v63 = vpop.f32.mrf.mxu1 }
0x1864   :  { %v2497_v2 = vsel %vm485_vm4, %v2492_v62, 0 }
0x1865   :  { %8393 = vmatpush3.bf16.xpose.msra.mxu1 %v2497_v2 }
0x1866   :  { %8404 = vmatprep.subr.bf16.mxu1 %v9306_v1 }
0x186c   :  { %8395 = vmatmul.mubr.msk.bf16.vlgmr.msra.gmra.mxu1 %vm485_vm4, %v2491_v18 }
0x186d   :  { %8406 = vmatprep.mubr.msk.bf16.mxu1 %vm9307_vm0, %v9306_v1  ;;  %8405 = vmatpush3.bf16.msra.mxu1 %v9000_v40 }
0x186e   :  { %8416 = vmatprep.subr.bf16.mxu1 %v9306_v1 }
0x192c   :  { %v2533_v21 = vpop.f32.mrf.mxu1 }
0x192d   :  { %v2540_v24 = vmul.f32 0.25, %v2533_v21 }
0x192e   :  { %v8396_v34 = vpop.f32.mrf.mxu1 }
0x192f   :  { %v2542_v3 = vadd.f32 %v2540_v24, %v9626_v36 }
0x1930   :  { %v2536_v4 = vpop.f32.mrf.mxu1 }
0x1931   :  { %v2541_v5 = vmul.f32 0.25, %v2536_v4  ;;  %v2544_v48 = vsel %vm9583_vm5, %v2542_v3, -1e+30 }
0x1932   :  { %v8397_v6 = vpop.f32.mrf.mxu1  ;;  %v2546_v7 = vsel %vm485_vm4, %v2544_v48, -inf }
0x1933   :  { %v2543_v9 = vadd.f32 %v2541_v5, %v9630_v44  ;;  %2547 = vmax.xlane.f32.xlu0 %v2546_v7 }
0x1935   :  { %v2545_v54 = vsel %vm9593_vm6, %v2543_v9, -1e+30 }
0x1936   :  { %v2549_v10 = vsel %vm485_vm4, %v2545_v54, -inf }
0x1937   :  { %2550 = vmax.xlane.f32.xlu1 %v2549_v10 }
0x19bc   :  { %v2548_v11 = vpop.xlane.xlu0 %2547 }
0x19bd   :  { %v2552_v12 = vsub.f32 %v2544_v48, %v2548_v11 }
0x19bf   :  { %v2554_v13 = vmul.f32 1.442695, %v2552_v12 }
0x19c0   :  { %v2551_v14 = vpop.xlane.xlu1 %2550 }
0x19c1   :  { %9159 = vpow2.f32 %v2554_v13  ;;  %v2553_v15 = vsub.f32 %v2545_v54, %v2551_v14 }
0x19c3   :  { %v2556_v18 = vmul.f32 1.442695, %v2553_v15 }
0x19c5   :  { %9161 = vpow2.f32 %v2556_v18 }
0x19ce   :  { %v9160_v19 = vpop.eup %9159 }
0x19cf   :  { %v2558_v20 = vsel %vm485_vm4, %v9160_v19, 0.0 }
0x19d0   :  { %2559 = vadd.xlane.f32.xlu0 %v2558_v20 }
0x19d2   :  { %v9162_v22 = vpop.eup %9161 }
0x19d3   :  { %v2561_v23 = vsel %vm485_vm4, %v9162_v22, 0.0 }
0x19d4   :  { %2562 = vadd.xlane.f32.xlu1 %v2561_v23 }
0x1a59   :  { %v2560_v25 = vpop.xlane.xlu0 %2559 }
0x1a5a   :  { %9163 = vrcp.f32 %v2560_v25 }
0x1a5d   :  { %v2563_v26 = vpop.xlane.xlu1 %2562 }
0x1a5e   :  { %9165 = vrcp.f32 %v2563_v26 }
0x1a67   :  { %v9164_v27 = vpop.eup %9163 }
0x1a68   :  { %v2566_v29 = vmul.f32 %v9164_v27, %v9160_v19 }
0x1a6b   :  { %v9166_v28 = vpop.eup %9165 }
0x1a6c   :  { %v2567_v30 = vmul.f32 %v9166_v28, %v9162_v22 }
0x1a6e   :  { %v2568_v32 = vpack.c.bf16 %v2567_v30, %v2566_v29 }
0x1a70   :  { %8401 = vmatmul.mubr.msk.bf16.vlgmr.msra.gmra.mxu0 %vm485_vm4, %v2568_v32 }
0x1a71   :  { %8411 = vmatpush3.bf16.msra.mxu0 %v8997_v31  ;;  %8412 = vmatprep.mubr.msk.bf16.mxu0 %vm9307_vm0, %v9306_v1 }
0x1a72   :  { %8424 = vmatprep.subr.bf16.mxu0 %v9306_v1 }
0x1a78   :  { %8413 = vmatmul.mubr.msk.bf16.vlgmr.msra.gmra.mxu0 %vm485_vm4, %v2316_v59  ;;  %v9004_v59 = vld [vmem:[%s10991_s9 + $0x60] sm:$0xff]  }
0x1a79   :  { %8425 = vmatpush3.bf16.msra.mxu0 %v8998_v33  ;;  %8428 = vmatprep.mubr.msk.bf16.mxu0 %vm9307_vm0, %v9306_v1 }
0x1a7a   :  { %8426 = vmatprep.subr.bf16.mxu0 %v9306_v1 }
0x1a7d   :  { %8427 = vmatpush3.bf16.msra.mxu0 %v8999_v35 }
0x1a7e   :  { %8440 = vmatprep.subr.bf16.mxu0 %v9306_v1 }
0x1a80   :  { %8429 = vmatmul.mubr.msk.bf16.vlgmr.msra.gmra.mxu0 %vm74_vm2, %v9898_v41 }
0x1a81   :  { %8442 = vmatprep.mubr.msk.bf16.mxu0 %vm9307_vm0, %v9306_v1 }
0x1b30   :  { %v2607_v43 = vpop.f32.mrf.mxu0 }
0x1b32   :  { %v8402_v46 = vpop.f32.mrf.mxu0 }
0x1b34   :  { %v2610_v47 = vpop.f32.mrf.mxu0 }
0x1b35   :  { %v2617_v52 = vpack.c.bf16 %v2610_v47, %v2607_v43 }
0x1b36   :  { %v8403_v53 = vpop.f32.mrf.mxu0 }
0x1b37   :  { %8407 = vmatmul.mubr.msk.bf16.vlgmr.msra.gmra.mxu1 %vm485_vm4, %v2617_v52  ;;  %v9005_v53 = vld [vmem:[%s10989_s7 + $0x78] sm:$0xff]  }
0x1b38   :  { %v10026_v37 = vpop.f32.mrf.mxu0  ;;  %8417 = vmatpush3.bf16.msra.mxu1 %v9001_v51  ;;  %8420 = vmatprep.mubr.msk.bf16.mxu1 %vm9307_vm0, %v9306_v1 }
0x1b39   :  { %8418 = vmatprep.subr.bf16.mxu1 %v9306_v1 }
0x1b3a   :  { %v8414_v39 = vpop.f32.mrf.mxu0 }
0x1b3b   :  { %v9006_v39 = vld [vmem:[%s10989_s7 + $0x70] sm:$0xff]  }
0x1b3c   :  { %v10034_v56 = vpop.f32.mrf.mxu0  ;;  %8419 = vmatpush3.bf16.msra.mxu1 %v9002_v55 }
0x1b3d   :  { %8432 = vmatprep.subr.bf16.mxu1 %v9306_v1 }
0x1b3e   :  { %v8415_v50 = vpop.f32.mrf.mxu0 }
0x1b3f   :  { %8421 = vmatmul.mubr.msk.bf16.vlgmr.msra.gmra.mxu1 %vm74_vm2, %v9898_v41  ;;  %v9008_v50 = vld [vmem:[%s10991_s9 + $0x70] sm:$0xff]  }
0x1b40   :  { %v2827_v57 = vpop.f32.mrf.mxu0  ;;  %8433 = vmatpush3.bf16.msra.mxu1 %v9003_v16  ;;  %8436 = vmatprep.mubr.msk.bf16.mxu1 %vm9307_vm0, %v9306_v1  ;;  %v9007_v16 = vld [vmem:[%s10991_s9 + $0x78] sm:$0xff]  }
0x1b41   :  { %8434 = vmatprep.subr.bf16.mxu1 %v9306_v1 }
0x1b42   :  { %v8430_v58 = vpop.f32.mrf.mxu0 }
0x1b44   :  { %v2830_v60 = vpop.f32.mrf.mxu0  ;;  %8435 = vmatpush3.bf16.msra.mxu1 %v9004_v59 }
0x1b45   :  { %v2893_v61 = vpack.c.bf16 %v2830_v60, %v2827_v57  ;;  %8446 = vmatprep.subr.bf16.mxu1 %v9306_v1  ;;  %v9009_v57 = vld [vmem:[%s10992_s10 + $0x30] sm:$0xff]  }
0x1b46   :  { %v8431_v17 = vpop.f32.mrf.mxu0 }
0x1b47   :  { %v2898_v62 = vsel %vm485_vm4, %v2893_v61, 0  ;;  %8437 = vmatmul.mubr.msk.bf16.vlgmr.msra.gmra.mxu1 %vm74_vm2, %v9898_v41  ;;  %v9010_v61 = vld [vmem:[%s10990_s8 + $0x78] sm:$0xff]  }
0x1b48   :  { %8441 = vmatpush3.bf16.xpose.msra.mxu0 %v2898_v62  ;;  %8448 = vmatprep.mubr.msk.bf16.mxu1 %vm9307_vm0, %v9306_v1 }
0x1b49   :  { %8452 = vmatprep.subr.bf16.mxu0 %v9306_v1 }
0x1bf7   :  { %v10055_v63 = vpop.f32.mrf.mxu1 }
0x1bf9   :  { %v8408_v2 = vpop.f32.mrf.mxu1 }
0x1bfb   :  { %v10057_v21 = vpop.f32.mrf.mxu1 }
0x1bfd   :  { %v8409_v24 = vpop.f32.mrf.mxu1 }
0x1bfe   :  { %v9011_v24 = vld [vmem:[%s10990_s8 + $0x70] sm:$0xff]  }
0x1bff   :  { %v2769_v34 = vpop.f32.mrf.mxu1 }
0x1c01   :  { %v8422_v3 = vpop.f32.mrf.mxu1 }
0x1c03   :  { %v2772_v4 = vpop.f32.mrf.mxu1 }
0x1c04   :  { %v2892_v5 = vpack.c.bf16 %v2772_v4, %v2769_v34 }
0x1c05   :  { %v8423_v48 = vpop.f32.mrf.mxu1 }
0x1c06   :  { %8443 = vmatmul.mubr.msk.bf16.vlgmr.msra.gmra.mxu0 %vm485_vm4, %v2892_v5 }
0x1c07   :  { %v2885_v6 = vpop.f32.mrf.mxu1  ;;  %8454 = vmatprep.mubr.msk.bf16.mxu0 %vm9307_vm0, %v9306_v1  ;;  %8453 = vmatpush3.bf16.msra.mxu0 %v9009_v57 }
0x1c08   :  { %8466 = vmatprep.subr.bf16.mxu0 %v9306_v1 }
0x1c09   :  { %v8438_v7 = vpop.f32.mrf.mxu1 }
0x1c0b   :  { %v2888_v9 = vpop.f32.mrf.mxu1 }
0x1c0c   :  { %v2968_v54 = vpack.c.bf16 %v2888_v9, %v2885_v6 }
0x1c0d   :  { %v8439_v10 = vpop.f32.mrf.mxu1 }
0x1c0e   :  { %8447 = vmatpush3.bf16.msra.mxu1 %v2968_v54  ;;  %v2712_v10 = vadd.f32 %v10026_v37, %v10055_v63 }
0x1c0f   :  { %8458 = vmatprep.subr.bf16.mxu1 %v9306_v1 }
0x1cc6   :  { %v2934_v11 = vpop.f32.mrf.mxu0 }
0x1cc7   :  { %v2941_v12 = vmul.f32 0.25, %v2934_v11 }
0x1cc8   :  { %v8444_v13 = vpop.f32.mrf.mxu0 }
0x1cc9   :  { %v2943_v14 = vsel %vm9583_vm5, %v2941_v12, -1e+30 }
0x1cca   :  { %v2937_v15 = vpop.f32.mrf.mxu0  ;;  %v2945_v18 = vsel %vm485_vm4, %v2943_v14, -inf }
0x1ccb   :  { %v2942_v19 = vmul.f32 0.25, %v2937_v15  ;;  %2946 = vmax.xlane.f32.xlu0 %v2945_v18 }
0x1ccc   :  { %v8445_v20 = vpop.f32.mrf.mxu0 }
0x1ccd   :  { %v2944_v22 = vsel %vm9593_vm6, %v2942_v19, -1e+30 }
0x1cce   :  { %v2948_v23 = vsel %vm485_vm4, %v2944_v22, -inf }
0x1ccf   :  { %2949 = vmax.xlane.f32.xlu1 %v2948_v23 }
0x1d54   :  { %v2947_v25 = vpop.xlane.xlu0 %2946 }
0x1d55   :  { %v2951_v26 = vsub.f32 %v2943_v14, %v2947_v25 }
0x1d57   :  { %v2953_v27 = vmul.f32 1.442695, %v2951_v26 }
0x1d58   :  { %v2950_v28 = vpop.xlane.xlu1 %2949 }
0x1d59   :  { %9167 = vpow2.f32 %v2953_v27  ;;  %v2952_v29 = vsub.f32 %v2944_v22, %v2950_v28 }
0x1d5b   :  { %v2955_v30 = vmul.f32 1.442695, %v2952_v29 }
0x1d5d   :  { %9169 = vpow2.f32 %v2955_v30 }
0x1d66   :  { %v9168_v31 = vpop.eup %9167 }
0x1d67   :  { %v2957_v32 = vsel %vm485_vm4, %v9168_v31, 0.0 }
0x1d68   :  { %2958 = vadd.xlane.f32.xlu0 %v2957_v32 }
0x1d6a   :  { %v9170_v33 = vpop.eup %9169 }
0x1d6b   :  { %v2960_v35 = vsel %vm485_vm4, %v9170_v33, 0.0 }
0x1d6c   :  { %2961 = vadd.xlane.f32.xlu1 %v2960_v35 }
0x1df1   :  { %v2959_v40 = vpop.xlane.xlu0 %2958 }
0x1df2   :  { %9171 = vrcp.f32 %v2959_v40 }
0x1df5   :  { %v2962_v43 = vpop.xlane.xlu1 %2961 }
0x1df6   :  { %9173 = vrcp.f32 %v2962_v43 }
0x1dff   :  { %v9172_v46 = vpop.eup %9171 }
0x1e00   :  { %v2965_v51 = vmul.f32 %v9172_v46, %v9168_v31 }
0x1e03   :  { %v9174_v47 = vpop.eup %9173 }
0x1e04   :  { %v2966_v52 = vmul.f32 %v9174_v47, %v9170_v33 }
0x1e06   :  { %v2967_v55 = vpack.c.bf16 %v2966_v52, %v2965_v51 }
0x1e08   :  { %8449 = vmatmul.mubr.msk.bf16.vlgmr.msra.gmra.mxu1 %vm485_vm4, %v2967_v55 }
0x1e09   :  { %8459 = vmatpush3.bf16.msra.mxu1 %v9005_v53  ;;  %8462 = vmatprep.mubr.msk.bf16.mxu1 %vm9307_vm0, %v9306_v1 }
0x1e0a   :  { %8460 = vmatprep.subr.bf16.mxu1 %v9306_v1 }
0x1e0d   :  { %8461 = vmatpush3.bf16.msra.mxu1 %v9006_v39 }
0x1e0e   :  { %8474 = vmatprep.subr.bf16.mxu1 %v9306_v1 }
0x1e10   :  { %8463 = vmatmul.mubr.msk.bf16.vlgmr.msra.gmra.mxu1 %vm74_vm2, %v9898_v41 }
0x1e11   :  { %8475 = vmatpush3.bf16.msra.mxu1 %v9007_v16  ;;  %8478 = vmatprep.mubr.msk.bf16.mxu1 %vm9307_vm0, %v9306_v1 }
0x1e12   :  { %8476 = vmatprep.subr.bf16.mxu1 %v9306_v1 }
0x1e15   :  { %8477 = vmatpush3.bf16.msra.mxu1 %v9008_v50 }
0x1e16   :  { %8488 = vmatprep.subr.bf16.mxu1 %v9306_v1 }
0x1e18   :  { %8479 = vmatmul.mubr.msk.bf16.vlgmr.msra.gmra.mxu1 %vm74_vm2, %v9898_v41 }
0x1e19   :  { %8490 = vmatprep.mubr.msk.bf16.mxu1 %vm9307_vm0, %v9306_v1 }
0x1ec8   :  { %v3006_v59 = vpop.f32.mrf.mxu1 }
0x1eca   :  { %v8450_v58 = vpop.f32.mrf.mxu1 }
0x1ecc   :  { %v3009_v60 = vpop.f32.mrf.mxu1 }
0x1ecd   :  { %v3016_v17 = vpack.c.bf16 %v3009_v60, %v3006_v59 }
0x1ece   :  { %v8451_v62 = vpop.f32.mrf.mxu1 }
0x1ecf   :  { %8455 = vmatmul.mubr.msk.bf16.vlgmr.msra.gmra.mxu0 %vm485_vm4, %v3016_v17 }
0x1ed0   :  { %v3120_v2 = vpop.f32.mrf.mxu1  ;;  %8467 = vmatpush3.bf16.msra.mxu0 %v9010_v61  ;;  %8470 = vmatprep.mubr.msk.bf16.mxu0 %vm9307_vm0, %v9306_v1  ;;  %v9012_v61 = vld [vmem:[%s10992_s10 + $0x38] sm:$0xff]  }
0x1ed1   :  { %8468 = vmatprep.subr.bf16.mxu0 %v9306_v1 }
0x1ed2   :  { %v8464_v34 = vpop.f32.mrf.mxu1 }
0x1ed4   :  { %v3123_v3 = vpop.f32.mrf.mxu1  ;;  %8469 = vmatpush3.bf16.msra.mxu0 %v9011_v24 }
0x1ed5   :  { %v3243_v4 = vpack.c.bf16 %v3123_v3, %v3120_v2  ;;  %8482 = vmatprep.subr.bf16.mxu0 %v9306_v1 }
0x1ed6   :  { %v8465_v5 = vpop.f32.mrf.mxu1 }
0x1ed7   :  { %8471 = vmatmul.mubr.msk.bf16.vlgmr.msra.gmra.mxu0 %vm74_vm2, %v9898_v41  ;;  %v2715_v41 = vadd.f32 %v10034_v56, %v10057_v21 }
0x1ed8   :  { %v3236_v48 = vpop.f32.mrf.mxu1  ;;  %8484 = vmatprep.mubr.msk.bf16.mxu0 %vm9307_vm0, %v9306_v1 }
0x1eda   :  { %v8480_v6 = vpop.f32.mrf.mxu1 }
0x1edc   :  { %v3239_v7 = vpop.f32.mrf.mxu1 }
0x1edd   :  { %v3319_v9 = vpack.c.bf16 %v3239_v7, %v3236_v48 }
0x1ede   :  { %v8481_v54 = vpop.f32.mrf.mxu1 }
0x1edf   :  { %8489 = vmatpush3.bf16.msra.mxu1 %v3319_v9 }
0x1ee0   :  { %8500 = vmatprep.subr.bf16.mxu1 %v9306_v1 }
0x1f8f   :  { %v3060_v11 = vpop.f32.mrf.mxu0 }
0x1f90   :  { %v10120_v12 = vadd.f32 %v3060_v11, %v2712_v10 }
0x1f91   :  { %v8456_v13 = vpop.f32.mrf.mxu0 }
0x1f93   :  { %v3063_v14 = vpop.f32.mrf.mxu0 }
0x1f94   :  { %v10124_v15 = vadd.f32 %v3063_v14, %v2715_v41 }
0x1f95   :  { %v8457_v18 = vpop.f32.mrf.mxu0 }
0x1f97   :  { %v3178_v19 = vpop.f32.mrf.mxu0 }
0x1f99   :  { %v8472_v20 = vpop.f32.mrf.mxu0 }
0x1f9b   :  { %v3181_v22 = vpop.f32.mrf.mxu0 }
0x1f9c   :  { %v3244_v23 = vpack.c.bf16 %v3181_v22, %v3178_v19  ;;  %v10165_v22 = vld [vmem:[#allocation2 + $0x10] sm:$0xff] }
0x1f9d   :  { %v8473_v25 = vpop.f32.mrf.mxu0 }
0x1f9e   :  { %v3249_v26 = vsel %vm485_vm4, %v3244_v23, 0  ;;  %v3779_v23 = vsel %vm74_vm2, %v10165_v22, 0.0  ;;  %v9013_v25 = vld [vmem:[%s10995_s13 + $0x18] sm:$0xff]  }
0x1f9f   :  { %8483 = vmatpush3.bf16.xpose.msra.mxu0 %v3249_v26  ;;  %v9014_v26 = vld [vmem:[%s10995_s13 + $0x10] sm:$0xff]  }
0x1fa0   :  { %8494 = vmatprep.subr.bf16.mxu0 %v9306_v1 }
0x1fa6   :  { %8485 = vmatmul.mubr.msk.bf16.vlgmr.msra.gmra.mxu0 %vm485_vm4, %v3243_v4 }
0x1fa7   :  { %8496 = vmatprep.mubr.msk.bf16.mxu0 %vm9307_vm0, %v9306_v1  ;;  %8495 = vmatpush3.bf16.msra.mxu0 %v9012_v61 }
0x1fa8   :  { %8508 = vmatprep.subr.bf16.mxu0 %v9306_v1 }
0x2066   :  { %v3285_v37 = vpop.f32.mrf.mxu0 }
0x2067   :  { %v3292_v56 = vmul.f32 0.25, %v3285_v37 }
0x2068   :  { %v8486_v63 = vpop.f32.mrf.mxu0 }
0x2069   :  { %v3294_v21 = vsel %vm9583_vm5, %v3292_v56, -1e+30 }
0x206a   :  { %v3288_v27 = vpop.f32.mrf.mxu0  ;;  %v3296_v28 = vsel %vm485_vm4, %v3294_v21, -inf }
0x206b   :  { %v3293_v29 = vmul.f32 0.25, %v3288_v27  ;;  %3297 = vmax.xlane.f32.xlu0 %v3296_v28 }
0x206c   :  { %v8487_v30 = vpop.f32.mrf.mxu0 }
0x206d   :  { %v3295_v31 = vsel %vm9593_vm6, %v3293_v29, -1e+30 }
0x206e   :  { %v3299_v32 = vsel %vm485_vm4, %v3295_v31, -inf }
0x206f   :  { %3300 = vmax.xlane.f32.xlu1 %v3299_v32 }
0x20f4   :  { %v3298_v33 = vpop.xlane.xlu0 %3297 }
0x20f5   :  { %v3302_v35 = vsub.f32 %v3294_v21, %v3298_v33 }
0x20f7   :  { %v3304_v40 = vmul.f32 1.442695, %v3302_v35 }
0x20f8   :  { %v3301_v43 = vpop.xlane.xlu1 %3300 }
0x20f9   :  { %9175 = vpow2.f32 %v3304_v40  ;;  %v3303_v46 = vsub.f32 %v3295_v31, %v3301_v43  ;;  %v7503_v31 = vld [vmem:[%s10993_s11 + $0x1] ss:$0 sm:$0xff] }
0x20fa   :  { %v7504_v40 = vld [vmem:[%s10994_s12 + $0x1] ss:$0 sm:$0xff] }
0x20fb   :  { %v3306_v47 = vmul.f32 1.442695, %v3303_v46 }
0x20fd   :  { %9177 = vpow2.f32 %v3306_v47 }
0x2106   :  { %v9176_v51 = vpop.eup %9175 }
0x2107   :  { %v3308_v52 = vsel %vm485_vm4, %v9176_v51, 0.0 }
0x2108   :  { %3309 = vadd.xlane.f32.xlu0 %v3308_v52  ;;  %v9015_v52 = vld [vmem:[%s10997_s15 + $0x78] sm:$0xff]  }
0x210a   :  { %v9178_v53 = vpop.eup %9177 }
0x210b   :  { %v3311_v55 = vsel %vm485_vm4, %v9178_v53, 0.0 }
0x210c   :  { %3312 = vadd.xlane.f32.xlu1 %v3311_v55  ;;  %v9017_v55 = vld [vmem:[%s10997_s15 + $0x68] sm:$0xff]  }
0x2191   :  { %v3310_v39 = vpop.xlane.xlu0 %3309 }
0x2192   :  { %9179 = vrcp.f32 %v3310_v39  ;;  %v9018_v39 = vld [vmem:[%s10997_s15 + $0x60] sm:$0xff]  }
0x2195   :  { %v3313_v16 = vpop.xlane.xlu1 %3312 }
0x2196   :  { %9181 = vrcp.f32 %v3313_v16  ;;  %v9019_v16 = vld [vmem:[%s10997_s15 + $0x58] sm:$0xff]  }
0x219f   :  { %v9180_v50 = vpop.eup %9179 }
0x21a0   :  { %v3316_v59 = vmul.f32 %v9180_v50, %v9176_v51  ;;  %v9020_v50 = vld [vmem:[%s10997_s15 + $0x50] sm:$0xff]  }
0x21a3   :  { %v9182_v57 = vpop.eup %9181 }
0x21a4   :  { %v3317_v58 = vmul.f32 %v9182_v57, %v9178_v53  ;;  %v9016_v53 = vld [vmem:[%s10997_s15 + $0x70] sm:$0xff]   ;;  %v9021_v57 = vld [vmem:[%s10997_s15 + $0x48] sm:$0xff]  }
0x21a6   :  { %v3318_v60 = vpack.c.bf16 %v3317_v58, %v3316_v59  ;;  %v9022_v59 = vld [vmem:[%s10997_s15 + $0x40] sm:$0xff]  }
0x21a7   :  { %v7510_v58 = vld [vmem:[%s10996_s14 + $0x1] ss:$0 sm:$0xff] }
0x21a8   :  { %8491 = vmatmul.mubr.msk.bf16.vlgmr.msra.gmra.mxu1 %vm485_vm4, %v3318_v60 }
0x21a9   :  { %8504 = vmatprep.mubr.msk.bf16.mxu1 %vm9307_vm0, %v9306_v1  ;;  %8501 = vmatpush3.bf16.msra.mxu1 %v9013_v25 }
0x21aa   :  { %8502 = vmatprep.subr.bf16.mxu1 %v9306_v1 }
0x21ad   :  { %8503 = vmatpush3.bf16.msra.mxu1 %v9014_v26  ;;  %v7539_v26 = vld [vmem:[%s10998_s16 + $0x1] ss:$0 sm:$0xff] }
0x21ae   :  { %8528 = vmatprep.subr.bf16.mxu1 %v9306_v1 }
0x2268   :  { %v3357_v17 = vpop.f32.mrf.mxu1 }
0x226a   :  { %v8492_v62 = vpop.f32.mrf.mxu1 }
0x226c   :  { %v3360_v2 = vpop.f32.mrf.mxu1 }
0x226d   :  { %v3367_v24 = vpack.c.bf16 %v3360_v2, %v3357_v17 }
0x226e   :  { %v8493_v34 = vpop.f32.mrf.mxu1 }
0x226f   :  { %8497 = vmatmul.mubr.msk.bf16.vlgmr.msra.gmra.mxu0 %vm485_vm4, %v3367_v24 }
0x2270   :  { %8524 = vmatprep.mubr.msk.bf16.mxu0 %vm9307_vm0, %v9306_v1  ;;  %8509 = vmatpush3.bf16.msra.mxu0 %v9015_v52 }
0x2271   :  { %8510 = vmatprep.subr.bf16.mxu0 %v9306_v1 }
0x2274   :  { %8511 = vmatpush3.bf16.msra.mxu0 %v9016_v53 }
0x2275   :  { %8512 = vmatprep.subr.bf16.mxu0 %v9306_v1 }
0x2278   :  { %8513 = vmatpush3.bf16.msra.mxu0 %v9017_v55 }
0x2279   :  { %8514 = vmatprep.subr.bf16.mxu0 %v9306_v1 }
0x227c   :  { %8515 = vmatpush3.bf16.msra.mxu0 %v9018_v39 }
0x227d   :  { %8516 = vmatprep.subr.bf16.mxu0 %v9306_v1 }
0x2280   :  { %8517 = vmatpush3.bf16.msra.mxu0 %v9019_v16 }
0x2281   :  { %8518 = vmatprep.subr.bf16.mxu0 %v9306_v1 }
0x2284   :  { %8519 = vmatpush3.bf16.msra.mxu0 %v9020_v50 }
0x2285   :  { %8520 = vmatprep.subr.bf16.mxu0 %v9306_v1 }
0x2288   :  { %8521 = vmatpush3.bf16.msra.mxu0 %v9021_v57  ;;  %v9023_v57 = vld [vmem:[%s11001_s19 + $0x8] sm:$0xff]  }
0x2289   :  { %8522 = vmatprep.subr.bf16.mxu0 %v9306_v1 }
0x228c   :  { %8523 = vmatpush3.bf16.msra.mxu0 %v9022_v59  ;;  %v9024_v59 = vld [vmem:[%s11001_s19] sm:$0xff]  }
0x228d   :  { %8560 = vmatprep.subr.bf16.mxu0 %v9306_v1 }
0x232f   :  { %v3411_v3 = vpop.f32.mrf.mxu0 }
0x2330   :  { %v3418_v4 = vadd.f32 %v3411_v3, %v10120_v12 }
0x2331   :  { %v8498_v5 = vpop.f32.mrf.mxu0 }
0x2332   :  { %v10151_v48 = vadd.f32 %v3418_v4, %v9868_v0 }
0x2333   :  { %v3414_v6 = vpop.f32.mrf.mxu0 }
0x2334   :  { %v3419_v7 = vadd.f32 %v3414_v6, %v10124_v15  ;;  %v3426_v9 = vsel %vm74_vm2, %v10151_v48, 0.0 }
0x2335   :  { %3427 = vadd.xlane.f32.xlu0 %v3426_v9  ;;  %v8499_v54 = vpop.f32.mrf.mxu0 }
0x2336   :  { %v10157_v10 = vadd.f32 %v3419_v7, %v9873_v8 }
0x2338   :  { %v3429_v11 = vsel %vm74_vm2, %v10157_v10, 0.0 }
0x2339   :  { %3430 = vadd.xlane.f32.xlu1 %v3429_v11 }
0x23be   :  { %v3428_v12 = vpop.xlane.xlu0 %3427 }
0x23bf   :  { %v3432_v13 = vmul.f32 0.03125, %v3428_v12 }
0x23c1   :  { %v3434_v0 = vsub.f32 %v10151_v48, %v3432_v13 }
0x23c2   :  { %v3431_v41 = vpop.xlane.xlu1 %3430 }
0x23c3   :  { %v3433_v14 = vmul.f32 0.03125, %v3431_v41  ;;  %v3436_v18 = vmul.f32 %v3434_v0, %v3434_v0 }
0x23c5   :  { %v3435_v15 = vsub.f32 %v10157_v10, %v3433_v14  ;;  %v3438_v19 = vsel %vm74_vm2, %v3436_v18, 0.0 }
0x23c6   :  { %3439 = vadd.xlane.f32.xlu0 %v3438_v19 }
0x23c7   :  { %v3437_v20 = vmul.f32 %v3435_v15, %v3435_v15 }
0x23c9   :  { %v3441_v8 = vsel %vm74_vm2, %v3437_v20, 0.0 }
0x23ca   :  { %3442 = vadd.xlane.f32.xlu1 %v3441_v8 }
0x23ce   :  { %3780 = vadd.xlane.f32.xlu1 %v3779_v23  ;;  %v73_v23 = vld [vmem:[%s11016_s0 + $0x18] sm:$0xff] }
0x23cf   :  { %78 = vst.msk [vmem:[#allocation2 + $0x18] sm:$0xff] %vm74_vm2, %v73_v23 }
0x244f   :  { %v3440_v37 = vpop.xlane.xlu0 %3439 }
0x2450   :  { %v3444_v56 = vmul.f32 0.03125, %v3440_v37 }
0x2452   :  { %v3446_v63 = vadd.f32 1e-05, %v3444_v56 }
0x2453   :  { %v3443_v21 = vpop.xlane.xlu1 %3442 }
0x2454   :  { %9183 = vrsqrt.f32 %v3446_v63  ;;  %v3445_v27 = vmul.f32 0.03125, %v3443_v21 }
0x2456   :  { %v3447_v28 = vadd.f32 1e-05, %v3445_v27 }
0x2458   :  { %9185 = vrsqrt.f32 %v3447_v28 }
0x2461   :  { %v9184_v29 = vpop.eup %9183 }
0x2462   :  { %v3450_v30 = vmul.f32 %v9184_v29, %v3434_v0 }
0x2464   :  { %v3458_v35 = vmul.f32 %v7503_v31, %v3450_v30  ;;  %v3781_v30 = vpop.xlane.xlu1 %3780 }
0x2465   :  { %v9186_v32 = vpop.eup %9185 }
0x2466   :  { %v3451_v33 = vmul.f32 %v9186_v32, %v3435_v15  ;;  %v3466_v46 = vadd.f32 %v7504_v40, %v3458_v35 }
0x2468   :  { %v3459_v43 = vmul.f32 %v7503_v31, %v3451_v33  ;;  %v3785_v31 = vmul.f32 0.03125, %v3781_v30  ;;  %v10234_v33 = vld [vmem:[#allocation2 + $0x18] sm:$0xff] }
0x246a   :  { %v3467_v47 = vadd.f32 %v7504_v40, %v3459_v43  ;;  %v3787_v35 = vsub.f32 %v10165_v22, %v3785_v31  ;;  %v3782_v40 = vsel %vm74_vm2, %v10234_v33, 0.0 }
0x246c   :  { %v3473_v51 = vpack.c.bf16 %v3467_v47, %v3466_v46  ;;  %v3789_v43 = vmul.f32 %v3787_v35, %v3787_v35 }
0x246e   :  { %8505 = vmatmul.mubr.msk.bf16.vlgmr.msra.gmra.mxu1 %vm74_vm2, %v3473_v51 }
0x246f   :  { %8532 = vmatprep.mubr.msk.bf16.mxu1 %vm9307_vm0, %v9306_v1  ;;  %8529 = vmatpush3.bf16.msra.mxu1 %v9023_v57 }
0x2470   :  { %8530 = vmatprep.subr.bf16.mxu1 %v9306_v1 }
0x2473   :  { %8531 = vmatpush3.bf16.msra.mxu1 %v9024_v59 }
0x2474   :  { %8536 = vmatprep.subr.bf16.mxu1 %v9306_v1 }
0x252e   :  { %v3531_v60 = vpop.f32.mrf.mxu1 }
0x252f   :  { %v3532_v61 = vadd.f32 %v7510_v58, %v3531_v60 }
0x2530   :  { %v8506_v17 = vpop.f32.mrf.mxu1 }
0x2531   :  { %v3538_v62 = vmul.f32 %v3532_v61, %v3532_v61 }
0x2532   :  { %v3534_v2 = vpop.f32.mrf.mxu1 }
0x2533   :  { %v3540_v24 = vmul.f32 %v3538_v62, %v3532_v61  ;;  %v3535_v34 = vadd.f32 %v7510_v58, %v3534_v2 }
0x2534   :  { %v8507_v3 = vpop.f32.mrf.mxu1 }
0x2535   :  { %v3542_v4 = vmul.f32 0.044715, %v3540_v24  ;;  %v3539_v5 = vmul.f32 %v3535_v34, %v3535_v34 }
0x2537   :  { %v3544_v6 = vadd.f32 %v3542_v4, %v3532_v61  ;;  %v3541_v7 = vmul.f32 %v3539_v5, %v3535_v34  ;;  %v7540_v5 = vld [vmem:[%s10999_s17] ss:$0 sm:$0xff] }
0x2539   :  { %v3546_v9 = vmul.f32 0.7978846, %v3544_v6  ;;  %v3543_v54 = vmul.f32 0.044715, %v3541_v7 }
0x253b   :  { %9187 = vtanh.f32 %v3546_v9  ;;  %v3545_v11 = vadd.f32 %v3543_v54, %v3535_v34  ;;  %v7541_v9 = vld [vmem:[%s11000_s18] ss:$0 sm:$0xff] }
0x253d   :  { %v3547_v12 = vmul.f32 0.7978846, %v3545_v11 }
0x253f   :  { %9189 = vtanh.f32 %v3547_v12 }
0x2548   :  { %v9188_v13 = vpop.eup %9187 }
0x2549   :  { %v3550_v0 = vadd.f32 1.0, %v9188_v13 }
0x254b   :  { %v3552_v14 = vmul.f32 0.5, %v3550_v0 }
0x254c   :  { %v9190_v41 = vpop.eup %9189 }
0x254d   :  { %v3551_v18 = vadd.f32 1.0, %v9190_v41  ;;  %v3554_v19 = vmul.f32 %v3552_v14, %v3532_v61  ;;  %v7546_v41 = vld [vmem:[%s11020_s27] ss:$0 sm:$0xff]  ;;  %v9025_v14 = vld [vmem:[%s10989_s7 + $0x8] sm:$0xff]  }
0x254f   :  { %v3553_v15 = vmul.f32 0.5, %v3551_v18 }
0x2551   :  { %v3555_v20 = vmul.f32 %v3553_v15, %v3535_v34 }
0x2553   :  { %v3573_v8 = vpack.c.bf16 %v3555_v20, %v3554_v19  ;;  %v7547_v20 = vld [vmem:[%s10988_s6] ss:$0 sm:$0xff] }
0x2555   :  { %8525 = vmatmul.mubr.bf16.vlgmr.msra.gmra.mxu0 %v3573_v8  ;;  %v9026_v8 = vld [vmem:[%s10989_s7] sm:$0xff]  }
0x2556   :  { %8562 = vmatprep.mubr.msk.bf16.mxu0 %vm9307_vm0, %v9306_v1 }
0x2615   :  { %v3656_v25 = vpop.f32.mrf.mxu0 }
0x2616   :  { %v3663_v37 = vadd.f32 %v3656_v25, %v10151_v48 }
0x2617   :  { %v8526_v56 = vpop.f32.mrf.mxu0 }
0x2618   :  { %v3673_v63 = vadd.f32 %v7539_v26, %v3663_v37  ;;  %v9028_v56 = vld [vmem:[%s10990_s8] sm:$0xff]  }
0x2619   :  { %v3659_v21 = vpop.f32.mrf.mxu0 }
0x261a   :  { %3675 = vst.msk [vmem:[#allocation2] sm:$0xff] %vm74_vm2, %v3673_v63  ;;  %v3664_v27 = vadd.f32 %v3659_v21, %v10157_v10  ;;  %v3791_v10 = vsel %vm74_vm2, %v3789_v43, 0.0  ;;  %v9029_v63 = vld [vmem:[%s10991_s9 + $0x8] sm:$0xff]   ;;  %v9030_v21 = vld [vmem:[%s10991_s9] sm:$0xff]  }
0x261b   :  { %v8527_v28 = vpop.f32.mrf.mxu0 }
0x261c   :  { %v3674_v29 = vadd.f32 %v7539_v26, %v3664_v27  ;;  %v9027_v26 = vld [vmem:[%s10990_s8 + $0x8] sm:$0xff]   ;;  %v7542_v27 = vld [vmem:[%s11002_s20] ss:$0 sm:$0xff] }
0x261e   :  { %3676 = vst.msk [vmem:[#allocation2 + $0x8] sm:$0xff] %vm74_vm2, %v3674_v29 }
0x2625   :  { %v3677_v32 = vld [vmem:[#allocation2 + $0x7] sm:$0xff] }
0x2626   :  { %v3680_v48 = vsel %vm74_vm2, %v3677_v32, 0.0 }
0x2627   :  { %3681 = vadd.xlane.f32.xlu0 %v3680_v48 }
0x262b   :  { %3783 = vadd.xlane.f32.xlu0 %v3782_v40 }
0x262f   :  { %3792 = vadd.xlane.f32.xlu0 %v3791_v10 }
0x26b0   :  { %v3682_v46 = vpop.xlane.xlu0 %3681 }
0x26b1   :  { %v3683_v47 = vmul.f32 0.03125, %v3682_v46 }
0x26b3   :  { %v3684_v51 = vsub.f32 %v3677_v32, %v3683_v47 }
0x26b4   :  { %v3784_v52 = vpop.xlane.xlu0 %3783 }
0x26b5   :  { %v3786_v53 = vmul.f32 0.03125, %v3784_v52  ;;  %v3685_v55 = vmul.f32 %v3684_v51, %v3684_v51 }
0x26b7   :  { %v3788_v39 = vsub.f32 %v10234_v33, %v3786_v53  ;;  %v3686_v22 = vsel %vm74_vm2, %v3685_v55, 0.0 }
0x26b8   :  { %3687 = vadd.xlane.f32.xlu1 %v3686_v22  ;;  %v3793_v58 = vpop.xlane.xlu0 %3792 }
0x26b9   :  { %v3790_v16 = vmul.f32 %v3788_v39, %v3788_v39  ;;  %v3797_v60 = vmul.f32 0.03125, %v3793_v58  ;;  %v9032_v58 = vld [vmem:[%s10989_s7 + $0x10] sm:$0xff]  }
0x26bb   :  { %v3794_v50 = vsel %vm74_vm2, %v3790_v16, 0.0  ;;  %v3799_v62 = vadd.f32 1e-05, %v3797_v60  ;;  %v9031_v16 = vld [vmem:[%s10989_s7 + $0x18] sm:$0xff]  }
0x26bc   :  { %3795 = vadd.xlane.f32.xlu1 %v3794_v50  ;;  %v9033_v60 = vld [vmem:[%s10991_s9 + $0x18] sm:$0xff]  }
0x2741   :  { %v3688_v61 = vpop.xlane.xlu1 %3687 }
0x2742   :  { %v3689_v17 = vmul.f32 0.03125, %v3688_v61  ;;  %v9034_v61 = vld [vmem:[%s10991_s9 + $0x10] sm:$0xff]  }
0x2744   :  { %v3690_v2 = vadd.f32 1e-05, %v3689_v17 }
0x2745   :  { %v3796_v24 = vpop.xlane.xlu1 %3795 }
0x2746   :  { %9191 = vrsqrt.f32 %v3690_v2  ;;  %v3798_v34 = vmul.f32 0.03125, %v3796_v24 }
0x2747   :  { %9193 = vrsqrt.f32 %v3799_v62 }
0x2748   :  { %v3800_v3 = vadd.f32 1e-05, %v3798_v34 }
0x274a   :  { %9195 = vrsqrt.f32 %v3800_v3 }
0x2753   :  { %v9192_v4 = vpop.eup %9191 }
0x2754   :  { %v3692_v6 = vmul.f32 %v9192_v4, %v3684_v51  ;;  %v9194_v7 = vpop.eup %9193 }
0x2755   :  { %v3803_v12 = vmul.f32 %v9194_v7, %v3787_v35 }
0x2756   :  { %v3699_v54 = vmul.f32 %v7540_v5, %v3692_v6 }
0x2757   :  { %v9196_v11 = vpop.eup %9195  ;;  %v3811_v19 = vmul.f32 %v7546_v41, %v3803_v12 }
0x2758   :  { %v3804_v13 = vmul.f32 %v9196_v11, %v3788_v39  ;;  %v3706_v0 = vadd.f32 %v7541_v9, %v3699_v54 }
0x2759   :  { %v3819_v25 = vadd.f32 %v7547_v20, %v3811_v19 }
0x275a   :  { %v3812_v18 = vmul.f32 %v7546_v41, %v3804_v13  ;;  %v3711_v15 = vpack.c.bf16 %v3706_v0, %v3706_v0 }
0x275c   :  { %8533 = vmatmul.mubr.msk.bf16.vlgmr.msra.gmra.mxu1 %vm74_vm2, %v3711_v15  ;;  %v3820_v23 = vadd.f32 %v7547_v20, %v3812_v18 }
0x275d   :  { %8537 = vmatpush3.bf16.msra.mxu1 %v9025_v14  ;;  %8540 = vmatprep.mubr.msk.bf16.mxu1 %vm9307_vm0, %v9306_v1 }
0x275e   :  { %8538 = vmatprep.subr.bf16.mxu1 %v9306_v1  ;;  %v10277_v37 = vpack.c.bf16 %v3820_v23, %v3819_v25 }
0x2761   :  { %8539 = vmatpush3.bf16.msra.mxu1 %v9026_v8 }
0x2762   :  { %8544 = vmatprep.subr.bf16.mxu1 %v9306_v1 }
0x2764   :  { %8541 = vmatmul.mubr.msk.bf16.vlgmr.msra.gmra.mxu1 %vm74_vm2, %v10277_v37 }
0x2765   :  { %8545 = vmatpush3.bf16.msra.mxu1 %v9027_v26  ;;  %8548 = vmatprep.mubr.msk.bf16.mxu1 %vm9307_vm0, %v9306_v1 }
0x2766   :  { %8546 = vmatprep.subr.bf16.mxu1 %v9306_v1 }
0x2769   :  { %8547 = vmatpush3.bf16.msra.mxu1 %v9028_v56 }
0x276a   :  { %8552 = vmatprep.subr.bf16.mxu1 %v9306_v1 }
0x276c   :  { %8549 = vmatmul.mubr.msk.bf16.vlgmr.msra.gmra.mxu1 %vm74_vm2, %v10277_v37 }
0x276d   :  { %8553 = vmatpush3.bf16.msra.mxu1 %v9029_v63  ;;  %8556 = vmatprep.mubr.msk.bf16.mxu1 %vm9307_vm0, %v9306_v1 }
0x276e   :  { %8554 = vmatprep.subr.bf16.mxu1 %v9306_v1 }
0x2771   :  { %8555 = vmatpush3.bf16.msra.mxu1 %v9030_v21 }
0x2772   :  { %8566 = vmatprep.subr.bf16.mxu1 %v9306_v1 }
0x2774   :  { %8557 = vmatmul.mubr.msk.bf16.vlgmr.msra.gmra.mxu1 %vm74_vm2, %v10277_v37 }
0x2775   :  { %8568 = vmatprep.mubr.msk.bf16.mxu1 %vm9307_vm0, %v9306_v1 }
0x281c   :  { %v3768_v28 = vpop.f32.mrf.mxu1 }
0x281d   :  { %v3769_v29 = vadd.f32 %v7542_v27, %v3768_v28 }
0x281e   :  { %v8534_v30 = vpop.f32.mrf.mxu1 }
0x281f   :  { %3774 = vst [vmem:[#allocation3] sm:$0xff] %v3769_v29 }
0x2820   :  { %v3771_v31 = vpop.f32.mrf.mxu1 }
0x2822   :  { %v8535_v32 = vpop.f32.mrf.mxu1 }
0x2824   :  { %v3875_v35 = vpop.f32.mrf.mxu1 }
0x2826   :  { %v8542_v48 = vpop.f32.mrf.mxu1 }
0x2828   :  { %v3878_v40 = vpop.f32.mrf.mxu1 }
0x2829   :  { %v3996_v50 = vpack.c.bf16 %v3878_v40, %v3875_v35 }
0x282a   :  { %v8543_v43 = vpop.f32.mrf.mxu1 }
0x282b   :  { %v9035_v43 = vld [vmem:[%s10990_s8 + $0x18] sm:$0xff]  }
0x282c   :  { %v3932_v10 = vpop.f32.mrf.mxu1 }
0x282e   :  { %v8550_v46 = vpop.f32.mrf.mxu1 }
0x282f   :  { %v9036_v46 = vld [vmem:[%s10990_s8 + $0x10] sm:$0xff]  }
0x2830   :  { %v3935_v47 = vpop.f32.mrf.mxu1 }
0x2831   :  { %v3997_v51 = vpack.c.bf16 %v3935_v47, %v3932_v10 }
0x2832   :  { %v8551_v52 = vpop.f32.mrf.mxu1 }
0x2833   :  { %v4002_v53 = vsel %vm485_vm4, %v3997_v51, 0 }
0x2834   :  { %v3989_v55 = vpop.f32.mrf.mxu1  ;;  %8561 = vmatpush3.bf16.xpose.msra.mxu0 %v4002_v53 }
0x2835   :  { %8572 = vmatprep.subr.bf16.mxu0 %v9306_v1 }
0x2836   :  { %v8558_v39 = vpop.f32.mrf.mxu1 }
0x2838   :  { %v3992_v22 = vpop.f32.mrf.mxu1 }
0x2839   :  { %v4074_v57 = vpack.c.bf16 %v3992_v22, %v3989_v55 }
0x283a   :  { %v8559_v59 = vpop.f32.mrf.mxu1 }
0x283b   :  { %8563 = vmatmul.mubr.msk.bf16.vlgmr.msra.gmra.mxu0 %vm485_vm4, %v3996_v50  ;;  %8567 = vmatpush3.bf16.msra.mxu1 %v4074_v57 }
0x283c   :  { %8573 = vmatpush3.bf16.msra.mxu0 %v9031_v16  ;;  %8576 = vmatprep.mubr.msk.bf16.mxu0 %vm9307_vm0, %v9306_v1 }
0x283d   :  { %8574 = vmatprep.subr.bf16.mxu0 %v9306_v1  ;;  %8580 = vmatprep.subr.bf16.mxu1 %v9306_v1 }
0x2840   :  { %8575 = vmatpush3.bf16.msra.mxu0 %v9032_v58 }
0x2841   :  { %8588 = vmatprep.subr.bf16.mxu0 %v9306_v1 }
0x2843   :  { %8577 = vmatmul.mubr.msk.bf16.vlgmr.msra.gmra.mxu0 %vm74_vm2, %v10277_v37 }
0x2844   :  { %8589 = vmatpush3.bf16.msra.mxu0 %v9033_v60  ;;  %8592 = vmatprep.mubr.msk.bf16.mxu0 %vm9307_vm0, %v9306_v1 }
0x2845   :  { %8590 = vmatprep.subr.bf16.mxu0 %v9306_v1 }
0x2848   :  { %8591 = vmatpush3.bf16.msra.mxu0 %v9034_v61 }
0x2849   :  { %8602 = vmatprep.subr.bf16.mxu0 %v9306_v1 }
0x284b   :  { %8593 = vmatmul.mubr.msk.bf16.vlgmr.msra.gmra.mxu0 %vm74_vm2, %v10277_v37 }
0x284c   :  { %8604 = vmatprep.mubr.msk.bf16.mxu0 %vm9307_vm0, %v9306_v1 }
0x28fb   :  { %v4038_v17 = vpop.f32.mrf.mxu0 }
0x28fc   :  { %v4045_v62 = vmul.f32 0.25, %v4038_v17 }
0x28fd   :  { %v8564_v2 = vpop.f32.mrf.mxu0 }
0x28fe   :  { %v4047_v24 = vadd.f32 %v4045_v62, %v9579_v38 }
0x28ff   :  { %v4041_v34 = vpop.f32.mrf.mxu0 }
0x2900   :  { %v4046_v3 = vmul.f32 0.25, %v4041_v34  ;;  %v4049_v4 = vsel %vm9583_vm5, %v4047_v24, -1e+30 }
0x2901   :  { %v8565_v5 = vpop.f32.mrf.mxu0  ;;  %v4051_v6 = vsel %vm485_vm4, %v4049_v4, -inf }
0x2902   :  { %v4048_v7 = vadd.f32 %v4046_v3, %v9589_v45  ;;  %4052 = vmax.xlane.f32.xlu0 %v4051_v6 }
0x2903   :  { %v4172_v9 = vpop.f32.mrf.mxu0 }
0x2904   :  { %v4050_v54 = vsel %vm9593_vm6, %v4048_v7, -1e+30 }
0x2905   :  { %v8578_v11 = vpop.f32.mrf.mxu0  ;;  %v4054_v12 = vsel %vm485_vm4, %v4050_v54, -inf }
0x2906   :  { %4055 = vmax.xlane.f32.xlu1 %v4054_v12 }
0x2907   :  { %v4175_v13 = vpop.f32.mrf.mxu0 }
0x2908   :  { %v4293_v0 = vpack.c.bf16 %v4175_v13, %v4172_v9 }
0x2909   :  { %v8579_v41 = vpop.f32.mrf.mxu0 }
0x290b   :  { %v4286_v14 = vpop.f32.mrf.mxu0 }
0x290d   :  { %v8594_v18 = vpop.f32.mrf.mxu0 }
0x290f   :  { %v4289_v15 = vpop.f32.mrf.mxu0 }
0x2910   :  { %v4371_v19 = vpack.c.bf16 %v4289_v15, %v4286_v14 }
0x2911   :  { %v8595_v20 = vpop.f32.mrf.mxu0 }
0x2912   :  { %8603 = vmatpush3.bf16.msra.mxu0 %v4371_v19 }
0x2913   :  { %8614 = vmatprep.subr.bf16.mxu0 %v9306_v1 }
0x298b   :  { %v4053_v8 = vpop.xlane.xlu0 %4052 }
0x298c   :  { %v4057_v23 = vsub.f32 %v4049_v4, %v4053_v8 }
0x298e   :  { %v4059_v25 = vmul.f32 1.442695, %v4057_v23 }
0x298f   :  { %v4056_v26 = vpop.xlane.xlu1 %4055 }
0x2990   :  { %9197 = vpow2.f32 %v4059_v25  ;;  %v4058_v56 = vsub.f32 %v4050_v54, %v4056_v26  ;;  %v9037_v26 = vld [vmem:[%s10992_s10] sm:$0xff]  }
0x2992   :  { %v4061_v63 = vmul.f32 1.442695, %v4058_v56 }
0x2994   :  { %9199 = vpow2.f32 %v4061_v63  ;;  %v9038_v63 = vld [vmem:[%s10990_s8 + $0x28] sm:$0xff]  }
0x299d   :  { %v9198_v21 = vpop.eup %9197 }
0x299e   :  { %v4063_v27 = vsel %vm485_vm4, %v9198_v21, 0.0 }
0x299f   :  { %4064 = vadd.xlane.f32.xlu0 %v4063_v27  ;;  %v9040_v27 = vld [vmem:[%s10992_s10 + $0x8] sm:$0xff]  }
0x29a1   :  { %v9200_v28 = vpop.eup %9199 }
0x29a2   :  { %v4066_v29 = vsel %vm485_vm4, %v9200_v28, 0.0 }
0x29a3   :  { %4067 = vadd.xlane.f32.xlu1 %v4066_v29 }
0x2a28   :  { %v4065_v30 = vpop.xlane.xlu0 %4064 }
0x2a29   :  { %9201 = vrcp.f32 %v4065_v30 }
0x2a2c   :  { %v4068_v31 = vpop.xlane.xlu1 %4067 }
0x2a2d   :  { %9203 = vrcp.f32 %v4068_v31  ;;  %v9041_v31 = vld [vmem:[%s10989_s7 + $0x28] sm:$0xff]  }
0x2a36   :  { %v9202_v32 = vpop.eup %9201 }
0x2a37   :  { %v4071_v48 = vmul.f32 %v9202_v32, %v9198_v21  ;;  %v9039_v21 = vld [vmem:[%s10990_s8 + $0x20] sm:$0xff]  }
0x2a3a   :  { %v9204_v35 = vpop.eup %9203 }
0x2a3b   :  { %v4072_v40 = vmul.f32 %v9204_v35, %v9200_v28 }
0x2a3d   :  { %v4073_v10 = vpack.c.bf16 %v4072_v40, %v4071_v48  ;;  %v9042_v40 = vld [vmem:[%s10989_s7 + $0x20] sm:$0xff]  }
0x2a3f   :  { %8569 = vmatmul.mubr.msk.bf16.vlgmr.msra.gmra.mxu1 %vm485_vm4, %v4073_v10 }
0x2a40   :  { %8581 = vmatpush3.bf16.msra.mxu1 %v9035_v43  ;;  %8584 = vmatprep.mubr.msk.bf16.mxu1 %vm9307_vm0, %v9306_v1 }
0x2a41   :  { %8582 = vmatprep.subr.bf16.mxu1 %v9306_v1 }
0x2a44   :  { %8583 = vmatpush3.bf16.msra.mxu1 %v9036_v46  ;;  %v9043_v46 = vld [vmem:[%s10991_s9 + $0x28] sm:$0xff]  }
0x2a45   :  { %8596 = vmatprep.subr.bf16.mxu1 %v9306_v1 }
0x2a47   :  { %8585 = vmatmul.mubr.msk.bf16.vlgmr.msra.gmra.mxu1 %vm74_vm2, %v10277_v37 }
0x2a48   :  { %8598 = vmatprep.mubr.msk.bf16.mxu1 %vm9307_vm0, %v9306_v1 }
0x2aff   :  { %v4112_v47 = vpop.f32.mrf.mxu1 }
0x2b01   :  { %v8570_v51 = vpop.f32.mrf.mxu1 }
0x2b03   :  { %v4115_v52 = vpop.f32.mrf.mxu1 }
0x2b04   :  { %v4121_v53 = vpack.c.bf16 %v4115_v52, %v4112_v47  ;;  %v9044_v52 = vld [vmem:[%s10991_s9 + $0x20] sm:$0xff]  }
0x2b05   :  { %v8571_v55 = vpop.f32.mrf.mxu1 }
0x2b07   :  { %v4229_v39 = vpop.f32.mrf.mxu1 }
0x2b09   :  { %v8586_v22 = vpop.f32.mrf.mxu1 }
0x2b0b   :  { %v4232_v16 = vpop.f32.mrf.mxu1 }
0x2b0c   :  { %v4294_v50 = vpack.c.bf16 %v4232_v16, %v4229_v39 }
0x2b0d   :  { %v8587_v57 = vpop.f32.mrf.mxu1 }
0x2b0e   :  { %v4299_v59 = vsel %vm485_vm4, %v4294_v50, 0 }
0x2b0f   :  { %8597 = vmatpush3.bf16.xpose.msra.mxu1 %v4299_v59 }
0x2b10   :  { %8608 = vmatprep.subr.bf16.mxu1 %v9306_v1 }
0x2b16   :  { %8599 = vmatmul.mubr.msk.bf16.vlgmr.msra.gmra.mxu1 %vm485_vm4, %v4293_v0 }
0x2b17   :  { %8610 = vmatprep.mubr.msk.bf16.mxu1 %vm9307_vm0, %v9306_v1  ;;  %8609 = vmatpush3.bf16.msra.mxu1 %v9040_v27 }
0x2b18   :  { %8620 = vmatprep.subr.bf16.mxu1 %v9306_v1 }
0x2bd6   :  { %v4335_v58 = vpop.f32.mrf.mxu1 }
0x2bd7   :  { %v4342_v60 = vmul.f32 0.25, %v4335_v58 }
0x2bd8   :  { %v8600_v61 = vpop.f32.mrf.mxu1 }
0x2bd9   :  { %v4344_v17 = vadd.f32 %v4342_v60, %v9626_v36 }
0x2bda   :  { %v4338_v62 = vpop.f32.mrf.mxu1 }
0x2bdb   :  { %v4343_v2 = vmul.f32 0.25, %v4338_v62  ;;  %v4346_v24 = vsel %vm9583_vm5, %v4344_v17, -1e+30 }
0x2bdc   :  { %v8601_v34 = vpop.f32.mrf.mxu1  ;;  %v4348_v3 = vsel %vm485_vm4, %v4346_v24, -inf }
0x2bdd   :  { %v4345_v4 = vadd.f32 %v4343_v2, %v9630_v44  ;;  %4349 = vmax.xlane.f32.xlu0 %v4348_v3 }
0x2bdf   :  { %v4347_v5 = vsel %vm9593_vm6, %v4345_v4, -1e+30 }
0x2be0   :  { %v4351_v6 = vsel %vm485_vm4, %v4347_v5, -inf }
0x2be1   :  { %4352 = vmax.xlane.f32.xlu1 %v4351_v6 }
0x2c66   :  { %v4350_v7 = vpop.xlane.xlu0 %4349 }
0x2c67   :  { %v4354_v9 = vsub.f32 %v4346_v24, %v4350_v7 }
0x2c69   :  { %v4356_v54 = vmul.f32 1.442695, %v4354_v9 }
0x2c6a   :  { %v4353_v11 = vpop.xlane.xlu1 %4352 }
0x2c6b   :  { %9205 = vpow2.f32 %v4356_v54  ;;  %v4355_v12 = vsub.f32 %v4347_v5, %v4353_v11 }
0x2c6d   :  { %v4358_v13 = vmul.f32 1.442695, %v4355_v12 }
0x2c6f   :  { %9207 = vpow2.f32 %v4358_v13 }
0x2c78   :  { %v9206_v0 = vpop.eup %9205 }
0x2c79   :  { %v4360_v41 = vsel %vm485_vm4, %v9206_v0, 0.0 }
0x2c7a   :  { %4361 = vadd.xlane.f32.xlu0 %v4360_v41 }
0x2c7c   :  { %v9208_v14 = vpop.eup %9207 }
0x2c7d   :  { %v4363_v18 = vsel %vm485_vm4, %v9208_v14, 0.0 }
0x2c7e   :  { %4364 = vadd.xlane.f32.xlu1 %v4363_v18 }
0x2d03   :  { %v4362_v15 = vpop.xlane.xlu0 %4361 }
0x2d04   :  { %9209 = vrcp.f32 %v4362_v15 }
0x2d07   :  { %v4365_v19 = vpop.xlane.xlu1 %4364 }
0x2d08   :  { %9211 = vrcp.f32 %v4365_v19 }
0x2d11   :  { %v9210_v20 = vpop.eup %9209 }
0x2d12   :  { %v4368_v23 = vmul.f32 %v9210_v20, %v9206_v0 }
0x2d15   :  { %v9212_v8 = vpop.eup %9211 }
0x2d16   :  { %v4369_v25 = vmul.f32 %v9212_v8, %v9208_v14 }
0x2d18   :  { %v4370_v56 = vpack.c.bf16 %v4369_v25, %v4368_v23 }
0x2d1a   :  { %8605 = vmatmul.mubr.msk.bf16.vlgmr.msra.gmra.mxu0 %vm485_vm4, %v4370_v56 }
0x2d1b   :  { %8615 = vmatpush3.bf16.msra.mxu0 %v9037_v26  ;;  %8616 = vmatprep.mubr.msk.bf16.mxu0 %vm9307_vm0, %v9306_v1 }
0x2d1c   :  { %8628 = vmatprep.subr.bf16.mxu0 %v9306_v1 }
0x2d22   :  { %8617 = vmatmul.mubr.msk.bf16.vlgmr.msra.gmra.mxu0 %vm485_vm4, %v4121_v53 }
0x2d23   :  { %8629 = vmatpush3.bf16.msra.mxu0 %v9038_v63  ;;  %8632 = vmatprep.mubr.msk.bf16.mxu0 %vm9307_vm0, %v9306_v1 }
0x2d24   :  { %8630 = vmatprep.subr.bf16.mxu0 %v9306_v1 }
0x2d27   :  { %8631 = vmatpush3.bf16.msra.mxu0 %v9039_v21 }
0x2d28   :  { %8644 = vmatprep.subr.bf16.mxu0 %v9306_v1 }
0x2d2a   :  { %8633 = vmatmul.mubr.msk.bf16.vlgmr.msra.gmra.mxu0 %vm74_vm2, %v10277_v37 }
0x2d2b   :  { %8646 = vmatprep.mubr.msk.bf16.mxu0 %vm9307_vm0, %v9306_v1 }
0x2dda   :  { %v4409_v28 = vpop.f32.mrf.mxu0 }
0x2ddc   :  { %v8606_v29 = vpop.f32.mrf.mxu0 }
0x2dde   :  { %v4412_v30 = vpop.f32.mrf.mxu0 }
0x2ddf   :  { %v4418_v32 = vpack.c.bf16 %v4412_v30, %v4409_v28 }
0x2de0   :  { %v8607_v35 = vpop.f32.mrf.mxu0 }
0x2de1   :  { %8611 = vmatmul.mubr.msk.bf16.vlgmr.msra.gmra.mxu1 %vm485_vm4, %v4418_v32  ;;  %v9045_v32 = vld [vmem:[%s10989_s7 + $0x38] sm:$0xff]  }
0x2de2   :  { %v10409_v48 = vpop.f32.mrf.mxu0  ;;  %8621 = vmatpush3.bf16.msra.mxu1 %v9041_v31  ;;  %8624 = vmatprep.mubr.msk.bf16.mxu1 %vm9307_vm0, %v9306_v1 }
0x2de3   :  { %8622 = vmatprep.subr.bf16.mxu1 %v9306_v1 }
0x2de4   :  { %v8618_v43 = vpop.f32.mrf.mxu0 }
0x2de5   :  { %v9047_v43 = vld [vmem:[%s10991_s9 + $0x38] sm:$0xff]  }
0x2de6   :  { %v10417_v10 = vpop.f32.mrf.mxu0  ;;  %8623 = vmatpush3.bf16.msra.mxu1 %v9042_v40  ;;  %v9046_v40 = vld [vmem:[%s10989_s7 + $0x30] sm:$0xff]  }
0x2de7   :  { %8636 = vmatprep.subr.bf16.mxu1 %v9306_v1 }
0x2de8   :  { %v8619_v47 = vpop.f32.mrf.mxu0 }
0x2de9   :  { %8625 = vmatmul.mubr.msk.bf16.vlgmr.msra.gmra.mxu1 %vm74_vm2, %v10277_v37  ;;  %v9049_v47 = vld [vmem:[%s10992_s10 + $0x10] sm:$0xff]  }
0x2dea   :  { %v4626_v51 = vpop.f32.mrf.mxu0  ;;  %8637 = vmatpush3.bf16.msra.mxu1 %v9043_v46  ;;  %8640 = vmatprep.mubr.msk.bf16.mxu1 %vm9307_vm0, %v9306_v1  ;;  %v9048_v46 = vld [vmem:[%s10991_s9 + $0x30] sm:$0xff]  }
0x2deb   :  { %8638 = vmatprep.subr.bf16.mxu1 %v9306_v1 }
0x2dec   :  { %v8634_v53 = vpop.f32.mrf.mxu0 }
0x2dee   :  { %v4629_v55 = vpop.f32.mrf.mxu0  ;;  %8639 = vmatpush3.bf16.msra.mxu1 %v9044_v52 }
0x2def   :  { %v4691_v39 = vpack.c.bf16 %v4629_v55, %v4626_v51  ;;  %8650 = vmatprep.subr.bf16.mxu1 %v9306_v1  ;;  %v9050_v55 = vld [vmem:[%s10990_s8 + $0x38] sm:$0xff]  }
0x2df0   :  { %v8635_v22 = vpop.f32.mrf.mxu0 }
0x2df1   :  { %v4696_v16 = vsel %vm485_vm4, %v4691_v39, 0  ;;  %8641 = vmatmul.mubr.msk.bf16.vlgmr.msra.gmra.mxu1 %vm74_vm2, %v10277_v37 }
0x2df2   :  { %8645 = vmatpush3.bf16.xpose.msra.mxu0 %v4696_v16  ;;  %8652 = vmatprep.mubr.msk.bf16.mxu1 %vm9307_vm0, %v9306_v1 }
0x2df3   :  { %8656 = vmatprep.subr.bf16.mxu0 %v9306_v1 }
0x2ea1   :  { %v10438_v50 = vpop.f32.mrf.mxu1 }
0x2ea3   :  { %v8612_v57 = vpop.f32.mrf.mxu1 }
0x2ea4   :  { %v9051_v57 = vld [vmem:[%s10990_s8 + $0x30] sm:$0xff]  }
0x2ea5   :  { %v10440_v59 = vpop.f32.mrf.mxu1 }
0x2ea7   :  { %v8613_v58 = vpop.f32.mrf.mxu1 }
0x2ea9   :  { %v4569_v60 = vpop.f32.mrf.mxu1 }
0x2eab   :  { %v8626_v61 = vpop.f32.mrf.mxu1 }
0x2ead   :  { %v4572_v17 = vpop.f32.mrf.mxu1 }
0x2eae   :  { %v4690_v62 = vpack.c.bf16 %v4572_v17, %v4569_v60 }
0x2eaf   :  { %v8627_v2 = vpop.f32.mrf.mxu1 }
0x2eb0   :  { %8647 = vmatmul.mubr.msk.bf16.vlgmr.msra.gmra.mxu0 %vm485_vm4, %v4690_v62 }
0x2eb1   :  { %v4683_v24 = vpop.f32.mrf.mxu1  ;;  %8658 = vmatprep.mubr.msk.bf16.mxu0 %vm9307_vm0, %v9306_v1  ;;  %8657 = vmatpush3.bf16.msra.mxu0 %v9049_v47 }
0x2eb2   :  { %8670 = vmatprep.subr.bf16.mxu0 %v9306_v1 }
0x2eb3   :  { %v8642_v34 = vpop.f32.mrf.mxu1 }
0x2eb5   :  { %v4686_v3 = vpop.f32.mrf.mxu1 }
0x2eb6   :  { %v4766_v4 = vpack.c.bf16 %v4686_v3, %v4683_v24 }
0x2eb7   :  { %v8643_v5 = vpop.f32.mrf.mxu1 }
0x2eb8   :  { %8651 = vmatpush3.bf16.msra.mxu1 %v4766_v4  ;;  %v4513_v4 = vadd.f32 %v10409_v48, %v10438_v50 }
0x2eb9   :  { %8662 = vmatprep.subr.bf16.mxu1 %v9306_v1 }
0x2f70   :  { %v4732_v6 = vpop.f32.mrf.mxu0 }
0x2f71   :  { %v4739_v7 = vmul.f32 0.25, %v4732_v6 }
0x2f72   :  { %v8648_v9 = vpop.f32.mrf.mxu0 }
0x2f73   :  { %v4741_v54 = vsel %vm9583_vm5, %v4739_v7, -1e+30 }
0x2f74   :  { %v4735_v11 = vpop.f32.mrf.mxu0  ;;  %v4743_v12 = vsel %vm485_vm4, %v4741_v54, -inf }
0x2f75   :  { %v4740_v13 = vmul.f32 0.25, %v4735_v11  ;;  %4744 = vmax.xlane.f32.xlu0 %v4743_v12 }
0x2f76   :  { %v8649_v0 = vpop.f32.mrf.mxu0 }
0x2f77   :  { %v4742_v41 = vsel %vm9593_vm6, %v4740_v13, -1e+30 }
0x2f78   :  { %v4746_v14 = vsel %vm485_vm4, %v4742_v41, -inf }
0x2f79   :  { %4747 = vmax.xlane.f32.xlu1 %v4746_v14 }
0x2ffe   :  { %v4745_v18 = vpop.xlane.xlu0 %4744 }
0x2fff   :  { %v4749_v15 = vsub.f32 %v4741_v54, %v4745_v18 }
0x3001   :  { %v4751_v19 = vmul.f32 1.442695, %v4749_v15 }
0x3002   :  { %v4748_v20 = vpop.xlane.xlu1 %4747 }
0x3003   :  { %9213 = vpow2.f32 %v4751_v19  ;;  %v4750_v8 = vsub.f32 %v4742_v41, %v4748_v20 }
0x3005   :  { %v4753_v23 = vmul.f32 1.442695, %v4750_v8 }
0x3007   :  { %9215 = vpow2.f32 %v4753_v23 }
0x3010   :  { %v9214_v25 = vpop.eup %9213 }
0x3011   :  { %v4755_v26 = vsel %vm485_vm4, %v9214_v25, 0.0 }
0x3012   :  { %4756 = vadd.xlane.f32.xlu0 %v4755_v26 }
0x3014   :  { %v9216_v56 = vpop.eup %9215 }
0x3015   :  { %v4758_v63 = vsel %vm485_vm4, %v9216_v56, 0.0 }
0x3016   :  { %4759 = vadd.xlane.f32.xlu1 %v4758_v63 }
0x309b   :  { %v4757_v21 = vpop.xlane.xlu0 %4756 }
0x309c   :  { %9217 = vrcp.f32 %v4757_v21 }
0x309f   :  { %v4760_v27 = vpop.xlane.xlu1 %4759 }
0x30a0   :  { %9219 = vrcp.f32 %v4760_v27 }
0x30a9   :  { %v9218_v28 = vpop.eup %9217 }
0x30aa   :  { %v4763_v30 = vmul.f32 %v9218_v28, %v9214_v25 }
0x30ad   :  { %v9220_v29 = vpop.eup %9219 }
0x30ae   :  { %v4764_v31 = vmul.f32 %v9220_v29, %v9216_v56 }
0x30b0   :  { %v4765_v35 = vpack.c.bf16 %v4764_v31, %v4763_v30 }
0x30b2   :  { %8653 = vmatmul.mubr.msk.bf16.vlgmr.msra.gmra.mxu1 %vm485_vm4, %v4765_v35 }
0x30b3   :  { %8663 = vmatpush3.bf16.msra.mxu1 %v9045_v32  ;;  %8666 = vmatprep.mubr.msk.bf16.mxu1 %vm9307_vm0, %v9306_v1 }
0x30b4   :  { %8664 = vmatprep.subr.bf16.mxu1 %v9306_v1 }
0x30b7   :  { %8665 = vmatpush3.bf16.msra.mxu1 %v9046_v40 }
0x30b8   :  { %8678 = vmatprep.subr.bf16.mxu1 %v9306_v1 }
0x30ba   :  { %8667 = vmatmul.mubr.msk.bf16.vlgmr.msra.gmra.mxu1 %vm74_vm2, %v10277_v37 }
0x30bb   :  { %8679 = vmatpush3.bf16.msra.mxu1 %v9047_v43  ;;  %8682 = vmatprep.mubr.msk.bf16.mxu1 %vm9307_vm0, %v9306_v1 }
0x30bc   :  { %8680 = vmatprep.subr.bf16.mxu1 %v9306_v1 }
0x30bf   :  { %8681 = vmatpush3.bf16.msra.mxu1 %v9048_v46 }
0x30c0   :  { %8692 = vmatprep.subr.bf16.mxu1 %v9306_v1 }
0x30c2   :  { %8683 = vmatmul.mubr.msk.bf16.vlgmr.msra.gmra.mxu1 %vm74_vm2, %v10277_v37 }
0x30c3   :  { %8694 = vmatprep.mubr.msk.bf16.mxu1 %vm9307_vm0, %v9306_v1 }
0x3172   :  { %v4804_v51 = vpop.f32.mrf.mxu1 }
0x3174   :  { %v8654_v52 = vpop.f32.mrf.mxu1 }
0x3176   :  { %v4807_v53 = vpop.f32.mrf.mxu1 }
0x3177   :  { %v4813_v39 = vpack.c.bf16 %v4807_v53, %v4804_v51  ;;  %v9052_v53 = vld [vmem:[%s10992_s10 + $0x18] sm:$0xff]  }
0x3178   :  { %v8655_v22 = vpop.f32.mrf.mxu1 }
0x3179   :  { %8659 = vmatmul.mubr.msk.bf16.vlgmr.msra.gmra.mxu0 %vm485_vm4, %v4813_v39 }
0x317a   :  { %v4916_v16 = vpop.f32.mrf.mxu1  ;;  %8671 = vmatpush3.bf16.msra.mxu0 %v9050_v55  ;;  %8674 = vmatprep.mubr.msk.bf16.mxu0 %vm9307_vm0, %v9306_v1 }
0x317b   :  { %8672 = vmatprep.subr.bf16.mxu0 %v9306_v1 }
0x317c   :  { %v8668_v58 = vpop.f32.mrf.mxu1 }
0x317e   :  { %v4919_v60 = vpop.f32.mrf.mxu1  ;;  %8673 = vmatpush3.bf16.msra.mxu0 %v9051_v57 }
0x317f   :  { %v5037_v61 = vpack.c.bf16 %v4919_v60, %v4916_v16  ;;  %8686 = vmatprep.subr.bf16.mxu0 %v9306_v1 }
0x3180   :  { %v8669_v17 = vpop.f32.mrf.mxu1 }
0x3181   :  { %8675 = vmatmul.mubr.msk.bf16.vlgmr.msra.gmra.mxu0 %vm74_vm2, %v10277_v37  ;;  %v4516_v37 = vadd.f32 %v10417_v10, %v10440_v59  ;;  %v9283_v17 = vld [vmem:[#allocation2 + $0x10] sm:$0xff] }
0x3182   :  { %v5030_v62 = vpop.f32.mrf.mxu1  ;;  %8688 = vmatprep.mubr.msk.bf16.mxu0 %vm9307_vm0, %v9306_v1 }
0x3184   :  { %v8684_v2 = vpop.f32.mrf.mxu1 }
0x3186   :  { %v5033_v24 = vpop.f32.mrf.mxu1 }
0x3187   :  { %v5113_v34 = vpack.c.bf16 %v5033_v24, %v5030_v62 }
0x3188   :  { %v8685_v3 = vpop.f32.mrf.mxu1 }
0x3189   :  { %8693 = vmatpush3.bf16.msra.mxu1 %v5113_v34 }
0x318a   :  { %8704 = vmatprep.subr.bf16.mxu1 %v9306_v1 }
0x3239   :  { %v4857_v5 = vpop.f32.mrf.mxu0 }
0x323a   :  { %v10503_v6 = vadd.f32 %v4857_v5, %v4513_v4 }
0x323b   :  { %v8660_v7 = vpop.f32.mrf.mxu0 }
0x323d   :  { %v4860_v9 = vpop.f32.mrf.mxu0 }
0x323e   :  { %v10507_v54 = vadd.f32 %v4860_v9, %v4516_v37 }
0x323f   :  { %v8661_v11 = vpop.f32.mrf.mxu0 }
0x3241   :  { %v4973_v12 = vpop.f32.mrf.mxu0 }
0x3243   :  { %v8676_v13 = vpop.f32.mrf.mxu0 }
0x3245   :  { %v4976_v0 = vpop.f32.mrf.mxu0 }
0x3246   :  { %v5038_v41 = vpack.c.bf16 %v4976_v0, %v4973_v12 }
0x3247   :  { %v8677_v14 = vpop.f32.mrf.mxu0 }
0x3248   :  { %v5043_v18 = vsel %vm485_vm4, %v5038_v41, 0  ;;  %v9053_v41 = vld [vmem:[%s10995_s13 + $0x8] sm:$0xff]   ;;  %v9054_v14 = vld [vmem:[%s10995_s13] sm:$0xff]  }
0x3249   :  { %8687 = vmatpush3.bf16.xpose.msra.mxu0 %v5043_v18 }
0x324a   :  { %8698 = vmatprep.subr.bf16.mxu0 %v9306_v1 }
0x3250   :  { %8689 = vmatmul.mubr.msk.bf16.vlgmr.msra.gmra.mxu0 %vm485_vm4, %v5037_v61 }
0x3251   :  { %8700 = vmatprep.mubr.msk.bf16.mxu0 %vm9307_vm0, %v9306_v1  ;;  %8699 = vmatpush3.bf16.msra.mxu0 %v9052_v53 }
0x3252   :  { %8712 = vmatprep.subr.bf16.mxu0 %v9306_v1 }
0x3310   :  { %v5079_v48 = vpop.f32.mrf.mxu0 }
0x3311   :  { %v5086_v10 = vmul.f32 0.25, %v5079_v48 }
0x3312   :  { %v8690_v50 = vpop.f32.mrf.mxu0 }
0x3313   :  { %v5088_v59 = vsel %vm9583_vm5, %v5086_v10, -1e+30 }
0x3314   :  { %v5082_v15 = vpop.f32.mrf.mxu0  ;;  %v5090_v19 = vsel %vm485_vm4, %v5088_v59, -inf }
0x3315   :  { %v5087_v20 = vmul.f32 0.25, %v5082_v15  ;;  %5091 = vmax.xlane.f32.xlu0 %v5090_v19 }
0x3316   :  { %v8691_v8 = vpop.f32.mrf.mxu0 }
0x3317   :  { %v5089_v23 = vsel %vm9593_vm6, %v5087_v20, -1e+30  ;;  %v7642_v8 = vld [vmem:[%s10993_s11] ss:$0 sm:$0xff] }
0x3318   :  { %v5093_v25 = vsel %vm485_vm4, %v5089_v23, -inf }
0x3319   :  { %5094 = vmax.xlane.f32.xlu1 %v5093_v25 }
0x339e   :  { %v5092_v26 = vpop.xlane.xlu0 %5091 }
0x339f   :  { %v5096_v56 = vsub.f32 %v5088_v59, %v5092_v26 }
0x33a1   :  { %v5098_v63 = vmul.f32 1.442695, %v5096_v56  ;;  %v7643_v56 = vld [vmem:[%s10994_s12] ss:$0 sm:$0xff] }
0x33a2   :  { %v5095_v21 = vpop.xlane.xlu1 %5094 }
0x33a3   :  { %9221 = vpow2.f32 %v5098_v63  ;;  %v5097_v27 = vsub.f32 %v5089_v23, %v5095_v21 }
0x33a5   :  { %v5100_v28 = vmul.f32 1.442695, %v5097_v27 }
0x33a7   :  { %9223 = vpow2.f32 %v5100_v28 }
0x33b0   :  { %v9222_v29 = vpop.eup %9221 }
0x33b1   :  { %v5102_v30 = vsel %vm485_vm4, %v9222_v29, 0.0 }
0x33b2   :  { %5103 = vadd.xlane.f32.xlu0 %v5102_v30  ;;  %v9056_v30 = vld [vmem:[%s10997_s15 + $0x30] sm:$0xff]  }
0x33b4   :  { %v9224_v31 = vpop.eup %9223 }
0x33b5   :  { %v5105_v32 = vsel %vm485_vm4, %v9224_v31, 0.0 }
0x33b6   :  { %5106 = vadd.xlane.f32.xlu1 %v5105_v32  ;;  %v9058_v32 = vld [vmem:[%s10997_s15 + $0x20] sm:$0xff]  }
0x343b   :  { %v5104_v35 = vpop.xlane.xlu0 %5103 }
0x343c   :  { %9225 = vrcp.f32 %v5104_v35  ;;  %v9059_v35 = vld [vmem:[%s10997_s15 + $0x18] sm:$0xff]  }
0x343f   :  { %v5107_v40 = vpop.xlane.xlu1 %5106 }
0x3440   :  { %9227 = vrcp.f32 %v5107_v40  ;;  %v9060_v40 = vld [vmem:[%s10997_s15 + $0x10] sm:$0xff]  }
0x3449   :  { %v9226_v43 = vpop.eup %9225 }
0x344a   :  { %v5110_v47 = vmul.f32 %v9226_v43, %v9222_v29  ;;  %v9055_v29 = vld [vmem:[%s10997_s15 + $0x38] sm:$0xff]   ;;  %v9061_v43 = vld [vmem:[%s10997_s15 + $0x8] sm:$0xff]  }
0x344d   :  { %v9228_v46 = vpop.eup %9227 }
0x344e   :  { %v5111_v51 = vmul.f32 %v9228_v46, %v9224_v31  ;;  %v9057_v31 = vld [vmem:[%s10997_s15 + $0x28] sm:$0xff]   ;;  %v9062_v46 = vld [vmem:[%s10997_s15] sm:$0xff]  }
0x3450   :  { %v5112_v52 = vpack.c.bf16 %v5111_v51, %v5110_v47  ;;  %v7644_v47 = vld [vmem:[%s10996_s14] ss:$0 sm:$0xff] }
0x3452   :  { %8695 = vmatmul.mubr.msk.bf16.vlgmr.msra.gmra.mxu1 %vm485_vm4, %v5112_v52 }
0x3453   :  { %8708 = vmatprep.mubr.msk.bf16.mxu1 %vm9307_vm0, %v9306_v1  ;;  %8705 = vmatpush3.bf16.msra.mxu1 %v9053_v41 }
0x3454   :  { %8706 = vmatprep.subr.bf16.mxu1 %v9306_v1 }
0x3457   :  { %8707 = vmatpush3.bf16.msra.mxu1 %v9054_v14 }
0x3458   :  { %8732 = vmatprep.subr.bf16.mxu1 %v9306_v1 }
0x3512   :  { %v5151_v55 = vpop.f32.mrf.mxu1 }
0x3514   :  { %v8696_v39 = vpop.f32.mrf.mxu1 }
0x3516   :  { %v5154_v22 = vpop.f32.mrf.mxu1 }
0x3517   :  { %v5160_v16 = vpack.c.bf16 %v5154_v22, %v5151_v55 }
0x3518   :  { %v8697_v57 = vpop.f32.mrf.mxu1 }
0x3519   :  { %8701 = vmatmul.mubr.msk.bf16.vlgmr.msra.gmra.mxu0 %vm485_vm4, %v5160_v16 }
0x351a   :  { %8728 = vmatprep.mubr.msk.bf16.mxu0 %vm9307_vm0, %v9306_v1  ;;  %8713 = vmatpush3.bf16.msra.mxu0 %v9055_v29 }
0x351b   :  { %8714 = vmatprep.subr.bf16.mxu0 %v9306_v1 }
0x351e   :  { %8715 = vmatpush3.bf16.msra.mxu0 %v9056_v30 }
0x351f   :  { %8716 = vmatprep.subr.bf16.mxu0 %v9306_v1 }
0x3522   :  { %8717 = vmatpush3.bf16.msra.mxu0 %v9057_v31 }
0x3523   :  { %8718 = vmatprep.subr.bf16.mxu0 %v9306_v1 }
0x3526   :  { %8719 = vmatpush3.bf16.msra.mxu0 %v9058_v32 }
0x3527   :  { %8720 = vmatprep.subr.bf16.mxu0 %v9306_v1 }
0x352a   :  { %8721 = vmatpush3.bf16.msra.mxu0 %v9059_v35 }
0x352b   :  { %8722 = vmatprep.subr.bf16.mxu0 %v9306_v1 }
0x352e   :  { %8723 = vmatpush3.bf16.msra.mxu0 %v9060_v40 }
0x352f   :  { %8724 = vmatprep.subr.bf16.mxu0 %v9306_v1 }
0x3532   :  { %8725 = vmatpush3.bf16.msra.mxu0 %v9061_v43 }
0x3533   :  { %8726 = vmatprep.subr.bf16.mxu0 %v9306_v1 }
0x3536   :  { %8727 = vmatpush3.bf16.msra.mxu0 %v9062_v46 }
0x3537   :  { %8762 = vmatprep.subr.bf16.mxu0 %v9306_v1 }
0x35d9   :  { %v5204_v58 = vpop.f32.mrf.mxu0 }
0x35da   :  { %v5211_v60 = vadd.f32 %v5204_v58, %v10503_v6 }
0x35db   :  { %v8702_v61 = vpop.f32.mrf.mxu0 }
0x35dc   :  { %v10533_v62 = vadd.f32 %v9283_v17, %v5211_v60 }
0x35dd   :  { %v5207_v2 = vpop.f32.mrf.mxu0 }
0x35de   :  { %v5212_v24 = vadd.f32 %v5207_v2, %v10507_v54  ;;  %v5217_v34 = vsel %vm74_vm2, %v10533_v62, 0.0 }
0x35df   :  { %5218 = vadd.xlane.f32.xlu0 %v5217_v34  ;;  %v8703_v3 = vpop.f32.mrf.mxu0 }
0x35e0   :  { %v10539_v4 = vadd.f32 %v5212_v24, %v10234_v33 }
0x35e2   :  { %v5220_v5 = vsel %vm74_vm2, %v10539_v4, 0.0 }
0x35e3   :  { %5221 = vadd.xlane.f32.xlu1 %v5220_v5 }
0x3668   :  { %v5219_v6 = vpop.xlane.xlu0 %5218 }
0x3669   :  { %v5223_v7 = vmul.f32 0.03125, %v5219_v6 }
0x366b   :  { %v5225_v37 = vsub.f32 %v10533_v62, %v5223_v7 }
0x366c   :  { %v5222_v9 = vpop.xlane.xlu1 %5221 }
0x366d   :  { %v5224_v11 = vmul.f32 0.03125, %v5222_v9  ;;  %v5227_v12 = vmul.f32 %v5225_v37, %v5225_v37 }
0x366f   :  { %v5226_v54 = vsub.f32 %v10539_v4, %v5224_v11  ;;  %v5229_v13 = vsel %vm74_vm2, %v5227_v12, 0.0 }
0x3670   :  { %5230 = vadd.xlane.f32.xlu0 %v5229_v13 }
0x3671   :  { %v5228_v0 = vmul.f32 %v5226_v54, %v5226_v54 }
0x3673   :  { %v5232_v33 = vsel %vm74_vm2, %v5228_v0, 0.0 }
0x3674   :  { %5233 = vadd.xlane.f32.xlu1 %v5232_v33  ;;  %v7656_v33 = vld [vmem:[%s10998_s16] ss:$0 sm:$0xff] }
0x36f9   :  { %v5231_v18 = vpop.xlane.xlu0 %5230 }
0x36fa   :  { %v5235_v48 = vmul.f32 0.03125, %v5231_v18 }
0x36fc   :  { %v5237_v10 = vadd.f32 1e-05, %v5235_v48 }
0x36fd   :  { %v5234_v50 = vpop.xlane.xlu1 %5233 }
0x36fe   :  { %9229 = vrsqrt.f32 %v5237_v10  ;;  %v5236_v59 = vmul.f32 0.03125, %v5234_v50 }
0x3700   :  { %v5238_v15 = vadd.f32 1e-05, %v5236_v59 }
0x3702   :  { %9231 = vrsqrt.f32 %v5238_v15 }
0x370b   :  { %v9230_v19 = vpop.eup %9229 }
0x370c   :  { %v5241_v20 = vmul.f32 %v9230_v19, %v5225_v37 }
0x370e   :  { %v5249_v25 = vmul.f32 %v7642_v8, %v5241_v20 }
0x370f   :  { %v9232_v23 = vpop.eup %9231 }
0x3710   :  { %v5242_v26 = vmul.f32 %v9232_v23, %v5226_v54  ;;  %v5257_v21 = vadd.f32 %v7643_v56, %v5249_v25 }
0x3712   :  { %v5250_v63 = vmul.f32 %v7642_v8, %v5242_v26 }
0x3714   :  { %v5258_v27 = vadd.f32 %v7643_v56, %v5250_v63 }
0x3716   :  { %v5263_v28 = vpack.c.bf16 %v5258_v27, %v5257_v21  ;;  %v9063_v27 = vld [vmem:[%s10989_s7 + $0x48] sm:$0xff]  }
0x3718   :  { %8709 = vmatmul.mubr.msk.bf16.vlgmr.msra.gmra.mxu1 %vm74_vm2, %v5263_v28  ;;  %v9064_v28 = vld [vmem:[%s10989_s7 + $0x40] sm:$0xff]  }
0x3719   :  { %8736 = vmatprep.mubr.msk.bf16.mxu1 %vm9307_vm0, %v9306_v1  ;;  %8733 = vmatpush3.bf16.msra.mxu1 %v9063_v27 }
0x371a   :  { %8734 = vmatprep.subr.bf16.mxu1 %v9306_v1 }
0x371d   :  { %8735 = vmatpush3.bf16.msra.mxu1 %v9064_v28 }
0x371e   :  { %8740 = vmatprep.subr.bf16.mxu1 %v9306_v1 }
0x37d8   :  { %v5320_v51 = vpop.f32.mrf.mxu1 }
0x37d9   :  { %v5321_v52 = vadd.f32 %v7644_v47, %v5320_v51 }
0x37da   :  { %v8710_v53 = vpop.f32.mrf.mxu1 }
0x37db   :  { %v5327_v55 = vmul.f32 %v5321_v52, %v5321_v52 }
0x37dc   :  { %v5323_v39 = vpop.f32.mrf.mxu1 }
0x37dd   :  { %v5329_v22 = vmul.f32 %v5327_v55, %v5321_v52  ;;  %v5324_v16 = vadd.f32 %v7644_v47, %v5323_v39  ;;  %v7659_v47 = vld [vmem:[%s11020_s27 + $0x1] ss:$0 sm:$0xff] }
0x37de   :  { %v8711_v57 = vpop.f32.mrf.mxu1  ;;  %v7660_v55 = vld [vmem:[%s10988_s6 + $0x1] ss:$0 sm:$0xff] }
0x37df   :  { %v5331_v58 = vmul.f32 0.044715, %v5329_v22  ;;  %v5328_v60 = vmul.f32 %v5324_v16, %v5324_v16  ;;  %v9065_v57 = vld [vmem:[%s10990_s8 + $0x48] sm:$0xff]  }
0x37e1   :  { %v5333_v61 = vadd.f32 %v5331_v58, %v5321_v52  ;;  %v5330_v17 = vmul.f32 %v5328_v60, %v5324_v16  ;;  %v9066_v60 = vld [vmem:[%s10990_s8 + $0x40] sm:$0xff]  }
0x37e3   :  { %v5335_v2 = vmul.f32 0.7978846, %v5333_v61  ;;  %v5332_v24 = vmul.f32 0.044715, %v5330_v17  ;;  %v9067_v61 = vld [vmem:[%s10991_s9 + $0x48] sm:$0xff]   ;;  %v9068_v17 = vld [vmem:[%s10991_s9 + $0x40] sm:$0xff]  }
0x37e5   :  { %9233 = vtanh.f32 %v5335_v2  ;;  %v5334_v34 = vadd.f32 %v5332_v24, %v5324_v16 }
0x37e7   :  { %v5336_v3 = vmul.f32 0.7978846, %v5334_v34 }
0x37e9   :  { %9235 = vtanh.f32 %v5336_v3 }
0x37f2   :  { %v9234_v5 = vpop.eup %9233 }
0x37f3   :  { %v5339_v6 = vadd.f32 1.0, %v9234_v5 }
0x37f5   :  { %v5341_v37 = vmul.f32 0.5, %v5339_v6 }
0x37f6   :  { %v9236_v7 = vpop.eup %9235 }
0x37f7   :  { %v5340_v9 = vadd.f32 1.0, %v9236_v7  ;;  %v5343_v12 = vmul.f32 %v5341_v37, %v5321_v52 }
0x37f9   :  { %v5342_v11 = vmul.f32 0.5, %v5340_v9 }
0x37fb   :  { %v5344_v54 = vmul.f32 %v5342_v11, %v5324_v16 }
0x37fd   :  { %v5361_v13 = vpack.c.bf16 %v5344_v54, %v5343_v12 }
0x37ff   :  { %8729 = vmatmul.mubr.bf16.vlgmr.msra.gmra.mxu0 %v5361_v13 }
0x3800   :  { %8764 = vmatprep.mubr.msk.bf16.mxu0 %vm9307_vm0, %v9306_v1 }
0x38bf   :  { %v5444_v0 = vpop.f32.mrf.mxu0 }
0x38c0   :  { %v5451_v41 = vadd.f32 %v5444_v0, %v10533_v62  ;;  %v9069_v0 = vld [vmem:[%s10989_s7 + $0x58] sm:$0xff]  }
0x38c1   :  { %v8730_v14 = vpop.f32.mrf.mxu0 }
0x38c2   :  { %v10605_v18 = vadd.f32 %v7656_v33, %v5451_v41 }
0x38c3   :  { %v5447_v48 = vpop.f32.mrf.mxu0 }
0x38c4   :  { %v5452_v10 = vadd.f32 %v5447_v48, %v10539_v4  ;;  %v5464_v50 = vsel %vm74_vm2, %v10605_v18, 0.0  ;;  %v9070_v48 = vld [vmem:[%s10989_s7 + $0x50] sm:$0xff]  }
0x38c5   :  { %5465 = vadd.xlane.f32.xlu0 %v5464_v50  ;;  %v8731_v59 = vpop.f32.mrf.mxu0  ;;  %v9072_v50 = vld [vmem:[%s10991_s9 + $0x50] sm:$0xff]  }
0x38c6   :  { %v10610_v15 = vadd.f32 %v7656_v33, %v5452_v10  ;;  %v9071_v10 = vld [vmem:[%s10991_s9 + $0x58] sm:$0xff]  }
0x38c8   :  { %v5467_v19 = vsel %vm74_vm2, %v10610_v15, 0.0 }
0x38c9   :  { %5468 = vadd.xlane.f32.xlu1 %v5467_v19 }
0x394e   :  { %v5466_v20 = vpop.xlane.xlu0 %5465 }
0x394f   :  { %v5470_v8 = vmul.f32 0.03125, %v5466_v20 }
0x3951   :  { %v5472_v62 = vsub.f32 %v10605_v18, %v5470_v8 }
0x3952   :  { %v5469_v23 = vpop.xlane.xlu1 %5468 }
0x3953   :  { %v5471_v25 = vmul.f32 0.03125, %v5469_v23  ;;  %v5474_v26 = vmul.f32 %v5472_v62, %v5472_v62 }
0x3955   :  { %v5473_v4 = vsub.f32 %v10610_v15, %v5471_v25  ;;  %v5476_v56 = vsel %vm74_vm2, %v5474_v26, 0.0 }
0x3956   :  { %5477 = vadd.xlane.f32.xlu0 %v5476_v56 }
0x3957   :  { %v5475_v63 = vmul.f32 %v5473_v4, %v5473_v4 }
0x3959   :  { %v5479_v21 = vsel %vm74_vm2, %v5475_v63, 0.0 }
0x395a   :  { %5480 = vadd.xlane.f32.xlu1 %v5479_v21 }
0x39df   :  { %v5478_v29 = vpop.xlane.xlu0 %5477 }
0x39e0   :  { %v5482_v30 = vmul.f32 0.03125, %v5478_v29 }
0x39e2   :  { %v5484_v31 = vadd.f32 1e-05, %v5482_v30 }
0x39e3   :  { %v5481_v32 = vpop.xlane.xlu1 %5480 }
0x39e4   :  { %9237 = vrsqrt.f32 %v5484_v31  ;;  %v5483_v35 = vmul.f32 0.03125, %v5481_v32 }
0x39e6   :  { %v5485_v40 = vadd.f32 1e-05, %v5483_v35 }
0x39e8   :  { %9239 = vrsqrt.f32 %v5485_v40 }
0x39f1   :  { %v9238_v43 = vpop.eup %9237 }
0x39f2   :  { %v5488_v46 = vmul.f32 %v9238_v43, %v5472_v62 }
0x39f4   :  { %v5496_v52 = vmul.f32 %v7659_v47, %v5488_v46 }
0x39f5   :  { %v9240_v51 = vpop.eup %9239 }
0x39f6   :  { %v5489_v53 = vmul.f32 %v9240_v51, %v5473_v4  ;;  %v5504_v22 = vadd.f32 %v7660_v55, %v5496_v52 }
0x39f8   :  { %v5497_v39 = vmul.f32 %v7659_v47, %v5489_v53 }
0x39fa   :  { %v5505_v16 = vadd.f32 %v7660_v55, %v5497_v39 }
0x39fc   :  { %v10635_v58 = vpack.c.bf16 %v5505_v16, %v5504_v22 }
0x39fe   :  { %8737 = vmatmul.mubr.msk.bf16.vlgmr.msra.gmra.mxu1 %vm74_vm2, %v10635_v58 }
0x39ff   :  { %8741 = vmatpush3.bf16.msra.mxu1 %v9065_v57  ;;  %8744 = vmatprep.mubr.msk.bf16.mxu1 %vm9307_vm0, %v9306_v1 }
0x3a00   :  { %8742 = vmatprep.subr.bf16.mxu1 %v9306_v1 }
0x3a03   :  { %8743 = vmatpush3.bf16.msra.mxu1 %v9066_v60 }
0x3a04   :  { %8748 = vmatprep.subr.bf16.mxu1 %v9306_v1 }
0x3a06   :  { %8745 = vmatmul.mubr.msk.bf16.vlgmr.msra.gmra.mxu1 %vm74_vm2, %v10635_v58 }
0x3a07   :  { %8749 = vmatpush3.bf16.msra.mxu1 %v9067_v61  ;;  %8752 = vmatprep.mubr.msk.bf16.mxu1 %vm9307_vm0, %v9306_v1 }
0x3a08   :  { %8750 = vmatprep.subr.bf16.mxu1 %v9306_v1 }
0x3a0b   :  { %8751 = vmatpush3.bf16.msra.mxu1 %v9068_v17 }
0x3a0c   :  { %8756 = vmatprep.subr.bf16.mxu1 %v9306_v1 }
0x3a0e   :  { %8753 = vmatmul.mubr.msk.bf16.vlgmr.msra.gmra.mxu1 %vm74_vm2, %v10635_v58 }
0x3a0f   :  { %8758 = vmatprep.mubr.msk.bf16.mxu1 %vm9307_vm0, %v9306_v1 }
0x3abe   :  { %v5560_v2 = vpop.f32.mrf.mxu1 }
0x3ac0   :  { %v8738_v24 = vpop.f32.mrf.mxu1 }
0x3ac2   :  { %v5563_v34 = vpop.f32.mrf.mxu1 }
0x3ac3   :  { %v5681_v33 = vpack.c.bf16 %v5563_v34, %v5560_v2  ;;  %v9073_v34 = vld [vmem:[%s10990_s8 + $0x58] sm:$0xff]  }
0x3ac4   :  { %v8739_v3 = vpop.f32.mrf.mxu1 }
0x3ac6   :  { %v5617_v5 = vpop.f32.mrf.mxu1 }
0x3ac8   :  { %v8746_v6 = vpop.f32.mrf.mxu1 }
0x3aca   :  { %v5620_v7 = vpop.f32.mrf.mxu1 }
0x3acb   :  { %v5682_v37 = vpack.c.bf16 %v5620_v7, %v5617_v5  ;;  %v9074_v5 = vld [vmem:[%s10990_s8 + $0x50] sm:$0xff]  }
0x3acc   :  { %v8747_v9 = vpop.f32.mrf.mxu1 }
0x3acd   :  { %v5687_v11 = vsel %vm485_vm4, %v5682_v37, 0 }
0x3ace   :  { %v5674_v12 = vpop.f32.mrf.mxu1  ;;  %8757 = vmatpush3.bf16.xpose.msra.mxu1 %v5687_v11 }
0x3acf   :  { %8768 = vmatprep.subr.bf16.mxu1 %v9306_v1 }
0x3ad0   :  { %v8754_v54 = vpop.f32.mrf.mxu1 }
0x3ad2   :  { %v5677_v13 = vpop.f32.mrf.mxu1 }
0x3ad3   :  { %v5759_v41 = vpack.c.bf16 %v5677_v13, %v5674_v12 }
0x3ad4   :  { %v8755_v14 = vpop.f32.mrf.mxu1 }
0x3ad5   :  { %8759 = vmatmul.mubr.msk.bf16.vlgmr.msra.gmra.mxu1 %vm485_vm4, %v5681_v33  ;;  %8763 = vmatpush3.bf16.msra.mxu0 %v5759_v41 }
0x3ad6   :  { %8769 = vmatpush3.bf16.msra.mxu1 %v9069_v0  ;;  %8772 = vmatprep.mubr.msk.bf16.mxu1 %vm9307_vm0, %v9306_v1 }
0x3ad7   :  { %8770 = vmatprep.subr.bf16.mxu1 %v9306_v1  ;;  %8776 = vmatprep.subr.bf16.mxu0 %v9306_v1 }
0x3ada   :  { %8771 = vmatpush3.bf16.msra.mxu1 %v9070_v48 }
0x3adb   :  { %8784 = vmatprep.subr.bf16.mxu1 %v9306_v1 }
0x3add   :  { %8773 = vmatmul.mubr.msk.bf16.vlgmr.msra.gmra.mxu1 %vm74_vm2, %v10635_v58 }
0x3ade   :  { %8785 = vmatpush3.bf16.msra.mxu1 %v9071_v10  ;;  %8788 = vmatprep.mubr.msk.bf16.mxu1 %vm9307_vm0, %v9306_v1 }
0x3adf   :  { %8786 = vmatprep.subr.bf16.mxu1 %v9306_v1 }
0x3ae2   :  { %8787 = vmatpush3.bf16.msra.mxu1 %v9072_v50 }
0x3ae3   :  { %8798 = vmatprep.subr.bf16.mxu1 %v9306_v1 }
0x3ae5   :  { %8789 = vmatmul.mubr.msk.bf16.vlgmr.msra.gmra.mxu1 %vm74_vm2, %v10635_v58 }
0x3ae6   :  { %8800 = vmatprep.mubr.msk.bf16.mxu1 %vm9307_vm0, %v9306_v1 }
0x3b95   :  { %v5723_v59 = vpop.f32.mrf.mxu1 }
0x3b96   :  { %v5730_v19 = vmul.f32 0.25, %v5723_v59 }
0x3b97   :  { %v8760_v20 = vpop.f32.mrf.mxu1 }
0x3b98   :  { %v5732_v8 = vadd.f32 %v5730_v19, %v9579_v38 }
0x3b99   :  { %v5726_v62 = vpop.f32.mrf.mxu1 }
0x3b9a   :  { %v5731_v23 = vmul.f32 0.25, %v5726_v62  ;;  %v5734_v25 = vsel %vm9583_vm5, %v5732_v8, -1e+30 }
0x3b9b   :  { %v8761_v26 = vpop.f32.mrf.mxu1  ;;  %v5736_v4 = vsel %vm485_vm4, %v5734_v25, -inf }
0x3b9c   :  { %v5733_v56 = vadd.f32 %v5731_v23, %v9589_v45  ;;  %5737 = vmax.xlane.f32.xlu0 %v5736_v4 }
0x3b9d   :  { %v5857_v63 = vpop.f32.mrf.mxu1 }
0x3b9e   :  { %v5735_v21 = vsel %vm9593_vm6, %v5733_v56, -1e+30 }
0x3b9f   :  { %v8774_v27 = vpop.f32.mrf.mxu1  ;;  %v5739_v28 = vsel %vm485_vm4, %v5735_v21, -inf }
0x3ba0   :  { %5740 = vmax.xlane.f32.xlu1 %v5739_v28 }
0x3ba1   :  { %v5860_v38 = vpop.f32.mrf.mxu1 }
0x3ba2   :  { %v5978_v29 = vpack.c.bf16 %v5860_v38, %v5857_v63 }
0x3ba3   :  { %v8775_v30 = vpop.f32.mrf.mxu1 }
0x3ba5   :  { %v5971_v31 = vpop.f32.mrf.mxu1 }
0x3ba7   :  { %v8790_v32 = vpop.f32.mrf.mxu1 }
0x3ba9   :  { %v5974_v35 = vpop.f32.mrf.mxu1 }
0x3baa   :  { %v6056_v40 = vpack.c.bf16 %v5974_v35, %v5971_v31 }
0x3bab   :  { %v8791_v43 = vpop.f32.mrf.mxu1 }
0x3bac   :  { %8799 = vmatpush3.bf16.msra.mxu1 %v6056_v40 }
0x3bad   :  { %8810 = vmatprep.subr.bf16.mxu1 %v9306_v1 }
0x3c25   :  { %v5738_v45 = vpop.xlane.xlu0 %5737 }
0x3c26   :  { %v5742_v46 = vsub.f32 %v5734_v25, %v5738_v45  ;;  %v9075_v45 = vld [vmem:[%s10992_s10 + $0x20] sm:$0xff]  }
0x3c28   :  { %v5744_v47 = vmul.f32 1.442695, %v5742_v46 }
0x3c29   :  { %v5741_v51 = vpop.xlane.xlu1 %5740 }
0x3c2a   :  { %9241 = vpow2.f32 %v5744_v47  ;;  %v5743_v52 = vsub.f32 %v5735_v21, %v5741_v51  ;;  %v9076_v47 = vld [vmem:[%s10990_s8 + $0x68] sm:$0xff]   ;;  %v9077_v51 = vld [vmem:[%s10990_s8 + $0x60] sm:$0xff]  }
0x3c2c   :  { %v5746_v53 = vmul.f32 1.442695, %v5743_v52  ;;  %v9078_v52 = vld [vmem:[%s10992_s10 + $0x28] sm:$0xff]  }
0x3c2e   :  { %9243 = vpow2.f32 %v5746_v53 }
0x3c37   :  { %v9242_v55 = vpop.eup %9241 }
0x3c38   :  { %v5748_v39 = vsel %vm485_vm4, %v9242_v55, 0.0 }
0x3c39   :  { %5749 = vadd.xlane.f32.xlu0 %v5748_v39 }
0x3c3b   :  { %v9244_v22 = vpop.eup %9243 }
0x3c3c   :  { %v5751_v16 = vsel %vm485_vm4, %v9244_v22, 0.0 }
0x3c3d   :  { %5752 = vadd.xlane.f32.xlu1 %v5751_v16 }
0x3cc2   :  { %v5750_v57 = vpop.xlane.xlu0 %5749 }
0x3cc3   :  { %9245 = vrcp.f32 %v5750_v57 }
0x3cc6   :  { %v5753_v60 = vpop.xlane.xlu1 %5752 }
0x3cc7   :  { %9247 = vrcp.f32 %v5753_v60 }
0x3cd0   :  { %v9246_v61 = vpop.eup %9245 }
0x3cd1   :  { %v5756_v2 = vmul.f32 %v9246_v61, %v9242_v55  ;;  %v9080_v61 = vld [vmem:[%s10989_s7 + $0x60] sm:$0xff]  }
0x3cd4   :  { %v9248_v17 = vpop.eup %9247 }
0x3cd5   :  { %v5757_v24 = vmul.f32 %v9248_v17, %v9244_v22  ;;  %v9079_v22 = vld [vmem:[%s10989_s7 + $0x68] sm:$0xff]  }
0x3cd7   :  { %v5758_v3 = vpack.c.bf16 %v5757_v24, %v5756_v2  ;;  %v9081_v24 = vld [vmem:[%s10991_s9 + $0x68] sm:$0xff]  }
0x3cd9   :  { %8765 = vmatmul.mubr.msk.bf16.vlgmr.msra.gmra.mxu0 %vm485_vm4, %v5758_v3 }
0x3cda   :  { %8777 = vmatpush3.bf16.msra.mxu0 %v9073_v34  ;;  %8780 = vmatprep.mubr.msk.bf16.mxu0 %vm9307_vm0, %v9306_v1 }
0x3cdb   :  { %8778 = vmatprep.subr.bf16.mxu0 %v9306_v1 }
0x3cde   :  { %8779 = vmatpush3.bf16.msra.mxu0 %v9074_v5  ;;  %v9082_v5 = vld [vmem:[%s10991_s9 + $0x60] sm:$0xff]  }
0x3cdf   :  { %8792 = vmatprep.subr.bf16.mxu0 %v9306_v1 }
0x3ce1   :  { %8781 = vmatmul.mubr.msk.bf16.vlgmr.msra.gmra.mxu0 %vm74_vm2, %v10635_v58 }
0x3ce2   :  { %8794 = vmatprep.mubr.msk.bf16.mxu0 %vm9307_vm0, %v9306_v1 }
0x3d99   :  { %v5797_v6 = vpop.f32.mrf.mxu0 }
0x3d9b   :  { %v8766_v7 = vpop.f32.mrf.mxu0 }
0x3d9d   :  { %v5800_v37 = vpop.f32.mrf.mxu0 }
0x3d9e   :  { %v5806_v9 = vpack.c.bf16 %v5800_v37, %v5797_v6 }
0x3d9f   :  { %v8767_v11 = vpop.f32.mrf.mxu0 }
0x3da1   :  { %v5914_v12 = vpop.f32.mrf.mxu0 }
0x3da3   :  { %v8782_v54 = vpop.f32.mrf.mxu0 }
0x3da5   :  { %v5917_v13 = vpop.f32.mrf.mxu0 }
0x3da6   :  { %v5979_v0 = vpack.c.bf16 %v5917_v13, %v5914_v12 }
0x3da7   :  { %v8783_v33 = vpop.f32.mrf.mxu0 }
0x3da8   :  { %v5984_v41 = vsel %vm485_vm4, %v5979_v0, 0 }
0x3da9   :  { %8793 = vmatpush3.bf16.xpose.msra.mxu0 %v5984_v41 }
0x3daa   :  { %8804 = vmatprep.subr.bf16.mxu0 %v9306_v1 }
0x3db0   :  { %8795 = vmatmul.mubr.msk.bf16.vlgmr.msra.gmra.mxu0 %vm485_vm4, %v5978_v29 }
0x3db1   :  { %8806 = vmatprep.mubr.msk.bf16.mxu0 %vm9307_vm0, %v9306_v1  ;;  %8805 = vmatpush3.bf16.msra.mxu0 %v9078_v52 }
0x3db2   :  { %8816 = vmatprep.subr.bf16.mxu0 %v9306_v1 }
0x3e70   :  { %v6020_v14 = vpop.f32.mrf.mxu0 }
0x3e71   :  { %v6027_v48 = vmul.f32 0.25, %v6020_v14 }
0x3e72   :  { %v8796_v10 = vpop.f32.mrf.mxu0 }
0x3e73   :  { %v6029_v50 = vadd.f32 %v6027_v48, %v9626_v36 }
0x3e74   :  { %v6023_v59 = vpop.f32.mrf.mxu0 }
0x3e75   :  { %v6028_v19 = vmul.f32 0.25, %v6023_v59  ;;  %v6031_v20 = vsel %vm9583_vm5, %v6029_v50, -1e+30 }
0x3e76   :  { %v8797_v8 = vpop.f32.mrf.mxu0  ;;  %v6033_v62 = vsel %vm485_vm4, %v6031_v20, -inf }
0x3e77   :  { %v6030_v23 = vadd.f32 %v6028_v19, %v9630_v44  ;;  %6034 = vmax.xlane.f32.xlu0 %v6033_v62 }
0x3e79   :  { %v6032_v25 = vsel %vm9593_vm6, %v6030_v23, -1e+30 }
0x3e7a   :  { %v6036_v26 = vsel %vm485_vm4, %v6032_v25, -inf }
0x3e7b   :  { %6037 = vmax.xlane.f32.xlu1 %v6036_v26 }
0x3f00   :  { %v6035_v4 = vpop.xlane.xlu0 %6034 }
0x3f01   :  { %v6039_v56 = vsub.f32 %v6031_v20, %v6035_v4 }
0x3f03   :  { %v6041_v36 = vmul.f32 1.442695, %v6039_v56 }
0x3f04   :  { %v6038_v63 = vpop.xlane.xlu1 %6037 }
0x3f05   :  { %9249 = vpow2.f32 %v6041_v36  ;;  %v6040_v21 = vsub.f32 %v6032_v25, %v6038_v63 }
0x3f07   :  { %v6043_v27 = vmul.f32 1.442695, %v6040_v21 }
0x3f09   :  { %9251 = vpow2.f32 %v6043_v27 }
0x3f12   :  { %v9250_v28 = vpop.eup %9249 }
0x3f13   :  { %v6045_v38 = vsel %vm485_vm4, %v9250_v28, 0.0 }
0x3f14   :  { %6046 = vadd.xlane.f32.xlu0 %v6045_v38 }
0x3f16   :  { %v9252_v44 = vpop.eup %9251 }
0x3f17   :  { %v6048_v29 = vsel %vm485_vm4, %v9252_v44, 0.0 }
0x3f18   :  { %6049 = vadd.xlane.f32.xlu1 %v6048_v29 }
0x3f9d   :  { %v6047_v30 = vpop.xlane.xlu0 %6046 }
0x3f9e   :  { %9253 = vrcp.f32 %v6047_v30 }
0x3fa1   :  { %v6050_v31 = vpop.xlane.xlu1 %6049 }
0x3fa2   :  { %9255 = vrcp.f32 %v6050_v31 }
0x3fab   :  { %v9254_v32 = vpop.eup %9253 }
0x3fac   :  { %v6053_v40 = vmul.f32 %v9254_v32, %v9250_v28 }
0x3faf   :  { %v9256_v35 = vpop.eup %9255 }
0x3fb0   :  { %v6054_v43 = vmul.f32 %v9256_v35, %v9252_v44 }
0x3fb2   :  { %v6055_v46 = vpack.c.bf16 %v6054_v43, %v6053_v40 }
0x3fb4   :  { %8801 = vmatmul.mubr.msk.bf16.vlgmr.msra.gmra.mxu1 %vm485_vm4, %v6055_v46 }
0x3fb5   :  { %8811 = vmatpush3.bf16.msra.mxu1 %v9075_v45  ;;  %8812 = vmatprep.mubr.msk.bf16.mxu1 %vm9307_vm0, %v9306_v1 }
0x3fb6   :  { %8824 = vmatprep.subr.bf16.mxu1 %v9306_v1 }
0x3fbc   :  { %8813 = vmatmul.mubr.msk.bf16.vlgmr.msra.gmra.mxu1 %vm485_vm4, %v5806_v9 }
0x3fbd   :  { %8825 = vmatpush3.bf16.msra.mxu1 %v9076_v47  ;;  %8828 = vmatprep.mubr.msk.bf16.mxu1 %vm9307_vm0, %v9306_v1 }
0x3fbe   :  { %8826 = vmatprep.subr.bf16.mxu1 %v9306_v1 }
0x3fc1   :  { %8827 = vmatpush3.bf16.msra.mxu1 %v9077_v51 }
0x3fc2   :  { %8840 = vmatprep.subr.bf16.mxu1 %v9306_v1 }
0x3fc4   :  { %8829 = vmatmul.mubr.msk.bf16.vlgmr.msra.gmra.mxu1 %vm74_vm2, %v10635_v58 }
0x3fc5   :  { %8842 = vmatprep.mubr.msk.bf16.mxu1 %vm9307_vm0, %v9306_v1 }
0x4074   :  { %v6094_v53 = vpop.f32.mrf.mxu1 }
0x4076   :  { %v8802_v55 = vpop.f32.mrf.mxu1 }
0x4077   :  { %v9083_v55 = vld [vmem:[%s10989_s7 + $0x78] sm:$0xff]  }
0x4078   :  { %v6097_v39 = vpop.f32.mrf.mxu1 }
0x4079   :  { %v6103_v16 = vpack.c.bf16 %v6097_v39, %v6094_v53 }
0x407a   :  { %v8803_v57 = vpop.f32.mrf.mxu1 }
0x407b   :  { %8807 = vmatmul.mubr.msk.bf16.vlgmr.msra.gmra.mxu0 %vm485_vm4, %v6103_v16  ;;  %v9085_v16 = vld [vmem:[%s10991_s9 + $0x78] sm:$0xff]   ;;  %v9086_v57 = vld [vmem:[%s10991_s9 + $0x70] sm:$0xff]  }
0x407c   :  { %v10763_v60 = vpop.f32.mrf.mxu1  ;;  %8817 = vmatpush3.bf16.msra.mxu0 %v9079_v22  ;;  %8820 = vmatprep.mubr.msk.bf16.mxu0 %vm9307_vm0, %v9306_v1  ;;  %v9084_v22 = vld [vmem:[%s10989_s7 + $0x70] sm:$0xff]  }
0x407d   :  { %8818 = vmatprep.subr.bf16.mxu0 %v9306_v1 }
0x407e   :  { %v8814_v17 = vpop.f32.mrf.mxu1 }
0x4080   :  { %v10771_v2 = vpop.f32.mrf.mxu1  ;;  %8819 = vmatpush3.bf16.msra.mxu0 %v9080_v61  ;;  %v9087_v61 = vld [vmem:[%s10992_s10 + $0x30] sm:$0xff]  }
0x4081   :  { %8832 = vmatprep.subr.bf16.mxu0 %v9306_v1 }
0x4082   :  { %v8815_v34 = vpop.f32.mrf.mxu1 }
0x4083   :  { %8821 = vmatmul.mubr.msk.bf16.vlgmr.msra.gmra.mxu0 %vm74_vm2, %v10635_v58 }
0x4084   :  { %v6311_v3 = vpop.f32.mrf.mxu1  ;;  %8833 = vmatpush3.bf16.msra.mxu0 %v9081_v24  ;;  %8836 = vmatprep.mubr.msk.bf16.mxu0 %vm9307_vm0, %v9306_v1 }
0x4085   :  { %8834 = vmatprep.subr.bf16.mxu0 %v9306_v1 }
0x4086   :  { %v8830_v6 = vpop.f32.mrf.mxu1 }
0x4088   :  { %v6314_v7 = vpop.f32.mrf.mxu1  ;;  %8835 = vmatpush3.bf16.msra.mxu0 %v9082_v5 }
0x4089   :  { %v6376_v37 = vpack.c.bf16 %v6314_v7, %v6311_v3  ;;  %8846 = vmatprep.subr.bf16.mxu0 %v9306_v1  ;;  %v9088_v3 = vld [vmem:[%s10990_s8 + $0x78] sm:$0xff]  }
0x408a   :  { %v8831_v9 = vpop.f32.mrf.mxu1 }
0x408b   :  { %v6381_v11 = vsel %vm485_vm4, %v6376_v37, 0  ;;  %8837 = vmatmul.mubr.msk.bf16.vlgmr.msra.gmra.mxu0 %vm74_vm2, %v10635_v58  ;;  %v9089_v37 = vld [vmem:[%s10990_s8 + $0x70] sm:$0xff]  }
0x408c   :  { %8841 = vmatpush3.bf16.xpose.msra.mxu1 %v6381_v11  ;;  %8848 = vmatprep.mubr.msk.bf16.mxu0 %vm9307_vm0, %v9306_v1 }
0x408d   :  { %8852 = vmatprep.subr.bf16.mxu1 %v9306_v1 }
0x413b   :  { %v10792_v12 = vpop.f32.mrf.mxu0 }
0x413d   :  { %v8808_v54 = vpop.f32.mrf.mxu0 }
0x413f   :  { %v10794_v13 = vpop.f32.mrf.mxu0 }
0x4141   :  { %v8809_v0 = vpop.f32.mrf.mxu0 }
0x4143   :  { %v6254_v33 = vpop.f32.mrf.mxu0 }
0x4145   :  { %v8822_v41 = vpop.f32.mrf.mxu0 }
0x4147   :  { %v6257_v14 = vpop.f32.mrf.mxu0 }
0x4148   :  { %v6375_v48 = vpack.c.bf16 %v6257_v14, %v6254_v33 }
0x4149   :  { %v8823_v10 = vpop.f32.mrf.mxu0 }
0x414a   :  { %8843 = vmatmul.mubr.msk.bf16.vlgmr.msra.gmra.mxu1 %vm485_vm4, %v6375_v48 }
0x414b   :  { %v6368_v50 = vpop.f32.mrf.mxu0  ;;  %8854 = vmatprep.mubr.msk.bf16.mxu1 %vm9307_vm0, %v9306_v1  ;;  %8853 = vmatpush3.bf16.msra.mxu1 %v9087_v61 }
0x414c   :  { %8866 = vmatprep.subr.bf16.mxu1 %v9306_v1 }
0x414d   :  { %v8838_v59 = vpop.f32.mrf.mxu0 }
0x414f   :  { %v6371_v19 = vpop.f32.mrf.mxu0 }
0x4150   :  { %v6451_v20 = vpack.c.bf16 %v6371_v19, %v6368_v50  ;;  %v6198_v50 = vadd.f32 %v10763_v60, %v10792_v12 }
0x4151   :  { %v8839_v8 = vpop.f32.mrf.mxu0 }
0x4152   :  { %8847 = vmatpush3.bf16.msra.mxu0 %v6451_v20 }
0x4153   :  { %8858 = vmatprep.subr.bf16.mxu0 %v9306_v1 }
0x420a   :  { %v6417_v62 = vpop.f32.mrf.mxu1 }
0x420b   :  { %v6424_v23 = vmul.f32 0.25, %v6417_v62 }
0x420c   :  { %v8844_v25 = vpop.f32.mrf.mxu1 }
0x420d   :  { %v6426_v26 = vsel %vm9583_vm5, %v6424_v23, -1e+30 }
0x420e   :  { %v6420_v4 = vpop.f32.mrf.mxu1  ;;  %v6428_v56 = vsel %vm485_vm4, %v6426_v26, -inf }
0x420f   :  { %v6425_v36 = vmul.f32 0.25, %v6420_v4  ;;  %6429 = vmax.xlane.f32.xlu0 %v6428_v56 }
0x4210   :  { %v8845_v63 = vpop.f32.mrf.mxu1 }
0x4211   :  { %v6427_v21 = vsel %vm9593_vm6, %v6425_v36, -1e+30 }
0x4212   :  { %v6431_v27 = vsel %vm485_vm4, %v6427_v21, -inf }
0x4213   :  { %6432 = vmax.xlane.f32.xlu1 %v6431_v27 }
0x4298   :  { %v6430_v28 = vpop.xlane.xlu0 %6429 }
0x4299   :  { %v6434_v38 = vsub.f32 %v6426_v26, %v6430_v28 }
0x429b   :  { %v6436_v44 = vmul.f32 1.442695, %v6434_v38 }
0x429c   :  { %v6433_v29 = vpop.xlane.xlu1 %6432 }
0x429d   :  { %9257 = vpow2.f32 %v6436_v44  ;;  %v6435_v30 = vsub.f32 %v6427_v21, %v6433_v29 }
0x429f   :  { %v6438_v31 = vmul.f32 1.442695, %v6435_v30 }
0x42a1   :  { %9259 = vpow2.f32 %v6438_v31 }
0x42aa   :  { %v9258_v32 = vpop.eup %9257 }
0x42ab   :  { %v6440_v35 = vsel %vm485_vm4, %v9258_v32, 0.0 }
0x42ac   :  { %6441 = vadd.xlane.f32.xlu0 %v6440_v35 }
0x42ae   :  { %v9260_v40 = vpop.eup %9259 }
0x42af   :  { %v6443_v43 = vsel %vm485_vm4, %v9260_v40, 0.0 }
0x42b0   :  { %6444 = vadd.xlane.f32.xlu1 %v6443_v43 }
0x4335   :  { %v6442_v45 = vpop.xlane.xlu0 %6441 }
0x4336   :  { %9261 = vrcp.f32 %v6442_v45 }
0x4339   :  { %v6445_v46 = vpop.xlane.xlu1 %6444 }
0x433a   :  { %9263 = vrcp.f32 %v6445_v46 }
0x4343   :  { %v9262_v47 = vpop.eup %9261 }
0x4344   :  { %v6448_v52 = vmul.f32 %v9262_v47, %v9258_v32 }
0x4347   :  { %v9264_v51 = vpop.eup %9263 }
0x4348   :  { %v6449_v53 = vmul.f32 %v9264_v51, %v9260_v40 }
0x434a   :  { %v6450_v39 = vpack.c.bf16 %v6449_v53, %v6448_v52 }
0x434c   :  { %8849 = vmatmul.mubr.msk.bf16.vlgmr.msra.gmra.mxu0 %vm485_vm4, %v6450_v39 }
0x434d   :  { %8859 = vmatpush3.bf16.msra.mxu0 %v9083_v55  ;;  %8862 = vmatprep.mubr.msk.bf16.mxu0 %vm9307_vm0, %v9306_v1 }
0x434e   :  { %8860 = vmatprep.subr.bf16.mxu0 %v9306_v1 }
0x4351   :  { %8861 = vmatpush3.bf16.msra.mxu0 %v9084_v22 }
0x4352   :  { %8874 = vmatprep.subr.bf16.mxu0 %v9306_v1 }
0x4354   :  { %8863 = vmatmul.mubr.msk.bf16.vlgmr.msra.gmra.mxu0 %vm74_vm2, %v10635_v58 }
0x4355   :  { %8875 = vmatpush3.bf16.msra.mxu0 %v9085_v16  ;;  %8878 = vmatprep.mubr.msk.bf16.mxu0 %vm9307_vm0, %v9306_v1  ;;  %v9090_v16 = vld [vmem:[%s10992_s10 + $0x38] sm:$0xff]  }
0x4356   :  { %8876 = vmatprep.subr.bf16.mxu0 %v9306_v1 }
0x4359   :  { %8877 = vmatpush3.bf16.msra.mxu0 %v9086_v57 }
0x435a   :  { %8888 = vmatprep.subr.bf16.mxu0 %v9306_v1 }
0x435c   :  { %8879 = vmatmul.mubr.msk.bf16.vlgmr.msra.gmra.mxu0 %vm74_vm2, %v10635_v58 }
0x435d   :  { %8890 = vmatprep.mubr.msk.bf16.mxu0 %vm9307_vm0, %v9306_v1 }
0x440c   :  { %v6489_v17 = vpop.f32.mrf.mxu0 }
0x440e   :  { %v8850_v24 = vpop.f32.mrf.mxu0 }
0x4410   :  { %v6492_v34 = vpop.f32.mrf.mxu0 }
0x4411   :  { %v6498_v5 = vpack.c.bf16 %v6492_v34, %v6489_v17 }
0x4412   :  { %v8851_v6 = vpop.f32.mrf.mxu0 }
0x4413   :  { %8855 = vmatmul.mubr.msk.bf16.vlgmr.msra.gmra.mxu1 %vm485_vm4, %v6498_v5 }
0x4414   :  { %v6601_v7 = vpop.f32.mrf.mxu0  ;;  %8867 = vmatpush3.bf16.msra.mxu1 %v9088_v3  ;;  %8870 = vmatprep.mubr.msk.bf16.mxu1 %vm9307_vm0, %v9306_v1 }
0x4415   :  { %8868 = vmatprep.subr.bf16.mxu1 %v9306_v1 }
0x4416   :  { %v8864_v9 = vpop.f32.mrf.mxu0 }
0x4418   :  { %v6604_v11 = vpop.f32.mrf.mxu0  ;;  %8869 = vmatpush3.bf16.msra.mxu1 %v9089_v37 }
0x4419   :  { %v6722_v54 = vpack.c.bf16 %v6604_v11, %v6601_v7  ;;  %8882 = vmatprep.subr.bf16.mxu1 %v9306_v1 }
0x441a   :  { %v8865_v0 = vpop.f32.mrf.mxu0 }
0x441b   :  { %8871 = vmatmul.mubr.msk.bf16.vlgmr.msra.gmra.mxu1 %vm74_vm2, %v10635_v58  ;;  %v6201_v58 = vadd.f32 %v10771_v2, %v10794_v13 }
0x441c   :  { %v6715_v33 = vpop.f32.mrf.mxu0  ;;  %8884 = vmatprep.mubr.msk.bf16.mxu1 %vm9307_vm0, %v9306_v1 }
0x441e   :  { %v8880_v41 = vpop.f32.mrf.mxu0 }
0x4420   :  { %v6718_v14 = vpop.f32.mrf.mxu0 }
0x4421   :  { %v6798_v48 = vpack.c.bf16 %v6718_v14, %v6715_v33 }
0x4422   :  { %v8881_v10 = vpop.f32.mrf.mxu0 }
0x4423   :  { %8889 = vmatpush3.bf16.msra.mxu0 %v6798_v48 }
0x4424   :  { %8900 = vmatprep.subr.bf16.mxu0 %v9306_v1 }
0x44d3   :  { %v6542_v59 = vpop.f32.mrf.mxu1 }
0x44d4   :  { %v10857_v19 = vadd.f32 %v6542_v59, %v6198_v50 }
0x44d5   :  { %v8856_v20 = vpop.f32.mrf.mxu1 }
0x44d7   :  { %v6545_v8 = vpop.f32.mrf.mxu1 }
0x44d8   :  { %v10861_v62 = vadd.f32 %v6545_v8, %v6201_v58  ;;  %v9091_v58 = vld [vmem:[%s10995_s13 + $0x18] sm:$0xff]   ;;  %v9092_v8 = vld [vmem:[%s10995_s13 + $0x10] sm:$0xff]  }
0x44d9   :  { %v8857_v23 = vpop.f32.mrf.mxu1 }
0x44db   :  { %v6658_v25 = vpop.f32.mrf.mxu1 }
0x44dd   :  { %v8872_v26 = vpop.f32.mrf.mxu1 }
0x44df   :  { %v6661_v4 = vpop.f32.mrf.mxu1 }
0x44e0   :  { %v6723_v56 = vpack.c.bf16 %v6661_v4, %v6658_v25 }
0x44e1   :  { %v8873_v36 = vpop.f32.mrf.mxu1 }
0x44e2   :  { %v6728_v63 = vsel %vm485_vm4, %v6723_v56, 0 }
0x44e3   :  { %8883 = vmatpush3.bf16.xpose.msra.mxu1 %v6728_v63 }
0x44e4   :  { %8894 = vmatprep.subr.bf16.mxu1 %v9306_v1 }
0x44ea   :  { %8885 = vmatmul.mubr.msk.bf16.vlgmr.msra.gmra.mxu1 %vm485_vm4, %v6722_v54 }
0x44eb   :  { %8896 = vmatprep.mubr.msk.bf16.mxu1 %vm9307_vm0, %v9306_v1  ;;  %8895 = vmatpush3.bf16.msra.mxu1 %v9090_v16 }
0x44ec   :  { %8908 = vmatprep.subr.bf16.mxu1 %v9306_v1 }
0x45aa   :  { %v6764_v60 = vpop.f32.mrf.mxu1 }
0x45ab   :  { %v6771_v2 = vmul.f32 0.25, %v6764_v60  ;;  %v7771_v60 = vld [vmem:[%s10993_s11 + $0x1] ss:$0 sm:$0xff] }
0x45ac   :  { %v8886_v12 = vpop.f32.mrf.mxu1 }
0x45ad   :  { %v6773_v13 = vsel %vm9583_vm5, %v6771_v2, -1e+30 }
0x45ae   :  { %v6767_v21 = vpop.f32.mrf.mxu1  ;;  %v6775_v27 = vsel %vm485_vm4, %v6773_v13, -inf }
0x45af   :  { %v6772_v28 = vmul.f32 0.25, %v6767_v21  ;;  %6776 = vmax.xlane.f32.xlu0 %v6775_v27  ;;  %v7772_v21 = vld [vmem:[%s10994_s12 + $0x1] ss:$0 sm:$0xff] }
0x45b0   :  { %v8887_v38 = vpop.f32.mrf.mxu1 }
0x45b1   :  { %v6774_v44 = vsel %vm9593_vm6, %v6772_v28, -1e+30 }
0x45b2   :  { %v6778_v29 = vsel %vm485_vm4, %v6774_v44, -inf }
0x45b3   :  { %6779 = vmax.xlane.f32.xlu1 %v6778_v29  ;;  %v9093_v29 = vld [vmem:[%s10997_s15 + $0x78] sm:$0xff]  }
0x4638   :  { %v6777_v30 = vpop.xlane.xlu0 %6776 }
0x4639   :  { %v6781_v31 = vsub.f32 %v6773_v13, %v6777_v30  ;;  %v9094_v30 = vld [vmem:[%s10997_s15 + $0x70] sm:$0xff]  }
0x463b   :  { %v6783_v32 = vmul.f32 1.442695, %v6781_v31  ;;  %v9095_v31 = vld [vmem:[%s10997_s15 + $0x68] sm:$0xff]  }
0x463c   :  { %v6780_v35 = vpop.xlane.xlu1 %6779 }
0x463d   :  { %9265 = vpow2.f32 %v6783_v32  ;;  %v6782_v40 = vsub.f32 %v6774_v44, %v6780_v35  ;;  %v9096_v32 = vld [vmem:[%s10997_s15 + $0x60] sm:$0xff]   ;;  %v9097_v35 = vld [vmem:[%s10997_s15 + $0x58] sm:$0xff]  }
0x463f   :  { %v6785_v42 = vmul.f32 1.442695, %v6782_v40  ;;  %v9098_v40 = vld [vmem:[%s10997_s15 + $0x50] sm:$0xff]  }
0x4641   :  { %9267 = vpow2.f32 %v6785_v42  ;;  %v9099_v42 = vld [vmem:[%s10997_s15 + $0x48] sm:$0xff]  }
0x464a   :  { %v9266_v43 = vpop.eup %9265 }
0x464b   :  { %v6787_v45 = vsel %vm485_vm4, %v9266_v43, 0.0 }
0x464c   :  { %6788 = vadd.xlane.f32.xlu0 %v6787_v45  ;;  %v7778_v45 = vld [vmem:[%s10996_s14 + $0x1] ss:$0 sm:$0xff] }
0x464e   :  { %v9268_v46 = vpop.eup %9267 }
0x464f   :  { %v6790_v47 = vsel %vm485_vm4, %v9268_v46, 0.0 }
0x4650   :  { %6791 = vadd.xlane.f32.xlu1 %v6790_v47 }
0x46d5   :  { %v6789_v49 = vpop.xlane.xlu0 %6788 }
0x46d6   :  { %9269 = vrcp.f32 %v6789_v49 }
0x46d9   :  { %v6792_v51 = vpop.xlane.xlu1 %6791 }
0x46da   :  { %9271 = vrcp.f32 %v6792_v51 }
0x46e3   :  { %v9270_v52 = vpop.eup %9269 }
0x46e4   :  { %v6795_v55 = vmul.f32 %v9270_v52, %v9266_v43  ;;  %v9100_v43 = vld [vmem:[%s10997_s15 + $0x40] sm:$0xff]  }
0x46e7   :  { %v9272_v53 = vpop.eup %9271 }
0x46e8   :  { %v6796_v39 = vmul.f32 %v9272_v53, %v9268_v46 }
0x46ea   :  { %v6797_v22 = vpack.c.bf16 %v6796_v39, %v6795_v55 }
0x46ec   :  { %8891 = vmatmul.mubr.msk.bf16.vlgmr.msra.gmra.mxu0 %vm485_vm4, %v6797_v22 }
0x46ed   :  { %8904 = vmatprep.mubr.msk.bf16.mxu0 %vm9307_vm0, %v9306_v1  ;;  %8901 = vmatpush3.bf16.msra.mxu0 %v9091_v58 }
0x46ee   :  { %8902 = vmatprep.subr.bf16.mxu0 %v9306_v1 }
0x46f1   :  { %8903 = vmatpush3.bf16.msra.mxu0 %v9092_v8 }
0x46f2   :  { %8928 = vmatprep.subr.bf16.mxu0 %v9306_v1 }
0x47ac   :  { %v6836_v57 = vpop.f32.mrf.mxu0 }
0x47ae   :  { %v8892_v61 = vpop.f32.mrf.mxu0 }
0x47b0   :  { %v6839_v17 = vpop.f32.mrf.mxu0 }
0x47b1   :  { %v6845_v24 = vpack.c.bf16 %v6839_v17, %v6836_v57 }
0x47b2   :  { %v8893_v34 = vpop.f32.mrf.mxu0 }
0x47b3   :  { %8897 = vmatmul.mubr.msk.bf16.vlgmr.msra.gmra.mxu1 %vm485_vm4, %v6845_v24 }
0x47b4   :  { %8924 = vmatprep.mubr.msk.bf16.mxu1 %vm9307_vm0, %v9306_v1  ;;  %8909 = vmatpush3.bf16.msra.mxu1 %v9093_v29 }
0x47b5   :  { %8910 = vmatprep.subr.bf16.mxu1 %v9306_v1 }
0x47b8   :  { %8911 = vmatpush3.bf16.msra.mxu1 %v9094_v30 }
0x47b9   :  { %8912 = vmatprep.subr.bf16.mxu1 %v9306_v1 }
0x47bc   :  { %8913 = vmatpush3.bf16.msra.mxu1 %v9095_v31 }
0x47bd   :  { %8914 = vmatprep.subr.bf16.mxu1 %v9306_v1 }
0x47c0   :  { %8915 = vmatpush3.bf16.msra.mxu1 %v9096_v32 }
0x47c1   :  { %8916 = vmatprep.subr.bf16.mxu1 %v9306_v1 }
0x47c4   :  { %8917 = vmatpush3.bf16.msra.mxu1 %v9097_v35 }
0x47c5   :  { %8918 = vmatprep.subr.bf16.mxu1 %v9306_v1 }
0x47c8   :  { %8919 = vmatpush3.bf16.msra.mxu1 %v9098_v40 }
0x47c9   :  { %8920 = vmatprep.subr.bf16.mxu1 %v9306_v1 }
0x47cc   :  { %8921 = vmatpush3.bf16.msra.mxu1 %v9099_v42 }
0x47cd   :  { %8922 = vmatprep.subr.bf16.mxu1 %v9306_v1 }
0x47d0   :  { %8923 = vmatpush3.bf16.msra.mxu1 %v9100_v43 }
0x4873   :  { %v6889_v3 = vpop.f32.mrf.mxu1 }
0x4874   :  { %v6896_v5 = vadd.f32 %v6889_v3, %v10857_v19 }
0x4875   :  { %v8898_v6 = vpop.f32.mrf.mxu1 }
0x4876   :  { %v10888_v7 = vadd.f32 %v6896_v5, %v10605_v18 }
0x4877   :  { %v6892_v37 = vpop.f32.mrf.mxu1 }
0x4878   :  { %v6897_v9 = vadd.f32 %v6892_v37, %v10861_v62  ;;  %v6902_v11 = vsel %vm74_vm2, %v10888_v7, 0.0 }
0x4879   :  { %6903 = vadd.xlane.f32.xlu0 %v6902_v11  ;;  %v8899_v54 = vpop.f32.mrf.mxu1 }
0x487a   :  { %v10894_v0 = vadd.f32 %v6897_v9, %v10610_v15 }
0x487c   :  { %v6905_v33 = vsel %vm74_vm2, %v10894_v0, 0.0 }
0x487d   :  { %6906 = vadd.xlane.f32.xlu1 %v6905_v33 }
0x4902   :  { %v6904_v41 = vpop.xlane.xlu0 %6903 }
0x4903   :  { %v6908_v14 = vmul.f32 0.03125, %v6904_v41 }
0x4905   :  { %v6910_v18 = vsub.f32 %v10888_v7, %v6908_v14 }
0x4906   :  { %v6907_v48 = vpop.xlane.xlu1 %6906 }
0x4907   :  { %v6909_v10 = vmul.f32 0.03125, %v6907_v48  ;;  %v6912_v50 = vmul.f32 %v6910_v18, %v6910_v18  ;;  %v7807_v48 = vld [vmem:[%s10998_s16 + $0x1] ss:$0 sm:$0xff] }
0x4909   :  { %v6911_v59 = vsub.f32 %v10894_v0, %v6909_v10  ;;  %v6914_v19 = vsel %vm74_vm2, %v6912_v50, 0.0 }
0x490a   :  { %6915 = vadd.xlane.f32.xlu0 %v6914_v19 }
0x490b   :  { %v6913_v20 = vmul.f32 %v6911_v59, %v6911_v59 }
0x490d   :  { %v6917_v15 = vsel %vm74_vm2, %v6913_v20, 0.0 }
0x490e   :  { %6918 = vadd.xlane.f32.xlu1 %v6917_v15 }
0x4993   :  { %v6916_v62 = vpop.xlane.xlu0 %6915 }
0x4994   :  { %v6920_v23 = vmul.f32 0.03125, %v6916_v62 }
0x4996   :  { %v6922_v25 = vadd.f32 1e-05, %v6920_v23 }
0x4997   :  { %v6919_v26 = vpop.xlane.xlu1 %6918 }
0x4998   :  { %9273 = vrsqrt.f32 %v6922_v25  ;;  %v6921_v4 = vmul.f32 0.03125, %v6919_v26 }
0x499a   :  { %v6923_v56 = vadd.f32 1e-05, %v6921_v4 }
0x499c   :  { %9275 = vrsqrt.f32 %v6923_v56  ;;  %v9101_v56 = vld [vmem:[%s11001_s19 + $0x8] sm:$0xff]  }
0x49a5   :  { %v9274_v36 = vpop.eup %9273 }
0x49a6   :  { %v6926_v63 = vmul.f32 %v9274_v36, %v6910_v18 }
0x49a8   :  { %v6934_v12 = vmul.f32 %v7771_v60, %v6926_v63 }
0x49a9   :  { %v9276_v2 = vpop.eup %9275 }
0x49aa   :  { %v6927_v13 = vmul.f32 %v9276_v2, %v6911_v59  ;;  %v6942_v28 = vadd.f32 %v7772_v21, %v6934_v12  ;;  %v7808_v12 = vld [vmem:[%s10999_s17] ss:$0 sm:$0xff] }
0x49ac   :  { %v6935_v27 = vmul.f32 %v7771_v60, %v6927_v13 }
0x49ae   :  { %v6943_v38 = vadd.f32 %v7772_v21, %v6935_v27  ;;  %v7809_v21 = vld [vmem:[%s11000_s18] ss:$0 sm:$0xff] }
0x49b0   :  { %v6948_v44 = vpack.c.bf16 %v6943_v38, %v6942_v28  ;;  %v7810_v38 = vld [vmem:[%s11002_s20] ss:$0 sm:$0xff] }
0x49b2   :  { %8905 = vmatmul.mubr.msk.bf16.vlgmr.msra.gmra.mxu0 %vm74_vm2, %v6948_v44 }
0x49b3   :  { %8932 = vmatprep.mubr.msk.bf16.mxu0 %vm9307_vm0, %v9306_v1  ;;  %8929 = vmatpush3.bf16.msra.mxu0 %v9101_v56 }
0x49b4   :  { %8930 = vmatprep.subr.bf16.mxu0 %v9306_v1 }
0x4a72   :  { %v7005_v46 = vpop.f32.mrf.mxu0 }
0x4a73   :  { %v7006_v47 = vadd.f32 %v7778_v45, %v7005_v46 }
0x4a74   :  { %v8906_v49 = vpop.f32.mrf.mxu0 }
0x4a75   :  { %v7012_v51 = vmul.f32 %v7006_v47, %v7006_v47 }
0x4a76   :  { %v7008_v52 = vpop.f32.mrf.mxu0 }
0x4a77   :  { %v7014_v53 = vmul.f32 %v7012_v51, %v7006_v47  ;;  %v7009_v55 = vadd.f32 %v7778_v45, %v7008_v52 }
0x4a78   :  { %v8907_v39 = vpop.f32.mrf.mxu0 }
0x4a79   :  { %v7016_v22 = vmul.f32 0.044715, %v7014_v53  ;;  %v7013_v16 = vmul.f32 %v7009_v55, %v7009_v55 }
0x4a7b   :  { %v7018_v57 = vadd.f32 %v7016_v22, %v7006_v47  ;;  %v7015_v61 = vmul.f32 %v7013_v16, %v7009_v55 }
0x4a7d   :  { %v7020_v17 = vmul.f32 0.7978846, %v7018_v57  ;;  %v7017_v24 = vmul.f32 0.044715, %v7015_v61 }
0x4a7f   :  { %9277 = vtanh.f32 %v7020_v17  ;;  %v7019_v34 = vadd.f32 %v7017_v24, %v7009_v55 }
0x4a81   :  { %v7021_v3 = vmul.f32 0.7978846, %v7019_v34 }
0x4a83   :  { %9279 = vtanh.f32 %v7021_v3 }
0x4a8c   :  { %v9278_v5 = vpop.eup %9277 }
0x4a8d   :  { %v7024_v6 = vadd.f32 1.0, %v9278_v5 }
0x4a8f   :  { %v7026_v9 = vmul.f32 0.5, %v7024_v6 }
0x4a90   :  { %v9280_v37 = vpop.eup %9279 }
0x4a91   :  { %v7025_v11 = vadd.f32 1.0, %v9280_v37  ;;  %v7028_v33 = vmul.f32 %v7026_v9, %v7006_v47 }
0x4a93   :  { %v7027_v54 = vmul.f32 0.5, %v7025_v11 }
0x4a95   :  { %v7029_v41 = vmul.f32 %v7027_v54, %v7009_v55 }
0x4a97   :  { %v7046_v14 = vpack.c.bf16 %v7029_v41, %v7028_v33 }
0x4a99   :  { %8925 = vmatmul.mubr.bf16.vlgmr.msra.gmra.mxu1 %v7046_v14 }
0x4b59   :  { %v7129_v18 = vpop.f32.mrf.mxu1 }
0x4b5a   :  { %v7136_v10 = vadd.f32 %v7129_v18, %v10888_v7 }
0x4b5b   :  { %v8926_v50 = vpop.f32.mrf.mxu1 }
0x4b5c   :  { %v7145_v59 = vadd.f32 %v7807_v48, %v7136_v10 }
0x4b5d   :  { %v7132_v19 = vpop.f32.mrf.mxu1 }
0x4b5e   :  { %7147 = vst.msk [vmem:[#allocation2 + $0x10] sm:$0xff] %vm74_vm2, %v7145_v59  ;;  %v7137_v20 = vadd.f32 %v7132_v19, %v10894_v0  ;;  %v9102_v0 = vld [vmem:[%s11001_s19] sm:$0xff]   ;;  %s9308_s19 = smov [#allocation3]  }
0x4b5f   :  { %v8927_v15 = vpop.f32.mrf.mxu1  ;;  %8931 = vmatpush3.bf16.msra.mxu0 %v9102_v0  ;;  %s7253_s11 = sshll.u32 %s9308_s19, 4  ;;  %s7254_s11 = int_to_ptr.vmem [resolvable:$true] %s7253_s11 }
0x4b60   :  { %v7146_v58 = vadd.f32 %v7807_v48, %v7137_v20  ;;  %s9284_s17 = scalar_lea.vmem %s7254_s11, 256  ;;  %p9289_p1 = scmp.lt.s32.totalorder %s7254_s11, %s7254_s11 }
0x4b61   :  { %p9285_p0 = scmp.ne.s32.totalorder %s7254_s11, %s9284_s17  ;;  %p9290_p2 = scmp.lt.s32.totalorder %s9284_s17, %s9284_s17 }
0x4b62   :  { %7148 = vst.msk [vmem:[#allocation2 + $0x18] sm:$0xff] %vm74_vm2, %v7146_v58 }
0x4b63   :  { %p9291_p3 = por %p9290_p2, %p9289_p1 }
0x4b65   :  { %p9292_p4 = pnand %p9291_p3, %p9285_p0 }
0x4b69   :  { %v7149_v8 = vld [vmem:[#allocation2 + $0x17] sm:$0xff] }
0x4b6a   :  { %v7152_v62 = vsel %vm74_vm2, %v7149_v8, 0.0 }
0x4b6b   :  { %7153 = vadd.xlane.f32.xlu0 %v7152_v62 }
0x4bf4   :  { %v7154_v23 = vpop.xlane.xlu0 %7153 }
0x4bf5   :  { %v7155_v25 = vmul.f32 0.03125, %v7154_v23 }
0x4bf7   :  { %v7156_v26 = vsub.f32 %v7149_v8, %v7155_v25 }
0x4bf9   :  { %v7157_v4 = vmul.f32 %v7156_v26, %v7156_v26 }
0x4bfb   :  { %v7158_v7 = vsel %vm74_vm2, %v7157_v4, 0.0 }
0x4bfc   :  { %7159 = vadd.xlane.f32.xlu1 %v7158_v7 }
0x4c85   :  { %v7160_v36 = vpop.xlane.xlu1 %7159 }
0x4c86   :  { %v7161_v63 = vmul.f32 0.03125, %v7160_v36 }
0x4c88   :  { %v7162_v60 = vadd.f32 1e-05, %v7161_v63 }
0x4c8a   :  { %9281 = vrsqrt.f32 %v7162_v60 }
0x4c97   :  { %v9282_v2 = vpop.eup %9281 }
0x4c98   :  { %v7164_v13 = vmul.f32 %v9282_v2, %v7156_v26 }
0x4c9a   :  { %v7171_v1 = vmul.f32 %v7808_v12, %v7164_v13 }
0x4c9c   :  { %v7178_v27 = vadd.f32 %v7809_v21, %v7171_v1 }
0x4c9e   :  { %v7183_v28 = vpack.c.bf16 %v7178_v27, %v7178_v27 }
0x4ca0   :  { %8933 = vmatmul.mubr.msk.bf16.vlgmr.msra.gmra.mxu0 %vm74_vm2, %v7183_v28 }
0x4d60   :  { %v7240_v44 = vpop.f32.mrf.mxu0 }
0x4d61   :  { %v7241_v29 = vadd.f32 %v7810_v38, %v7240_v44 }
0x4d62   :  { %v8934_v30 = vpop.f32.mrf.mxu0 }
0x4d63   :  { %7247 = vst [vmem:[#allocation3 + $0x8] sm:$0xff] %v7241_v29 }
0x4d64   :  { %v7243_v31 = vpop.f32.mrf.mxu0 }
0x4d65   :  { %9295 = shalt.err (!%p9292_p4)
}
0x4d66   :  { %s9309_s18 = smov 128   ;;  %s9310_s22 = smov 8   ;;  %v8935_v32 = vpop.f32.mrf.mxu0 }
0x4d67   :  { %7259 = dma.vmem_to_hbm [thread:$0]  %s7254_s11, 256, %s11003_s21, [#allocation4], %s9309_s18, %s9309_s18, %s9310_s22  }
0x4d68   :  { %9304 = dma.done.wait [#allocation4], 256  }
0x4d69   :  { %9305 = vsyncadd [#allocation4], 4294967040 }
0x4d6a   :  { %7263 = vsyncpa [#allocation4], 1 }

</bundles_post_ra>
